<compile_context>
chip_gen: v7x
topology: tpu7x:2x2x1
jax: 0.10.0
libtpu: 0.0.40
codegen_flags: <defaults>
</compile_context>

<pallas_src>
import functools

import jax
import jax.numpy as jnp
from jax import lax
from jax.experimental import pallas as pl
from jax.experimental.pallas import tpu as pltpu

F32 = jnp.float32
BF16 = jnp.bfloat16
_VMEM = pl.BlockSpec(memory_space=pltpu.MemorySpace.VMEM)


def _wdot(a, b):
    """Last-dim(a) x first-dim(b) contraction on the MXU: bf16 in, f32 accum."""
    return lax.dot_general(
        a.astype(BF16), b.astype(BF16),
        dimension_numbers=(((a.ndim - 1,), (0,)), ((), ())),
        preferred_element_type=F32)


# ----------------------------------------------------------------------------
# K1: attention + residual + LayerNorm1 + conv1(1x1)+ReLU   (grid over batch)
#   x: [B, L, D]  ->  attn: [B, L, L],  y: [B, L, N]   (N = d_ff = num_nodes)
# ----------------------------------------------------------------------------
def _attn_ln_conv1_kernel(x_ref, g1_ref, b1_ref, w1_ref, c1b_ref,
                          attn_ref, y_ref, *, scale):
    q = x_ref[0]                                            # [L, D]
    # scaled dot-product self-attention (exact f32: attn is an exported output)
    s = jnp.einsum("ld,md->lm", q, q, preferred_element_type=F32) * scale
    s = s - jnp.max(s, axis=-1, keepdims=True)
    e = jnp.exp(s)
    p = e / jnp.sum(e, axis=-1, keepdims=True)
    attn_ref[0] = p
    new_x = jnp.dot(p, q, preferred_element_type=F32)       # [L, D]
    # residual + LayerNorm1
    xr = q + new_x
    mu = jnp.mean(xr, axis=-1, keepdims=True)
    var = jnp.mean((xr - mu) ** 2, axis=-1, keepdims=True)
    ln = (xr - mu) * lax.rsqrt(var + 1e-5) * g1_ref[...] + b1_ref[...]
    # conv1 (1x1, D->N) + ReLU, feature-last
    y_ref[0] = jnp.maximum(_wdot(ln, w1_ref[...]) + c1b_ref[...], 0.0)


def attn_ln_conv1(x, ln1_g, ln1_b, conv1_wt, conv1_b):
    B, L, D = x.shape
    N = conv1_wt.shape[1]
    kernel = functools.partial(_attn_ln_conv1_kernel, scale=1.0 / (D ** 0.5))
    return pl.pallas_call(
        kernel,
        out_shape=(jax.ShapeDtypeStruct((B, L, L), F32),
                   jax.ShapeDtypeStruct((B, L, N), F32)),
        grid=(B,),
        in_specs=[pl.BlockSpec((1, L, D), lambda b: (b, 0, 0)),
                  pl.BlockSpec((1, D), lambda b: (0, 0)),
                  pl.BlockSpec((1, D), lambda b: (0, 0)),
                  pl.BlockSpec((D, N), lambda b: (0, 0)),
                  pl.BlockSpec((1, N), lambda b: (0, 0))],
        out_specs=(pl.BlockSpec((1, L, L), lambda b: (b, 0, 0)),
                   pl.BlockSpec((1, L, N), lambda b: (b, 0, 0))),
        compiler_params=pltpu.CompilerParams(
            dimension_semantics=("parallel",)),
    )(x, ln1_g, ln1_b, conv1_wt, conv1_b)


# ----------------------------------------------------------------------------
# K2: graph constructor + 6-layer LSTM stack + fc projection (all VMEM-resident)
#   y_t: [L, B, N]  ->  hc_t: [L, B, N], adp/an1/an2: [N, N], gsum: [1, 1]
#   PyTorch LSTM gate order (i, f, g, o); b = b_ih + b_hh folded; h0 = c0 = 0.
# ----------------------------------------------------------------------------
def _lstm_graph_kernel(*args, num_layers, seq_len, hid, alpha, thresh, n_nodes):
    (y_ref, fc_wt_ref, fc_b_ref,
     e1_ref, e2_ref, gw1_ref, gb1_ref, gw2_ref, gb2_ref) = args[:9]
    layer_refs = args[9:9 + 3 * num_layers]
    (hc_ref, adp_ref, gsum_ref,
     an1_ref, an2_ref) = args[9 + 3 * num_layers: 14 + 3 * num_layers]
    hall_sc = args[14 + 3 * num_layers]              # [L, B, H] scratch

    # ---- graph constructor (exact f32: adjacency is an exported output) ----
    n1 = jnp.tanh(alpha * (jnp.dot(e1_ref[...], gw1_ref[...],
                                   preferred_element_type=F32) + gb1_ref[...]))
    n2 = jnp.tanh(alpha * (jnp.dot(e2_ref[...], gw2_ref[...],
                                   preferred_element_type=F32) + gb2_ref[...]))
    m = jnp.einsum("ik,jk->ij", n1, n2, preferred_element_type=F32)
    adj = jax.nn.sigmoid(alpha * (m - m.T))          # one matmul + XLU transpose
    adj = jnp.where(adj < thresh, 0.0, adj)
    adp_ref[...] = adj
    ssum = jnp.sum(jnp.sum(adj, axis=0, keepdims=True), axis=1, keepdims=True)
    gsum_ref[...] = jnp.abs(ssum - float(n_nodes))
    # pre-normalize BOTH propagation matrices once (shared by every batch in K3)
    eye = jnp.eye(n_nodes, dtype=F32)
    ad1 = adj + eye
    an1_ref[...] = ad1 / jnp.sum(ad1, axis=1, keepdims=True)
    ad2 = adj.T + eye
    an2_ref[...] = ad2 / jnp.sum(ad2, axis=1, keepdims=True)

    # ---- 6-layer LSTM stack (time-major, statically unrolled) ----
    bsz = y_ref.shape[1]
    for k in range(num_layers):
        wih_ref, whh_ref, b_ref = layer_refs[3 * k: 3 * k + 3]
        whh = whh_ref[...]
        xin = y_ref[...] if k == 0 else hall_sc[...]
        # batched input projection for the whole layer: [L, B, 4H]
        xp = _wdot(xin, wih_ref[...]) + b_ref[...]
        h = jnp.zeros((bsz, hid), F32)
        c = jnp.zeros((bsz, hid), F32)
        for t in range(seq_len):                     # static unroll (L is small)
            gates = xp[t] + _wdot(h, whh)            # [B, 4H]
            sig = jax.nn.sigmoid(gates)              # sigmoids on the full tile
            gi = sig[:, 0:hid]
            gf = sig[:, hid:2 * hid]
            go = sig[:, 3 * hid:4 * hid]
            gg = jnp.tanh(gates[:, 2 * hid:3 * hid])
            c = gf * c + gi * gg
            h = go * jnp.tanh(c)
            hall_sc[t] = h
    # fc:  hall [L, B, H] @ fc_wt [H, N]  ->  hc [L, B, N]
    hc_ref[...] = _wdot(hall_sc[...], fc_wt_ref[...]) + fc_b_ref[...]


def lstm_graph(y_t, params, *, alpha, thresh):
    L, B, N = y_t.shape
    D = params["fc_wt"].shape[0]
    lstm_params = params["lstm"]
    num_layers = len(lstm_params)
    flat = []
    for lp in lstm_params:
        flat += [lp["wih_t"], lp["whh_t"], lp["b"]]
    kernel = functools.partial(_lstm_graph_kernel, num_layers=num_layers,
                               seq_len=L, hid=D, alpha=alpha, thresh=thresh,
                               n_nodes=N)
    return pl.pallas_call(
        kernel,
        out_shape=(jax.ShapeDtypeStruct((L, B, N), F32),   # hc_t
                   jax.ShapeDtypeStruct((N, N), F32),       # adp
                   jax.ShapeDtypeStruct((1, 1), F32),       # gsum
                   jax.ShapeDtypeStruct((N, N), F32),       # an1
                   jax.ShapeDtypeStruct((N, N), F32)),      # an2
        in_specs=[_VMEM] * (9 + 3 * num_layers),
        out_specs=(_VMEM,) * 5,
        scratch_shapes=[pltpu.VMEM((L, B, D), F32)],
    )(y_t, params["fc_wt"], params["fc_b"],
      params["emb1"], params["emb2"],
      params["gc_w1t"], params["gc_b1"], params["gc_w2t"], params["gc_b2"],
      *flat)


# ----------------------------------------------------------------------------
# K3: per-batch MixProp x2 + residual gate + conv2 + LayerNorm2 + add.
#   y, hc: [B, L, N] (node-last), an1/an2: [N, N]  ->  out: [B, L, D]
# ----------------------------------------------------------------------------
def _gcn_gate_out_kernel(y_ref, hc_ref, an1_ref, an2_ref,
                         mp1w_ref, mp1b_ref, mp2w_ref, mp2b_ref,
                         c2w_ref, c2b_ref, g2_ref, be2_ref,
                         out_ref, *, gdep, prop_alpha, n_nodes):
    hc = hc_ref[0]                                   # [L, N]  nodes on lanes
    y = y_ref[0]                                     # [L, N]

    def mixprop(an, w_ref, b_ref):
        h = hc
        acc = _wdot(h, w_ref[0:n_nodes, :])          # [L, D]
        for i in range(1, gdep + 1):
            h = prop_alpha * hc + (1.0 - prop_alpha) * _wdot(h, an)
            acc = acc + _wdot(h, w_ref[i * n_nodes:(i + 1) * n_nodes, :])
        return acc + b_ref[...]

    gx = (mixprop(an1_ref[...], mp1w_ref, mp1b_ref)
          + mixprop(an2_ref[...], mp2w_ref, mp2b_ref))

    # ---- residual gate + conv2 (1x1, N->D) + LayerNorm2 + GCN add ----
    s = y + hc
    y2 = jnp.tanh(s) * jax.nn.sigmoid(s)
    # NOTE: reference's `y = dropout(conv2(y).transpose(-1,1))` is dead code.
    y2d = _wdot(y2, c2w_ref[...]) + c2b_ref[...]     # [L, D]
    mu = jnp.mean(y2d, axis=-1, keepdims=True)
    var = jnp.mean((y2d - mu) ** 2, axis=-1, keepdims=True)
    ln = (y2d - mu) * lax.rsqrt(var + 1e-5) * g2_ref[...] + be2_ref[...]
    out_ref[0] = ln + gx


def gcn_gate_out(y, hc, an1, an2, params, *, gdep, prop_alpha):
    B, L, N = y.shape
    D = params["conv2_wt"].shape[1]
    KND = (gdep + 1) * N
    kernel = functools.partial(_gcn_gate_out_kernel, gdep=gdep,
                               prop_alpha=prop_alpha, n_nodes=N)
    const2 = lambda b: (0, 0)
    return pl.pallas_call(
        kernel,
        out_shape=jax.ShapeDtypeStruct((B, L, D), F32),
        grid=(B,),
        in_specs=[pl.BlockSpec((1, L, N), lambda b: (b, 0, 0)),   # y
                  pl.BlockSpec((1, L, N), lambda b: (b, 0, 0)),   # hc
                  pl.BlockSpec((N, N), const2),                   # an1
                  pl.BlockSpec((N, N), const2),                   # an2
                  pl.BlockSpec((KND, D), const2),                 # mp1 weight
                  pl.BlockSpec((1, D), const2),                   # mp1 bias
                  pl.BlockSpec((KND, D), const2),                 # mp2 weight
                  pl.BlockSpec((1, D), const2),                   # mp2 bias
                  pl.BlockSpec((N, D), const2),                   # conv2 weight
                  pl.BlockSpec((1, D), const2),                   # conv2 bias
                  pl.BlockSpec((1, D), const2),                   # ln2 gamma
                  pl.BlockSpec((1, D), const2)],                  # ln2 beta
        out_specs=pl.BlockSpec((1, L, D), lambda b: (b, 0, 0)),
        compiler_params=pltpu.CompilerParams(
            dimension_semantics=("parallel",)),
    )(y, hc, an1, an2,
      params["mp1_wt"], params["mp1_b"], params["mp2_wt"], params["mp2_b"],
      params["conv2_wt"], params["conv2_b"], params["ln2_g"], params["ln2_b"])


# ----------------------------------------------------------------------------
# Parameter init (deterministic, synthetic)
# ----------------------------------------------------------------------------
def init_params(key, d_model, d_ff, node_dim, num_lstm_layers=6, gdep=3):
    keys = list(jax.random.split(key, 64))
    it = iter(keys)

    def nrm(shape, scale=0.1):
        return (scale * jax.random.normal(next(it), shape)).astype(F32)

    params = dict(
        ln1_g=jnp.ones((1, d_model), F32), ln1_b=jnp.zeros((1, d_model), F32),
        ln2_g=jnp.ones((1, d_model), F32), ln2_b=jnp.zeros((1, d_model), F32),
        conv1_wt=nrm((d_model, d_ff)), conv1_b=nrm((1, d_ff)),
        conv2_wt=nrm((d_ff, d_model)), conv2_b=nrm((1, d_model)),
        fc_wt=nrm((d_model, d_ff)), fc_b=nrm((1, 1, d_ff)),
        emb1=nrm((d_ff, node_dim), 1.0), emb2=nrm((d_ff, node_dim), 1.0),
        gc_w1t=nrm((node_dim, node_dim)), gc_b1=nrm((1, node_dim)),
        gc_w2t=nrm((node_dim, node_dim)), gc_b2=nrm((1, node_dim)),
        mp1_wt=nrm(((gdep + 1) * d_ff, d_model)), mp1_b=nrm((1, d_model)),
        mp2_wt=nrm(((gdep + 1) * d_ff, d_model)), mp2_b=nrm((1, d_model)),
        lstm=[],
    )
    for k in range(num_lstm_layers):
        in_k = d_ff if k == 0 else d_model
        params["lstm"].append(dict(
            wih_t=nrm((in_k, 4 * d_model)),
            whh_t=nrm((d_model, 4 * d_model)),
            b=nrm((1, 1, 4 * d_model)),     # b_ih + b_hh folded together
        ))
    return params


# ----------------------------------------------------------------------------
# EncoderLayer forward: 3 fused Pallas kernels + two tiny layout transposes.
# ----------------------------------------------------------------------------
def encoder_layer_forward(params, x, *, tanhalpha=3.0, propalpha=0.3,
                          gcn_depth=3, graph_thresh=0.79):
    # K1: attention + residual + LN1 + conv1(+relu)   ->  attn, y [B, L, N]
    attn, y = attn_ln_conv1(x, params["ln1_g"], params["ln1_b"],
                            params["conv1_wt"], params["conv1_b"])

    # K2: graph constructor + 6-layer LSTM stack + fc  (time-major)
    y_t = jnp.transpose(y, (1, 0, 2))                # tiny [L,B,N] layout fix (XLA)
    hc_t, adp, gsum, an1, an2 = lstm_graph(y_t, params, alpha=tanhalpha,
                                           thresh=graph_thresh)
    hc = jnp.transpose(hc_t, (1, 0, 2))              # back to [B, L, N]

    # K3: per-batch MixProp x2 + gate + conv2 + LN2 + add
    out = gcn_gate_out(y, hc, an1, an2, params, gdep=gcn_depth,
                       prop_alpha=propalpha)
    return out, attn, gsum[0, 0], adp


# ----------------------------------------------------------------------------
if __name__ == "__main__":
    B, L, D_MODEL, D_FF, NODE_DIM = 2, 8, 16, 32, 10

    key = jax.random.PRNGKey(0)
    pkey, xkey = jax.random.split(key)
    params = init_params(pkey, d_model=D_MODEL, d_ff=D_FF, node_dim=NODE_DIM)
    x = jax.random.normal(xkey, (B, L, D_MODEL), dtype=F32)

    fwd = jax.jit(encoder_layer_forward)
    out, attn, gsum, adp = fwd(params, x)
    jax.block_until_ready((out, attn, gsum, adp))

    assert out.shape == (B, L, D_MODEL)
    assert attn.shape == (B, L, L)
    assert adp.shape == (D_FF, D_FF)
    assert gsum.shape == ()
    assert bool(jnp.all(jnp.isfinite(out)))
    assert bool(jnp.all(jnp.isfinite(attn)))
    assert bool(jnp.all(jnp.isfinite(adp)))
    print("KERNEL_OK")
</pallas_src>

<mosaic_0001>
module attributes {stable_mosaic.version = 11 : i64} {
  func.func @_attn_ln_conv1_kernel(%arg0: i32, %arg1: memref<1x8x16xf32, #tpu.memory_space<vmem>>, %arg2: memref<1x16xf32, #tpu.memory_space<vmem>>, %arg3: memref<1x16xf32, #tpu.memory_space<vmem>>, %arg4: memref<16x32xf32, #tpu.memory_space<vmem>>, %arg5: memref<1x32xf32, #tpu.memory_space<vmem>>, %arg6: memref<1x8x8xf32, #tpu.memory_space<vmem>>, %arg7: memref<1x8x32xf32, #tpu.memory_space<vmem>>) attributes {dimension_semantics = [#tpu.dimension_semantics<parallel>], iteration_bounds = array<i64: 2>, scalar_prefetch = 0 : i64, scratch_operands = 0 : i64, tpu.core_type = #tpu.core_type<tc>, window_params = [{transform_indices = @transform_0, window_bounds = array<i64: 1, 8, 16>}, {pipeline_mode = #tpu.pipeline_mode<synchronous>, transform_indices = @transform_1, window_bounds = array<i64: 1, 16>}, {pipeline_mode = #tpu.pipeline_mode<synchronous>, transform_indices = @transform_2, window_bounds = array<i64: 1, 16>}, {pipeline_mode = #tpu.pipeline_mode<synchronous>, transform_indices = @transform_3, window_bounds = array<i64: 16, 32>}, {pipeline_mode = #tpu.pipeline_mode<synchronous>, transform_indices = @transform_4, window_bounds = array<i64: 1, 32>}, {transform_indices = @transform_5, window_bounds = array<i64: 1, 8, 8>}, {transform_indices = @transform_6, window_bounds = array<i64: 1, 8, 32>}]} {
    %c0 = arith.constant 0 : index
    %c0_0 = arith.constant 0 : index
    %c0_1 = arith.constant 0 : index
    %0 = vector.load %arg1[%c0, %c0_0, %c0_1] : memref<1x8x16xf32, #tpu.memory_space<vmem>>, vector<1x8x16xf32>
    %1 = vector.shape_cast %0 : vector<1x8x16xf32> to vector<8x16xf32>
    "tpu.trace_start"() <{level = 10 : i32, message = "ld,md->lm"}> : () -> ()
    %cst = arith.constant dense<0.000000e+00> : vector<8x8xf32>
    %2 = tpu.matmul %1, %1, %cst {dimension_numbers = #tpu.dot_dimension_numbers<[1], [1], [0], [0], [0, 0, 1, 0], [], []>} : vector<8x16xf32>, vector<8x16xf32>, vector<8x8xf32> -> vector<8x8xf32>
    "tpu.trace_stop"() : () -> ()
    %cst_2 = arith.constant 2.500000e-01 : f32
    %3 = vector.broadcast %cst_2 : f32 to vector<8x8xf32>
    %4 = arith.mulf %2, %3 : vector<8x8xf32>
    %cst_3 = arith.constant dense<0xFF800000> : vector<8xf32>
    %5 = vector.multi_reduction <maximumf>, %4, %cst_3 [1] : vector<8x8xf32> to vector<8xf32>
    %6 = vector.shape_cast %5 : vector<8xf32> to vector<8x1xf32>
    %7 = vector.broadcast %6 : vector<8x1xf32> to vector<8x8xf32>
    %8 = arith.subf %4, %7 : vector<8x8xf32>
    %9 = math.exp %8 : vector<8x8xf32>
    %cst_4 = arith.constant dense<0.000000e+00> : vector<8xf32>
    %10 = vector.multi_reduction <add>, %9, %cst_4 [1] : vector<8x8xf32> to vector<8xf32>
    %11 = vector.shape_cast %10 : vector<8xf32> to vector<8x1xf32>
    %12 = vector.broadcast %11 : vector<8x1xf32> to vector<8x8xf32>
    %13 = arith.divf %9, %12 : vector<8x8xf32>
    %c0_5 = arith.constant 0 : index
    %c0_6 = arith.constant 0 : index
    %c0_7 = arith.constant 0 : index
    %14 = vector.load %arg6[%c0_5, %c0_6, %c0_7] : memref<1x8x8xf32, #tpu.memory_space<vmem>>, vector<1x8x8xf32>
    %15 = vector.shape_cast %14 : vector<1x8x8xf32> to vector<8x8xf32>
    %16 = vector.shape_cast %13 : vector<8x8xf32> to vector<1x8x8xf32>
    tpu.vector_store %arg6[%c0_5, %c0_6, %c0_7], %16 {strides = array<i32>} : memref<1x8x8xf32, #tpu.memory_space<vmem>>, vector<1x8x8xf32>,
    %cst_8 = arith.constant dense<0.000000e+00> : vector<8x16xf32>
    %17 = tpu.matmul %13, %1, %cst_8 {dimension_numbers = #tpu.dot_dimension_numbers<[1], [0], [0], [1], [0, 0, 1, 1], [], []>} : vector<8x8xf32>, vector<8x16xf32>, vector<8x16xf32> -> vector<8x16xf32>
    %18 = arith.addf %1, %17 : vector<8x16xf32>
    %cst_9 = arith.constant dense<0.000000e+00> : vector<8xf32>
    %19 = vector.multi_reduction <add>, %18, %cst_9 [1] : vector<8x16xf32> to vector<8xf32>
    %20 = vector.shape_cast %19 : vector<8xf32> to vector<8x1xf32>
    %cst_10 = arith.constant 1.600000e+01 : f32
    %21 = vector.broadcast %cst_10 : f32 to vector<8x1xf32>
    %22 = arith.divf %20, %21 : vector<8x1xf32>
    %23 = vector.broadcast %22 : vector<8x1xf32> to vector<8x16xf32>
    %24 = arith.subf %18, %23 : vector<8x16xf32>
    %25 = arith.mulf %24, %24 : vector<8x16xf32>
    %cst_11 = arith.constant dense<0.000000e+00> : vector<8xf32>
    %26 = vector.multi_reduction <add>, %25, %cst_11 [1] : vector<8x16xf32> to vector<8xf32>
    %27 = vector.shape_cast %26 : vector<8xf32> to vector<8x1xf32>
    %cst_12 = arith.constant 1.600000e+01 : f32
    %28 = vector.broadcast %cst_12 : f32 to vector<8x1xf32>
    %29 = arith.divf %27, %28 : vector<8x1xf32>
    %30 = vector.broadcast %22 : vector<8x1xf32> to vector<8x16xf32>
    %31 = arith.subf %18, %30 : vector<8x16xf32>
    %cst_13 = arith.constant 9.99999974E-6 : f32
    %32 = vector.broadcast %cst_13 : f32 to vector<8x1xf32>
    %33 = arith.addf %29, %32 : vector<8x1xf32>
    %34 = math.rsqrt %33 : vector<8x1xf32>
    %35 = vector.broadcast %34 : vector<8x1xf32> to vector<8x16xf32>
    %36 = arith.mulf %31, %35 : vector<8x16xf32>
    %c0_14 = arith.constant 0 : index
    %c0_15 = arith.constant 0 : index
    %37 = vector.load %arg2[%c0_14, %c0_15] : memref<1x16xf32, #tpu.memory_space<vmem>>, vector<1x16xf32>
    %38 = vector.broadcast %37 : vector<1x16xf32> to vector<8x16xf32>
    %39 = arith.mulf %36, %38 : vector<8x16xf32>
    %c0_16 = arith.constant 0 : index
    %c0_17 = arith.constant 0 : index
    %40 = vector.load %arg3[%c0_16, %c0_17] : memref<1x16xf32, #tpu.memory_space<vmem>>, vector<1x16xf32>
    %41 = vector.broadcast %40 : vector<1x16xf32> to vector<8x16xf32>
    %42 = arith.addf %39, %41 : vector<8x16xf32>
    %c0_18 = arith.constant 0 : index
    %c0_19 = arith.constant 0 : index
    %43 = vector.load %arg4[%c0_18, %c0_19] : memref<16x32xf32, #tpu.memory_space<vmem>>, vector<16x32xf32>
    %44 = arith.truncf %42 : vector<8x16xf32> to vector<8x16xbf16>
    %45 = arith.truncf %43 : vector<16x32xf32> to vector<16x32xbf16>
    %cst_20 = arith.constant dense<0.000000e+00> : vector<8x32xf32>
    %46 = tpu.matmul %44, %45, %cst_20 {dimension_numbers = #tpu.dot_dimension_numbers<[1], [0], [0], [1], [0, 0, 1, 1], [], []>} : vector<8x16xbf16>, vector<16x32xbf16>, vector<8x32xf32> -> vector<8x32xf32>
    %c0_21 = arith.constant 0 : index
    %c0_22 = arith.constant 0 : index
    %47 = vector.load %arg5[%c0_21, %c0_22] : memref<1x32xf32, #tpu.memory_space<vmem>>, vector<1x32xf32>
    %48 = vector.broadcast %47 : vector<1x32xf32> to vector<8x32xf32>
    %49 = arith.addf %46, %48 : vector<8x32xf32>
    %cst_23 = arith.constant 0.000000e+00 : f32
    %50 = vector.broadcast %cst_23 : f32 to vector<8x32xf32>
    %51 = arith.maximumf %49, %50 : vector<8x32xf32>
    %c0_24 = arith.constant 0 : index
    %c0_25 = arith.constant 0 : index
    %c0_26 = arith.constant 0 : index
    %52 = vector.load %arg7[%c0_24, %c0_25, %c0_26] : memref<1x8x32xf32, #tpu.memory_space<vmem>>, vector<1x8x32xf32>
    %53 = vector.shape_cast %52 : vector<1x8x32xf32> to vector<8x32xf32>
    %54 = vector.shape_cast %51 : vector<8x32xf32> to vector<1x8x32xf32>
    tpu.vector_store %arg7[%c0_24, %c0_25, %c0_26], %54 {strides = array<i32>} : memref<1x8x32xf32, #tpu.memory_space<vmem>>, vector<1x8x32xf32>,
    return
  }
  func.func @transform_0(%arg0: i32) -> (i32, i32, i32) {
    %c0_i32 = arith.constant 0 : i32
    %c0_i32_0 = arith.constant 0 : i32
    %c0_i32_1 = arith.constant 0 : i32
    return %arg0, %c0_i32, %c0_i32_0 : i32, i32, i32
  }
  func.func @transform_1(%arg0: i32) -> (i32, i32) {
    %c0_i32 = arith.constant 0 : i32
    %c0_i32_0 = arith.constant 0 : i32
    %c0_i32_1 = arith.constant 0 : i32
    return %c0_i32, %c0_i32_0 : i32, i32
  }
  func.func @transform_2(%arg0: i32) -> (i32, i32) {
    %c0_i32 = arith.constant 0 : i32
    %c0_i32_0 = arith.constant 0 : i32
    %c0_i32_1 = arith.constant 0 : i32
    return %c0_i32, %c0_i32_0 : i32, i32
  }
  func.func @transform_3(%arg0: i32) -> (i32, i32) {
    %c0_i32 = arith.constant 0 : i32
    %c0_i32_0 = arith.constant 0 : i32
    %c0_i32_1 = arith.constant 0 : i32
    return %c0_i32, %c0_i32_0 : i32, i32
  }
  func.func @transform_4(%arg0: i32) -> (i32, i32) {
    %c0_i32 = arith.constant 0 : i32
    %c0_i32_0 = arith.constant 0 : i32
    %c0_i32_1 = arith.constant 0 : i32
    return %c0_i32, %c0_i32_0 : i32, i32
  }
  func.func @transform_5(%arg0: i32) -> (i32, i32, i32) {
    %c0_i32 = arith.constant 0 : i32
    %c0_i32_0 = arith.constant 0 : i32
    %c0_i32_1 = arith.constant 0 : i32
    return %arg0, %c0_i32, %c0_i32_0 : i32, i32, i32
  }
  func.func @transform_6(%arg0: i32) -> (i32, i32, i32) {
    %c0_i32 = arith.constant 0 : i32
    %c0_i32_0 = arith.constant 0 : i32
    %c0_i32_1 = arith.constant 0 : i32
    return %arg0, %c0_i32, %c0_i32_0 : i32, i32, i32
  }
}

module attributes {stable_mosaic.version = 11 : i64} {
  func.func @_gcn_gate_out_kernel(%arg0: i32, %arg1: memref<1x8x32xf32, #tpu.memory_space<vmem>>, %arg2: memref<1x8x32xf32, #tpu.memory_space<vmem>>, %arg3: memref<32x32xf32, #tpu.memory_space<vmem>>, %arg4: memref<32x32xf32, #tpu.memory_space<vmem>>, %arg5: memref<128x16xf32, #tpu.memory_space<vmem>>, %arg6: memref<1x16xf32, #tpu.memory_space<vmem>>, %arg7: memref<128x16xf32, #tpu.memory_space<vmem>>, %arg8: memref<1x16xf32, #tpu.memory_space<vmem>>, %arg9: memref<32x16xf32, #tpu.memory_space<vmem>>, %arg10: memref<1x16xf32, #tpu.memory_space<vmem>>, %arg11: memref<1x16xf32, #tpu.memory_space<vmem>>, %arg12: memref<1x16xf32, #tpu.memory_space<vmem>>, %arg13: memref<1x8x16xf32, #tpu.memory_space<vmem>>) attributes {dimension_semantics = [#tpu.dimension_semantics<parallel>], iteration_bounds = array<i64: 2>, scalar_prefetch = 0 : i64, scratch_operands = 0 : i64, tpu.core_type = #tpu.core_type<tc>, window_params = [{transform_indices = @transform_0, window_bounds = array<i64: 1, 8, 32>}, {transform_indices = @transform_1, window_bounds = array<i64: 1, 8, 32>}, {pipeline_mode = #tpu.pipeline_mode<synchronous>, transform_indices = @transform_2, window_bounds = array<i64: 32, 32>}, {pipeline_mode = #tpu.pipeline_mode<synchronous>, transform_indices = @transform_3, window_bounds = array<i64: 32, 32>}, {pipeline_mode = #tpu.pipeline_mode<synchronous>, transform_indices = @transform_4, window_bounds = array<i64: 128, 16>}, {pipeline_mode = #tpu.pipeline_mode<synchronous>, transform_indices = @transform_5, window_bounds = array<i64: 1, 16>}, {pipeline_mode = #tpu.pipeline_mode<synchronous>, transform_indices = @transform_6, window_bounds = array<i64: 128, 16>}, {pipeline_mode = #tpu.pipeline_mode<synchronous>, transform_indices = @transform_7, window_bounds = array<i64: 1, 16>}, {pipeline_mode = #tpu.pipeline_mode<synchronous>, transform_indices = @transform_8, window_bounds = array<i64: 32, 16>}, {pipeline_mode = #tpu.pipeline_mode<synchronous>, transform_indices = @transform_9, window_bounds = array<i64: 1, 16>}, {pipeline_mode = #tpu.pipeline_mode<synchronous>, transform_indices = @transform_10, window_bounds = array<i64: 1, 16>}, {pipeline_mode = #tpu.pipeline_mode<synchronous>, transform_indices = @transform_11, window_bounds = array<i64: 1, 16>}, {transform_indices = @transform_12, window_bounds = array<i64: 1, 8, 16>}]} {
    %c0 = arith.constant 0 : index
    %c0_0 = arith.constant 0 : index
    %c0_1 = arith.constant 0 : index
    %0 = vector.load %arg2[%c0, %c0_0, %c0_1] : memref<1x8x32xf32, #tpu.memory_space<vmem>>, vector<1x8x32xf32>
    %1 = vector.shape_cast %0 : vector<1x8x32xf32> to vector<8x32xf32>
    %c0_2 = arith.constant 0 : index
    %c0_3 = arith.constant 0 : index
    %c0_4 = arith.constant 0 : index
    %2 = vector.load %arg1[%c0_2, %c0_3, %c0_4] : memref<1x8x32xf32, #tpu.memory_space<vmem>>, vector<1x8x32xf32>
    %3 = vector.shape_cast %2 : vector<1x8x32xf32> to vector<8x32xf32>
    %c0_5 = arith.constant 0 : index
    %c0_6 = arith.constant 0 : index
    %4 = vector.load %arg3[%c0_5, %c0_6] : memref<32x32xf32, #tpu.memory_space<vmem>>, vector<32x32xf32>
    %c0_7 = arith.constant 0 : index
    %c0_8 = arith.constant 0 : index
    %5 = vector.load %arg5[%c0_7, %c0_8] : memref<128x16xf32, #tpu.memory_space<vmem>>, vector<32x16xf32>
    %6 = arith.truncf %1 : vector<8x32xf32> to vector<8x32xbf16>
    %7 = arith.truncf %5 : vector<32x16xf32> to vector<32x16xbf16>
    %cst = arith.constant dense<0.000000e+00> : vector<8x16xf32>
    %8 = tpu.matmul %6, %7, %cst {dimension_numbers = #tpu.dot_dimension_numbers<[1], [0], [0], [1], [0, 0, 1, 1], [], []>} : vector<8x32xbf16>, vector<32x16xbf16>, vector<8x16xf32> -> vector<8x16xf32>
    %cst_9 = arith.constant 3.000000e-01 : f32
    %9 = vector.broadcast %cst_9 : f32 to vector<8x32xf32>
    %10 = arith.mulf %9, %1 : vector<8x32xf32>
    %11 = arith.truncf %1 : vector<8x32xf32> to vector<8x32xbf16>
    %12 = arith.truncf %4 : vector<32x32xf32> to vector<32x32xbf16>
    %cst_10 = arith.constant dense<0.000000e+00> : vector<8x32xf32>
    %13 = tpu.matmul %11, %12, %cst_10 {dimension_numbers = #tpu.dot_dimension_numbers<[1], [0], [0], [1], [0, 0, 1, 1], [], []>} : vector<8x32xbf16>, vector<32x32xbf16>, vector<8x32xf32> -> vector<8x32xf32>
    %cst_11 = arith.constant 0.699999988 : f32
    %14 = vector.broadcast %cst_11 : f32 to vector<8x32xf32>
    %15 = arith.mulf %14, %13 : vector<8x32xf32>
    %16 = arith.addf %10, %15 : vector<8x32xf32>
    %c32 = arith.constant 32 : index
    %c0_12 = arith.constant 0 : index
    %17 = vector.load %arg5[%c32, %c0_12] : memref<128x16xf32, #tpu.memory_space<vmem>>, vector<32x16xf32>
    %18 = arith.truncf %16 : vector<8x32xf32> to vector<8x32xbf16>
    %19 = arith.truncf %17 : vector<32x16xf32> to vector<32x16xbf16>
    %cst_13 = arith.constant dense<0.000000e+00> : vector<8x16xf32>
    %20 = tpu.matmul %18, %19, %cst_13 {dimension_numbers = #tpu.dot_dimension_numbers<[1], [0], [0], [1], [0, 0, 1, 1], [], []>} : vector<8x32xbf16>, vector<32x16xbf16>, vector<8x16xf32> -> vector<8x16xf32>
    %21 = arith.addf %8, %20 : vector<8x16xf32>
    %cst_14 = arith.constant 3.000000e-01 : f32
    %22 = vector.broadcast %cst_14 : f32 to vector<8x32xf32>
    %23 = arith.mulf %22, %1 : vector<8x32xf32>
    %24 = arith.truncf %16 : vector<8x32xf32> to vector<8x32xbf16>
    %25 = arith.truncf %4 : vector<32x32xf32> to vector<32x32xbf16>
    %cst_15 = arith.constant dense<0.000000e+00> : vector<8x32xf32>
    %26 = tpu.matmul %24, %25, %cst_15 {dimension_numbers = #tpu.dot_dimension_numbers<[1], [0], [0], [1], [0, 0, 1, 1], [], []>} : vector<8x32xbf16>, vector<32x32xbf16>, vector<8x32xf32> -> vector<8x32xf32>
    %cst_16 = arith.constant 0.699999988 : f32
    %27 = vector.broadcast %cst_16 : f32 to vector<8x32xf32>
    %28 = arith.mulf %27, %26 : vector<8x32xf32>
    %29 = arith.addf %23, %28 : vector<8x32xf32>
    %c64 = arith.constant 64 : index
    %c0_17 = arith.constant 0 : index
    %30 = vector.load %arg5[%c64, %c0_17] : memref<128x16xf32, #tpu.memory_space<vmem>>, vector<32x16xf32>
    %31 = arith.truncf %29 : vector<8x32xf32> to vector<8x32xbf16>
    %32 = arith.truncf %30 : vector<32x16xf32> to vector<32x16xbf16>
    %cst_18 = arith.constant dense<0.000000e+00> : vector<8x16xf32>
    %33 = tpu.matmul %31, %32, %cst_18 {dimension_numbers = #tpu.dot_dimension_numbers<[1], [0], [0], [1], [0, 0, 1, 1], [], []>} : vector<8x32xbf16>, vector<32x16xbf16>, vector<8x16xf32> -> vector<8x16xf32>
    %34 = arith.addf %21, %33 : vector<8x16xf32>
    %cst_19 = arith.constant 3.000000e-01 : f32
    %35 = vector.broadcast %cst_19 : f32 to vector<8x32xf32>
    %36 = arith.mulf %35, %1 : vector<8x32xf32>
    %37 = arith.truncf %29 : vector<8x32xf32> to vector<8x32xbf16>
    %38 = arith.truncf %4 : vector<32x32xf32> to vector<32x32xbf16>
    %cst_20 = arith.constant dense<0.000000e+00> : vector<8x32xf32>
    %39 = tpu.matmul %37, %38, %cst_20 {dimension_numbers = #tpu.dot_dimension_numbers<[1], [0], [0], [1], [0, 0, 1, 1], [], []>} : vector<8x32xbf16>, vector<32x32xbf16>, vector<8x32xf32> -> vector<8x32xf32>
    %cst_21 = arith.constant 0.699999988 : f32
    %40 = vector.broadcast %cst_21 : f32 to vector<8x32xf32>
    %41 = arith.mulf %40, %39 : vector<8x32xf32>
    %42 = arith.addf %36, %41 : vector<8x32xf32>
    %c96 = arith.constant 96 : index
    %c0_22 = arith.constant 0 : index
    %43 = vector.load %arg5[%c96, %c0_22] : memref<128x16xf32, #tpu.memory_space<vmem>>, vector<32x16xf32>
    %44 = arith.truncf %42 : vector<8x32xf32> to vector<8x32xbf16>
    %45 = arith.truncf %43 : vector<32x16xf32> to vector<32x16xbf16>
    %cst_23 = arith.constant dense<0.000000e+00> : vector<8x16xf32>
    %46 = tpu.matmul %44, %45, %cst_23 {dimension_numbers = #tpu.dot_dimension_numbers<[1], [0], [0], [1], [0, 0, 1, 1], [], []>} : vector<8x32xbf16>, vector<32x16xbf16>, vector<8x16xf32> -> vector<8x16xf32>
    %47 = arith.addf %34, %46 : vector<8x16xf32>
    %c0_24 = arith.constant 0 : index
    %c0_25 = arith.constant 0 : index
    %48 = vector.load %arg6[%c0_24, %c0_25] : memref<1x16xf32, #tpu.memory_space<vmem>>, vector<1x16xf32>
    %49 = vector.broadcast %48 : vector<1x16xf32> to vector<8x16xf32>
    %50 = arith.addf %47, %49 : vector<8x16xf32>
    %c0_26 = arith.constant 0 : index
    %c0_27 = arith.constant 0 : index
    %51 = vector.load %arg4[%c0_26, %c0_27] : memref<32x32xf32, #tpu.memory_space<vmem>>, vector<32x32xf32>
    %c0_28 = arith.constant 0 : index
    %c0_29 = arith.constant 0 : index
    %52 = vector.load %arg7[%c0_28, %c0_29] : memref<128x16xf32, #tpu.memory_space<vmem>>, vector<32x16xf32>
    %53 = arith.truncf %1 : vector<8x32xf32> to vector<8x32xbf16>
    %54 = arith.truncf %52 : vector<32x16xf32> to vector<32x16xbf16>
    %cst_30 = arith.constant dense<0.000000e+00> : vector<8x16xf32>
    %55 = tpu.matmul %53, %54, %cst_30 {dimension_numbers = #tpu.dot_dimension_numbers<[1], [0], [0], [1], [0, 0, 1, 1], [], []>} : vector<8x32xbf16>, vector<32x16xbf16>, vector<8x16xf32> -> vector<8x16xf32>
    %cst_31 = arith.constant 3.000000e-01 : f32
    %56 = vector.broadcast %cst_31 : f32 to vector<8x32xf32>
    %57 = arith.mulf %56, %1 : vector<8x32xf32>
    %58 = arith.truncf %1 : vector<8x32xf32> to vector<8x32xbf16>
    %59 = arith.truncf %51 : vector<32x32xf32> to vector<32x32xbf16>
    %cst_32 = arith.constant dense<0.000000e+00> : vector<8x32xf32>
    %60 = tpu.matmul %58, %59, %cst_32 {dimension_numbers = #tpu.dot_dimension_numbers<[1], [0], [0], [1], [0, 0, 1, 1], [], []>} : vector<8x32xbf16>, vector<32x32xbf16>, vector<8x32xf32> -> vector<8x32xf32>
    %cst_33 = arith.constant 0.699999988 : f32
    %61 = vector.broadcast %cst_33 : f32 to vector<8x32xf32>
    %62 = arith.mulf %61, %60 : vector<8x32xf32>
    %63 = arith.addf %57, %62 : vector<8x32xf32>
    %c32_34 = arith.constant 32 : index
    %c0_35 = arith.constant 0 : index
    %64 = vector.load %arg7[%c32_34, %c0_35] : memref<128x16xf32, #tpu.memory_space<vmem>>, vector<32x16xf32>
    %65 = arith.truncf %63 : vector<8x32xf32> to vector<8x32xbf16>
    %66 = arith.truncf %64 : vector<32x16xf32> to vector<32x16xbf16>
    %cst_36 = arith.constant dense<0.000000e+00> : vector<8x16xf32>
    %67 = tpu.matmul %65, %66, %cst_36 {dimension_numbers = #tpu.dot_dimension_numbers<[1], [0], [0], [1], [0, 0, 1, 1], [], []>} : vector<8x32xbf16>, vector<32x16xbf16>, vector<8x16xf32> -> vector<8x16xf32>
    %68 = arith.addf %55, %67 : vector<8x16xf32>
    %cst_37 = arith.constant 3.000000e-01 : f32
    %69 = vector.broadcast %cst_37 : f32 to vector<8x32xf32>
    %70 = arith.mulf %69, %1 : vector<8x32xf32>
    %71 = arith.truncf %63 : vector<8x32xf32> to vector<8x32xbf16>
    %72 = arith.truncf %51 : vector<32x32xf32> to vector<32x32xbf16>
    %cst_38 = arith.constant dense<0.000000e+00> : vector<8x32xf32>
    %73 = tpu.matmul %71, %72, %cst_38 {dimension_numbers = #tpu.dot_dimension_numbers<[1], [0], [0], [1], [0, 0, 1, 1], [], []>} : vector<8x32xbf16>, vector<32x32xbf16>, vector<8x32xf32> -> vector<8x32xf32>
    %cst_39 = arith.constant 0.699999988 : f32
    %74 = vector.broadcast %cst_39 : f32 to vector<8x32xf32>
    %75 = arith.mulf %74, %73 : vector<8x32xf32>
    %76 = arith.addf %70, %75 : vector<8x32xf32>
    %c64_40 = arith.constant 64 : index
    %c0_41 = arith.constant 0 : index
    %77 = vector.load %arg7[%c64_40, %c0_41] : memref<128x16xf32, #tpu.memory_space<vmem>>, vector<32x16xf32>
    %78 = arith.truncf %76 : vector<8x32xf32> to vector<8x32xbf16>
    %79 = arith.truncf %77 : vector<32x16xf32> to vector<32x16xbf16>
    %cst_42 = arith.constant dense<0.000000e+00> : vector<8x16xf32>
    %80 = tpu.matmul %78, %79, %cst_42 {dimension_numbers = #tpu.dot_dimension_numbers<[1], [0], [0], [1], [0, 0, 1, 1], [], []>} : vector<8x32xbf16>, vector<32x16xbf16>, vector<8x16xf32> -> vector<8x16xf32>
    %81 = arith.addf %68, %80 : vector<8x16xf32>
    %cst_43 = arith.constant 3.000000e-01 : f32
    %82 = vector.broadcast %cst_43 : f32 to vector<8x32xf32>
    %83 = arith.mulf %82, %1 : vector<8x32xf32>
    %84 = arith.truncf %76 : vector<8x32xf32> to vector<8x32xbf16>
    %85 = arith.truncf %51 : vector<32x32xf32> to vector<32x32xbf16>
    %cst_44 = arith.constant dense<0.000000e+00> : vector<8x32xf32>
    %86 = tpu.matmul %84, %85, %cst_44 {dimension_numbers = #tpu.dot_dimension_numbers<[1], [0], [0], [1], [0, 0, 1, 1], [], []>} : vector<8x32xbf16>, vector<32x32xbf16>, vector<8x32xf32> -> vector<8x32xf32>
    %cst_45 = arith.constant 0.699999988 : f32
    %87 = vector.broadcast %cst_45 : f32 to vector<8x32xf32>
    %88 = arith.mulf %87, %86 : vector<8x32xf32>
    %89 = arith.addf %83, %88 : vector<8x32xf32>
    %c96_46 = arith.constant 96 : index
    %c0_47 = arith.constant 0 : index
    %90 = vector.load %arg7[%c96_46, %c0_47] : memref<128x16xf32, #tpu.memory_space<vmem>>, vector<32x16xf32>
    %91 = arith.truncf %89 : vector<8x32xf32> to vector<8x32xbf16>
    %92 = arith.truncf %90 : vector<32x16xf32> to vector<32x16xbf16>
    %cst_48 = arith.constant dense<0.000000e+00> : vector<8x16xf32>
    %93 = tpu.matmul %91, %92, %cst_48 {dimension_numbers = #tpu.dot_dimension_numbers<[1], [0], [0], [1], [0, 0, 1, 1], [], []>} : vector<8x32xbf16>, vector<32x16xbf16>, vector<8x16xf32> -> vector<8x16xf32>
    %94 = arith.addf %81, %93 : vector<8x16xf32>
    %c0_49 = arith.constant 0 : index
    %c0_50 = arith.constant 0 : index
    %95 = vector.load %arg8[%c0_49, %c0_50] : memref<1x16xf32, #tpu.memory_space<vmem>>, vector<1x16xf32>
    %96 = vector.broadcast %95 : vector<1x16xf32> to vector<8x16xf32>
    %97 = arith.addf %94, %96 : vector<8x16xf32>
    %98 = arith.addf %50, %97 : vector<8x16xf32>
    %99 = arith.addf %3, %1 : vector<8x32xf32>
    %100 = math.tanh %99 : vector<8x32xf32>
    %101 = arith.negf %99 : vector<8x32xf32>
    %102 = math.exp %101 : vector<8x32xf32>
    %cst_51 = arith.constant 1.000000e+00 : f32
    %103 = vector.broadcast %cst_51 : f32 to vector<8x32xf32>
    %104 = arith.addf %103, %102 : vector<8x32xf32>
    %105 = arith.divf %103, %104 : vector<8x32xf32>
    %106 = arith.mulf %100, %105 : vector<8x32xf32>
    %c0_52 = arith.constant 0 : index
    %c0_53 = arith.constant 0 : index
    %107 = vector.load %arg9[%c0_52, %c0_53] : memref<32x16xf32, #tpu.memory_space<vmem>>, vector<32x16xf32>
    %108 = arith.truncf %106 : vector<8x32xf32> to vector<8x32xbf16>
    %109 = arith.truncf %107 : vector<32x16xf32> to vector<32x16xbf16>
    %cst_54 = arith.constant dense<0.000000e+00> : vector<8x16xf32>
    %110 = tpu.matmul %108, %109, %cst_54 {dimension_numbers = #tpu.dot_dimension_numbers<[1], [0], [0], [1], [0, 0, 1, 1], [], []>} : vector<8x32xbf16>, vector<32x16xbf16>, vector<8x16xf32> -> vector<8x16xf32>
    %c0_55 = arith.constant 0 : index
    %c0_56 = arith.constant 0 : index
    %111 = vector.load %arg10[%c0_55, %c0_56] : memref<1x16xf32, #tpu.memory_space<vmem>>, vector<1x16xf32>
    %112 = vector.broadcast %111 : vector<1x16xf32> to vector<8x16xf32>
    %113 = arith.addf %110, %112 : vector<8x16xf32>
    %cst_57 = arith.constant dense<0.000000e+00> : vector<8xf32>
    %114 = vector.multi_reduction <add>, %113, %cst_57 [1] : vector<8x16xf32> to vector<8xf32>
    %115 = vector.shape_cast %114 : vector<8xf32> to vector<8x1xf32>
    %cst_58 = arith.constant 1.600000e+01 : f32
    %116 = vector.broadcast %cst_58 : f32 to vector<8x1xf32>
    %117 = arith.divf %115, %116 : vector<8x1xf32>
    %118 = vector.broadcast %117 : vector<8x1xf32> to vector<8x16xf32>
    %119 = arith.subf %113, %118 : vector<8x16xf32>
    %120 = arith.mulf %119, %119 : vector<8x16xf32>
    %cst_59 = arith.constant dense<0.000000e+00> : vector<8xf32>
    %121 = vector.multi_reduction <add>, %120, %cst_59 [1] : vector<8x16xf32> to vector<8xf32>
    %122 = vector.shape_cast %121 : vector<8xf32> to vector<8x1xf32>
    %cst_60 = arith.constant 1.600000e+01 : f32
    %123 = vector.broadcast %cst_60 : f32 to vector<8x1xf32>
    %124 = arith.divf %122, %123 : vector<8x1xf32>
    %125 = vector.broadcast %117 : vector<8x1xf32> to vector<8x16xf32>
    %126 = arith.subf %113, %125 : vector<8x16xf32>
    %cst_61 = arith.constant 9.99999974E-6 : f32
    %127 = vector.broadcast %cst_61 : f32 to vector<8x1xf32>
    %128 = arith.addf %124, %127 : vector<8x1xf32>
    %129 = math.rsqrt %128 : vector<8x1xf32>
    %130 = vector.broadcast %129 : vector<8x1xf32> to vector<8x16xf32>
    %131 = arith.mulf %126, %130 : vector<8x16xf32>
    %c0_62 = arith.constant 0 : index
    %c0_63 = arith.constant 0 : index
    %132 = vector.load %arg11[%c0_62, %c0_63] : memref<1x16xf32, #tpu.memory_space<vmem>>, vector<1x16xf32>
    %133 = vector.broadcast %132 : vector<1x16xf32> to vector<8x16xf32>
    %134 = arith.mulf %131, %133 : vector<8x16xf32>
    %c0_64 = arith.constant 0 : index
    %c0_65 = arith.constant 0 : index
    %135 = vector.load %arg12[%c0_64, %c0_65] : memref<1x16xf32, #tpu.memory_space<vmem>>, vector<1x16xf32>
    %136 = vector.broadcast %135 : vector<1x16xf32> to vector<8x16xf32>
    %137 = arith.addf %134, %136 : vector<8x16xf32>
    %138 = arith.addf %137, %98 : vector<8x16xf32>
    %c0_66 = arith.constant 0 : index
    %c0_67 = arith.constant 0 : index
    %c0_68 = arith.constant 0 : index
    %139 = vector.load %arg13[%c0_66, %c0_67, %c0_68] : memref<1x8x16xf32, #tpu.memory_space<vmem>>, vector<1x8x16xf32>
    %140 = vector.shape_cast %139 : vector<1x8x16xf32> to vector<8x16xf32>
    %141 = vector.shape_cast %138 : vector<8x16xf32> to vector<1x8x16xf32>
    tpu.vector_store %arg13[%c0_66, %c0_67, %c0_68], %141 {strides = array<i32>} : memref<1x8x16xf32, #tpu.memory_space<vmem>>, vector<1x8x16xf32>,
    return
  }
  func.func @transform_0(%arg0: i32) -> (i32, i32, i32) {
    %c0_i32 = arith.constant 0 : i32
    %c0_i32_0 = arith.constant 0 : i32
    %c0_i32_1 = arith.constant 0 : i32
    return %arg0, %c0_i32, %c0_i32_0 : i32, i32, i32
  }
  func.func @transform_1(%arg0: i32) -> (i32, i32, i32) {
    %c0_i32 = arith.constant 0 : i32
    %c0_i32_0 = arith.constant 0 : i32
    %c0_i32_1 = arith.constant 0 : i32
    return %arg0, %c0_i32, %c0_i32_0 : i32, i32, i32
  }
  func.func @transform_2(%arg0: i32) -> (i32, i32) {
    %c0_i32 = arith.constant 0 : i32
    %c0_i32_0 = arith.constant 0 : i32
    %c0_i32_1 = arith.constant 0 : i32
    return %c0_i32, %c0_i32_0 : i32, i32
  }
  func.func @transform_3(%arg0: i32) -> (i32, i32) {
    %c0_i32 = arith.constant 0 : i32
    %c0_i32_0 = arith.constant 0 : i32
    %c0_i32_1 = arith.constant 0 : i32
    return %c0_i32, %c0_i32_0 : i32, i32
  }
  func.func @transform_4(%arg0: i32) -> (i32, i32) {
    %c0_i32 = arith.constant 0 : i32
    %c0_i32_0 = arith.constant 0 : i32
    %c0_i32_1 = arith.constant 0 : i32
    return %c0_i32, %c0_i32_0 : i32, i32
  }
  func.func @transform_5(%arg0: i32) -> (i32, i32) {
    %c0_i32 = arith.constant 0 : i32
    %c0_i32_0 = arith.constant 0 : i32
    %c0_i32_1 = arith.constant 0 : i32
    return %c0_i32, %c0_i32_0 : i32, i32
  }
  func.func @transform_6(%arg0: i32) -> (i32, i32) {
    %c0_i32 = arith.constant 0 : i32
    %c0_i32_0 = arith.constant 0 : i32
    %c0_i32_1 = arith.constant 0 : i32
    return %c0_i32, %c0_i32_0 : i32, i32
  }
  func.func @transform_7(%arg0: i32) -> (i32, i32) {
    %c0_i32 = arith.constant 0 : i32
    %c0_i32_0 = arith.constant 0 : i32
    %c0_i32_1 = arith.constant 0 : i32
    return %c0_i32, %c0_i32_0 : i32, i32
  }
  func.func @transform_8(%arg0: i32) -> (i32, i32) {
    %c0_i32 = arith.constant 0 : i32
    %c0_i32_0 = arith.constant 0 : i32
    %c0_i32_1 = arith.constant 0 : i32
    return %c0_i32, %c0_i32_0 : i32, i32
  }
  func.func @transform_9(%arg0: i32) -> (i32, i32) {
    %c0_i32 = arith.constant 0 : i32
    %c0_i32_0 = arith.constant 0 : i32
    %c0_i32_1 = arith.constant 0 : i32
    return %c0_i32, %c0_i32_0 : i32, i32
  }
  func.func @transform_10(%arg0: i32) -> (i32, i32) {
    %c0_i32 = arith.constant 0 : i32
    %c0_i32_0 = arith.constant 0 : i32
    %c0_i32_1 = arith.constant 0 : i32
    return %c0_i32, %c0_i32_0 : i32, i32
  }
  func.func @transform_11(%arg0: i32) -> (i32, i32) {
    %c0_i32 = arith.constant 0 : i32
    %c0_i32_0 = arith.constant 0 : i32
    %c0_i32_1 = arith.constant 0 : i32
    return %c0_i32, %c0_i32_0 : i32, i32
  }
  func.func @transform_12(%arg0: i32) -> (i32, i32, i32) {
    %c0_i32 = arith.constant 0 : i32
    %c0_i32_0 = arith.constant 0 : i32
    %c0_i32_1 = arith.constant 0 : i32
    return %arg0, %c0_i32, %c0_i32_0 : i32, i32, i32
  }
}

module attributes {stable_mosaic.version = 11 : i64} {
  func.func @_lstm_graph_kernel(%arg0: memref<8x2x32xf32, #tpu.memory_space<vmem>>, %arg1: memref<16x32xf32, #tpu.memory_space<vmem>>, %arg2: memref<1x1x32xf32, #tpu.memory_space<vmem>>, %arg3: memref<32x10xf32, #tpu.memory_space<vmem>>, %arg4: memref<32x10xf32, #tpu.memory_space<vmem>>, %arg5: memref<10x10xf32, #tpu.memory_space<vmem>>, %arg6: memref<1x10xf32, #tpu.memory_space<vmem>>, %arg7: memref<10x10xf32, #tpu.memory_space<vmem>>, %arg8: memref<1x10xf32, #tpu.memory_space<vmem>>, %arg9: memref<32x64xf32, #tpu.memory_space<vmem>>, %arg10: memref<16x64xf32, #tpu.memory_space<vmem>>, %arg11: memref<1x1x64xf32, #tpu.memory_space<vmem>>, %arg12: memref<16x64xf32, #tpu.memory_space<vmem>>, %arg13: memref<16x64xf32, #tpu.memory_space<vmem>>, %arg14: memref<1x1x64xf32, #tpu.memory_space<vmem>>, %arg15: memref<16x64xf32, #tpu.memory_space<vmem>>, %arg16: memref<16x64xf32, #tpu.memory_space<vmem>>, %arg17: memref<1x1x64xf32, #tpu.memory_space<vmem>>, %arg18: memref<16x64xf32, #tpu.memory_space<vmem>>, %arg19: memref<16x64xf32, #tpu.memory_space<vmem>>, %arg20: memref<1x1x64xf32, #tpu.memory_space<vmem>>, %arg21: memref<16x64xf32, #tpu.memory_space<vmem>>, %arg22: memref<16x64xf32, #tpu.memory_space<vmem>>, %arg23: memref<1x1x64xf32, #tpu.memory_space<vmem>>, %arg24: memref<16x64xf32, #tpu.memory_space<vmem>>, %arg25: memref<16x64xf32, #tpu.memory_space<vmem>>, %arg26: memref<1x1x64xf32, #tpu.memory_space<vmem>>, %arg27: memref<8x2x32xf32, #tpu.memory_space<vmem>>, %arg28: memref<32x32xf32, #tpu.memory_space<vmem>>, %arg29: memref<1x1xf32, #tpu.memory_space<vmem>>, %arg30: memref<32x32xf32, #tpu.memory_space<vmem>>, %arg31: memref<32x32xf32, #tpu.memory_space<vmem>>, %arg32: memref<8x2x16xf32, #tpu.memory_space<vmem>>) attributes {dimension_semantics = [], scalar_prefetch = 0 : i64, scratch_operands = 1 : i64, tpu.core_type = #tpu.core_type<tc>} {
    %c0 = arith.constant 0 : index
    %c0_0 = arith.constant 0 : index
    %0 = vector.load %arg3[%c0, %c0_0] : memref<32x10xf32, #tpu.memory_space<vmem>>, vector<32x10xf32>
    %c0_1 = arith.constant 0 : index
    %c0_2 = arith.constant 0 : index
    %1 = vector.load %arg5[%c0_1, %c0_2] : memref<10x10xf32, #tpu.memory_space<vmem>>, vector<10x10xf32>
    %cst = arith.constant dense<0.000000e+00> : vector<32x10xf32>
    %2 = tpu.matmul %0, %1, %cst {dimension_numbers = #tpu.dot_dimension_numbers<[1], [0], [0], [1], [0, 0, 1, 1], [], []>} : vector<32x10xf32>, vector<10x10xf32>, vector<32x10xf32> -> vector<32x10xf32>
    %c0_3 = arith.constant 0 : index
    %c0_4 = arith.constant 0 : index
    %3 = vector.load %arg6[%c0_3, %c0_4] : memref<1x10xf32, #tpu.memory_space<vmem>>, vector<1x10xf32>
    %4 = vector.broadcast %3 : vector<1x10xf32> to vector<32x10xf32>
    %5 = arith.addf %2, %4 : vector<32x10xf32>
    %cst_5 = arith.constant 3.000000e+00 : f32
    %6 = vector.broadcast %cst_5 : f32 to vector<32x10xf32>
    %7 = arith.mulf %6, %5 : vector<32x10xf32>
    %8 = math.tanh %7 : vector<32x10xf32>
    %c0_6 = arith.constant 0 : index
    %c0_7 = arith.constant 0 : index
    %9 = vector.load %arg4[%c0_6, %c0_7] : memref<32x10xf32, #tpu.memory_space<vmem>>, vector<32x10xf32>
    %c0_8 = arith.constant 0 : index
    %c0_9 = arith.constant 0 : index
    %10 = vector.load %arg7[%c0_8, %c0_9] : memref<10x10xf32, #tpu.memory_space<vmem>>, vector<10x10xf32>
    %cst_10 = arith.constant dense<0.000000e+00> : vector<32x10xf32>
    %11 = tpu.matmul %9, %10, %cst_10 {dimension_numbers = #tpu.dot_dimension_numbers<[1], [0], [0], [1], [0, 0, 1, 1], [], []>} : vector<32x10xf32>, vector<10x10xf32>, vector<32x10xf32> -> vector<32x10xf32>
    %c0_11 = arith.constant 0 : index
    %c0_12 = arith.constant 0 : index
    %12 = vector.load %arg8[%c0_11, %c0_12] : memref<1x10xf32, #tpu.memory_space<vmem>>, vector<1x10xf32>
    %13 = vector.broadcast %12 : vector<1x10xf32> to vector<32x10xf32>
    %14 = arith.addf %11, %13 : vector<32x10xf32>
    %cst_13 = arith.constant 3.000000e+00 : f32
    %15 = vector.broadcast %cst_13 : f32 to vector<32x10xf32>
    %16 = arith.mulf %15, %14 : vector<32x10xf32>
    %17 = math.tanh %16 : vector<32x10xf32>
    "tpu.trace_start"() <{level = 10 : i32, message = "ik,jk->ij"}> : () -> ()
    %cst_14 = arith.constant dense<0.000000e+00> : vector<32x32xf32>
    %18 = tpu.matmul %8, %17, %cst_14 {dimension_numbers = #tpu.dot_dimension_numbers<[1], [1], [0], [0], [0, 0, 1, 0], [], []>} : vector<32x10xf32>, vector<32x10xf32>, vector<32x32xf32> -> vector<32x32xf32>
    "tpu.trace_stop"() : () -> ()
    %19 = tpu.transpose %18, [1, 0] : vector<32x32xf32> -> vector<32x32xf32>
    %20 = arith.subf %18, %19 : vector<32x32xf32>
    %cst_15 = arith.constant 3.000000e+00 : f32
    %21 = vector.broadcast %cst_15 : f32 to vector<32x32xf32>
    %22 = arith.mulf %21, %20 : vector<32x32xf32>
    %23 = arith.negf %22 : vector<32x32xf32>
    %24 = math.exp %23 : vector<32x32xf32>
    %cst_16 = arith.constant 1.000000e+00 : f32
    %25 = vector.broadcast %cst_16 : f32 to vector<32x32xf32>
    %26 = arith.addf %25, %24 : vector<32x32xf32>
    %27 = arith.divf %25, %26 : vector<32x32xf32>
    %cst_17 = arith.constant 7.900000e-01 : f32
    %28 = vector.broadcast %cst_17 : f32 to vector<32x32xf32>
    %29 = arith.cmpf olt, %27, %28 : vector<32x32xf32>
    %cst_18 = arith.constant 0.000000e+00 : f32
    %30 = vector.broadcast %cst_18 : f32 to vector<32x32xf32>
    %31 = arith.select %29, %30, %27 : vector<32x32xi1>, vector<32x32xf32>
    %c0_19 = arith.constant 0 : index
    %c0_20 = arith.constant 0 : index
    %32 = vector.load %arg28[%c0_19, %c0_20] : memref<32x32xf32, #tpu.memory_space<vmem>>, vector<32x32xf32>
    tpu.vector_store %arg28[%c0_19, %c0_20], %31 {strides = array<i32>} : memref<32x32xf32, #tpu.memory_space<vmem>>, vector<32x32xf32>,
    %cst_21 = arith.constant dense<0.000000e+00> : vector<32xf32>
    %33 = vector.multi_reduction <add>, %31, %cst_21 [0] : vector<32x32xf32> to vector<32xf32>
    %34 = vector.shape_cast %33 : vector<32xf32> to vector<1x32xf32>
    %cst_22 = arith.constant dense<0.000000e+00> : vector<1xf32>
    %35 = vector.multi_reduction <add>, %34, %cst_22 [1] : vector<1x32xf32> to vector<1xf32>
    %36 = vector.shape_cast %35 : vector<1xf32> to vector<1x1xf32>
    %cst_23 = arith.constant 3.200000e+01 : f32
    %37 = vector.broadcast %cst_23 : f32 to vector<1x1xf32>
    %38 = arith.subf %36, %37 : vector<1x1xf32>
    %39 = math.absf %38 : vector<1x1xf32>
    %c0_24 = arith.constant 0 : index
    %c0_25 = arith.constant 0 : index
    %40 = vector.load %arg29[%c0_24, %c0_25] : memref<1x1xf32, #tpu.memory_space<vmem>>, vector<1x1xf32>
    tpu.vector_store %arg29[%c0_24, %c0_25], %39 {strides = array<i32>} : memref<1x1xf32, #tpu.memory_space<vmem>>, vector<1x1xf32>,
    %41 = tpu.iota {dimensions = array<i32: 0>} : vector<32x32xi32>
    %42 = tpu.iota {dimensions = array<i32: 1>} : vector<32x32xi32>
    %c0_i32 = arith.constant 0 : i32
    %43 = vector.broadcast %c0_i32 : i32 to vector<32x32xi32>
    %44 = arith.addi %41, %43 : vector<32x32xi32>
    %45 = arith.cmpi eq, %44, %42 : vector<32x32xi32>
    %46 = arith.extui %45 : vector<32x32xi1> to vector<32x32xi32>
    %47 = arith.sitofp %46 : vector<32x32xi32> to vector<32x32xf32>
    %48 = arith.addf %31, %47 : vector<32x32xf32>
    %cst_26 = arith.constant dense<0.000000e+00> : vector<32xf32>
    %49 = vector.multi_reduction <add>, %48, %cst_26 [1] : vector<32x32xf32> to vector<32xf32>
    %50 = vector.shape_cast %49 : vector<32xf32> to vector<32x1xf32>
    %51 = vector.broadcast %50 : vector<32x1xf32> to vector<32x32xf32>
    %52 = arith.divf %48, %51 : vector<32x32xf32>
    %c0_27 = arith.constant 0 : index
    %c0_28 = arith.constant 0 : index
    %53 = vector.load %arg30[%c0_27, %c0_28] : memref<32x32xf32, #tpu.memory_space<vmem>>, vector<32x32xf32>
    tpu.vector_store %arg30[%c0_27, %c0_28], %52 {strides = array<i32>} : memref<32x32xf32, #tpu.memory_space<vmem>>, vector<32x32xf32>,
    %54 = tpu.transpose %31, [1, 0] : vector<32x32xf32> -> vector<32x32xf32>
    %55 = arith.addf %54, %47 : vector<32x32xf32>
    %cst_29 = arith.constant dense<0.000000e+00> : vector<32xf32>
    %56 = vector.multi_reduction <add>, %55, %cst_29 [1] : vector<32x32xf32> to vector<32xf32>
    %57 = vector.shape_cast %56 : vector<32xf32> to vector<32x1xf32>
    %58 = vector.broadcast %57 : vector<32x1xf32> to vector<32x32xf32>
    %59 = arith.divf %55, %58 : vector<32x32xf32>
    %c0_30 = arith.constant 0 : index
    %c0_31 = arith.constant 0 : index
    %60 = vector.load %arg31[%c0_30, %c0_31] : memref<32x32xf32, #tpu.memory_space<vmem>>, vector<32x32xf32>
    tpu.vector_store %arg31[%c0_30, %c0_31], %59 {strides = array<i32>} : memref<32x32xf32, #tpu.memory_space<vmem>>, vector<32x32xf32>,
    %c0_32 = arith.constant 0 : index
    %c0_33 = arith.constant 0 : index
    %61 = vector.load %arg10[%c0_32, %c0_33] : memref<16x64xf32, #tpu.memory_space<vmem>>, vector<16x64xf32>
    %c0_34 = arith.constant 0 : index
    %c0_35 = arith.constant 0 : index
    %c0_36 = arith.constant 0 : index
    %62 = vector.load %arg0[%c0_34, %c0_35, %c0_36] : memref<8x2x32xf32, #tpu.memory_space<vmem>>, vector<8x2x32xf32>
    %c0_37 = arith.constant 0 : index
    %c0_38 = arith.constant 0 : index
    %63 = vector.load %arg9[%c0_37, %c0_38] : memref<32x64xf32, #tpu.memory_space<vmem>>, vector<32x64xf32>
    %64 = arith.truncf %62 : vector<8x2x32xf32> to vector<8x2x32xbf16>
    %65 = arith.truncf %63 : vector<32x64xf32> to vector<32x64xbf16>
    %cst_39 = arith.constant dense<0.000000e+00> : vector<8x2x64xf32>
    %66 = tpu.matmul %64, %65, %cst_39 {dimension_numbers = #tpu.dot_dimension_numbers<[2], [0], [0, 1], [1], [0, 0, 0, 1, 1, 1], [], []>} : vector<8x2x32xbf16>, vector<32x64xbf16>, vector<8x2x64xf32> -> vector<8x2x64xf32>
    %c0_40 = arith.constant 0 : index
    %c0_41 = arith.constant 0 : index
    %c0_42 = arith.constant 0 : index
    %67 = vector.load %arg11[%c0_40, %c0_41, %c0_42] : memref<1x1x64xf32, #tpu.memory_space<vmem>>, vector<1x1x64xf32>
    %68 = vector.broadcast %67 : vector<1x1x64xf32> to vector<8x2x64xf32>
    %69 = arith.addf %66, %68 : vector<8x2x64xf32>
    %cst_43 = arith.constant 0.000000e+00 : f32
    %70 = vector.broadcast %cst_43 : f32 to vector<2x16xf32>
    %cst_44 = arith.constant 0.000000e+00 : f32
    %71 = vector.broadcast %cst_44 : f32 to vector<2x16xf32>
    %72 = vector.extract_strided_slice %69 {offsets = [0, 0, 0], sizes = [1, 2, 64], strides = [1, 1, 1]} : vector<8x2x64xf32> to vector<1x2x64xf32>
    %73 = vector.shape_cast %72 : vector<1x2x64xf32> to vector<2x64xf32>
    %74 = arith.truncf %70 : vector<2x16xf32> to vector<2x16xbf16>
    %75 = arith.truncf %61 : vector<16x64xf32> to vector<16x64xbf16>
    %cst_45 = arith.constant dense<0.000000e+00> : vector<2x64xf32>
    %76 = tpu.matmul %74, %75, %cst_45 {dimension_numbers = #tpu.dot_dimension_numbers<[1], [0], [0], [1], [0, 0, 1, 1], [], []>} : vector<2x16xbf16>, vector<16x64xbf16>, vector<2x64xf32> -> vector<2x64xf32>
    %77 = arith.addf %73, %76 : vector<2x64xf32>
    %78 = arith.negf %77 : vector<2x64xf32>
    %79 = math.exp %78 : vector<2x64xf32>
    %cst_46 = arith.constant 1.000000e+00 : f32
    %80 = vector.broadcast %cst_46 : f32 to vector<2x64xf32>
    %81 = arith.addf %80, %79 : vector<2x64xf32>
    %82 = arith.divf %80, %81 : vector<2x64xf32>
    %83 = vector.extract_strided_slice %82 {offsets = [0, 0], sizes = [2, 16], strides = [1, 1]} : vector<2x64xf32> to vector<2x16xf32>
    %84 = vector.extract_strided_slice %82 {offsets = [0, 16], sizes = [2, 16], strides = [1, 1]} : vector<2x64xf32> to vector<2x16xf32>
    %85 = vector.extract_strided_slice %82 {offsets = [0, 48], sizes = [2, 16], strides = [1, 1]} : vector<2x64xf32> to vector<2x16xf32>
    %86 = vector.extract_strided_slice %77 {offsets = [0, 32], sizes = [2, 16], strides = [1, 1]} : vector<2x64xf32> to vector<2x16xf32>
    %87 = math.tanh %86 : vector<2x16xf32>
    %88 = arith.mulf %84, %71 : vector<2x16xf32>
    %89 = arith.mulf %83, %87 : vector<2x16xf32>
    %90 = arith.addf %88, %89 : vector<2x16xf32>
    %91 = math.tanh %90 : vector<2x16xf32>
    %92 = arith.mulf %85, %91 : vector<2x16xf32>
    %c0_47 = arith.constant 0 : index
    %c0_48 = arith.constant 0 : index
    %c0_49 = arith.constant 0 : index
    %93 = vector.load %arg32[%c0_47, %c0_48, %c0_49] : memref<8x2x16xf32, #tpu.memory_space<vmem>>, vector<1x2x16xf32>
    %94 = vector.shape_cast %93 : vector<1x2x16xf32> to vector<2x16xf32>
    %95 = vector.shape_cast %92 : vector<2x16xf32> to vector<1x2x16xf32>
    tpu.vector_store %arg32[%c0_47, %c0_48, %c0_49], %95 {strides = array<i32>} : memref<8x2x16xf32, #tpu.memory_space<vmem>>, vector<1x2x16xf32>,
    %96 = vector.extract_strided_slice %69 {offsets = [1, 0, 0], sizes = [1, 2, 64], strides = [1, 1, 1]} : vector<8x2x64xf32> to vector<1x2x64xf32>
    %97 = vector.shape_cast %96 : vector<1x2x64xf32> to vector<2x64xf32>
    %98 = arith.truncf %92 : vector<2x16xf32> to vector<2x16xbf16>
    %99 = arith.truncf %61 : vector<16x64xf32> to vector<16x64xbf16>
    %cst_50 = arith.constant dense<0.000000e+00> : vector<2x64xf32>
    %100 = tpu.matmul %98, %99, %cst_50 {dimension_numbers = #tpu.dot_dimension_numbers<[1], [0], [0], [1], [0, 0, 1, 1], [], []>} : vector<2x16xbf16>, vector<16x64xbf16>, vector<2x64xf32> -> vector<2x64xf32>
    %101 = arith.addf %97, %100 : vector<2x64xf32>
    %102 = arith.negf %101 : vector<2x64xf32>
    %103 = math.exp %102 : vector<2x64xf32>
    %cst_51 = arith.constant 1.000000e+00 : f32
    %104 = vector.broadcast %cst_51 : f32 to vector<2x64xf32>
    %105 = arith.addf %104, %103 : vector<2x64xf32>
    %106 = arith.divf %104, %105 : vector<2x64xf32>
    %107 = vector.extract_strided_slice %106 {offsets = [0, 0], sizes = [2, 16], strides = [1, 1]} : vector<2x64xf32> to vector<2x16xf32>
    %108 = vector.extract_strided_slice %106 {offsets = [0, 16], sizes = [2, 16], strides = [1, 1]} : vector<2x64xf32> to vector<2x16xf32>
    %109 = vector.extract_strided_slice %106 {offsets = [0, 48], sizes = [2, 16], strides = [1, 1]} : vector<2x64xf32> to vector<2x16xf32>
    %110 = vector.extract_strided_slice %101 {offsets = [0, 32], sizes = [2, 16], strides = [1, 1]} : vector<2x64xf32> to vector<2x16xf32>
    %111 = math.tanh %110 : vector<2x16xf32>
    %112 = arith.mulf %108, %90 : vector<2x16xf32>
    %113 = arith.mulf %107, %111 : vector<2x16xf32>
    %114 = arith.addf %112, %113 : vector<2x16xf32>
    %115 = math.tanh %114 : vector<2x16xf32>
    %116 = arith.mulf %109, %115 : vector<2x16xf32>
    %c1 = arith.constant 1 : index
    %c0_52 = arith.constant 0 : index
    %c0_53 = arith.constant 0 : index
    %117 = vector.load %arg32[%c1, %c0_52, %c0_53] : memref<8x2x16xf32, #tpu.memory_space<vmem>>, vector<1x2x16xf32>
    %118 = vector.shape_cast %117 : vector<1x2x16xf32> to vector<2x16xf32>
    %119 = vector.shape_cast %116 : vector<2x16xf32> to vector<1x2x16xf32>
    tpu.vector_store %arg32[%c1, %c0_52, %c0_53], %119 {strides = array<i32>} : memref<8x2x16xf32, #tpu.memory_space<vmem>>, vector<1x2x16xf32>,
    %120 = vector.extract_strided_slice %69 {offsets = [2, 0, 0], sizes = [1, 2, 64], strides = [1, 1, 1]} : vector<8x2x64xf32> to vector<1x2x64xf32>
    %121 = vector.shape_cast %120 : vector<1x2x64xf32> to vector<2x64xf32>
    %122 = arith.truncf %116 : vector<2x16xf32> to vector<2x16xbf16>
    %123 = arith.truncf %61 : vector<16x64xf32> to vector<16x64xbf16>
    %cst_54 = arith.constant dense<0.000000e+00> : vector<2x64xf32>
    %124 = tpu.matmul %122, %123, %cst_54 {dimension_numbers = #tpu.dot_dimension_numbers<[1], [0], [0], [1], [0, 0, 1, 1], [], []>} : vector<2x16xbf16>, vector<16x64xbf16>, vector<2x64xf32> -> vector<2x64xf32>
    %125 = arith.addf %121, %124 : vector<2x64xf32>
    %126 = arith.negf %125 : vector<2x64xf32>
    %127 = math.exp %126 : vector<2x64xf32>
    %cst_55 = arith.constant 1.000000e+00 : f32
    %128 = vector.broadcast %cst_55 : f32 to vector<2x64xf32>
    %129 = arith.addf %128, %127 : vector<2x64xf32>
    %130 = arith.divf %128, %129 : vector<2x64xf32>
    %131 = vector.extract_strided_slice %130 {offsets = [0, 0], sizes = [2, 16], strides = [1, 1]} : vector<2x64xf32> to vector<2x16xf32>
    %132 = vector.extract_strided_slice %130 {offsets = [0, 16], sizes = [2, 16], strides = [1, 1]} : vector<2x64xf32> to vector<2x16xf32>
    %133 = vector.extract_strided_slice %130 {offsets = [0, 48], sizes = [2, 16], strides = [1, 1]} : vector<2x64xf32> to vector<2x16xf32>
    %134 = vector.extract_strided_slice %125 {offsets = [0, 32], sizes = [2, 16], strides = [1, 1]} : vector<2x64xf32> to vector<2x16xf32>
    %135 = math.tanh %134 : vector<2x16xf32>
    %136 = arith.mulf %132, %114 : vector<2x16xf32>
    %137 = arith.mulf %131, %135 : vector<2x16xf32>
    %138 = arith.addf %136, %137 : vector<2x16xf32>
    %139 = math.tanh %138 : vector<2x16xf32>
    %140 = arith.mulf %133, %139 : vector<2x16xf32>
    %c2 = arith.constant 2 : index
    %c0_56 = arith.constant 0 : index
    %c0_57 = arith.constant 0 : index
    %141 = vector.load %arg32[%c2, %c0_56, %c0_57] : memref<8x2x16xf32, #tpu.memory_space<vmem>>, vector<1x2x16xf32>
    %142 = vector.shape_cast %141 : vector<1x2x16xf32> to vector<2x16xf32>
    %143 = vector.shape_cast %140 : vector<2x16xf32> to vector<1x2x16xf32>
    tpu.vector_store %arg32[%c2, %c0_56, %c0_57], %143 {strides = array<i32>} : memref<8x2x16xf32, #tpu.memory_space<vmem>>, vector<1x2x16xf32>,
    %144 = vector.extract_strided_slice %69 {offsets = [3, 0, 0], sizes = [1, 2, 64], strides = [1, 1, 1]} : vector<8x2x64xf32> to vector<1x2x64xf32>
    %145 = vector.shape_cast %144 : vector<1x2x64xf32> to vector<2x64xf32>
    %146 = arith.truncf %140 : vector<2x16xf32> to vector<2x16xbf16>
    %147 = arith.truncf %61 : vector<16x64xf32> to vector<16x64xbf16>
    %cst_58 = arith.constant dense<0.000000e+00> : vector<2x64xf32>
    %148 = tpu.matmul %146, %147, %cst_58 {dimension_numbers = #tpu.dot_dimension_numbers<[1], [0], [0], [1], [0, 0, 1, 1], [], []>} : vector<2x16xbf16>, vector<16x64xbf16>, vector<2x64xf32> -> vector<2x64xf32>
    %149 = arith.addf %145, %148 : vector<2x64xf32>
    %150 = arith.negf %149 : vector<2x64xf32>
    %151 = math.exp %150 : vector<2x64xf32>
    %cst_59 = arith.constant 1.000000e+00 : f32
    %152 = vector.broadcast %cst_59 : f32 to vector<2x64xf32>
    %153 = arith.addf %152, %151 : vector<2x64xf32>
    %154 = arith.divf %152, %153 : vector<2x64xf32>
    %155 = vector.extract_strided_slice %154 {offsets = [0, 0], sizes = [2, 16], strides = [1, 1]} : vector<2x64xf32> to vector<2x16xf32>
    %156 = vector.extract_strided_slice %154 {offsets = [0, 16], sizes = [2, 16], strides = [1, 1]} : vector<2x64xf32> to vector<2x16xf32>
    %157 = vector.extract_strided_slice %154 {offsets = [0, 48], sizes = [2, 16], strides = [1, 1]} : vector<2x64xf32> to vector<2x16xf32>
    %158 = vector.extract_strided_slice %149 {offsets = [0, 32], sizes = [2, 16], strides = [1, 1]} : vector<2x64xf32> to vector<2x16xf32>
    %159 = math.tanh %158 : vector<2x16xf32>
    %160 = arith.mulf %156, %138 : vector<2x16xf32>
    %161 = arith.mulf %155, %159 : vector<2x16xf32>
    %162 = arith.addf %160, %161 : vector<2x16xf32>
    %163 = math.tanh %162 : vector<2x16xf32>
    %164 = arith.mulf %157, %163 : vector<2x16xf32>
    %c3 = arith.constant 3 : index
    %c0_60 = arith.constant 0 : index
    %c0_61 = arith.constant 0 : index
    %165 = vector.load %arg32[%c3, %c0_60, %c0_61] : memref<8x2x16xf32, #tpu.memory_space<vmem>>, vector<1x2x16xf32>
    %166 = vector.shape_cast %165 : vector<1x2x16xf32> to vector<2x16xf32>
    %167 = vector.shape_cast %164 : vector<2x16xf32> to vector<1x2x16xf32>
    tpu.vector_store %arg32[%c3, %c0_60, %c0_61], %167 {strides = array<i32>} : memref<8x2x16xf32, #tpu.memory_space<vmem>>, vector<1x2x16xf32>,
    %168 = vector.extract_strided_slice %69 {offsets = [4, 0, 0], sizes = [1, 2, 64], strides = [1, 1, 1]} : vector<8x2x64xf32> to vector<1x2x64xf32>
    %169 = vector.shape_cast %168 : vector<1x2x64xf32> to vector<2x64xf32>
    %170 = arith.truncf %164 : vector<2x16xf32> to vector<2x16xbf16>
    %171 = arith.truncf %61 : vector<16x64xf32> to vector<16x64xbf16>
    %cst_62 = arith.constant dense<0.000000e+00> : vector<2x64xf32>
    %172 = tpu.matmul %170, %171, %cst_62 {dimension_numbers = #tpu.dot_dimension_numbers<[1], [0], [0], [1], [0, 0, 1, 1], [], []>} : vector<2x16xbf16>, vector<16x64xbf16>, vector<2x64xf32> -> vector<2x64xf32>
    %173 = arith.addf %169, %172 : vector<2x64xf32>
    %174 = arith.negf %173 : vector<2x64xf32>
    %175 = math.exp %174 : vector<2x64xf32>
    %cst_63 = arith.constant 1.000000e+00 : f32
    %176 = vector.broadcast %cst_63 : f32 to vector<2x64xf32>
    %177 = arith.addf %176, %175 : vector<2x64xf32>
    %178 = arith.divf %176, %177 : vector<2x64xf32>
    %179 = vector.extract_strided_slice %178 {offsets = [0, 0], sizes = [2, 16], strides = [1, 1]} : vector<2x64xf32> to vector<2x16xf32>
    %180 = vector.extract_strided_slice %178 {offsets = [0, 16], sizes = [2, 16], strides = [1, 1]} : vector<2x64xf32> to vector<2x16xf32>
    %181 = vector.extract_strided_slice %178 {offsets = [0, 48], sizes = [2, 16], strides = [1, 1]} : vector<2x64xf32> to vector<2x16xf32>
    %182 = vector.extract_strided_slice %173 {offsets = [0, 32], sizes = [2, 16], strides = [1, 1]} : vector<2x64xf32> to vector<2x16xf32>
    %183 = math.tanh %182 : vector<2x16xf32>
    %184 = arith.mulf %180, %162 : vector<2x16xf32>
    %185 = arith.mulf %179, %183 : vector<2x16xf32>
    %186 = arith.addf %184, %185 : vector<2x16xf32>
    %187 = math.tanh %186 : vector<2x16xf32>
    %188 = arith.mulf %181, %187 : vector<2x16xf32>
    %c4 = arith.constant 4 : index
    %c0_64 = arith.constant 0 : index
    %c0_65 = arith.constant 0 : index
    %189 = vector.load %arg32[%c4, %c0_64, %c0_65] : memref<8x2x16xf32, #tpu.memory_space<vmem>>, vector<1x2x16xf32>
    %190 = vector.shape_cast %189 : vector<1x2x16xf32> to vector<2x16xf32>
    %191 = vector.shape_cast %188 : vector<2x16xf32> to vector<1x2x16xf32>
    tpu.vector_store %arg32[%c4, %c0_64, %c0_65], %191 {strides = array<i32>} : memref<8x2x16xf32, #tpu.memory_space<vmem>>, vector<1x2x16xf32>,
    %192 = vector.extract_strided_slice %69 {offsets = [5, 0, 0], sizes = [1, 2, 64], strides = [1, 1, 1]} : vector<8x2x64xf32> to vector<1x2x64xf32>
    %193 = vector.shape_cast %192 : vector<1x2x64xf32> to vector<2x64xf32>
    %194 = arith.truncf %188 : vector<2x16xf32> to vector<2x16xbf16>
    %195 = arith.truncf %61 : vector<16x64xf32> to vector<16x64xbf16>
    %cst_66 = arith.constant dense<0.000000e+00> : vector<2x64xf32>
    %196 = tpu.matmul %194, %195, %cst_66 {dimension_numbers = #tpu.dot_dimension_numbers<[1], [0], [0], [1], [0, 0, 1, 1], [], []>} : vector<2x16xbf16>, vector<16x64xbf16>, vector<2x64xf32> -> vector<2x64xf32>
    %197 = arith.addf %193, %196 : vector<2x64xf32>
    %198 = arith.negf %197 : vector<2x64xf32>
    %199 = math.exp %198 : vector<2x64xf32>
    %cst_67 = arith.constant 1.000000e+00 : f32
    %200 = vector.broadcast %cst_67 : f32 to vector<2x64xf32>
    %201 = arith.addf %200, %199 : vector<2x64xf32>
    %202 = arith.divf %200, %201 : vector<2x64xf32>
    %203 = vector.extract_strided_slice %202 {offsets = [0, 0], sizes = [2, 16], strides = [1, 1]} : vector<2x64xf32> to vector<2x16xf32>
    %204 = vector.extract_strided_slice %202 {offsets = [0, 16], sizes = [2, 16], strides = [1, 1]} : vector<2x64xf32> to vector<2x16xf32>
    %205 = vector.extract_strided_slice %202 {offsets = [0, 48], sizes = [2, 16], strides = [1, 1]} : vector<2x64xf32> to vector<2x16xf32>
    %206 = vector.extract_strided_slice %197 {offsets = [0, 32], sizes = [2, 16], strides = [1, 1]} : vector<2x64xf32> to vector<2x16xf32>
    %207 = math.tanh %206 : vector<2x16xf32>
    %208 = arith.mulf %204, %186 : vector<2x16xf32>
    %209 = arith.mulf %203, %207 : vector<2x16xf32>
    %210 = arith.addf %208, %209 : vector<2x16xf32>
    %211 = math.tanh %210 : vector<2x16xf32>
    %212 = arith.mulf %205, %211 : vector<2x16xf32>
    %c5 = arith.constant 5 : index
    %c0_68 = arith.constant 0 : index
    %c0_69 = arith.constant 0 : index
    %213 = vector.load %arg32[%c5, %c0_68, %c0_69] : memref<8x2x16xf32, #tpu.memory_space<vmem>>, vector<1x2x16xf32>
    %214 = vector.shape_cast %213 : vector<1x2x16xf32> to vector<2x16xf32>
    %215 = vector.shape_cast %212 : vector<2x16xf32> to vector<1x2x16xf32>
    tpu.vector_store %arg32[%c5, %c0_68, %c0_69], %215 {strides = array<i32>} : memref<8x2x16xf32, #tpu.memory_space<vmem>>, vector<1x2x16xf32>,
    %216 = vector.extract_strided_slice %69 {offsets = [6, 0, 0], sizes = [1, 2, 64], strides = [1, 1, 1]} : vector<8x2x64xf32> to vector<1x2x64xf32>
    %217 = vector.shape_cast %216 : vector<1x2x64xf32> to vector<2x64xf32>
    %218 = arith.truncf %212 : vector<2x16xf32> to vector<2x16xbf16>
    %219 = arith.truncf %61 : vector<16x64xf32> to vector<16x64xbf16>
    %cst_70 = arith.constant dense<0.000000e+00> : vector<2x64xf32>
    %220 = tpu.matmul %218, %219, %cst_70 {dimension_numbers = #tpu.dot_dimension_numbers<[1], [0], [0], [1], [0, 0, 1, 1], [], []>} : vector<2x16xbf16>, vector<16x64xbf16>, vector<2x64xf32> -> vector<2x64xf32>
    %221 = arith.addf %217, %220 : vector<2x64xf32>
    %222 = arith.negf %221 : vector<2x64xf32>
    %223 = math.exp %222 : vector<2x64xf32>
    %cst_71 = arith.constant 1.000000e+00 : f32
    %224 = vector.broadcast %cst_71 : f32 to vector<2x64xf32>
    %225 = arith.addf %224, %223 : vector<2x64xf32>
    %226 = arith.divf %224, %225 : vector<2x64xf32>
    %227 = vector.extract_strided_slice %226 {offsets = [0, 0], sizes = [2, 16], strides = [1, 1]} : vector<2x64xf32> to vector<2x16xf32>
    %228 = vector.extract_strided_slice %226 {offsets = [0, 16], sizes = [2, 16], strides = [1, 1]} : vector<2x64xf32> to vector<2x16xf32>
    %229 = vector.extract_strided_slice %226 {offsets = [0, 48], sizes = [2, 16], strides = [1, 1]} : vector<2x64xf32> to vector<2x16xf32>
    %230 = vector.extract_strided_slice %221 {offsets = [0, 32], sizes = [2, 16], strides = [1, 1]} : vector<2x64xf32> to vector<2x16xf32>
    %231 = math.tanh %230 : vector<2x16xf32>
    %232 = arith.mulf %228, %210 : vector<2x16xf32>
    %233 = arith.mulf %227, %231 : vector<2x16xf32>
    %234 = arith.addf %232, %233 : vector<2x16xf32>
    %235 = math.tanh %234 : vector<2x16xf32>
    %236 = arith.mulf %229, %235 : vector<2x16xf32>
    %c6 = arith.constant 6 : index
    %c0_72 = arith.constant 0 : index
    %c0_73 = arith.constant 0 : index
    %237 = vector.load %arg32[%c6, %c0_72, %c0_73] : memref<8x2x16xf32, #tpu.memory_space<vmem>>, vector<1x2x16xf32>
    %238 = vector.shape_cast %237 : vector<1x2x16xf32> to vector<2x16xf32>
    %239 = vector.shape_cast %236 : vector<2x16xf32> to vector<1x2x16xf32>
    tpu.vector_store %arg32[%c6, %c0_72, %c0_73], %239 {strides = array<i32>} : memref<8x2x16xf32, #tpu.memory_space<vmem>>, vector<1x2x16xf32>,
    %240 = vector.extract_strided_slice %69 {offsets = [7, 0, 0], sizes = [1, 2, 64], strides = [1, 1, 1]} : vector<8x2x64xf32> to vector<1x2x64xf32>
    %241 = vector.shape_cast %240 : vector<1x2x64xf32> to vector<2x64xf32>
    %242 = arith.truncf %236 : vector<2x16xf32> to vector<2x16xbf16>
    %243 = arith.truncf %61 : vector<16x64xf32> to vector<16x64xbf16>
    %cst_74 = arith.constant dense<0.000000e+00> : vector<2x64xf32>
    %244 = tpu.matmul %242, %243, %cst_74 {dimension_numbers = #tpu.dot_dimension_numbers<[1], [0], [0], [1], [0, 0, 1, 1], [], []>} : vector<2x16xbf16>, vector<16x64xbf16>, vector<2x64xf32> -> vector<2x64xf32>
    %245 = arith.addf %241, %244 : vector<2x64xf32>
    %246 = arith.negf %245 : vector<2x64xf32>
    %247 = math.exp %246 : vector<2x64xf32>
    %cst_75 = arith.constant 1.000000e+00 : f32
    %248 = vector.broadcast %cst_75 : f32 to vector<2x64xf32>
    %249 = arith.addf %248, %247 : vector<2x64xf32>
    %250 = arith.divf %248, %249 : vector<2x64xf32>
    %251 = vector.extract_strided_slice %250 {offsets = [0, 0], sizes = [2, 16], strides = [1, 1]} : vector<2x64xf32> to vector<2x16xf32>
    %252 = vector.extract_strided_slice %250 {offsets = [0, 16], sizes = [2, 16], strides = [1, 1]} : vector<2x64xf32> to vector<2x16xf32>
    %253 = vector.extract_strided_slice %250 {offsets = [0, 48], sizes = [2, 16], strides = [1, 1]} : vector<2x64xf32> to vector<2x16xf32>
    %254 = vector.extract_strided_slice %245 {offsets = [0, 32], sizes = [2, 16], strides = [1, 1]} : vector<2x64xf32> to vector<2x16xf32>
    %255 = math.tanh %254 : vector<2x16xf32>
    %256 = arith.mulf %252, %234 : vector<2x16xf32>
    %257 = arith.mulf %251, %255 : vector<2x16xf32>
    %258 = arith.addf %256, %257 : vector<2x16xf32>
    %259 = math.tanh %258 : vector<2x16xf32>
    %260 = arith.mulf %253, %259 : vector<2x16xf32>
    %c7 = arith.constant 7 : index
    %c0_76 = arith.constant 0 : index
    %c0_77 = arith.constant 0 : index
    %261 = vector.load %arg32[%c7, %c0_76, %c0_77] : memref<8x2x16xf32, #tpu.memory_space<vmem>>, vector<1x2x16xf32>
    %262 = vector.shape_cast %261 : vector<1x2x16xf32> to vector<2x16xf32>
    %263 = vector.shape_cast %260 : vector<2x16xf32> to vector<1x2x16xf32>
    tpu.vector_store %arg32[%c7, %c0_76, %c0_77], %263 {strides = array<i32>} : memref<8x2x16xf32, #tpu.memory_space<vmem>>, vector<1x2x16xf32>,
    %c0_78 = arith.constant 0 : index
    %c0_79 = arith.constant 0 : index
    %264 = vector.load %arg13[%c0_78, %c0_79] : memref<16x64xf32, #tpu.memory_space<vmem>>, vector<16x64xf32>
    %c0_80 = arith.constant 0 : index
    %c0_81 = arith.constant 0 : index
    %c0_82 = arith.constant 0 : index
    %265 = vector.load %arg32[%c0_80, %c0_81, %c0_82] : memref<8x2x16xf32, #tpu.memory_space<vmem>>, vector<8x2x16xf32>
    %c0_83 = arith.constant 0 : index
    %c0_84 = arith.constant 0 : index
    %266 = vector.load %arg12[%c0_83, %c0_84] : memref<16x64xf32, #tpu.memory_space<vmem>>, vector<16x64xf32>
    %267 = arith.truncf %265 : vector<8x2x16xf32> to vector<8x2x16xbf16>
    %268 = arith.truncf %266 : vector<16x64xf32> to vector<16x64xbf16>
    %cst_85 = arith.constant dense<0.000000e+00> : vector<8x2x64xf32>
    %269 = tpu.matmul %267, %268, %cst_85 {dimension_numbers = #tpu.dot_dimension_numbers<[2], [0], [0, 1], [1], [0, 0, 0, 1, 1, 1], [], []>} : vector<8x2x16xbf16>, vector<16x64xbf16>, vector<8x2x64xf32> -> vector<8x2x64xf32>
    %c0_86 = arith.constant 0 : index
    %c0_87 = arith.constant 0 : index
    %c0_88 = arith.constant 0 : index
    %270 = vector.load %arg14[%c0_86, %c0_87, %c0_88] : memref<1x1x64xf32, #tpu.memory_space<vmem>>, vector<1x1x64xf32>
    %271 = vector.broadcast %270 : vector<1x1x64xf32> to vector<8x2x64xf32>
    %272 = arith.addf %269, %271 : vector<8x2x64xf32>
    %cst_89 = arith.constant 0.000000e+00 : f32
    %273 = vector.broadcast %cst_89 : f32 to vector<2x16xf32>
    %cst_90 = arith.constant 0.000000e+00 : f32
    %274 = vector.broadcast %cst_90 : f32 to vector<2x16xf32>
    %275 = vector.extract_strided_slice %272 {offsets = [0, 0, 0], sizes = [1, 2, 64], strides = [1, 1, 1]} : vector<8x2x64xf32> to vector<1x2x64xf32>
    %276 = vector.shape_cast %275 : vector<1x2x64xf32> to vector<2x64xf32>
    %277 = arith.truncf %273 : vector<2x16xf32> to vector<2x16xbf16>
    %278 = arith.truncf %264 : vector<16x64xf32> to vector<16x64xbf16>
    %cst_91 = arith.constant dense<0.000000e+00> : vector<2x64xf32>
    %279 = tpu.matmul %277, %278, %cst_91 {dimension_numbers = #tpu.dot_dimension_numbers<[1], [0], [0], [1], [0, 0, 1, 1], [], []>} : vector<2x16xbf16>, vector<16x64xbf16>, vector<2x64xf32> -> vector<2x64xf32>
    %280 = arith.addf %276, %279 : vector<2x64xf32>
    %281 = arith.negf %280 : vector<2x64xf32>
    %282 = math.exp %281 : vector<2x64xf32>
    %cst_92 = arith.constant 1.000000e+00 : f32
    %283 = vector.broadcast %cst_92 : f32 to vector<2x64xf32>
    %284 = arith.addf %283, %282 : vector<2x64xf32>
    %285 = arith.divf %283, %284 : vector<2x64xf32>
    %286 = vector.extract_strided_slice %285 {offsets = [0, 0], sizes = [2, 16], strides = [1, 1]} : vector<2x64xf32> to vector<2x16xf32>
    %287 = vector.extract_strided_slice %285 {offsets = [0, 16], sizes = [2, 16], strides = [1, 1]} : vector<2x64xf32> to vector<2x16xf32>
    %288 = vector.extract_strided_slice %285 {offsets = [0, 48], sizes = [2, 16], strides = [1, 1]} : vector<2x64xf32> to vector<2x16xf32>
    %289 = vector.extract_strided_slice %280 {offsets = [0, 32], sizes = [2, 16], strides = [1, 1]} : vector<2x64xf32> to vector<2x16xf32>
    %290 = math.tanh %289 : vector<2x16xf32>
    %291 = arith.mulf %287, %274 : vector<2x16xf32>
    %292 = arith.mulf %286, %290 : vector<2x16xf32>
    %293 = arith.addf %291, %292 : vector<2x16xf32>
    %294 = math.tanh %293 : vector<2x16xf32>
    %295 = arith.mulf %288, %294 : vector<2x16xf32>
    %c0_93 = arith.constant 0 : index
    %c0_94 = arith.constant 0 : index
    %c0_95 = arith.constant 0 : index
    %296 = vector.load %arg32[%c0_93, %c0_94, %c0_95] : memref<8x2x16xf32, #tpu.memory_space<vmem>>, vector<1x2x16xf32>
    %297 = vector.shape_cast %296 : vector<1x2x16xf32> to vector<2x16xf32>
    %298 = vector.shape_cast %295 : vector<2x16xf32> to vector<1x2x16xf32>
    tpu.vector_store %arg32[%c0_93, %c0_94, %c0_95], %298 {strides = array<i32>} : memref<8x2x16xf32, #tpu.memory_space<vmem>>, vector<1x2x16xf32>,
    %299 = vector.extract_strided_slice %272 {offsets = [1, 0, 0], sizes = [1, 2, 64], strides = [1, 1, 1]} : vector<8x2x64xf32> to vector<1x2x64xf32>
    %300 = vector.shape_cast %299 : vector<1x2x64xf32> to vector<2x64xf32>
    %301 = arith.truncf %295 : vector<2x16xf32> to vector<2x16xbf16>
    %302 = arith.truncf %264 : vector<16x64xf32> to vector<16x64xbf16>
    %cst_96 = arith.constant dense<0.000000e+00> : vector<2x64xf32>
    %303 = tpu.matmul %301, %302, %cst_96 {dimension_numbers = #tpu.dot_dimension_numbers<[1], [0], [0], [1], [0, 0, 1, 1], [], []>} : vector<2x16xbf16>, vector<16x64xbf16>, vector<2x64xf32> -> vector<2x64xf32>
    %304 = arith.addf %300, %303 : vector<2x64xf32>
    %305 = arith.negf %304 : vector<2x64xf32>
    %306 = math.exp %305 : vector<2x64xf32>
    %cst_97 = arith.constant 1.000000e+00 : f32
    %307 = vector.broadcast %cst_97 : f32 to vector<2x64xf32>
    %308 = arith.addf %307, %306 : vector<2x64xf32>
    %309 = arith.divf %307, %308 : vector<2x64xf32>
    %310 = vector.extract_strided_slice %309 {offsets = [0, 0], sizes = [2, 16], strides = [1, 1]} : vector<2x64xf32> to vector<2x16xf32>
    %311 = vector.extract_strided_slice %309 {offsets = [0, 16], sizes = [2, 16], strides = [1, 1]} : vector<2x64xf32> to vector<2x16xf32>
    %312 = vector.extract_strided_slice %309 {offsets = [0, 48], sizes = [2, 16], strides = [1, 1]} : vector<2x64xf32> to vector<2x16xf32>
    %313 = vector.extract_strided_slice %304 {offsets = [0, 32], sizes = [2, 16], strides = [1, 1]} : vector<2x64xf32> to vector<2x16xf32>
    %314 = math.tanh %313 : vector<2x16xf32>
    %315 = arith.mulf %311, %293 : vector<2x16xf32>
    %316 = arith.mulf %310, %314 : vector<2x16xf32>
    %317 = arith.addf %315, %316 : vector<2x16xf32>
    %318 = math.tanh %317 : vector<2x16xf32>
    %319 = arith.mulf %312, %318 : vector<2x16xf32>
    %c1_98 = arith.constant 1 : index
    %c0_99 = arith.constant 0 : index
    %c0_100 = arith.constant 0 : index
    %320 = vector.load %arg32[%c1_98, %c0_99, %c0_100] : memref<8x2x16xf32, #tpu.memory_space<vmem>>, vector<1x2x16xf32>
    %321 = vector.shape_cast %320 : vector<1x2x16xf32> to vector<2x16xf32>
    %322 = vector.shape_cast %319 : vector<2x16xf32> to vector<1x2x16xf32>
    tpu.vector_store %arg32[%c1_98, %c0_99, %c0_100], %322 {strides = array<i32>} : memref<8x2x16xf32, #tpu.memory_space<vmem>>, vector<1x2x16xf32>,
    %323 = vector.extract_strided_slice %272 {offsets = [2, 0, 0], sizes = [1, 2, 64], strides = [1, 1, 1]} : vector<8x2x64xf32> to vector<1x2x64xf32>
    %324 = vector.shape_cast %323 : vector<1x2x64xf32> to vector<2x64xf32>
    %325 = arith.truncf %319 : vector<2x16xf32> to vector<2x16xbf16>
    %326 = arith.truncf %264 : vector<16x64xf32> to vector<16x64xbf16>
    %cst_101 = arith.constant dense<0.000000e+00> : vector<2x64xf32>
    %327 = tpu.matmul %325, %326, %cst_101 {dimension_numbers = #tpu.dot_dimension_numbers<[1], [0], [0], [1], [0, 0, 1, 1], [], []>} : vector<2x16xbf16>, vector<16x64xbf16>, vector<2x64xf32> -> vector<2x64xf32>
    %328 = arith.addf %324, %327 : vector<2x64xf32>
    %329 = arith.negf %328 : vector<2x64xf32>
    %330 = math.exp %329 : vector<2x64xf32>
    %cst_102 = arith.constant 1.000000e+00 : f32
    %331 = vector.broadcast %cst_102 : f32 to vector<2x64xf32>
    %332 = arith.addf %331, %330 : vector<2x64xf32>
    %333 = arith.divf %331, %332 : vector<2x64xf32>
    %334 = vector.extract_strided_slice %333 {offsets = [0, 0], sizes = [2, 16], strides = [1, 1]} : vector<2x64xf32> to vector<2x16xf32>
    %335 = vector.extract_strided_slice %333 {offsets = [0, 16], sizes = [2, 16], strides = [1, 1]} : vector<2x64xf32> to vector<2x16xf32>
    %336 = vector.extract_strided_slice %333 {offsets = [0, 48], sizes = [2, 16], strides = [1, 1]} : vector<2x64xf32> to vector<2x16xf32>
    %337 = vector.extract_strided_slice %328 {offsets = [0, 32], sizes = [2, 16], strides = [1, 1]} : vector<2x64xf32> to vector<2x16xf32>
    %338 = math.tanh %337 : vector<2x16xf32>
    %339 = arith.mulf %335, %317 : vector<2x16xf32>
    %340 = arith.mulf %334, %338 : vector<2x16xf32>
    %341 = arith.addf %339, %340 : vector<2x16xf32>
    %342 = math.tanh %341 : vector<2x16xf32>
    %343 = arith.mulf %336, %342 : vector<2x16xf32>
    %c2_103 = arith.constant 2 : index
    %c0_104 = arith.constant 0 : index
    %c0_105 = arith.constant 0 : index
    %344 = vector.load %arg32[%c2_103, %c0_104, %c0_105] : memref<8x2x16xf32, #tpu.memory_space<vmem>>, vector<1x2x16xf32>
    %345 = vector.shape_cast %344 : vector<1x2x16xf32> to vector<2x16xf32>
    %346 = vector.shape_cast %343 : vector<2x16xf32> to vector<1x2x16xf32>
    tpu.vector_store %arg32[%c2_103, %c0_104, %c0_105], %346 {strides = array<i32>} : memref<8x2x16xf32, #tpu.memory_space<vmem>>, vector<1x2x16xf32>,
    %347 = vector.extract_strided_slice %272 {offsets = [3, 0, 0], sizes = [1, 2, 64], strides = [1, 1, 1]} : vector<8x2x64xf32> to vector<1x2x64xf32>
    %348 = vector.shape_cast %347 : vector<1x2x64xf32> to vector<2x64xf32>
    %349 = arith.truncf %343 : vector<2x16xf32> to vector<2x16xbf16>
    %350 = arith.truncf %264 : vector<16x64xf32> to vector<16x64xbf16>
    %cst_106 = arith.constant dense<0.000000e+00> : vector<2x64xf32>
    %351 = tpu.matmul %349, %350, %cst_106 {dimension_numbers = #tpu.dot_dimension_numbers<[1], [0], [0], [1], [0, 0, 1, 1], [], []>} : vector<2x16xbf16>, vector<16x64xbf16>, vector<2x64xf32> -> vector<2x64xf32>
    %352 = arith.addf %348, %351 : vector<2x64xf32>
    %353 = arith.negf %352 : vector<2x64xf32>
    %354 = math.exp %353 : vector<2x64xf32>
    %cst_107 = arith.constant 1.000000e+00 : f32
    %355 = vector.broadcast %cst_107 : f32 to vector<2x64xf32>
    %356 = arith.addf %355, %354 : vector<2x64xf32>
    %357 = arith.divf %355, %356 : vector<2x64xf32>
    %358 = vector.extract_strided_slice %357 {offsets = [0, 0], sizes = [2, 16], strides = [1, 1]} : vector<2x64xf32> to vector<2x16xf32>
    %359 = vector.extract_strided_slice %357 {offsets = [0, 16], sizes = [2, 16], strides = [1, 1]} : vector<2x64xf32> to vector<2x16xf32>
    %360 = vector.extract_strided_slice %357 {offsets = [0, 48], sizes = [2, 16], strides = [1, 1]} : vector<2x64xf32> to vector<2x16xf32>
    %361 = vector.extract_strided_slice %352 {offsets = [0, 32], sizes = [2, 16], strides = [1, 1]} : vector<2x64xf32> to vector<2x16xf32>
    %362 = math.tanh %361 : vector<2x16xf32>
    %363 = arith.mulf %359, %341 : vector<2x16xf32>
    %364 = arith.mulf %358, %362 : vector<2x16xf32>
    %365 = arith.addf %363, %364 : vector<2x16xf32>
    %366 = math.tanh %365 : vector<2x16xf32>
    %367 = arith.mulf %360, %366 : vector<2x16xf32>
    %c3_108 = arith.constant 3 : index
    %c0_109 = arith.constant 0 : index
    %c0_110 = arith.constant 0 : index
    %368 = vector.load %arg32[%c3_108, %c0_109, %c0_110] : memref<8x2x16xf32, #tpu.memory_space<vmem>>, vector<1x2x16xf32>
    %369 = vector.shape_cast %368 : vector<1x2x16xf32> to vector<2x16xf32>
    %370 = vector.shape_cast %367 : vector<2x16xf32> to vector<1x2x16xf32>
    tpu.vector_store %arg32[%c3_108, %c0_109, %c0_110], %370 {strides = array<i32>} : memref<8x2x16xf32, #tpu.memory_space<vmem>>, vector<1x2x16xf32>,
    %371 = vector.extract_strided_slice %272 {offsets = [4, 0, 0], sizes = [1, 2, 64], strides = [1, 1, 1]} : vector<8x2x64xf32> to vector<1x2x64xf32>
    %372 = vector.shape_cast %371 : vector<1x2x64xf32> to vector<2x64xf32>
    %373 = arith.truncf %367 : vector<2x16xf32> to vector<2x16xbf16>
    %374 = arith.truncf %264 : vector<16x64xf32> to vector<16x64xbf16>
    %cst_111 = arith.constant dense<0.000000e+00> : vector<2x64xf32>
    %375 = tpu.matmul %373, %374, %cst_111 {dimension_numbers = #tpu.dot_dimension_numbers<[1], [0], [0], [1], [0, 0, 1, 1], [], []>} : vector<2x16xbf16>, vector<16x64xbf16>, vector<2x64xf32> -> vector<2x64xf32>
    %376 = arith.addf %372, %375 : vector<2x64xf32>
    %377 = arith.negf %376 : vector<2x64xf32>
    %378 = math.exp %377 : vector<2x64xf32>
    %cst_112 = arith.constant 1.000000e+00 : f32
    %379 = vector.broadcast %cst_112 : f32 to vector<2x64xf32>
    %380 = arith.addf %379, %378 : vector<2x64xf32>
    %381 = arith.divf %379, %380 : vector<2x64xf32>
    %382 = vector.extract_strided_slice %381 {offsets = [0, 0], sizes = [2, 16], strides = [1, 1]} : vector<2x64xf32> to vector<2x16xf32>
    %383 = vector.extract_strided_slice %381 {offsets = [0, 16], sizes = [2, 16], strides = [1, 1]} : vector<2x64xf32> to vector<2x16xf32>
    %384 = vector.extract_strided_slice %381 {offsets = [0, 48], sizes = [2, 16], strides = [1, 1]} : vector<2x64xf32> to vector<2x16xf32>
    %385 = vector.extract_strided_slice %376 {offsets = [0, 32], sizes = [2, 16], strides = [1, 1]} : vector<2x64xf32> to vector<2x16xf32>
    %386 = math.tanh %385 : vector<2x16xf32>
    %387 = arith.mulf %383, %365 : vector<2x16xf32>
    %388 = arith.mulf %382, %386 : vector<2x16xf32>
    %389 = arith.addf %387, %388 : vector<2x16xf32>
    %390 = math.tanh %389 : vector<2x16xf32>
    %391 = arith.mulf %384, %390 : vector<2x16xf32>
    %c4_113 = arith.constant 4 : index
    %c0_114 = arith.constant 0 : index
    %c0_115 = arith.constant 0 : index
    %392 = vector.load %arg32[%c4_113, %c0_114, %c0_115] : memref<8x2x16xf32, #tpu.memory_space<vmem>>, vector<1x2x16xf32>
    %393 = vector.shape_cast %392 : vector<1x2x16xf32> to vector<2x16xf32>
    %394 = vector.shape_cast %391 : vector<2x16xf32> to vector<1x2x16xf32>
    tpu.vector_store %arg32[%c4_113, %c0_114, %c0_115], %394 {strides = array<i32>} : memref<8x2x16xf32, #tpu.memory_space<vmem>>, vector<1x2x16xf32>,
    %395 = vector.extract_strided_slice %272 {offsets = [5, 0, 0], sizes = [1, 2, 64], strides = [1, 1, 1]} : vector<8x2x64xf32> to vector<1x2x64xf32>
    %396 = vector.shape_cast %395 : vector<1x2x64xf32> to vector<2x64xf32>
    %397 = arith.truncf %391 : vector<2x16xf32> to vector<2x16xbf16>
    %398 = arith.truncf %264 : vector<16x64xf32> to vector<16x64xbf16>
    %cst_116 = arith.constant dense<0.000000e+00> : vector<2x64xf32>
    %399 = tpu.matmul %397, %398, %cst_116 {dimension_numbers = #tpu.dot_dimension_numbers<[1], [0], [0], [1], [0, 0, 1, 1], [], []>} : vector<2x16xbf16>, vector<16x64xbf16>, vector<2x64xf32> -> vector<2x64xf32>
    %400 = arith.addf %396, %399 : vector<2x64xf32>
    %401 = arith.negf %400 : vector<2x64xf32>
    %402 = math.exp %401 : vector<2x64xf32>
    %cst_117 = arith.constant 1.000000e+00 : f32
    %403 = vector.broadcast %cst_117 : f32 to vector<2x64xf32>
    %404 = arith.addf %403, %402 : vector<2x64xf32>
    %405 = arith.divf %403, %404 : vector<2x64xf32>
    %406 = vector.extract_strided_slice %405 {offsets = [0, 0], sizes = [2, 16], strides = [1, 1]} : vector<2x64xf32> to vector<2x16xf32>
    %407 = vector.extract_strided_slice %405 {offsets = [0, 16], sizes = [2, 16], strides = [1, 1]} : vector<2x64xf32> to vector<2x16xf32>
    %408 = vector.extract_strided_slice %405 {offsets = [0, 48], sizes = [2, 16], strides = [1, 1]} : vector<2x64xf32> to vector<2x16xf32>
    %409 = vector.extract_strided_slice %400 {offsets = [0, 32], sizes = [2, 16], strides = [1, 1]} : vector<2x64xf32> to vector<2x16xf32>
    %410 = math.tanh %409 : vector<2x16xf32>
    %411 = arith.mulf %407, %389 : vector<2x16xf32>
    %412 = arith.mulf %406, %410 : vector<2x16xf32>
    %413 = arith.addf %411, %412 : vector<2x16xf32>
    %414 = math.tanh %413 : vector<2x16xf32>
    %415 = arith.mulf %408, %414 : vector<2x16xf32>
    %c5_118 = arith.constant 5 : index
    %c0_119 = arith.constant 0 : index
    %c0_120 = arith.constant 0 : index
    %416 = vector.load %arg32[%c5_118, %c0_119, %c0_120] : memref<8x2x16xf32, #tpu.memory_space<vmem>>, vector<1x2x16xf32>
    %417 = vector.shape_cast %416 : vector<1x2x16xf32> to vector<2x16xf32>
    %418 = vector.shape_cast %415 : vector<2x16xf32> to vector<1x2x16xf32>
    tpu.vector_store %arg32[%c5_118, %c0_119, %c0_120], %418 {strides = array<i32>} : memref<8x2x16xf32, #tpu.memory_space<vmem>>, vector<1x2x16xf32>,
    %419 = vector.extract_strided_slice %272 {offsets = [6, 0, 0], sizes = [1, 2, 64], strides = [1, 1, 1]} : vector<8x2x64xf32> to vector<1x2x64xf32>
    %420 = vector.shape_cast %419 : vector<1x2x64xf32> to vector<2x64xf32>
    %421 = arith.truncf %415 : vector<2x16xf32> to vector<2x16xbf16>
    %422 = arith.truncf %264 : vector<16x64xf32> to vector<16x64xbf16>
    %cst_121 = arith.constant dense<0.000000e+00> : vector<2x64xf32>
    %423 = tpu.matmul %421, %422, %cst_121 {dimension_numbers = #tpu.dot_dimension_numbers<[1], [0], [0], [1], [0, 0, 1, 1], [], []>} : vector<2x16xbf16>, vector<16x64xbf16>, vector<2x64xf32> -> vector<2x64xf32>
    %424 = arith.addf %420, %423 : vector<2x64xf32>
    %425 = arith.negf %424 : vector<2x64xf32>
    %426 = math.exp %425 : vector<2x64xf32>
    %cst_122 = arith.constant 1.000000e+00 : f32
    %427 = vector.broadcast %cst_122 : f32 to vector<2x64xf32>
    %428 = arith.addf %427, %426 : vector<2x64xf32>
    %429 = arith.divf %427, %428 : vector<2x64xf32>
    %430 = vector.extract_strided_slice %429 {offsets = [0, 0], sizes = [2, 16], strides = [1, 1]} : vector<2x64xf32> to vector<2x16xf32>
    %431 = vector.extract_strided_slice %429 {offsets = [0, 16], sizes = [2, 16], strides = [1, 1]} : vector<2x64xf32> to vector<2x16xf32>
    %432 = vector.extract_strided_slice %429 {offsets = [0, 48], sizes = [2, 16], strides = [1, 1]} : vector<2x64xf32> to vector<2x16xf32>
    %433 = vector.extract_strided_slice %424 {offsets = [0, 32], sizes = [2, 16], strides = [1, 1]} : vector<2x64xf32> to vector<2x16xf32>
    %434 = math.tanh %433 : vector<2x16xf32>
    %435 = arith.mulf %431, %413 : vector<2x16xf32>
    %436 = arith.mulf %430, %434 : vector<2x16xf32>
    %437 = arith.addf %435, %436 : vector<2x16xf32>
    %438 = math.tanh %437 : vector<2x16xf32>
    %439 = arith.mulf %432, %438 : vector<2x16xf32>
    %c6_123 = arith.constant 6 : index
    %c0_124 = arith.constant 0 : index
    %c0_125 = arith.constant 0 : index
    %440 = vector.load %arg32[%c6_123, %c0_124, %c0_125] : memref<8x2x16xf32, #tpu.memory_space<vmem>>, vector<1x2x16xf32>
    %441 = vector.shape_cast %440 : vector<1x2x16xf32> to vector<2x16xf32>
    %442 = vector.shape_cast %439 : vector<2x16xf32> to vector<1x2x16xf32>
    tpu.vector_store %arg32[%c6_123, %c0_124, %c0_125], %442 {strides = array<i32>} : memref<8x2x16xf32, #tpu.memory_space<vmem>>, vector<1x2x16xf32>,
    %443 = vector.extract_strided_slice %272 {offsets = [7, 0, 0], sizes = [1, 2, 64], strides = [1, 1, 1]} : vector<8x2x64xf32> to vector<1x2x64xf32>
    %444 = vector.shape_cast %443 : vector<1x2x64xf32> to vector<2x64xf32>
    %445 = arith.truncf %439 : vector<2x16xf32> to vector<2x16xbf16>
    %446 = arith.truncf %264 : vector<16x64xf32> to vector<16x64xbf16>
    %cst_126 = arith.constant dense<0.000000e+00> : vector<2x64xf32>
    %447 = tpu.matmul %445, %446, %cst_126 {dimension_numbers = #tpu.dot_dimension_numbers<[1], [0], [0], [1], [0, 0, 1, 1], [], []>} : vector<2x16xbf16>, vector<16x64xbf16>, vector<2x64xf32> -> vector<2x64xf32>
    %448 = arith.addf %444, %447 : vector<2x64xf32>
    %449 = arith.negf %448 : vector<2x64xf32>
    %450 = math.exp %449 : vector<2x64xf32>
    %cst_127 = arith.constant 1.000000e+00 : f32
    %451 = vector.broadcast %cst_127 : f32 to vector<2x64xf32>
    %452 = arith.addf %451, %450 : vector<2x64xf32>
    %453 = arith.divf %451, %452 : vector<2x64xf32>
    %454 = vector.extract_strided_slice %453 {offsets = [0, 0], sizes = [2, 16], strides = [1, 1]} : vector<2x64xf32> to vector<2x16xf32>
    %455 = vector.extract_strided_slice %453 {offsets = [0, 16], sizes = [2, 16], strides = [1, 1]} : vector<2x64xf32> to vector<2x16xf32>
    %456 = vector.extract_strided_slice %453 {offsets = [0, 48], sizes = [2, 16], strides = [1, 1]} : vector<2x64xf32> to vector<2x16xf32>
    %457 = vector.extract_strided_slice %448 {offsets = [0, 32], sizes = [2, 16], strides = [1, 1]} : vector<2x64xf32> to vector<2x16xf32>
    %458 = math.tanh %457 : vector<2x16xf32>
    %459 = arith.mulf %455, %437 : vector<2x16xf32>
    %460 = arith.mulf %454, %458 : vector<2x16xf32>
    %461 = arith.addf %459, %460 : vector<2x16xf32>
    %462 = math.tanh %461 : vector<2x16xf32>
    %463 = arith.mulf %456, %462 : vector<2x16xf32>
    %c7_128 = arith.constant 7 : index
    %c0_129 = arith.constant 0 : index
    %c0_130 = arith.constant 0 : index
    %464 = vector.load %arg32[%c7_128, %c0_129, %c0_130] : memref<8x2x16xf32, #tpu.memory_space<vmem>>, vector<1x2x16xf32>
    %465 = vector.shape_cast %464 : vector<1x2x16xf32> to vector<2x16xf32>
    %466 = vector.shape_cast %463 : vector<2x16xf32> to vector<1x2x16xf32>
    tpu.vector_store %arg32[%c7_128, %c0_129, %c0_130], %466 {strides = array<i32>} : memref<8x2x16xf32, #tpu.memory_space<vmem>>, vector<1x2x16xf32>,
    %c0_131 = arith.constant 0 : index
    %c0_132 = arith.constant 0 : index
    %467 = vector.load %arg16[%c0_131, %c0_132] : memref<16x64xf32, #tpu.memory_space<vmem>>, vector<16x64xf32>
    %c0_133 = arith.constant 0 : index
    %c0_134 = arith.constant 0 : index
    %c0_135 = arith.constant 0 : index
    %468 = vector.load %arg32[%c0_133, %c0_134, %c0_135] : memref<8x2x16xf32, #tpu.memory_space<vmem>>, vector<8x2x16xf32>
    %c0_136 = arith.constant 0 : index
    %c0_137 = arith.constant 0 : index
    %469 = vector.load %arg15[%c0_136, %c0_137] : memref<16x64xf32, #tpu.memory_space<vmem>>, vector<16x64xf32>
    %470 = arith.truncf %468 : vector<8x2x16xf32> to vector<8x2x16xbf16>
    %471 = arith.truncf %469 : vector<16x64xf32> to vector<16x64xbf16>
    %cst_138 = arith.constant dense<0.000000e+00> : vector<8x2x64xf32>
    %472 = tpu.matmul %470, %471, %cst_138 {dimension_numbers = #tpu.dot_dimension_numbers<[2], [0], [0, 1], [1], [0, 0, 0, 1, 1, 1], [], []>} : vector<8x2x16xbf16>, vector<16x64xbf16>, vector<8x2x64xf32> -> vector<8x2x64xf32>
    %c0_139 = arith.constant 0 : index
    %c0_140 = arith.constant 0 : index
    %c0_141 = arith.constant 0 : index
    %473 = vector.load %arg17[%c0_139, %c0_140, %c0_141] : memref<1x1x64xf32, #tpu.memory_space<vmem>>, vector<1x1x64xf32>
    %474 = vector.broadcast %473 : vector<1x1x64xf32> to vector<8x2x64xf32>
    %475 = arith.addf %472, %474 : vector<8x2x64xf32>
    %cst_142 = arith.constant 0.000000e+00 : f32
    %476 = vector.broadcast %cst_142 : f32 to vector<2x16xf32>
    %cst_143 = arith.constant 0.000000e+00 : f32
    %477 = vector.broadcast %cst_143 : f32 to vector<2x16xf32>
    %478 = vector.extract_strided_slice %475 {offsets = [0, 0, 0], sizes = [1, 2, 64], strides = [1, 1, 1]} : vector<8x2x64xf32> to vector<1x2x64xf32>
    %479 = vector.shape_cast %478 : vector<1x2x64xf32> to vector<2x64xf32>
    %480 = arith.truncf %476 : vector<2x16xf32> to vector<2x16xbf16>
    %481 = arith.truncf %467 : vector<16x64xf32> to vector<16x64xbf16>
    %cst_144 = arith.constant dense<0.000000e+00> : vector<2x64xf32>
    %482 = tpu.matmul %480, %481, %cst_144 {dimension_numbers = #tpu.dot_dimension_numbers<[1], [0], [0], [1], [0, 0, 1, 1], [], []>} : vector<2x16xbf16>, vector<16x64xbf16>, vector<2x64xf32> -> vector<2x64xf32>
    %483 = arith.addf %479, %482 : vector<2x64xf32>
    %484 = arith.negf %483 : vector<2x64xf32>
    %485 = math.exp %484 : vector<2x64xf32>
    %cst_145 = arith.constant 1.000000e+00 : f32
    %486 = vector.broadcast %cst_145 : f32 to vector<2x64xf32>
    %487 = arith.addf %486, %485 : vector<2x64xf32>
    %488 = arith.divf %486, %487 : vector<2x64xf32>
    %489 = vector.extract_strided_slice %488 {offsets = [0, 0], sizes = [2, 16], strides = [1, 1]} : vector<2x64xf32> to vector<2x16xf32>
    %490 = vector.extract_strided_slice %488 {offsets = [0, 16], sizes = [2, 16], strides = [1, 1]} : vector<2x64xf32> to vector<2x16xf32>
    %491 = vector.extract_strided_slice %488 {offsets = [0, 48], sizes = [2, 16], strides = [1, 1]} : vector<2x64xf32> to vector<2x16xf32>
    %492 = vector.extract_strided_slice %483 {offsets = [0, 32], sizes = [2, 16], strides = [1, 1]} : vector<2x64xf32> to vector<2x16xf32>
    %493 = math.tanh %492 : vector<2x16xf32>
    %494 = arith.mulf %490, %477 : vector<2x16xf32>
    %495 = arith.mulf %489, %493 : vector<2x16xf32>
    %496 = arith.addf %494, %495 : vector<2x16xf32>
    %497 = math.tanh %496 : vector<2x16xf32>
    %498 = arith.mulf %491, %497 : vector<2x16xf32>
    %c0_146 = arith.constant 0 : index
    %c0_147 = arith.constant 0 : index
    %c0_148 = arith.constant 0 : index
    %499 = vector.load %arg32[%c0_146, %c0_147, %c0_148] : memref<8x2x16xf32, #tpu.memory_space<vmem>>, vector<1x2x16xf32>
    %500 = vector.shape_cast %499 : vector<1x2x16xf32> to vector<2x16xf32>
    %501 = vector.shape_cast %498 : vector<2x16xf32> to vector<1x2x16xf32>
    tpu.vector_store %arg32[%c0_146, %c0_147, %c0_148], %501 {strides = array<i32>} : memref<8x2x16xf32, #tpu.memory_space<vmem>>, vector<1x2x16xf32>,
    %502 = vector.extract_strided_slice %475 {offsets = [1, 0, 0], sizes = [1, 2, 64], strides = [1, 1, 1]} : vector<8x2x64xf32> to vector<1x2x64xf32>
    %503 = vector.shape_cast %502 : vector<1x2x64xf32> to vector<2x64xf32>
    %504 = arith.truncf %498 : vector<2x16xf32> to vector<2x16xbf16>
    %505 = arith.truncf %467 : vector<16x64xf32> to vector<16x64xbf16>
    %cst_149 = arith.constant dense<0.000000e+00> : vector<2x64xf32>
    %506 = tpu.matmul %504, %505, %cst_149 {dimension_numbers = #tpu.dot_dimension_numbers<[1], [0], [0], [1], [0, 0, 1, 1], [], []>} : vector<2x16xbf16>, vector<16x64xbf16>, vector<2x64xf32> -> vector<2x64xf32>
    %507 = arith.addf %503, %506 : vector<2x64xf32>
    %508 = arith.negf %507 : vector<2x64xf32>
    %509 = math.exp %508 : vector<2x64xf32>
    %cst_150 = arith.constant 1.000000e+00 : f32
    %510 = vector.broadcast %cst_150 : f32 to vector<2x64xf32>
    %511 = arith.addf %510, %509 : vector<2x64xf32>
    %512 = arith.divf %510, %511 : vector<2x64xf32>
    %513 = vector.extract_strided_slice %512 {offsets = [0, 0], sizes = [2, 16], strides = [1, 1]} : vector<2x64xf32> to vector<2x16xf32>
    %514 = vector.extract_strided_slice %512 {offsets = [0, 16], sizes = [2, 16], strides = [1, 1]} : vector<2x64xf32> to vector<2x16xf32>
    %515 = vector.extract_strided_slice %512 {offsets = [0, 48], sizes = [2, 16], strides = [1, 1]} : vector<2x64xf32> to vector<2x16xf32>
    %516 = vector.extract_strided_slice %507 {offsets = [0, 32], sizes = [2, 16], strides = [1, 1]} : vector<2x64xf32> to vector<2x16xf32>
    %517 = math.tanh %516 : vector<2x16xf32>
    %518 = arith.mulf %514, %496 : vector<2x16xf32>
    %519 = arith.mulf %513, %517 : vector<2x16xf32>
    %520 = arith.addf %518, %519 : vector<2x16xf32>
    %521 = math.tanh %520 : vector<2x16xf32>
    %522 = arith.mulf %515, %521 : vector<2x16xf32>
    %c1_151 = arith.constant 1 : index
    %c0_152 = arith.constant 0 : index
    %c0_153 = arith.constant 0 : index
    %523 = vector.load %arg32[%c1_151, %c0_152, %c0_153] : memref<8x2x16xf32, #tpu.memory_space<vmem>>, vector<1x2x16xf32>
    %524 = vector.shape_cast %523 : vector<1x2x16xf32> to vector<2x16xf32>
    %525 = vector.shape_cast %522 : vector<2x16xf32> to vector<1x2x16xf32>
    tpu.vector_store %arg32[%c1_151, %c0_152, %c0_153], %525 {strides = array<i32>} : memref<8x2x16xf32, #tpu.memory_space<vmem>>, vector<1x2x16xf32>,
    %526 = vector.extract_strided_slice %475 {offsets = [2, 0, 0], sizes = [1, 2, 64], strides = [1, 1, 1]} : vector<8x2x64xf32> to vector<1x2x64xf32>
    %527 = vector.shape_cast %526 : vector<1x2x64xf32> to vector<2x64xf32>
    %528 = arith.truncf %522 : vector<2x16xf32> to vector<2x16xbf16>
    %529 = arith.truncf %467 : vector<16x64xf32> to vector<16x64xbf16>
    %cst_154 = arith.constant dense<0.000000e+00> : vector<2x64xf32>
    %530 = tpu.matmul %528, %529, %cst_154 {dimension_numbers = #tpu.dot_dimension_numbers<[1], [0], [0], [1], [0, 0, 1, 1], [], []>} : vector<2x16xbf16>, vector<16x64xbf16>, vector<2x64xf32> -> vector<2x64xf32>
    %531 = arith.addf %527, %530 : vector<2x64xf32>
    %532 = arith.negf %531 : vector<2x64xf32>
    %533 = math.exp %532 : vector<2x64xf32>
    %cst_155 = arith.constant 1.000000e+00 : f32
    %534 = vector.broadcast %cst_155 : f32 to vector<2x64xf32>
    %535 = arith.addf %534, %533 : vector<2x64xf32>
    %536 = arith.divf %534, %535 : vector<2x64xf32>
    %537 = vector.extract_strided_slice %536 {offsets = [0, 0], sizes = [2, 16], strides = [1, 1]} : vector<2x64xf32> to vector<2x16xf32>
    %538 = vector.extract_strided_slice %536 {offsets = [0, 16], sizes = [2, 16], strides = [1, 1]} : vector<2x64xf32> to vector<2x16xf32>
    %539 = vector.extract_strided_slice %536 {offsets = [0, 48], sizes = [2, 16], strides = [1, 1]} : vector<2x64xf32> to vector<2x16xf32>
    %540 = vector.extract_strided_slice %531 {offsets = [0, 32], sizes = [2, 16], strides = [1, 1]} : vector<2x64xf32> to vector<2x16xf32>
    %541 = math.tanh %540 : vector<2x16xf32>
    %542 = arith.mulf %538, %520 : vector<2x16xf32>
    %543 = arith.mulf %537, %541 : vector<2x16xf32>
    %544 = arith.addf %542, %543 : vector<2x16xf32>
    %545 = math.tanh %544 : vector<2x16xf32>
    %546 = arith.mulf %539, %545 : vector<2x16xf32>
    %c2_156 = arith.constant 2 : index
    %c0_157 = arith.constant 0 : index
    %c0_158 = arith.constant 0 : index
    %547 = vector.load %arg32[%c2_156, %c0_157, %c0_158] : memref<8x2x16xf32, #tpu.memory_space<vmem>>, vector<1x2x16xf32>
    %548 = vector.shape_cast %547 : vector<1x2x16xf32> to vector<2x16xf32>
    %549 = vector.shape_cast %546 : vector<2x16xf32> to vector<1x2x16xf32>
    tpu.vector_store %arg32[%c2_156, %c0_157, %c0_158], %549 {strides = array<i32>} : memref<8x2x16xf32, #tpu.memory_space<vmem>>, vector<1x2x16xf32>,
    %550 = vector.extract_strided_slice %475 {offsets = [3, 0, 0], sizes = [1, 2, 64], strides = [1, 1, 1]} : vector<8x2x64xf32> to vector<1x2x64xf32>
    %551 = vector.shape_cast %550 : vector<1x2x64xf32> to vector<2x64xf32>
    %552 = arith.truncf %546 : vector<2x16xf32> to vector<2x16xbf16>
    %553 = arith.truncf %467 : vector<16x64xf32> to vector<16x64xbf16>
    %cst_159 = arith.constant dense<0.000000e+00> : vector<2x64xf32>
    %554 = tpu.matmul %552, %553, %cst_159 {dimension_numbers = #tpu.dot_dimension_numbers<[1], [0], [0], [1], [0, 0, 1, 1], [], []>} : vector<2x16xbf16>, vector<16x64xbf16>, vector<2x64xf32> -> vector<2x64xf32>
    %555 = arith.addf %551, %554 : vector<2x64xf32>
    %556 = arith.negf %555 : vector<2x64xf32>
    %557 = math.exp %556 : vector<2x64xf32>
    %cst_160 = arith.constant 1.000000e+00 : f32
    %558 = vector.broadcast %cst_160 : f32 to vector<2x64xf32>
    %559 = arith.addf %558, %557 : vector<2x64xf32>
    %560 = arith.divf %558, %559 : vector<2x64xf32>
    %561 = vector.extract_strided_slice %560 {offsets = [0, 0], sizes = [2, 16], strides = [1, 1]} : vector<2x64xf32> to vector<2x16xf32>
    %562 = vector.extract_strided_slice %560 {offsets = [0, 16], sizes = [2, 16], strides = [1, 1]} : vector<2x64xf32> to vector<2x16xf32>
    %563 = vector.extract_strided_slice %560 {offsets = [0, 48], sizes = [2, 16], strides = [1, 1]} : vector<2x64xf32> to vector<2x16xf32>
    %564 = vector.extract_strided_slice %555 {offsets = [0, 32], sizes = [2, 16], strides = [1, 1]} : vector<2x64xf32> to vector<2x16xf32>
    %565 = math.tanh %564 : vector<2x16xf32>
    %566 = arith.mulf %562, %544 : vector<2x16xf32>
    %567 = arith.mulf %561, %565 : vector<2x16xf32>
    %568 = arith.addf %566, %567 : vector<2x16xf32>
    %569 = math.tanh %568 : vector<2x16xf32>
    %570 = arith.mulf %563, %569 : vector<2x16xf32>
    %c3_161 = arith.constant 3 : index
    %c0_162 = arith.constant 0 : index
    %c0_163 = arith.constant 0 : index
    %571 = vector.load %arg32[%c3_161, %c0_162, %c0_163] : memref<8x2x16xf32, #tpu.memory_space<vmem>>, vector<1x2x16xf32>
    %572 = vector.shape_cast %571 : vector<1x2x16xf32> to vector<2x16xf32>
    %573 = vector.shape_cast %570 : vector<2x16xf32> to vector<1x2x16xf32>
    tpu.vector_store %arg32[%c3_161, %c0_162, %c0_163], %573 {strides = array<i32>} : memref<8x2x16xf32, #tpu.memory_space<vmem>>, vector<1x2x16xf32>,
    %574 = vector.extract_strided_slice %475 {offsets = [4, 0, 0], sizes = [1, 2, 64], strides = [1, 1, 1]} : vector<8x2x64xf32> to vector<1x2x64xf32>
    %575 = vector.shape_cast %574 : vector<1x2x64xf32> to vector<2x64xf32>
    %576 = arith.truncf %570 : vector<2x16xf32> to vector<2x16xbf16>
    %577 = arith.truncf %467 : vector<16x64xf32> to vector<16x64xbf16>
    %cst_164 = arith.constant dense<0.000000e+00> : vector<2x64xf32>
    %578 = tpu.matmul %576, %577, %cst_164 {dimension_numbers = #tpu.dot_dimension_numbers<[1], [0], [0], [1], [0, 0, 1, 1], [], []>} : vector<2x16xbf16>, vector<16x64xbf16>, vector<2x64xf32> -> vector<2x64xf32>
    %579 = arith.addf %575, %578 : vector<2x64xf32>
    %580 = arith.negf %579 : vector<2x64xf32>
    %581 = math.exp %580 : vector<2x64xf32>
    %cst_165 = arith.constant 1.000000e+00 : f32
    %582 = vector.broadcast %cst_165 : f32 to vector<2x64xf32>
    %583 = arith.addf %582, %581 : vector<2x64xf32>
    %584 = arith.divf %582, %583 : vector<2x64xf32>
    %585 = vector.extract_strided_slice %584 {offsets = [0, 0], sizes = [2, 16], strides = [1, 1]} : vector<2x64xf32> to vector<2x16xf32>
    %586 = vector.extract_strided_slice %584 {offsets = [0, 16], sizes = [2, 16], strides = [1, 1]} : vector<2x64xf32> to vector<2x16xf32>
    %587 = vector.extract_strided_slice %584 {offsets = [0, 48], sizes = [2, 16], strides = [1, 1]} : vector<2x64xf32> to vector<2x16xf32>
    %588 = vector.extract_strided_slice %579 {offsets = [0, 32], sizes = [2, 16], strides = [1, 1]} : vector<2x64xf32> to vector<2x16xf32>
    %589 = math.tanh %588 : vector<2x16xf32>
    %590 = arith.mulf %586, %568 : vector<2x16xf32>
    %591 = arith.mulf %585, %589 : vector<2x16xf32>
    %592 = arith.addf %590, %591 : vector<2x16xf32>
    %593 = math.tanh %592 : vector<2x16xf32>
    %594 = arith.mulf %587, %593 : vector<2x16xf32>
    %c4_166 = arith.constant 4 : index
    %c0_167 = arith.constant 0 : index
    %c0_168 = arith.constant 0 : index
    %595 = vector.load %arg32[%c4_166, %c0_167, %c0_168] : memref<8x2x16xf32, #tpu.memory_space<vmem>>, vector<1x2x16xf32>
    %596 = vector.shape_cast %595 : vector<1x2x16xf32> to vector<2x16xf32>
    %597 = vector.shape_cast %594 : vector<2x16xf32> to vector<1x2x16xf32>
    tpu.vector_store %arg32[%c4_166, %c0_167, %c0_168], %597 {strides = array<i32>} : memref<8x2x16xf32, #tpu.memory_space<vmem>>, vector<1x2x16xf32>,
    %598 = vector.extract_strided_slice %475 {offsets = [5, 0, 0], sizes = [1, 2, 64], strides = [1, 1, 1]} : vector<8x2x64xf32> to vector<1x2x64xf32>
    %599 = vector.shape_cast %598 : vector<1x2x64xf32> to vector<2x64xf32>
    %600 = arith.truncf %594 : vector<2x16xf32> to vector<2x16xbf16>
    %601 = arith.truncf %467 : vector<16x64xf32> to vector<16x64xbf16>
    %cst_169 = arith.constant dense<0.000000e+00> : vector<2x64xf32>
    %602 = tpu.matmul %600, %601, %cst_169 {dimension_numbers = #tpu.dot_dimension_numbers<[1], [0], [0], [1], [0, 0, 1, 1], [], []>} : vector<2x16xbf16>, vector<16x64xbf16>, vector<2x64xf32> -> vector<2x64xf32>
    %603 = arith.addf %599, %602 : vector<2x64xf32>
    %604 = arith.negf %603 : vector<2x64xf32>
    %605 = math.exp %604 : vector<2x64xf32>
    %cst_170 = arith.constant 1.000000e+00 : f32
    %606 = vector.broadcast %cst_170 : f32 to vector<2x64xf32>
    %607 = arith.addf %606, %605 : vector<2x64xf32>
    %608 = arith.divf %606, %607 : vector<2x64xf32>
    %609 = vector.extract_strided_slice %608 {offsets = [0, 0], sizes = [2, 16], strides = [1, 1]} : vector<2x64xf32> to vector<2x16xf32>
    %610 = vector.extract_strided_slice %608 {offsets = [0, 16], sizes = [2, 16], strides = [1, 1]} : vector<2x64xf32> to vector<2x16xf32>
    %611 = vector.extract_strided_slice %608 {offsets = [0, 48], sizes = [2, 16], strides = [1, 1]} : vector<2x64xf32> to vector<2x16xf32>
    %612 = vector.extract_strided_slice %603 {offsets = [0, 32], sizes = [2, 16], strides = [1, 1]} : vector<2x64xf32> to vector<2x16xf32>
    %613 = math.tanh %612 : vector<2x16xf32>
    %614 = arith.mulf %610, %592 : vector<2x16xf32>
    %615 = arith.mulf %609, %613 : vector<2x16xf32>
    %616 = arith.addf %614, %615 : vector<2x16xf32>
    %617 = math.tanh %616 : vector<2x16xf32>
    %618 = arith.mulf %611, %617 : vector<2x16xf32>
    %c5_171 = arith.constant 5 : index
    %c0_172 = arith.constant 0 : index
    %c0_173 = arith.constant 0 : index
    %619 = vector.load %arg32[%c5_171, %c0_172, %c0_173] : memref<8x2x16xf32, #tpu.memory_space<vmem>>, vector<1x2x16xf32>
    %620 = vector.shape_cast %619 : vector<1x2x16xf32> to vector<2x16xf32>
    %621 = vector.shape_cast %618 : vector<2x16xf32> to vector<1x2x16xf32>
    tpu.vector_store %arg32[%c5_171, %c0_172, %c0_173], %621 {strides = array<i32>} : memref<8x2x16xf32, #tpu.memory_space<vmem>>, vector<1x2x16xf32>,
    %622 = vector.extract_strided_slice %475 {offsets = [6, 0, 0], sizes = [1, 2, 64], strides = [1, 1, 1]} : vector<8x2x64xf32> to vector<1x2x64xf32>
    %623 = vector.shape_cast %622 : vector<1x2x64xf32> to vector<2x64xf32>
    %624 = arith.truncf %618 : vector<2x16xf32> to vector<2x16xbf16>
    %625 = arith.truncf %467 : vector<16x64xf32> to vector<16x64xbf16>
    %cst_174 = arith.constant dense<0.000000e+00> : vector<2x64xf32>
    %626 = tpu.matmul %624, %625, %cst_174 {dimension_numbers = #tpu.dot_dimension_numbers<[1], [0], [0], [1], [0, 0, 1, 1], [], []>} : vector<2x16xbf16>, vector<16x64xbf16>, vector<2x64xf32> -> vector<2x64xf32>
    %627 = arith.addf %623, %626 : vector<2x64xf32>
    %628 = arith.negf %627 : vector<2x64xf32>
    %629 = math.exp %628 : vector<2x64xf32>
    %cst_175 = arith.constant 1.000000e+00 : f32
    %630 = vector.broadcast %cst_175 : f32 to vector<2x64xf32>
    %631 = arith.addf %630, %629 : vector<2x64xf32>
    %632 = arith.divf %630, %631 : vector<2x64xf32>
    %633 = vector.extract_strided_slice %632 {offsets = [0, 0], sizes = [2, 16], strides = [1, 1]} : vector<2x64xf32> to vector<2x16xf32>
    %634 = vector.extract_strided_slice %632 {offsets = [0, 16], sizes = [2, 16], strides = [1, 1]} : vector<2x64xf32> to vector<2x16xf32>
    %635 = vector.extract_strided_slice %632 {offsets = [0, 48], sizes = [2, 16], strides = [1, 1]} : vector<2x64xf32> to vector<2x16xf32>
    %636 = vector.extract_strided_slice %627 {offsets = [0, 32], sizes = [2, 16], strides = [1, 1]} : vector<2x64xf32> to vector<2x16xf32>
    %637 = math.tanh %636 : vector<2x16xf32>
    %638 = arith.mulf %634, %616 : vector<2x16xf32>
    %639 = arith.mulf %633, %637 : vector<2x16xf32>
    %640 = arith.addf %638, %639 : vector<2x16xf32>
    %641 = math.tanh %640 : vector<2x16xf32>
    %642 = arith.mulf %635, %641 : vector<2x16xf32>
    %c6_176 = arith.constant 6 : index
    %c0_177 = arith.constant 0 : index
    %c0_178 = arith.constant 0 : index
    %643 = vector.load %arg32[%c6_176, %c0_177, %c0_178] : memref<8x2x16xf32, #tpu.memory_space<vmem>>, vector<1x2x16xf32>
    %644 = vector.shape_cast %643 : vector<1x2x16xf32> to vector<2x16xf32>
    %645 = vector.shape_cast %642 : vector<2x16xf32> to vector<1x2x16xf32>
    tpu.vector_store %arg32[%c6_176, %c0_177, %c0_178], %645 {strides = array<i32>} : memref<8x2x16xf32, #tpu.memory_space<vmem>>, vector<1x2x16xf32>,
    %646 = vector.extract_strided_slice %475 {offsets = [7, 0, 0], sizes = [1, 2, 64], strides = [1, 1, 1]} : vector<8x2x64xf32> to vector<1x2x64xf32>
    %647 = vector.shape_cast %646 : vector<1x2x64xf32> to vector<2x64xf32>
    %648 = arith.truncf %642 : vector<2x16xf32> to vector<2x16xbf16>
    %649 = arith.truncf %467 : vector<16x64xf32> to vector<16x64xbf16>
    %cst_179 = arith.constant dense<0.000000e+00> : vector<2x64xf32>
    %650 = tpu.matmul %648, %649, %cst_179 {dimension_numbers = #tpu.dot_dimension_numbers<[1], [0], [0], [1], [0, 0, 1, 1], [], []>} : vector<2x16xbf16>, vector<16x64xbf16>, vector<2x64xf32> -> vector<2x64xf32>
    %651 = arith.addf %647, %650 : vector<2x64xf32>
    %652 = arith.negf %651 : vector<2x64xf32>
    %653 = math.exp %652 : vector<2x64xf32>
    %cst_180 = arith.constant 1.000000e+00 : f32
    %654 = vector.broadcast %cst_180 : f32 to vector<2x64xf32>
    %655 = arith.addf %654, %653 : vector<2x64xf32>
    %656 = arith.divf %654, %655 : vector<2x64xf32>
    %657 = vector.extract_strided_slice %656 {offsets = [0, 0], sizes = [2, 16], strides = [1, 1]} : vector<2x64xf32> to vector<2x16xf32>
    %658 = vector.extract_strided_slice %656 {offsets = [0, 16], sizes = [2, 16], strides = [1, 1]} : vector<2x64xf32> to vector<2x16xf32>
    %659 = vector.extract_strided_slice %656 {offsets = [0, 48], sizes = [2, 16], strides = [1, 1]} : vector<2x64xf32> to vector<2x16xf32>
    %660 = vector.extract_strided_slice %651 {offsets = [0, 32], sizes = [2, 16], strides = [1, 1]} : vector<2x64xf32> to vector<2x16xf32>
    %661 = math.tanh %660 : vector<2x16xf32>
    %662 = arith.mulf %658, %640 : vector<2x16xf32>
    %663 = arith.mulf %657, %661 : vector<2x16xf32>
    %664 = arith.addf %662, %663 : vector<2x16xf32>
    %665 = math.tanh %664 : vector<2x16xf32>
    %666 = arith.mulf %659, %665 : vector<2x16xf32>
    %c7_181 = arith.constant 7 : index
    %c0_182 = arith.constant 0 : index
    %c0_183 = arith.constant 0 : index
    %667 = vector.load %arg32[%c7_181, %c0_182, %c0_183] : memref<8x2x16xf32, #tpu.memory_space<vmem>>, vector<1x2x16xf32>
    %668 = vector.shape_cast %667 : vector<1x2x16xf32> to vector<2x16xf32>
    %669 = vector.shape_cast %666 : vector<2x16xf32> to vector<1x2x16xf32>
    tpu.vector_store %arg32[%c7_181, %c0_182, %c0_183], %669 {strides = array<i32>} : memref<8x2x16xf32, #tpu.memory_space<vmem>>, vector<1x2x16xf32>,
    %c0_184 = arith.constant 0 : index
    %c0_185 = arith.constant 0 : index
    %670 = vector.load %arg19[%c0_184, %c0_185] : memref<16x64xf32, #tpu.memory_space<vmem>>, vector<16x64xf32>
    %c0_186 = arith.constant 0 : index
    %c0_187 = arith.constant 0 : index
    %c0_188 = arith.constant 0 : index
    %671 = vector.load %arg32[%c0_186, %c0_187, %c0_188] : memref<8x2x16xf32, #tpu.memory_space<vmem>>, vector<8x2x16xf32>
    %c0_189 = arith.constant 0 : index
    %c0_190 = arith.constant 0 : index
    %672 = vector.load %arg18[%c0_189, %c0_190] : memref<16x64xf32, #tpu.memory_space<vmem>>, vector<16x64xf32>
    %673 = arith.truncf %671 : vector<8x2x16xf32> to vector<8x2x16xbf16>
    %674 = arith.truncf %672 : vector<16x64xf32> to vector<16x64xbf16>
    %cst_191 = arith.constant dense<0.000000e+00> : vector<8x2x64xf32>
    %675 = tpu.matmul %673, %674, %cst_191 {dimension_numbers = #tpu.dot_dimension_numbers<[2], [0], [0, 1], [1], [0, 0, 0, 1, 1, 1], [], []>} : vector<8x2x16xbf16>, vector<16x64xbf16>, vector<8x2x64xf32> -> vector<8x2x64xf32>
    %c0_192 = arith.constant 0 : index
    %c0_193 = arith.constant 0 : index
    %c0_194 = arith.constant 0 : index
    %676 = vector.load %arg20[%c0_192, %c0_193, %c0_194] : memref<1x1x64xf32, #tpu.memory_space<vmem>>, vector<1x1x64xf32>
    %677 = vector.broadcast %676 : vector<1x1x64xf32> to vector<8x2x64xf32>
    %678 = arith.addf %675, %677 : vector<8x2x64xf32>
    %cst_195 = arith.constant 0.000000e+00 : f32
    %679 = vector.broadcast %cst_195 : f32 to vector<2x16xf32>
    %cst_196 = arith.constant 0.000000e+00 : f32
    %680 = vector.broadcast %cst_196 : f32 to vector<2x16xf32>
    %681 = vector.extract_strided_slice %678 {offsets = [0, 0, 0], sizes = [1, 2, 64], strides = [1, 1, 1]} : vector<8x2x64xf32> to vector<1x2x64xf32>
    %682 = vector.shape_cast %681 : vector<1x2x64xf32> to vector<2x64xf32>
    %683 = arith.truncf %679 : vector<2x16xf32> to vector<2x16xbf16>
    %684 = arith.truncf %670 : vector<16x64xf32> to vector<16x64xbf16>
    %cst_197 = arith.constant dense<0.000000e+00> : vector<2x64xf32>
    %685 = tpu.matmul %683, %684, %cst_197 {dimension_numbers = #tpu.dot_dimension_numbers<[1], [0], [0], [1], [0, 0, 1, 1], [], []>} : vector<2x16xbf16>, vector<16x64xbf16>, vector<2x64xf32> -> vector<2x64xf32>
    %686 = arith.addf %682, %685 : vector<2x64xf32>
    %687 = arith.negf %686 : vector<2x64xf32>
    %688 = math.exp %687 : vector<2x64xf32>
    %cst_198 = arith.constant 1.000000e+00 : f32
    %689 = vector.broadcast %cst_198 : f32 to vector<2x64xf32>
    %690 = arith.addf %689, %688 : vector<2x64xf32>
    %691 = arith.divf %689, %690 : vector<2x64xf32>
    %692 = vector.extract_strided_slice %691 {offsets = [0, 0], sizes = [2, 16], strides = [1, 1]} : vector<2x64xf32> to vector<2x16xf32>
    %693 = vector.extract_strided_slice %691 {offsets = [0, 16], sizes = [2, 16], strides = [1, 1]} : vector<2x64xf32> to vector<2x16xf32>
    %694 = vector.extract_strided_slice %691 {offsets = [0, 48], sizes = [2, 16], strides = [1, 1]} : vector<2x64xf32> to vector<2x16xf32>
    %695 = vector.extract_strided_slice %686 {offsets = [0, 32], sizes = [2, 16], strides = [1, 1]} : vector<2x64xf32> to vector<2x16xf32>
    %696 = math.tanh %695 : vector<2x16xf32>
    %697 = arith.mulf %693, %680 : vector<2x16xf32>
    %698 = arith.mulf %692, %696 : vector<2x16xf32>
    %699 = arith.addf %697, %698 : vector<2x16xf32>
    %700 = math.tanh %699 : vector<2x16xf32>
    %701 = arith.mulf %694, %700 : vector<2x16xf32>
    %c0_199 = arith.constant 0 : index
    %c0_200 = arith.constant 0 : index
    %c0_201 = arith.constant 0 : index
    %702 = vector.load %arg32[%c0_199, %c0_200, %c0_201] : memref<8x2x16xf32, #tpu.memory_space<vmem>>, vector<1x2x16xf32>
    %703 = vector.shape_cast %702 : vector<1x2x16xf32> to vector<2x16xf32>
    %704 = vector.shape_cast %701 : vector<2x16xf32> to vector<1x2x16xf32>
    tpu.vector_store %arg32[%c0_199, %c0_200, %c0_201], %704 {strides = array<i32>} : memref<8x2x16xf32, #tpu.memory_space<vmem>>, vector<1x2x16xf32>,
    %705 = vector.extract_strided_slice %678 {offsets = [1, 0, 0], sizes = [1, 2, 64], strides = [1, 1, 1]} : vector<8x2x64xf32> to vector<1x2x64xf32>
    %706 = vector.shape_cast %705 : vector<1x2x64xf32> to vector<2x64xf32>
    %707 = arith.truncf %701 : vector<2x16xf32> to vector<2x16xbf16>
    %708 = arith.truncf %670 : vector<16x64xf32> to vector<16x64xbf16>
    %cst_202 = arith.constant dense<0.000000e+00> : vector<2x64xf32>
    %709 = tpu.matmul %707, %708, %cst_202 {dimension_numbers = #tpu.dot_dimension_numbers<[1], [0], [0], [1], [0, 0, 1, 1], [], []>} : vector<2x16xbf16>, vector<16x64xbf16>, vector<2x64xf32> -> vector<2x64xf32>
    %710 = arith.addf %706, %709 : vector<2x64xf32>
    %711 = arith.negf %710 : vector<2x64xf32>
    %712 = math.exp %711 : vector<2x64xf32>
    %cst_203 = arith.constant 1.000000e+00 : f32
    %713 = vector.broadcast %cst_203 : f32 to vector<2x64xf32>
    %714 = arith.addf %713, %712 : vector<2x64xf32>
    %715 = arith.divf %713, %714 : vector<2x64xf32>
    %716 = vector.extract_strided_slice %715 {offsets = [0, 0], sizes = [2, 16], strides = [1, 1]} : vector<2x64xf32> to vector<2x16xf32>
    %717 = vector.extract_strided_slice %715 {offsets = [0, 16], sizes = [2, 16], strides = [1, 1]} : vector<2x64xf32> to vector<2x16xf32>
    %718 = vector.extract_strided_slice %715 {offsets = [0, 48], sizes = [2, 16], strides = [1, 1]} : vector<2x64xf32> to vector<2x16xf32>
    %719 = vector.extract_strided_slice %710 {offsets = [0, 32], sizes = [2, 16], strides = [1, 1]} : vector<2x64xf32> to vector<2x16xf32>
    %720 = math.tanh %719 : vector<2x16xf32>
    %721 = arith.mulf %717, %699 : vector<2x16xf32>
    %722 = arith.mulf %716, %720 : vector<2x16xf32>
    %723 = arith.addf %721, %722 : vector<2x16xf32>
    %724 = math.tanh %723 : vector<2x16xf32>
    %725 = arith.mulf %718, %724 : vector<2x16xf32>
    %c1_204 = arith.constant 1 : index
    %c0_205 = arith.constant 0 : index
    %c0_206 = arith.constant 0 : index
    %726 = vector.load %arg32[%c1_204, %c0_205, %c0_206] : memref<8x2x16xf32, #tpu.memory_space<vmem>>, vector<1x2x16xf32>
    %727 = vector.shape_cast %726 : vector<1x2x16xf32> to vector<2x16xf32>
    %728 = vector.shape_cast %725 : vector<2x16xf32> to vector<1x2x16xf32>
    tpu.vector_store %arg32[%c1_204, %c0_205, %c0_206], %728 {strides = array<i32>} : memref<8x2x16xf32, #tpu.memory_space<vmem>>, vector<1x2x16xf32>,
    %729 = vector.extract_strided_slice %678 {offsets = [2, 0, 0], sizes = [1, 2, 64], strides = [1, 1, 1]} : vector<8x2x64xf32> to vector<1x2x64xf32>
    %730 = vector.shape_cast %729 : vector<1x2x64xf32> to vector<2x64xf32>
    %731 = arith.truncf %725 : vector<2x16xf32> to vector<2x16xbf16>
    %732 = arith.truncf %670 : vector<16x64xf32> to vector<16x64xbf16>
    %cst_207 = arith.constant dense<0.000000e+00> : vector<2x64xf32>
    %733 = tpu.matmul %731, %732, %cst_207 {dimension_numbers = #tpu.dot_dimension_numbers<[1], [0], [0], [1], [0, 0, 1, 1], [], []>} : vector<2x16xbf16>, vector<16x64xbf16>, vector<2x64xf32> -> vector<2x64xf32>
    %734 = arith.addf %730, %733 : vector<2x64xf32>
    %735 = arith.negf %734 : vector<2x64xf32>
    %736 = math.exp %735 : vector<2x64xf32>
    %cst_208 = arith.constant 1.000000e+00 : f32
    %737 = vector.broadcast %cst_208 : f32 to vector<2x64xf32>
    %738 = arith.addf %737, %736 : vector<2x64xf32>
    %739 = arith.divf %737, %738 : vector<2x64xf32>
    %740 = vector.extract_strided_slice %739 {offsets = [0, 0], sizes = [2, 16], strides = [1, 1]} : vector<2x64xf32> to vector<2x16xf32>
    %741 = vector.extract_strided_slice %739 {offsets = [0, 16], sizes = [2, 16], strides = [1, 1]} : vector<2x64xf32> to vector<2x16xf32>
    %742 = vector.extract_strided_slice %739 {offsets = [0, 48], sizes = [2, 16], strides = [1, 1]} : vector<2x64xf32> to vector<2x16xf32>
    %743 = vector.extract_strided_slice %734 {offsets = [0, 32], sizes = [2, 16], strides = [1, 1]} : vector<2x64xf32> to vector<2x16xf32>
    %744 = math.tanh %743 : vector<2x16xf32>
    %745 = arith.mulf %741, %723 : vector<2x16xf32>
    %746 = arith.mulf %740, %744 : vector<2x16xf32>
    %747 = arith.addf %745, %746 : vector<2x16xf32>
    %748 = math.tanh %747 : vector<2x16xf32>
    %749 = arith.mulf %742, %748 : vector<2x16xf32>
    %c2_209 = arith.constant 2 : index
    %c0_210 = arith.constant 0 : index
    %c0_211 = arith.constant 0 : index
    %750 = vector.load %arg32[%c2_209, %c0_210, %c0_211] : memref<8x2x16xf32, #tpu.memory_space<vmem>>, vector<1x2x16xf32>
    %751 = vector.shape_cast %750 : vector<1x2x16xf32> to vector<2x16xf32>
    %752 = vector.shape_cast %749 : vector<2x16xf32> to vector<1x2x16xf32>
    tpu.vector_store %arg32[%c2_209, %c0_210, %c0_211], %752 {strides = array<i32>} : memref<8x2x16xf32, #tpu.memory_space<vmem>>, vector<1x2x16xf32>,
    %753 = vector.extract_strided_slice %678 {offsets = [3, 0, 0], sizes = [1, 2, 64], strides = [1, 1, 1]} : vector<8x2x64xf32> to vector<1x2x64xf32>
    %754 = vector.shape_cast %753 : vector<1x2x64xf32> to vector<2x64xf32>
    %755 = arith.truncf %749 : vector<2x16xf32> to vector<2x16xbf16>
    %756 = arith.truncf %670 : vector<16x64xf32> to vector<16x64xbf16>
    %cst_212 = arith.constant dense<0.000000e+00> : vector<2x64xf32>
    %757 = tpu.matmul %755, %756, %cst_212 {dimension_numbers = #tpu.dot_dimension_numbers<[1], [0], [0], [1], [0, 0, 1, 1], [], []>} : vector<2x16xbf16>, vector<16x64xbf16>, vector<2x64xf32> -> vector<2x64xf32>
    %758 = arith.addf %754, %757 : vector<2x64xf32>
    %759 = arith.negf %758 : vector<2x64xf32>
    %760 = math.exp %759 : vector<2x64xf32>
    %cst_213 = arith.constant 1.000000e+00 : f32
    %761 = vector.broadcast %cst_213 : f32 to vector<2x64xf32>
    %762 = arith.addf %761, %760 : vector<2x64xf32>
    %763 = arith.divf %761, %762 : vector<2x64xf32>
    %764 = vector.extract_strided_slice %763 {offsets = [0, 0], sizes = [2, 16], strides = [1, 1]} : vector<2x64xf32> to vector<2x16xf32>
    %765 = vector.extract_strided_slice %763 {offsets = [0, 16], sizes = [2, 16], strides = [1, 1]} : vector<2x64xf32> to vector<2x16xf32>
    %766 = vector.extract_strided_slice %763 {offsets = [0, 48], sizes = [2, 16], strides = [1, 1]} : vector<2x64xf32> to vector<2x16xf32>
    %767 = vector.extract_strided_slice %758 {offsets = [0, 32], sizes = [2, 16], strides = [1, 1]} : vector<2x64xf32> to vector<2x16xf32>
    %768 = math.tanh %767 : vector<2x16xf32>
    %769 = arith.mulf %765, %747 : vector<2x16xf32>
    %770 = arith.mulf %764, %768 : vector<2x16xf32>
    %771 = arith.addf %769, %770 : vector<2x16xf32>
    %772 = math.tanh %771 : vector<2x16xf32>
    %773 = arith.mulf %766, %772 : vector<2x16xf32>
    %c3_214 = arith.constant 3 : index
    %c0_215 = arith.constant 0 : index
    %c0_216 = arith.constant 0 : index
    %774 = vector.load %arg32[%c3_214, %c0_215, %c0_216] : memref<8x2x16xf32, #tpu.memory_space<vmem>>, vector<1x2x16xf32>
    %775 = vector.shape_cast %774 : vector<1x2x16xf32> to vector<2x16xf32>
    %776 = vector.shape_cast %773 : vector<2x16xf32> to vector<1x2x16xf32>
    tpu.vector_store %arg32[%c3_214, %c0_215, %c0_216], %776 {strides = array<i32>} : memref<8x2x16xf32, #tpu.memory_space<vmem>>, vector<1x2x16xf32>,
    %777 = vector.extract_strided_slice %678 {offsets = [4, 0, 0], sizes = [1, 2, 64], strides = [1, 1, 1]} : vector<8x2x64xf32> to vector<1x2x64xf32>
    %778 = vector.shape_cast %777 : vector<1x2x64xf32> to vector<2x64xf32>
    %779 = arith.truncf %773 : vector<2x16xf32> to vector<2x16xbf16>
    %780 = arith.truncf %670 : vector<16x64xf32> to vector<16x64xbf16>
    %cst_217 = arith.constant dense<0.000000e+00> : vector<2x64xf32>
    %781 = tpu.matmul %779, %780, %cst_217 {dimension_numbers = #tpu.dot_dimension_numbers<[1], [0], [0], [1], [0, 0, 1, 1], [], []>} : vector<2x16xbf16>, vector<16x64xbf16>, vector<2x64xf32> -> vector<2x64xf32>
    %782 = arith.addf %778, %781 : vector<2x64xf32>
    %783 = arith.negf %782 : vector<2x64xf32>
    %784 = math.exp %783 : vector<2x64xf32>
    %cst_218 = arith.constant 1.000000e+00 : f32
    %785 = vector.broadcast %cst_218 : f32 to vector<2x64xf32>
    %786 = arith.addf %785, %784 : vector<2x64xf32>
    %787 = arith.divf %785, %786 : vector<2x64xf32>
    %788 = vector.extract_strided_slice %787 {offsets = [0, 0], sizes = [2, 16], strides = [1, 1]} : vector<2x64xf32> to vector<2x16xf32>
    %789 = vector.extract_strided_slice %787 {offsets = [0, 16], sizes = [2, 16], strides = [1, 1]} : vector<2x64xf32> to vector<2x16xf32>
    %790 = vector.extract_strided_slice %787 {offsets = [0, 48], sizes = [2, 16], strides = [1, 1]} : vector<2x64xf32> to vector<2x16xf32>
    %791 = vector.extract_strided_slice %782 {offsets = [0, 32], sizes = [2, 16], strides = [1, 1]} : vector<2x64xf32> to vector<2x16xf32>
    %792 = math.tanh %791 : vector<2x16xf32>
    %793 = arith.mulf %789, %771 : vector<2x16xf32>
    %794 = arith.mulf %788, %792 : vector<2x16xf32>
    %795 = arith.addf %793, %794 : vector<2x16xf32>
    %796 = math.tanh %795 : vector<2x16xf32>
    %797 = arith.mulf %790, %796 : vector<2x16xf32>
    %c4_219 = arith.constant 4 : index
    %c0_220 = arith.constant 0 : index
    %c0_221 = arith.constant 0 : index
    %798 = vector.load %arg32[%c4_219, %c0_220, %c0_221] : memref<8x2x16xf32, #tpu.memory_space<vmem>>, vector<1x2x16xf32>
    %799 = vector.shape_cast %798 : vector<1x2x16xf32> to vector<2x16xf32>
    %800 = vector.shape_cast %797 : vector<2x16xf32> to vector<1x2x16xf32>
    tpu.vector_store %arg32[%c4_219, %c0_220, %c0_221], %800 {strides = array<i32>} : memref<8x2x16xf32, #tpu.memory_space<vmem>>, vector<1x2x16xf32>,
    %801 = vector.extract_strided_slice %678 {offsets = [5, 0, 0], sizes = [1, 2, 64], strides = [1, 1, 1]} : vector<8x2x64xf32> to vector<1x2x64xf32>
    %802 = vector.shape_cast %801 : vector<1x2x64xf32> to vector<2x64xf32>
    %803 = arith.truncf %797 : vector<2x16xf32> to vector<2x16xbf16>
    %804 = arith.truncf %670 : vector<16x64xf32> to vector<16x64xbf16>
    %cst_222 = arith.constant dense<0.000000e+00> : vector<2x64xf32>
    %805 = tpu.matmul %803, %804, %cst_222 {dimension_numbers = #tpu.dot_dimension_numbers<[1], [0], [0], [1], [0, 0, 1, 1], [], []>} : vector<2x16xbf16>, vector<16x64xbf16>, vector<2x64xf32> -> vector<2x64xf32>
    %806 = arith.addf %802, %805 : vector<2x64xf32>
    %807 = arith.negf %806 : vector<2x64xf32>
    %808 = math.exp %807 : vector<2x64xf32>
    %cst_223 = arith.constant 1.000000e+00 : f32
    %809 = vector.broadcast %cst_223 : f32 to vector<2x64xf32>
    %810 = arith.addf %809, %808 : vector<2x64xf32>
    %811 = arith.divf %809, %810 : vector<2x64xf32>
    %812 = vector.extract_strided_slice %811 {offsets = [0, 0], sizes = [2, 16], strides = [1, 1]} : vector<2x64xf32> to vector<2x16xf32>
    %813 = vector.extract_strided_slice %811 {offsets = [0, 16], sizes = [2, 16], strides = [1, 1]} : vector<2x64xf32> to vector<2x16xf32>
    %814 = vector.extract_strided_slice %811 {offsets = [0, 48], sizes = [2, 16], strides = [1, 1]} : vector<2x64xf32> to vector<2x16xf32>
    %815 = vector.extract_strided_slice %806 {offsets = [0, 32], sizes = [2, 16], strides = [1, 1]} : vector<2x64xf32> to vector<2x16xf32>
    %816 = math.tanh %815 : vector<2x16xf32>
    %817 = arith.mulf %813, %795 : vector<2x16xf32>
    %818 = arith.mulf %812, %816 : vector<2x16xf32>
    %819 = arith.addf %817, %818 : vector<2x16xf32>
    %820 = math.tanh %819 : vector<2x16xf32>
    %821 = arith.mulf %814, %820 : vector<2x16xf32>
    %c5_224 = arith.constant 5 : index
    %c0_225 = arith.constant 0 : index
    %c0_226 = arith.constant 0 : index
    %822 = vector.load %arg32[%c5_224, %c0_225, %c0_226] : memref<8x2x16xf32, #tpu.memory_space<vmem>>, vector<1x2x16xf32>
    %823 = vector.shape_cast %822 : vector<1x2x16xf32> to vector<2x16xf32>
    %824 = vector.shape_cast %821 : vector<2x16xf32> to vector<1x2x16xf32>
    tpu.vector_store %arg32[%c5_224, %c0_225, %c0_226], %824 {strides = array<i32>} : memref<8x2x16xf32, #tpu.memory_space<vmem>>, vector<1x2x16xf32>,
    %825 = vector.extract_strided_slice %678 {offsets = [6, 0, 0], sizes = [1, 2, 64], strides = [1, 1, 1]} : vector<8x2x64xf32> to vector<1x2x64xf32>
    %826 = vector.shape_cast %825 : vector<1x2x64xf32> to vector<2x64xf32>
    %827 = arith.truncf %821 : vector<2x16xf32> to vector<2x16xbf16>
    %828 = arith.truncf %670 : vector<16x64xf32> to vector<16x64xbf16>
    %cst_227 = arith.constant dense<0.000000e+00> : vector<2x64xf32>
    %829 = tpu.matmul %827, %828, %cst_227 {dimension_numbers = #tpu.dot_dimension_numbers<[1], [0], [0], [1], [0, 0, 1, 1], [], []>} : vector<2x16xbf16>, vector<16x64xbf16>, vector<2x64xf32> -> vector<2x64xf32>
    %830 = arith.addf %826, %829 : vector<2x64xf32>
    %831 = arith.negf %830 : vector<2x64xf32>
    %832 = math.exp %831 : vector<2x64xf32>
    %cst_228 = arith.constant 1.000000e+00 : f32
    %833 = vector.broadcast %cst_228 : f32 to vector<2x64xf32>
    %834 = arith.addf %833, %832 : vector<2x64xf32>
    %835 = arith.divf %833, %834 : vector<2x64xf32>
    %836 = vector.extract_strided_slice %835 {offsets = [0, 0], sizes = [2, 16], strides = [1, 1]} : vector<2x64xf32> to vector<2x16xf32>
    %837 = vector.extract_strided_slice %835 {offsets = [0, 16], sizes = [2, 16], strides = [1, 1]} : vector<2x64xf32> to vector<2x16xf32>
    %838 = vector.extract_strided_slice %835 {offsets = [0, 48], sizes = [2, 16], strides = [1, 1]} : vector<2x64xf32> to vector<2x16xf32>
    %839 = vector.extract_strided_slice %830 {offsets = [0, 32], sizes = [2, 16], strides = [1, 1]} : vector<2x64xf32> to vector<2x16xf32>
    %840 = math.tanh %839 : vector<2x16xf32>
    %841 = arith.mulf %837, %819 : vector<2x16xf32>
    %842 = arith.mulf %836, %840 : vector<2x16xf32>
    %843 = arith.addf %841, %842 : vector<2x16xf32>
    %844 = math.tanh %843 : vector<2x16xf32>
    %845 = arith.mulf %838, %844 : vector<2x16xf32>
    %c6_229 = arith.constant 6 : index
    %c0_230 = arith.constant 0 : index
    %c0_231 = arith.constant 0 : index
    %846 = vector.load %arg32[%c6_229, %c0_230, %c0_231] : memref<8x2x16xf32, #tpu.memory_space<vmem>>, vector<1x2x16xf32>
    %847 = vector.shape_cast %846 : vector<1x2x16xf32> to vector<2x16xf32>
    %848 = vector.shape_cast %845 : vector<2x16xf32> to vector<1x2x16xf32>
    tpu.vector_store %arg32[%c6_229, %c0_230, %c0_231], %848 {strides = array<i32>} : memref<8x2x16xf32, #tpu.memory_space<vmem>>, vector<1x2x16xf32>,
    %849 = vector.extract_strided_slice %678 {offsets = [7, 0, 0], sizes = [1, 2, 64], strides = [1, 1, 1]} : vector<8x2x64xf32> to vector<1x2x64xf32>
    %850 = vector.shape_cast %849 : vector<1x2x64xf32> to vector<2x64xf32>
    %851 = arith.truncf %845 : vector<2x16xf32> to vector<2x16xbf16>
    %852 = arith.truncf %670 : vector<16x64xf32> to vector<16x64xbf16>
    %cst_232 = arith.constant dense<0.000000e+00> : vector<2x64xf32>
    %853 = tpu.matmul %851, %852, %cst_232 {dimension_numbers = #tpu.dot_dimension_numbers<[1], [0], [0], [1], [0, 0, 1, 1], [], []>} : vector<2x16xbf16>, vector<16x64xbf16>, vector<2x64xf32> -> vector<2x64xf32>
    %854 = arith.addf %850, %853 : vector<2x64xf32>
    %855 = arith.negf %854 : vector<2x64xf32>
    %856 = math.exp %855 : vector<2x64xf32>
    %cst_233 = arith.constant 1.000000e+00 : f32
    %857 = vector.broadcast %cst_233 : f32 to vector<2x64xf32>
    %858 = arith.addf %857, %856 : vector<2x64xf32>
    %859 = arith.divf %857, %858 : vector<2x64xf32>
    %860 = vector.extract_strided_slice %859 {offsets = [0, 0], sizes = [2, 16], strides = [1, 1]} : vector<2x64xf32> to vector<2x16xf32>
    %861 = vector.extract_strided_slice %859 {offsets = [0, 16], sizes = [2, 16], strides = [1, 1]} : vector<2x64xf32> to vector<2x16xf32>
    %862 = vector.extract_strided_slice %859 {offsets = [0, 48], sizes = [2, 16], strides = [1, 1]} : vector<2x64xf32> to vector<2x16xf32>
    %863 = vector.extract_strided_slice %854 {offsets = [0, 32], sizes = [2, 16], strides = [1, 1]} : vector<2x64xf32> to vector<2x16xf32>
    %864 = math.tanh %863 : vector<2x16xf32>
    %865 = arith.mulf %861, %843 : vector<2x16xf32>
    %866 = arith.mulf %860, %864 : vector<2x16xf32>
    %867 = arith.addf %865, %866 : vector<2x16xf32>
    %868 = math.tanh %867 : vector<2x16xf32>
    %869 = arith.mulf %862, %868 : vector<2x16xf32>
    %c7_234 = arith.constant 7 : index
    %c0_235 = arith.constant 0 : index
    %c0_236 = arith.constant 0 : index
    %870 = vector.load %arg32[%c7_234, %c0_235, %c0_236] : memref<8x2x16xf32, #tpu.memory_space<vmem>>, vector<1x2x16xf32>
    %871 = vector.shape_cast %870 : vector<1x2x16xf32> to vector<2x16xf32>
    %872 = vector.shape_cast %869 : vector<2x16xf32> to vector<1x2x16xf32>
    tpu.vector_store %arg32[%c7_234, %c0_235, %c0_236], %872 {strides = array<i32>} : memref<8x2x16xf32, #tpu.memory_space<vmem>>, vector<1x2x16xf32>,
    %c0_237 = arith.constant 0 : index
    %c0_238 = arith.constant 0 : index
    %873 = vector.load %arg22[%c0_237, %c0_238] : memref<16x64xf32, #tpu.memory_space<vmem>>, vector<16x64xf32>
    %c0_239 = arith.constant 0 : index
    %c0_240 = arith.constant 0 : index
    %c0_241 = arith.constant 0 : index
    %874 = vector.load %arg32[%c0_239, %c0_240, %c0_241] : memref<8x2x16xf32, #tpu.memory_space<vmem>>, vector<8x2x16xf32>
    %c0_242 = arith.constant 0 : index
    %c0_243 = arith.constant 0 : index
    %875 = vector.load %arg21[%c0_242, %c0_243] : memref<16x64xf32, #tpu.memory_space<vmem>>, vector<16x64xf32>
    %876 = arith.truncf %874 : vector<8x2x16xf32> to vector<8x2x16xbf16>
    %877 = arith.truncf %875 : vector<16x64xf32> to vector<16x64xbf16>
    %cst_244 = arith.constant dense<0.000000e+00> : vector<8x2x64xf32>
    %878 = tpu.matmul %876, %877, %cst_244 {dimension_numbers = #tpu.dot_dimension_numbers<[2], [0], [0, 1], [1], [0, 0, 0, 1, 1, 1], [], []>} : vector<8x2x16xbf16>, vector<16x64xbf16>, vector<8x2x64xf32> -> vector<8x2x64xf32>
    %c0_245 = arith.constant 0 : index
    %c0_246 = arith.constant 0 : index
    %c0_247 = arith.constant 0 : index
    %879 = vector.load %arg23[%c0_245, %c0_246, %c0_247] : memref<1x1x64xf32, #tpu.memory_space<vmem>>, vector<1x1x64xf32>
    %880 = vector.broadcast %879 : vector<1x1x64xf32> to vector<8x2x64xf32>
    %881 = arith.addf %878, %880 : vector<8x2x64xf32>
    %cst_248 = arith.constant 0.000000e+00 : f32
    %882 = vector.broadcast %cst_248 : f32 to vector<2x16xf32>
    %cst_249 = arith.constant 0.000000e+00 : f32
    %883 = vector.broadcast %cst_249 : f32 to vector<2x16xf32>
    %884 = vector.extract_strided_slice %881 {offsets = [0, 0, 0], sizes = [1, 2, 64], strides = [1, 1, 1]} : vector<8x2x64xf32> to vector<1x2x64xf32>
    %885 = vector.shape_cast %884 : vector<1x2x64xf32> to vector<2x64xf32>
    %886 = arith.truncf %882 : vector<2x16xf32> to vector<2x16xbf16>
    %887 = arith.truncf %873 : vector<16x64xf32> to vector<16x64xbf16>
    %cst_250 = arith.constant dense<0.000000e+00> : vector<2x64xf32>
    %888 = tpu.matmul %886, %887, %cst_250 {dimension_numbers = #tpu.dot_dimension_numbers<[1], [0], [0], [1], [0, 0, 1, 1], [], []>} : vector<2x16xbf16>, vector<16x64xbf16>, vector<2x64xf32> -> vector<2x64xf32>
    %889 = arith.addf %885, %888 : vector<2x64xf32>
    %890 = arith.negf %889 : vector<2x64xf32>
    %891 = math.exp %890 : vector<2x64xf32>
    %cst_251 = arith.constant 1.000000e+00 : f32
    %892 = vector.broadcast %cst_251 : f32 to vector<2x64xf32>
    %893 = arith.addf %892, %891 : vector<2x64xf32>
    %894 = arith.divf %892, %893 : vector<2x64xf32>
    %895 = vector.extract_strided_slice %894 {offsets = [0, 0], sizes = [2, 16], strides = [1, 1]} : vector<2x64xf32> to vector<2x16xf32>
    %896 = vector.extract_strided_slice %894 {offsets = [0, 16], sizes = [2, 16], strides = [1, 1]} : vector<2x64xf32> to vector<2x16xf32>
    %897 = vector.extract_strided_slice %894 {offsets = [0, 48], sizes = [2, 16], strides = [1, 1]} : vector<2x64xf32> to vector<2x16xf32>
    %898 = vector.extract_strided_slice %889 {offsets = [0, 32], sizes = [2, 16], strides = [1, 1]} : vector<2x64xf32> to vector<2x16xf32>
    %899 = math.tanh %898 : vector<2x16xf32>
    %900 = arith.mulf %896, %883 : vector<2x16xf32>
    %901 = arith.mulf %895, %899 : vector<2x16xf32>
    %902 = arith.addf %900, %901 : vector<2x16xf32>
    %903 = math.tanh %902 : vector<2x16xf32>
    %904 = arith.mulf %897, %903 : vector<2x16xf32>
    %c0_252 = arith.constant 0 : index
    %c0_253 = arith.constant 0 : index
    %c0_254 = arith.constant 0 : index
    %905 = vector.load %arg32[%c0_252, %c0_253, %c0_254] : memref<8x2x16xf32, #tpu.memory_space<vmem>>, vector<1x2x16xf32>
    %906 = vector.shape_cast %905 : vector<1x2x16xf32> to vector<2x16xf32>
    %907 = vector.shape_cast %904 : vector<2x16xf32> to vector<1x2x16xf32>
    tpu.vector_store %arg32[%c0_252, %c0_253, %c0_254], %907 {strides = array<i32>} : memref<8x2x16xf32, #tpu.memory_space<vmem>>, vector<1x2x16xf32>,
    %908 = vector.extract_strided_slice %881 {offsets = [1, 0, 0], sizes = [1, 2, 64], strides = [1, 1, 1]} : vector<8x2x64xf32> to vector<1x2x64xf32>
    %909 = vector.shape_cast %908 : vector<1x2x64xf32> to vector<2x64xf32>
    %910 = arith.truncf %904 : vector<2x16xf32> to vector<2x16xbf16>
    %911 = arith.truncf %873 : vector<16x64xf32> to vector<16x64xbf16>
    %cst_255 = arith.constant dense<0.000000e+00> : vector<2x64xf32>
    %912 = tpu.matmul %910, %911, %cst_255 {dimension_numbers = #tpu.dot_dimension_numbers<[1], [0], [0], [1], [0, 0, 1, 1], [], []>} : vector<2x16xbf16>, vector<16x64xbf16>, vector<2x64xf32> -> vector<2x64xf32>
    %913 = arith.addf %909, %912 : vector<2x64xf32>
    %914 = arith.negf %913 : vector<2x64xf32>
    %915 = math.exp %914 : vector<2x64xf32>
    %cst_256 = arith.constant 1.000000e+00 : f32
    %916 = vector.broadcast %cst_256 : f32 to vector<2x64xf32>
    %917 = arith.addf %916, %915 : vector<2x64xf32>
    %918 = arith.divf %916, %917 : vector<2x64xf32>
    %919 = vector.extract_strided_slice %918 {offsets = [0, 0], sizes = [2, 16], strides = [1, 1]} : vector<2x64xf32> to vector<2x16xf32>
    %920 = vector.extract_strided_slice %918 {offsets = [0, 16], sizes = [2, 16], strides = [1, 1]} : vector<2x64xf32> to vector<2x16xf32>
    %921 = vector.extract_strided_slice %918 {offsets = [0, 48], sizes = [2, 16], strides = [1, 1]} : vector<2x64xf32> to vector<2x16xf32>
    %922 = vector.extract_strided_slice %913 {offsets = [0, 32], sizes = [2, 16], strides = [1, 1]} : vector<2x64xf32> to vector<2x16xf32>
    %923 = math.tanh %922 : vector<2x16xf32>
    %924 = arith.mulf %920, %902 : vector<2x16xf32>
    %925 = arith.mulf %919, %923 : vector<2x16xf32>
    %926 = arith.addf %924, %925 : vector<2x16xf32>
    %927 = math.tanh %926 : vector<2x16xf32>
    %928 = arith.mulf %921, %927 : vector<2x16xf32>
    %c1_257 = arith.constant 1 : index
    %c0_258 = arith.constant 0 : index
    %c0_259 = arith.constant 0 : index
    %929 = vector.load %arg32[%c1_257, %c0_258, %c0_259] : memref<8x2x16xf32, #tpu.memory_space<vmem>>, vector<1x2x16xf32>
    %930 = vector.shape_cast %929 : vector<1x2x16xf32> to vector<2x16xf32>
    %931 = vector.shape_cast %928 : vector<2x16xf32> to vector<1x2x16xf32>
    tpu.vector_store %arg32[%c1_257, %c0_258, %c0_259], %931 {strides = array<i32>} : memref<8x2x16xf32, #tpu.memory_space<vmem>>, vector<1x2x16xf32>,
    %932 = vector.extract_strided_slice %881 {offsets = [2, 0, 0], sizes = [1, 2, 64], strides = [1, 1, 1]} : vector<8x2x64xf32> to vector<1x2x64xf32>
    %933 = vector.shape_cast %932 : vector<1x2x64xf32> to vector<2x64xf32>
    %934 = arith.truncf %928 : vector<2x16xf32> to vector<2x16xbf16>
    %935 = arith.truncf %873 : vector<16x64xf32> to vector<16x64xbf16>
    %cst_260 = arith.constant dense<0.000000e+00> : vector<2x64xf32>
    %936 = tpu.matmul %934, %935, %cst_260 {dimension_numbers = #tpu.dot_dimension_numbers<[1], [0], [0], [1], [0, 0, 1, 1], [], []>} : vector<2x16xbf16>, vector<16x64xbf16>, vector<2x64xf32> -> vector<2x64xf32>
    %937 = arith.addf %933, %936 : vector<2x64xf32>
    %938 = arith.negf %937 : vector<2x64xf32>
    %939 = math.exp %938 : vector<2x64xf32>
    %cst_261 = arith.constant 1.000000e+00 : f32
    %940 = vector.broadcast %cst_261 : f32 to vector<2x64xf32>
    %941 = arith.addf %940, %939 : vector<2x64xf32>
    %942 = arith.divf %940, %941 : vector<2x64xf32>
    %943 = vector.extract_strided_slice %942 {offsets = [0, 0], sizes = [2, 16], strides = [1, 1]} : vector<2x64xf32> to vector<2x16xf32>
    %944 = vector.extract_strided_slice %942 {offsets = [0, 16], sizes = [2, 16], strides = [1, 1]} : vector<2x64xf32> to vector<2x16xf32>
    %945 = vector.extract_strided_slice %942 {offsets = [0, 48], sizes = [2, 16], strides = [1, 1]} : vector<2x64xf32> to vector<2x16xf32>
    %946 = vector.extract_strided_slice %937 {offsets = [0, 32], sizes = [2, 16], strides = [1, 1]} : vector<2x64xf32> to vector<2x16xf32>
    %947 = math.tanh %946 : vector<2x16xf32>
    %948 = arith.mulf %944, %926 : vector<2x16xf32>
    %949 = arith.mulf %943, %947 : vector<2x16xf32>
    %950 = arith.addf %948, %949 : vector<2x16xf32>
    %951 = math.tanh %950 : vector<2x16xf32>
    %952 = arith.mulf %945, %951 : vector<2x16xf32>
    %c2_262 = arith.constant 2 : index
    %c0_263 = arith.constant 0 : index
    %c0_264 = arith.constant 0 : index
    %953 = vector.load %arg32[%c2_262, %c0_263, %c0_264] : memref<8x2x16xf32, #tpu.memory_space<vmem>>, vector<1x2x16xf32>
    %954 = vector.shape_cast %953 : vector<1x2x16xf32> to vector<2x16xf32>
    %955 = vector.shape_cast %952 : vector<2x16xf32> to vector<1x2x16xf32>
    tpu.vector_store %arg32[%c2_262, %c0_263, %c0_264], %955 {strides = array<i32>} : memref<8x2x16xf32, #tpu.memory_space<vmem>>, vector<1x2x16xf32>,
    %956 = vector.extract_strided_slice %881 {offsets = [3, 0, 0], sizes = [1, 2, 64], strides = [1, 1, 1]} : vector<8x2x64xf32> to vector<1x2x64xf32>
    %957 = vector.shape_cast %956 : vector<1x2x64xf32> to vector<2x64xf32>
    %958 = arith.truncf %952 : vector<2x16xf32> to vector<2x16xbf16>
    %959 = arith.truncf %873 : vector<16x64xf32> to vector<16x64xbf16>
    %cst_265 = arith.constant dense<0.000000e+00> : vector<2x64xf32>
    %960 = tpu.matmul %958, %959, %cst_265 {dimension_numbers = #tpu.dot_dimension_numbers<[1], [0], [0], [1], [0, 0, 1, 1], [], []>} : vector<2x16xbf16>, vector<16x64xbf16>, vector<2x64xf32> -> vector<2x64xf32>
    %961 = arith.addf %957, %960 : vector<2x64xf32>
    %962 = arith.negf %961 : vector<2x64xf32>
    %963 = math.exp %962 : vector<2x64xf32>
    %cst_266 = arith.constant 1.000000e+00 : f32
    %964 = vector.broadcast %cst_266 : f32 to vector<2x64xf32>
    %965 = arith.addf %964, %963 : vector<2x64xf32>
    %966 = arith.divf %964, %965 : vector<2x64xf32>
    %967 = vector.extract_strided_slice %966 {offsets = [0, 0], sizes = [2, 16], strides = [1, 1]} : vector<2x64xf32> to vector<2x16xf32>
    %968 = vector.extract_strided_slice %966 {offsets = [0, 16], sizes = [2, 16], strides = [1, 1]} : vector<2x64xf32> to vector<2x16xf32>
    %969 = vector.extract_strided_slice %966 {offsets = [0, 48], sizes = [2, 16], strides = [1, 1]} : vector<2x64xf32> to vector<2x16xf32>
    %970 = vector.extract_strided_slice %961 {offsets = [0, 32], sizes = [2, 16], strides = [1, 1]} : vector<2x64xf32> to vector<2x16xf32>
    %971 = math.tanh %970 : vector<2x16xf32>
    %972 = arith.mulf %968, %950 : vector<2x16xf32>
    %973 = arith.mulf %967, %971 : vector<2x16xf32>
    %974 = arith.addf %972, %973 : vector<2x16xf32>
    %975 = math.tanh %974 : vector<2x16xf32>
    %976 = arith.mulf %969, %975 : vector<2x16xf32>
    %c3_267 = arith.constant 3 : index
    %c0_268 = arith.constant 0 : index
    %c0_269 = arith.constant 0 : index
    %977 = vector.load %arg32[%c3_267, %c0_268, %c0_269] : memref<8x2x16xf32, #tpu.memory_space<vmem>>, vector<1x2x16xf32>
    %978 = vector.shape_cast %977 : vector<1x2x16xf32> to vector<2x16xf32>
    %979 = vector.shape_cast %976 : vector<2x16xf32> to vector<1x2x16xf32>
    tpu.vector_store %arg32[%c3_267, %c0_268, %c0_269], %979 {strides = array<i32>} : memref<8x2x16xf32, #tpu.memory_space<vmem>>, vector<1x2x16xf32>,
    %980 = vector.extract_strided_slice %881 {offsets = [4, 0, 0], sizes = [1, 2, 64], strides = [1, 1, 1]} : vector<8x2x64xf32> to vector<1x2x64xf32>
    %981 = vector.shape_cast %980 : vector<1x2x64xf32> to vector<2x64xf32>
    %982 = arith.truncf %976 : vector<2x16xf32> to vector<2x16xbf16>
    %983 = arith.truncf %873 : vector<16x64xf32> to vector<16x64xbf16>
    %cst_270 = arith.constant dense<0.000000e+00> : vector<2x64xf32>
    %984 = tpu.matmul %982, %983, %cst_270 {dimension_numbers = #tpu.dot_dimension_numbers<[1], [0], [0], [1], [0, 0, 1, 1], [], []>} : vector<2x16xbf16>, vector<16x64xbf16>, vector<2x64xf32> -> vector<2x64xf32>
    %985 = arith.addf %981, %984 : vector<2x64xf32>
    %986 = arith.negf %985 : vector<2x64xf32>
    %987 = math.exp %986 : vector<2x64xf32>
    %cst_271 = arith.constant 1.000000e+00 : f32
    %988 = vector.broadcast %cst_271 : f32 to vector<2x64xf32>
    %989 = arith.addf %988, %987 : vector<2x64xf32>
    %990 = arith.divf %988, %989 : vector<2x64xf32>
    %991 = vector.extract_strided_slice %990 {offsets = [0, 0], sizes = [2, 16], strides = [1, 1]} : vector<2x64xf32> to vector<2x16xf32>
    %992 = vector.extract_strided_slice %990 {offsets = [0, 16], sizes = [2, 16], strides = [1, 1]} : vector<2x64xf32> to vector<2x16xf32>
    %993 = vector.extract_strided_slice %990 {offsets = [0, 48], sizes = [2, 16], strides = [1, 1]} : vector<2x64xf32> to vector<2x16xf32>
    %994 = vector.extract_strided_slice %985 {offsets = [0, 32], sizes = [2, 16], strides = [1, 1]} : vector<2x64xf32> to vector<2x16xf32>
    %995 = math.tanh %994 : vector<2x16xf32>
    %996 = arith.mulf %992, %974 : vector<2x16xf32>
    %997 = arith.mulf %991, %995 : vector<2x16xf32>
    %998 = arith.addf %996, %997 : vector<2x16xf32>
    %999 = math.tanh %998 : vector<2x16xf32>
    %1000 = arith.mulf %993, %999 : vector<2x16xf32>
    %c4_272 = arith.constant 4 : index
    %c0_273 = arith.constant 0 : index
    %c0_274 = arith.constant 0 : index
    %1001 = vector.load %arg32[%c4_272, %c0_273, %c0_274] : memref<8x2x16xf32, #tpu.memory_space<vmem>>, vector<1x2x16xf32>
    %1002 = vector.shape_cast %1001 : vector<1x2x16xf32> to vector<2x16xf32>
    %1003 = vector.shape_cast %1000 : vector<2x16xf32> to vector<1x2x16xf32>
    tpu.vector_store %arg32[%c4_272, %c0_273, %c0_274], %1003 {strides = array<i32>} : memref<8x2x16xf32, #tpu.memory_space<vmem>>, vector<1x2x16xf32>,
    %1004 = vector.extract_strided_slice %881 {offsets = [5, 0, 0], sizes = [1, 2, 64], strides = [1, 1, 1]} : vector<8x2x64xf32> to vector<1x2x64xf32>
    %1005 = vector.shape_cast %1004 : vector<1x2x64xf32> to vector<2x64xf32>
    %1006 = arith.truncf %1000 : vector<2x16xf32> to vector<2x16xbf16>
    %1007 = arith.truncf %873 : vector<16x64xf32> to vector<16x64xbf16>
    %cst_275 = arith.constant dense<0.000000e+00> : vector<2x64xf32>
    %1008 = tpu.matmul %1006, %1007, %cst_275 {dimension_numbers = #tpu.dot_dimension_numbers<[1], [0], [0], [1], [0, 0, 1, 1], [], []>} : vector<2x16xbf16>, vector<16x64xbf16>, vector<2x64xf32> -> vector<2x64xf32>
    %1009 = arith.addf %1005, %1008 : vector<2x64xf32>
    %1010 = arith.negf %1009 : vector<2x64xf32>
    %1011 = math.exp %1010 : vector<2x64xf32>
    %cst_276 = arith.constant 1.000000e+00 : f32
    %1012 = vector.broadcast %cst_276 : f32 to vector<2x64xf32>
    %1013 = arith.addf %1012, %1011 : vector<2x64xf32>
    %1014 = arith.divf %1012, %1013 : vector<2x64xf32>
    %1015 = vector.extract_strided_slice %1014 {offsets = [0, 0], sizes = [2, 16], strides = [1, 1]} : vector<2x64xf32> to vector<2x16xf32>
    %1016 = vector.extract_strided_slice %1014 {offsets = [0, 16], sizes = [2, 16], strides = [1, 1]} : vector<2x64xf32> to vector<2x16xf32>
    %1017 = vector.extract_strided_slice %1014 {offsets = [0, 48], sizes = [2, 16], strides = [1, 1]} : vector<2x64xf32> to vector<2x16xf32>
    %1018 = vector.extract_strided_slice %1009 {offsets = [0, 32], sizes = [2, 16], strides = [1, 1]} : vector<2x64xf32> to vector<2x16xf32>
    %1019 = math.tanh %1018 : vector<2x16xf32>
    %1020 = arith.mulf %1016, %998 : vector<2x16xf32>
    %1021 = arith.mulf %1015, %1019 : vector<2x16xf32>
    %1022 = arith.addf %1020, %1021 : vector<2x16xf32>
    %1023 = math.tanh %1022 : vector<2x16xf32>
    %1024 = arith.mulf %1017, %1023 : vector<2x16xf32>
    %c5_277 = arith.constant 5 : index
    %c0_278 = arith.constant 0 : index
    %c0_279 = arith.constant 0 : index
    %1025 = vector.load %arg32[%c5_277, %c0_278, %c0_279] : memref<8x2x16xf32, #tpu.memory_space<vmem>>, vector<1x2x16xf32>
    %1026 = vector.shape_cast %1025 : vector<1x2x16xf32> to vector<2x16xf32>
    %1027 = vector.shape_cast %1024 : vector<2x16xf32> to vector<1x2x16xf32>
    tpu.vector_store %arg32[%c5_277, %c0_278, %c0_279], %1027 {strides = array<i32>} : memref<8x2x16xf32, #tpu.memory_space<vmem>>, vector<1x2x16xf32>,
    %1028 = vector.extract_strided_slice %881 {offsets = [6, 0, 0], sizes = [1, 2, 64], strides = [1, 1, 1]} : vector<8x2x64xf32> to vector<1x2x64xf32>
    %1029 = vector.shape_cast %1028 : vector<1x2x64xf32> to vector<2x64xf32>
    %1030 = arith.truncf %1024 : vector<2x16xf32> to vector<2x16xbf16>
    %1031 = arith.truncf %873 : vector<16x64xf32> to vector<16x64xbf16>
    %cst_280 = arith.constant dense<0.000000e+00> : vector<2x64xf32>
    %1032 = tpu.matmul %1030, %1031, %cst_280 {dimension_numbers = #tpu.dot_dimension_numbers<[1], [0], [0], [1], [0, 0, 1, 1], [], []>} : vector<2x16xbf16>, vector<16x64xbf16>, vector<2x64xf32> -> vector<2x64xf32>
    %1033 = arith.addf %1029, %1032 : vector<2x64xf32>
    %1034 = arith.negf %1033 : vector<2x64xf32>
    %1035 = math.exp %1034 : vector<2x64xf32>
    %cst_281 = arith.constant 1.000000e+00 : f32
    %1036 = vector.broadcast %cst_281 : f32 to vector<2x64xf32>
    %1037 = arith.addf %1036, %1035 : vector<2x64xf32>
    %1038 = arith.divf %1036, %1037 : vector<2x64xf32>
    %1039 = vector.extract_strided_slice %1038 {offsets = [0, 0], sizes = [2, 16], strides = [1, 1]} : vector<2x64xf32> to vector<2x16xf32>
    %1040 = vector.extract_strided_slice %1038 {offsets = [0, 16], sizes = [2, 16], strides = [1, 1]} : vector<2x64xf32> to vector<2x16xf32>
    %1041 = vector.extract_strided_slice %1038 {offsets = [0, 48], sizes = [2, 16], strides = [1, 1]} : vector<2x64xf32> to vector<2x16xf32>
    %1042 = vector.extract_strided_slice %1033 {offsets = [0, 32], sizes = [2, 16], strides = [1, 1]} : vector<2x64xf32> to vector<2x16xf32>
    %1043 = math.tanh %1042 : vector<2x16xf32>
    %1044 = arith.mulf %1040, %1022 : vector<2x16xf32>
    %1045 = arith.mulf %1039, %1043 : vector<2x16xf32>
    %1046 = arith.addf %1044, %1045 : vector<2x16xf32>
    %1047 = math.tanh %1046 : vector<2x16xf32>
    %1048 = arith.mulf %1041, %1047 : vector<2x16xf32>
    %c6_282 = arith.constant 6 : index
    %c0_283 = arith.constant 0 : index
    %c0_284 = arith.constant 0 : index
    %1049 = vector.load %arg32[%c6_282, %c0_283, %c0_284] : memref<8x2x16xf32, #tpu.memory_space<vmem>>, vector<1x2x16xf32>
    %1050 = vector.shape_cast %1049 : vector<1x2x16xf32> to vector<2x16xf32>
    %1051 = vector.shape_cast %1048 : vector<2x16xf32> to vector<1x2x16xf32>
    tpu.vector_store %arg32[%c6_282, %c0_283, %c0_284], %1051 {strides = array<i32>} : memref<8x2x16xf32, #tpu.memory_space<vmem>>, vector<1x2x16xf32>,
    %1052 = vector.extract_strided_slice %881 {offsets = [7, 0, 0], sizes = [1, 2, 64], strides = [1, 1, 1]} : vector<8x2x64xf32> to vector<1x2x64xf32>
    %1053 = vector.shape_cast %1052 : vector<1x2x64xf32> to vector<2x64xf32>
    %1054 = arith.truncf %1048 : vector<2x16xf32> to vector<2x16xbf16>
    %1055 = arith.truncf %873 : vector<16x64xf32> to vector<16x64xbf16>
    %cst_285 = arith.constant dense<0.000000e+00> : vector<2x64xf32>
    %1056 = tpu.matmul %1054, %1055, %cst_285 {dimension_numbers = #tpu.dot_dimension_numbers<[1], [0], [0], [1], [0, 0, 1, 1], [], []>} : vector<2x16xbf16>, vector<16x64xbf16>, vector<2x64xf32> -> vector<2x64xf32>
    %1057 = arith.addf %1053, %1056 : vector<2x64xf32>
    %1058 = arith.negf %1057 : vector<2x64xf32>
    %1059 = math.exp %1058 : vector<2x64xf32>
    %cst_286 = arith.constant 1.000000e+00 : f32
    %1060 = vector.broadcast %cst_286 : f32 to vector<2x64xf32>
    %1061 = arith.addf %1060, %1059 : vector<2x64xf32>
    %1062 = arith.divf %1060, %1061 : vector<2x64xf32>
    %1063 = vector.extract_strided_slice %1062 {offsets = [0, 0], sizes = [2, 16], strides = [1, 1]} : vector<2x64xf32> to vector<2x16xf32>
    %1064 = vector.extract_strided_slice %1062 {offsets = [0, 16], sizes = [2, 16], strides = [1, 1]} : vector<2x64xf32> to vector<2x16xf32>
    %1065 = vector.extract_strided_slice %1062 {offsets = [0, 48], sizes = [2, 16], strides = [1, 1]} : vector<2x64xf32> to vector<2x16xf32>
    %1066 = vector.extract_strided_slice %1057 {offsets = [0, 32], sizes = [2, 16], strides = [1, 1]} : vector<2x64xf32> to vector<2x16xf32>
    %1067 = math.tanh %1066 : vector<2x16xf32>
    %1068 = arith.mulf %1064, %1046 : vector<2x16xf32>
    %1069 = arith.mulf %1063, %1067 : vector<2x16xf32>
    %1070 = arith.addf %1068, %1069 : vector<2x16xf32>
    %1071 = math.tanh %1070 : vector<2x16xf32>
    %1072 = arith.mulf %1065, %1071 : vector<2x16xf32>
    %c7_287 = arith.constant 7 : index
    %c0_288 = arith.constant 0 : index
    %c0_289 = arith.constant 0 : index
    %1073 = vector.load %arg32[%c7_287, %c0_288, %c0_289] : memref<8x2x16xf32, #tpu.memory_space<vmem>>, vector<1x2x16xf32>
    %1074 = vector.shape_cast %1073 : vector<1x2x16xf32> to vector<2x16xf32>
    %1075 = vector.shape_cast %1072 : vector<2x16xf32> to vector<1x2x16xf32>
    tpu.vector_store %arg32[%c7_287, %c0_288, %c0_289], %1075 {strides = array<i32>} : memref<8x2x16xf32, #tpu.memory_space<vmem>>, vector<1x2x16xf32>,
    %c0_290 = arith.constant 0 : index
    %c0_291 = arith.constant 0 : index
    %1076 = vector.load %arg25[%c0_290, %c0_291] : memref<16x64xf32, #tpu.memory_space<vmem>>, vector<16x64xf32>
    %c0_292 = arith.constant 0 : index
    %c0_293 = arith.constant 0 : index
    %c0_294 = arith.constant 0 : index
    %1077 = vector.load %arg32[%c0_292, %c0_293, %c0_294] : memref<8x2x16xf32, #tpu.memory_space<vmem>>, vector<8x2x16xf32>
    %c0_295 = arith.constant 0 : index
    %c0_296 = arith.constant 0 : index
    %1078 = vector.load %arg24[%c0_295, %c0_296] : memref<16x64xf32, #tpu.memory_space<vmem>>, vector<16x64xf32>
    %1079 = arith.truncf %1077 : vector<8x2x16xf32> to vector<8x2x16xbf16>
    %1080 = arith.truncf %1078 : vector<16x64xf32> to vector<16x64xbf16>
    %cst_297 = arith.constant dense<0.000000e+00> : vector<8x2x64xf32>
    %1081 = tpu.matmul %1079, %1080, %cst_297 {dimension_numbers = #tpu.dot_dimension_numbers<[2], [0], [0, 1], [1], [0, 0, 0, 1, 1, 1], [], []>} : vector<8x2x16xbf16>, vector<16x64xbf16>, vector<8x2x64xf32> -> vector<8x2x64xf32>
    %c0_298 = arith.constant 0 : index
    %c0_299 = arith.constant 0 : index
    %c0_300 = arith.constant 0 : index
    %1082 = vector.load %arg26[%c0_298, %c0_299, %c0_300] : memref<1x1x64xf32, #tpu.memory_space<vmem>>, vector<1x1x64xf32>
    %1083 = vector.broadcast %1082 : vector<1x1x64xf32> to vector<8x2x64xf32>
    %1084 = arith.addf %1081, %1083 : vector<8x2x64xf32>
    %cst_301 = arith.constant 0.000000e+00 : f32
    %1085 = vector.broadcast %cst_301 : f32 to vector<2x16xf32>
    %cst_302 = arith.constant 0.000000e+00 : f32
    %1086 = vector.broadcast %cst_302 : f32 to vector<2x16xf32>
    %1087 = vector.extract_strided_slice %1084 {offsets = [0, 0, 0], sizes = [1, 2, 64], strides = [1, 1, 1]} : vector<8x2x64xf32> to vector<1x2x64xf32>
    %1088 = vector.shape_cast %1087 : vector<1x2x64xf32> to vector<2x64xf32>
    %1089 = arith.truncf %1085 : vector<2x16xf32> to vector<2x16xbf16>
    %1090 = arith.truncf %1076 : vector<16x64xf32> to vector<16x64xbf16>
    %cst_303 = arith.constant dense<0.000000e+00> : vector<2x64xf32>
    %1091 = tpu.matmul %1089, %1090, %cst_303 {dimension_numbers = #tpu.dot_dimension_numbers<[1], [0], [0], [1], [0, 0, 1, 1], [], []>} : vector<2x16xbf16>, vector<16x64xbf16>, vector<2x64xf32> -> vector<2x64xf32>
    %1092 = arith.addf %1088, %1091 : vector<2x64xf32>
    %1093 = arith.negf %1092 : vector<2x64xf32>
    %1094 = math.exp %1093 : vector<2x64xf32>
    %cst_304 = arith.constant 1.000000e+00 : f32
    %1095 = vector.broadcast %cst_304 : f32 to vector<2x64xf32>
    %1096 = arith.addf %1095, %1094 : vector<2x64xf32>
    %1097 = arith.divf %1095, %1096 : vector<2x64xf32>
    %1098 = vector.extract_strided_slice %1097 {offsets = [0, 0], sizes = [2, 16], strides = [1, 1]} : vector<2x64xf32> to vector<2x16xf32>
    %1099 = vector.extract_strided_slice %1097 {offsets = [0, 16], sizes = [2, 16], strides = [1, 1]} : vector<2x64xf32> to vector<2x16xf32>
    %1100 = vector.extract_strided_slice %1097 {offsets = [0, 48], sizes = [2, 16], strides = [1, 1]} : vector<2x64xf32> to vector<2x16xf32>
    %1101 = vector.extract_strided_slice %1092 {offsets = [0, 32], sizes = [2, 16], strides = [1, 1]} : vector<2x64xf32> to vector<2x16xf32>
    %1102 = math.tanh %1101 : vector<2x16xf32>
    %1103 = arith.mulf %1099, %1086 : vector<2x16xf32>
    %1104 = arith.mulf %1098, %1102 : vector<2x16xf32>
    %1105 = arith.addf %1103, %1104 : vector<2x16xf32>
    %1106 = math.tanh %1105 : vector<2x16xf32>
    %1107 = arith.mulf %1100, %1106 : vector<2x16xf32>
    %c0_305 = arith.constant 0 : index
    %c0_306 = arith.constant 0 : index
    %c0_307 = arith.constant 0 : index
    %1108 = vector.load %arg32[%c0_305, %c0_306, %c0_307] : memref<8x2x16xf32, #tpu.memory_space<vmem>>, vector<1x2x16xf32>
    %1109 = vector.shape_cast %1108 : vector<1x2x16xf32> to vector<2x16xf32>
    %1110 = vector.shape_cast %1107 : vector<2x16xf32> to vector<1x2x16xf32>
    tpu.vector_store %arg32[%c0_305, %c0_306, %c0_307], %1110 {strides = array<i32>} : memref<8x2x16xf32, #tpu.memory_space<vmem>>, vector<1x2x16xf32>,
    %1111 = vector.extract_strided_slice %1084 {offsets = [1, 0, 0], sizes = [1, 2, 64], strides = [1, 1, 1]} : vector<8x2x64xf32> to vector<1x2x64xf32>
    %1112 = vector.shape_cast %1111 : vector<1x2x64xf32> to vector<2x64xf32>
    %1113 = arith.truncf %1107 : vector<2x16xf32> to vector<2x16xbf16>
    %1114 = arith.truncf %1076 : vector<16x64xf32> to vector<16x64xbf16>
    %cst_308 = arith.constant dense<0.000000e+00> : vector<2x64xf32>
    %1115 = tpu.matmul %1113, %1114, %cst_308 {dimension_numbers = #tpu.dot_dimension_numbers<[1], [0], [0], [1], [0, 0, 1, 1], [], []>} : vector<2x16xbf16>, vector<16x64xbf16>, vector<2x64xf32> -> vector<2x64xf32>
    %1116 = arith.addf %1112, %1115 : vector<2x64xf32>
    %1117 = arith.negf %1116 : vector<2x64xf32>
    %1118 = math.exp %1117 : vector<2x64xf32>
    %cst_309 = arith.constant 1.000000e+00 : f32
    %1119 = vector.broadcast %cst_309 : f32 to vector<2x64xf32>
    %1120 = arith.addf %1119, %1118 : vector<2x64xf32>
    %1121 = arith.divf %1119, %1120 : vector<2x64xf32>
    %1122 = vector.extract_strided_slice %1121 {offsets = [0, 0], sizes = [2, 16], strides = [1, 1]} : vector<2x64xf32> to vector<2x16xf32>
    %1123 = vector.extract_strided_slice %1121 {offsets = [0, 16], sizes = [2, 16], strides = [1, 1]} : vector<2x64xf32> to vector<2x16xf32>
    %1124 = vector.extract_strided_slice %1121 {offsets = [0, 48], sizes = [2, 16], strides = [1, 1]} : vector<2x64xf32> to vector<2x16xf32>
    %1125 = vector.extract_strided_slice %1116 {offsets = [0, 32], sizes = [2, 16], strides = [1, 1]} : vector<2x64xf32> to vector<2x16xf32>
    %1126 = math.tanh %1125 : vector<2x16xf32>
    %1127 = arith.mulf %1123, %1105 : vector<2x16xf32>
    %1128 = arith.mulf %1122, %1126 : vector<2x16xf32>
    %1129 = arith.addf %1127, %1128 : vector<2x16xf32>
    %1130 = math.tanh %1129 : vector<2x16xf32>
    %1131 = arith.mulf %1124, %1130 : vector<2x16xf32>
    %c1_310 = arith.constant 1 : index
    %c0_311 = arith.constant 0 : index
    %c0_312 = arith.constant 0 : index
    %1132 = vector.load %arg32[%c1_310, %c0_311, %c0_312] : memref<8x2x16xf32, #tpu.memory_space<vmem>>, vector<1x2x16xf32>
    %1133 = vector.shape_cast %1132 : vector<1x2x16xf32> to vector<2x16xf32>
    %1134 = vector.shape_cast %1131 : vector<2x16xf32> to vector<1x2x16xf32>
    tpu.vector_store %arg32[%c1_310, %c0_311, %c0_312], %1134 {strides = array<i32>} : memref<8x2x16xf32, #tpu.memory_space<vmem>>, vector<1x2x16xf32>,
    %1135 = vector.extract_strided_slice %1084 {offsets = [2, 0, 0], sizes = [1, 2, 64], strides = [1, 1, 1]} : vector<8x2x64xf32> to vector<1x2x64xf32>
    %1136 = vector.shape_cast %1135 : vector<1x2x64xf32> to vector<2x64xf32>
    %1137 = arith.truncf %1131 : vector<2x16xf32> to vector<2x16xbf16>
    %1138 = arith.truncf %1076 : vector<16x64xf32> to vector<16x64xbf16>
    %cst_313 = arith.constant dense<0.000000e+00> : vector<2x64xf32>
    %1139 = tpu.matmul %1137, %1138, %cst_313 {dimension_numbers = #tpu.dot_dimension_numbers<[1], [0], [0], [1], [0, 0, 1, 1], [], []>} : vector<2x16xbf16>, vector<16x64xbf16>, vector<2x64xf32> -> vector<2x64xf32>
    %1140 = arith.addf %1136, %1139 : vector<2x64xf32>
    %1141 = arith.negf %1140 : vector<2x64xf32>
    %1142 = math.exp %1141 : vector<2x64xf32>
    %cst_314 = arith.constant 1.000000e+00 : f32
    %1143 = vector.broadcast %cst_314 : f32 to vector<2x64xf32>
    %1144 = arith.addf %1143, %1142 : vector<2x64xf32>
    %1145 = arith.divf %1143, %1144 : vector<2x64xf32>
    %1146 = vector.extract_strided_slice %1145 {offsets = [0, 0], sizes = [2, 16], strides = [1, 1]} : vector<2x64xf32> to vector<2x16xf32>
    %1147 = vector.extract_strided_slice %1145 {offsets = [0, 16], sizes = [2, 16], strides = [1, 1]} : vector<2x64xf32> to vector<2x16xf32>
    %1148 = vector.extract_strided_slice %1145 {offsets = [0, 48], sizes = [2, 16], strides = [1, 1]} : vector<2x64xf32> to vector<2x16xf32>
    %1149 = vector.extract_strided_slice %1140 {offsets = [0, 32], sizes = [2, 16], strides = [1, 1]} : vector<2x64xf32> to vector<2x16xf32>
    %1150 = math.tanh %1149 : vector<2x16xf32>
    %1151 = arith.mulf %1147, %1129 : vector<2x16xf32>
    %1152 = arith.mulf %1146, %1150 : vector<2x16xf32>
    %1153 = arith.addf %1151, %1152 : vector<2x16xf32>
    %1154 = math.tanh %1153 : vector<2x16xf32>
    %1155 = arith.mulf %1148, %1154 : vector<2x16xf32>
    %c2_315 = arith.constant 2 : index
    %c0_316 = arith.constant 0 : index
    %c0_317 = arith.constant 0 : index
    %1156 = vector.load %arg32[%c2_315, %c0_316, %c0_317] : memref<8x2x16xf32, #tpu.memory_space<vmem>>, vector<1x2x16xf32>
    %1157 = vector.shape_cast %1156 : vector<1x2x16xf32> to vector<2x16xf32>
    %1158 = vector.shape_cast %1155 : vector<2x16xf32> to vector<1x2x16xf32>
    tpu.vector_store %arg32[%c2_315, %c0_316, %c0_317], %1158 {strides = array<i32>} : memref<8x2x16xf32, #tpu.memory_space<vmem>>, vector<1x2x16xf32>,
    %1159 = vector.extract_strided_slice %1084 {offsets = [3, 0, 0], sizes = [1, 2, 64], strides = [1, 1, 1]} : vector<8x2x64xf32> to vector<1x2x64xf32>
    %1160 = vector.shape_cast %1159 : vector<1x2x64xf32> to vector<2x64xf32>
    %1161 = arith.truncf %1155 : vector<2x16xf32> to vector<2x16xbf16>
    %1162 = arith.truncf %1076 : vector<16x64xf32> to vector<16x64xbf16>
    %cst_318 = arith.constant dense<0.000000e+00> : vector<2x64xf32>
    %1163 = tpu.matmul %1161, %1162, %cst_318 {dimension_numbers = #tpu.dot_dimension_numbers<[1], [0], [0], [1], [0, 0, 1, 1], [], []>} : vector<2x16xbf16>, vector<16x64xbf16>, vector<2x64xf32> -> vector<2x64xf32>
    %1164 = arith.addf %1160, %1163 : vector<2x64xf32>
    %1165 = arith.negf %1164 : vector<2x64xf32>
    %1166 = math.exp %1165 : vector<2x64xf32>
    %cst_319 = arith.constant 1.000000e+00 : f32
    %1167 = vector.broadcast %cst_319 : f32 to vector<2x64xf32>
    %1168 = arith.addf %1167, %1166 : vector<2x64xf32>
    %1169 = arith.divf %1167, %1168 : vector<2x64xf32>
    %1170 = vector.extract_strided_slice %1169 {offsets = [0, 0], sizes = [2, 16], strides = [1, 1]} : vector<2x64xf32> to vector<2x16xf32>
    %1171 = vector.extract_strided_slice %1169 {offsets = [0, 16], sizes = [2, 16], strides = [1, 1]} : vector<2x64xf32> to vector<2x16xf32>
    %1172 = vector.extract_strided_slice %1169 {offsets = [0, 48], sizes = [2, 16], strides = [1, 1]} : vector<2x64xf32> to vector<2x16xf32>
    %1173 = vector.extract_strided_slice %1164 {offsets = [0, 32], sizes = [2, 16], strides = [1, 1]} : vector<2x64xf32> to vector<2x16xf32>
    %1174 = math.tanh %1173 : vector<2x16xf32>
    %1175 = arith.mulf %1171, %1153 : vector<2x16xf32>
    %1176 = arith.mulf %1170, %1174 : vector<2x16xf32>
    %1177 = arith.addf %1175, %1176 : vector<2x16xf32>
    %1178 = math.tanh %1177 : vector<2x16xf32>
    %1179 = arith.mulf %1172, %1178 : vector<2x16xf32>
    %c3_320 = arith.constant 3 : index
    %c0_321 = arith.constant 0 : index
    %c0_322 = arith.constant 0 : index
    %1180 = vector.load %arg32[%c3_320, %c0_321, %c0_322] : memref<8x2x16xf32, #tpu.memory_space<vmem>>, vector<1x2x16xf32>
    %1181 = vector.shape_cast %1180 : vector<1x2x16xf32> to vector<2x16xf32>
    %1182 = vector.shape_cast %1179 : vector<2x16xf32> to vector<1x2x16xf32>
    tpu.vector_store %arg32[%c3_320, %c0_321, %c0_322], %1182 {strides = array<i32>} : memref<8x2x16xf32, #tpu.memory_space<vmem>>, vector<1x2x16xf32>,
    %1183 = vector.extract_strided_slice %1084 {offsets = [4, 0, 0], sizes = [1, 2, 64], strides = [1, 1, 1]} : vector<8x2x64xf32> to vector<1x2x64xf32>
    %1184 = vector.shape_cast %1183 : vector<1x2x64xf32> to vector<2x64xf32>
    %1185 = arith.truncf %1179 : vector<2x16xf32> to vector<2x16xbf16>
    %1186 = arith.truncf %1076 : vector<16x64xf32> to vector<16x64xbf16>
    %cst_323 = arith.constant dense<0.000000e+00> : vector<2x64xf32>
    %1187 = tpu.matmul %1185, %1186, %cst_323 {dimension_numbers = #tpu.dot_dimension_numbers<[1], [0], [0], [1], [0, 0, 1, 1], [], []>} : vector<2x16xbf16>, vector<16x64xbf16>, vector<2x64xf32> -> vector<2x64xf32>
    %1188 = arith.addf %1184, %1187 : vector<2x64xf32>
    %1189 = arith.negf %1188 : vector<2x64xf32>
    %1190 = math.exp %1189 : vector<2x64xf32>
    %cst_324 = arith.constant 1.000000e+00 : f32
    %1191 = vector.broadcast %cst_324 : f32 to vector<2x64xf32>
    %1192 = arith.addf %1191, %1190 : vector<2x64xf32>
    %1193 = arith.divf %1191, %1192 : vector<2x64xf32>
    %1194 = vector.extract_strided_slice %1193 {offsets = [0, 0], sizes = [2, 16], strides = [1, 1]} : vector<2x64xf32> to vector<2x16xf32>
    %1195 = vector.extract_strided_slice %1193 {offsets = [0, 16], sizes = [2, 16], strides = [1, 1]} : vector<2x64xf32> to vector<2x16xf32>
    %1196 = vector.extract_strided_slice %1193 {offsets = [0, 48], sizes = [2, 16], strides = [1, 1]} : vector<2x64xf32> to vector<2x16xf32>
    %1197 = vector.extract_strided_slice %1188 {offsets = [0, 32], sizes = [2, 16], strides = [1, 1]} : vector<2x64xf32> to vector<2x16xf32>
    %1198 = math.tanh %1197 : vector<2x16xf32>
    %1199 = arith.mulf %1195, %1177 : vector<2x16xf32>
    %1200 = arith.mulf %1194, %1198 : vector<2x16xf32>
    %1201 = arith.addf %1199, %1200 : vector<2x16xf32>
    %1202 = math.tanh %1201 : vector<2x16xf32>
    %1203 = arith.mulf %1196, %1202 : vector<2x16xf32>
    %c4_325 = arith.constant 4 : index
    %c0_326 = arith.constant 0 : index
    %c0_327 = arith.constant 0 : index
    %1204 = vector.load %arg32[%c4_325, %c0_326, %c0_327] : memref<8x2x16xf32, #tpu.memory_space<vmem>>, vector<1x2x16xf32>
    %1205 = vector.shape_cast %1204 : vector<1x2x16xf32> to vector<2x16xf32>
    %1206 = vector.shape_cast %1203 : vector<2x16xf32> to vector<1x2x16xf32>
    tpu.vector_store %arg32[%c4_325, %c0_326, %c0_327], %1206 {strides = array<i32>} : memref<8x2x16xf32, #tpu.memory_space<vmem>>, vector<1x2x16xf32>,
    %1207 = vector.extract_strided_slice %1084 {offsets = [5, 0, 0], sizes = [1, 2, 64], strides = [1, 1, 1]} : vector<8x2x64xf32> to vector<1x2x64xf32>
    %1208 = vector.shape_cast %1207 : vector<1x2x64xf32> to vector<2x64xf32>
    %1209 = arith.truncf %1203 : vector<2x16xf32> to vector<2x16xbf16>
    %1210 = arith.truncf %1076 : vector<16x64xf32> to vector<16x64xbf16>
    %cst_328 = arith.constant dense<0.000000e+00> : vector<2x64xf32>
    %1211 = tpu.matmul %1209, %1210, %cst_328 {dimension_numbers = #tpu.dot_dimension_numbers<[1], [0], [0], [1], [0, 0, 1, 1], [], []>} : vector<2x16xbf16>, vector<16x64xbf16>, vector<2x64xf32> -> vector<2x64xf32>
    %1212 = arith.addf %1208, %1211 : vector<2x64xf32>
    %1213 = arith.negf %1212 : vector<2x64xf32>
    %1214 = math.exp %1213 : vector<2x64xf32>
    %cst_329 = arith.constant 1.000000e+00 : f32
    %1215 = vector.broadcast %cst_329 : f32 to vector<2x64xf32>
    %1216 = arith.addf %1215, %1214 : vector<2x64xf32>
    %1217 = arith.divf %1215, %1216 : vector<2x64xf32>
    %1218 = vector.extract_strided_slice %1217 {offsets = [0, 0], sizes = [2, 16], strides = [1, 1]} : vector<2x64xf32> to vector<2x16xf32>
    %1219 = vector.extract_strided_slice %1217 {offsets = [0, 16], sizes = [2, 16], strides = [1, 1]} : vector<2x64xf32> to vector<2x16xf32>
    %1220 = vector.extract_strided_slice %1217 {offsets = [0, 48], sizes = [2, 16], strides = [1, 1]} : vector<2x64xf32> to vector<2x16xf32>
    %1221 = vector.extract_strided_slice %1212 {offsets = [0, 32], sizes = [2, 16], strides = [1, 1]} : vector<2x64xf32> to vector<2x16xf32>
    %1222 = math.tanh %1221 : vector<2x16xf32>
    %1223 = arith.mulf %1219, %1201 : vector<2x16xf32>
    %1224 = arith.mulf %1218, %1222 : vector<2x16xf32>
    %1225 = arith.addf %1223, %1224 : vector<2x16xf32>
    %1226 = math.tanh %1225 : vector<2x16xf32>
    %1227 = arith.mulf %1220, %1226 : vector<2x16xf32>
    %c5_330 = arith.constant 5 : index
    %c0_331 = arith.constant 0 : index
    %c0_332 = arith.constant 0 : index
    %1228 = vector.load %arg32[%c5_330, %c0_331, %c0_332] : memref<8x2x16xf32, #tpu.memory_space<vmem>>, vector<1x2x16xf32>
    %1229 = vector.shape_cast %1228 : vector<1x2x16xf32> to vector<2x16xf32>
    %1230 = vector.shape_cast %1227 : vector<2x16xf32> to vector<1x2x16xf32>
    tpu.vector_store %arg32[%c5_330, %c0_331, %c0_332], %1230 {strides = array<i32>} : memref<8x2x16xf32, #tpu.memory_space<vmem>>, vector<1x2x16xf32>,
    %1231 = vector.extract_strided_slice %1084 {offsets = [6, 0, 0], sizes = [1, 2, 64], strides = [1, 1, 1]} : vector<8x2x64xf32> to vector<1x2x64xf32>
    %1232 = vector.shape_cast %1231 : vector<1x2x64xf32> to vector<2x64xf32>
    %1233 = arith.truncf %1227 : vector<2x16xf32> to vector<2x16xbf16>
    %1234 = arith.truncf %1076 : vector<16x64xf32> to vector<16x64xbf16>
    %cst_333 = arith.constant dense<0.000000e+00> : vector<2x64xf32>
    %1235 = tpu.matmul %1233, %1234, %cst_333 {dimension_numbers = #tpu.dot_dimension_numbers<[1], [0], [0], [1], [0, 0, 1, 1], [], []>} : vector<2x16xbf16>, vector<16x64xbf16>, vector<2x64xf32> -> vector<2x64xf32>
    %1236 = arith.addf %1232, %1235 : vector<2x64xf32>
    %1237 = arith.negf %1236 : vector<2x64xf32>
    %1238 = math.exp %1237 : vector<2x64xf32>
    %cst_334 = arith.constant 1.000000e+00 : f32
    %1239 = vector.broadcast %cst_334 : f32 to vector<2x64xf32>
    %1240 = arith.addf %1239, %1238 : vector<2x64xf32>
    %1241 = arith.divf %1239, %1240 : vector<2x64xf32>
    %1242 = vector.extract_strided_slice %1241 {offsets = [0, 0], sizes = [2, 16], strides = [1, 1]} : vector<2x64xf32> to vector<2x16xf32>
    %1243 = vector.extract_strided_slice %1241 {offsets = [0, 16], sizes = [2, 16], strides = [1, 1]} : vector<2x64xf32> to vector<2x16xf32>
    %1244 = vector.extract_strided_slice %1241 {offsets = [0, 48], sizes = [2, 16], strides = [1, 1]} : vector<2x64xf32> to vector<2x16xf32>
    %1245 = vector.extract_strided_slice %1236 {offsets = [0, 32], sizes = [2, 16], strides = [1, 1]} : vector<2x64xf32> to vector<2x16xf32>
    %1246 = math.tanh %1245 : vector<2x16xf32>
    %1247 = arith.mulf %1243, %1225 : vector<2x16xf32>
    %1248 = arith.mulf %1242, %1246 : vector<2x16xf32>
    %1249 = arith.addf %1247, %1248 : vector<2x16xf32>
    %1250 = math.tanh %1249 : vector<2x16xf32>
    %1251 = arith.mulf %1244, %1250 : vector<2x16xf32>
    %c6_335 = arith.constant 6 : index
    %c0_336 = arith.constant 0 : index
    %c0_337 = arith.constant 0 : index
    %1252 = vector.load %arg32[%c6_335, %c0_336, %c0_337] : memref<8x2x16xf32, #tpu.memory_space<vmem>>, vector<1x2x16xf32>
    %1253 = vector.shape_cast %1252 : vector<1x2x16xf32> to vector<2x16xf32>
    %1254 = vector.shape_cast %1251 : vector<2x16xf32> to vector<1x2x16xf32>
    tpu.vector_store %arg32[%c6_335, %c0_336, %c0_337], %1254 {strides = array<i32>} : memref<8x2x16xf32, #tpu.memory_space<vmem>>, vector<1x2x16xf32>,
    %1255 = vector.extract_strided_slice %1084 {offsets = [7, 0, 0], sizes = [1, 2, 64], strides = [1, 1, 1]} : vector<8x2x64xf32> to vector<1x2x64xf32>
    %1256 = vector.shape_cast %1255 : vector<1x2x64xf32> to vector<2x64xf32>
    %1257 = arith.truncf %1251 : vector<2x16xf32> to vector<2x16xbf16>
    %1258 = arith.truncf %1076 : vector<16x64xf32> to vector<16x64xbf16>
    %cst_338 = arith.constant dense<0.000000e+00> : vector<2x64xf32>
    %1259 = tpu.matmul %1257, %1258, %cst_338 {dimension_numbers = #tpu.dot_dimension_numbers<[1], [0], [0], [1], [0, 0, 1, 1], [], []>} : vector<2x16xbf16>, vector<16x64xbf16>, vector<2x64xf32> -> vector<2x64xf32>
    %1260 = arith.addf %1256, %1259 : vector<2x64xf32>
    %1261 = arith.negf %1260 : vector<2x64xf32>
    %1262 = math.exp %1261 : vector<2x64xf32>
    %cst_339 = arith.constant 1.000000e+00 : f32
    %1263 = vector.broadcast %cst_339 : f32 to vector<2x64xf32>
    %1264 = arith.addf %1263, %1262 : vector<2x64xf32>
    %1265 = arith.divf %1263, %1264 : vector<2x64xf32>
    %1266 = vector.extract_strided_slice %1265 {offsets = [0, 0], sizes = [2, 16], strides = [1, 1]} : vector<2x64xf32> to vector<2x16xf32>
    %1267 = vector.extract_strided_slice %1265 {offsets = [0, 16], sizes = [2, 16], strides = [1, 1]} : vector<2x64xf32> to vector<2x16xf32>
    %1268 = vector.extract_strided_slice %1265 {offsets = [0, 48], sizes = [2, 16], strides = [1, 1]} : vector<2x64xf32> to vector<2x16xf32>
    %1269 = vector.extract_strided_slice %1260 {offsets = [0, 32], sizes = [2, 16], strides = [1, 1]} : vector<2x64xf32> to vector<2x16xf32>
    %1270 = math.tanh %1269 : vector<2x16xf32>
    %1271 = arith.mulf %1267, %1249 : vector<2x16xf32>
    %1272 = arith.mulf %1266, %1270 : vector<2x16xf32>
    %1273 = arith.addf %1271, %1272 : vector<2x16xf32>
    %1274 = math.tanh %1273 : vector<2x16xf32>
    %1275 = arith.mulf %1268, %1274 : vector<2x16xf32>
    %c7_340 = arith.constant 7 : index
    %c0_341 = arith.constant 0 : index
    %c0_342 = arith.constant 0 : index
    %1276 = vector.load %arg32[%c7_340, %c0_341, %c0_342] : memref<8x2x16xf32, #tpu.memory_space<vmem>>, vector<1x2x16xf32>
    %1277 = vector.shape_cast %1276 : vector<1x2x16xf32> to vector<2x16xf32>
    %1278 = vector.shape_cast %1275 : vector<2x16xf32> to vector<1x2x16xf32>
    tpu.vector_store %arg32[%c7_340, %c0_341, %c0_342], %1278 {strides = array<i32>} : memref<8x2x16xf32, #tpu.memory_space<vmem>>, vector<1x2x16xf32>,
    %c0_343 = arith.constant 0 : index
    %c0_344 = arith.constant 0 : index
    %c0_345 = arith.constant 0 : index
    %1279 = vector.load %arg32[%c0_343, %c0_344, %c0_345] : memref<8x2x16xf32, #tpu.memory_space<vmem>>, vector<8x2x16xf32>
    %c0_346 = arith.constant 0 : index
    %c0_347 = arith.constant 0 : index
    %1280 = vector.load %arg1[%c0_346, %c0_347] : memref<16x32xf32, #tpu.memory_space<vmem>>, vector<16x32xf32>
    %1281 = arith.truncf %1279 : vector<8x2x16xf32> to vector<8x2x16xbf16>
    %1282 = arith.truncf %1280 : vector<16x32xf32> to vector<16x32xbf16>
    %cst_348 = arith.constant dense<0.000000e+00> : vector<8x2x32xf32>
    %1283 = tpu.matmul %1281, %1282, %cst_348 {dimension_numbers = #tpu.dot_dimension_numbers<[2], [0], [0, 1], [1], [0, 0, 0, 1, 1, 1], [], []>} : vector<8x2x16xbf16>, vector<16x32xbf16>, vector<8x2x32xf32> -> vector<8x2x32xf32>
    %c0_349 = arith.constant 0 : index
    %c0_350 = arith.constant 0 : index
    %c0_351 = arith.constant 0 : index
    %1284 = vector.load %arg2[%c0_349, %c0_350, %c0_351] : memref<1x1x32xf32, #tpu.memory_space<vmem>>, vector<1x1x32xf32>
    %1285 = vector.broadcast %1284 : vector<1x1x32xf32> to vector<8x2x32xf32>
    %1286 = arith.addf %1283, %1285 : vector<8x2x32xf32>
    %c0_352 = arith.constant 0 : index
    %c0_353 = arith.constant 0 : index
    %c0_354 = arith.constant 0 : index
    %1287 = vector.load %arg27[%c0_352, %c0_353, %c0_354] : memref<8x2x32xf32, #tpu.memory_space<vmem>>, vector<8x2x32xf32>
    tpu.vector_store %arg27[%c0_352, %c0_353, %c0_354], %1286 {strides = array<i32>} : memref<8x2x32xf32, #tpu.memory_space<vmem>>, vector<8x2x32xf32>,
    return
  }
}

</mosaic_0001>

<bundles_post_ra>
// kernel: encoder_layer_forward.3
= control target key start
LH: loop header
LB: loop body
LE: loop exit
PB: predicated region body
PF: predicated region fallthrough
CT: control target
= control target key end

     0   :  { %s1321_s0 = inlined_call_operand.vmem [shape: f32[2,8,16], index: 0, kind: input, shape index: {}]   ;;  %s1322_s1 = inlined_call_operand.hbm [shape: f32[1,16], index: 1, kind: input, shape index: {}]   ;;  %s1323_s2 = inlined_call_operand.hbm [shape: f32[1,16], index: 2, kind: input, shape index: {}]   ;;  %s1324_s3 = inlined_call_operand.hbm [shape: f32[16,32], index: 3, kind: input, shape index: {}]   ;;  %s1325_s4 = inlined_call_operand.hbm [shape: f32[1,32], index: 4, kind: input, shape index: {}]   ;;  %s1326_s5 = inlined_call_operand.hbm [shape: f32[2,8,8], index: 5, kind: output, shape index: {0}]   ;;  %s1327_s6 = inlined_call_operand.vmem [shape: f32[2,8,32], index: 6, kind: output, shape index: {1}]  }
   0x1   :  { %1331 = sst [smem:[#allocation15_spill]] %s1322_s1 }
   0x2   :  { %1332 = sst [smem:[#allocation16_spill]] %s1323_s2 }
   0x3   :  { %12 = vsyncpa [#allocation3], 0 }
   0x4   :  { %13 = vsyncpa [#allocation6], 0 }
   0x5   :  { %14 = vsyncpa [#allocation9], 0 }
   0x6   :  { %15 = vsyncpa [#allocation4], 0 }
   0x7   :  { %17 = vsyncpa [#allocation4 + $0x1], 0  ;;  %s1077_s21 = smov 0   ;;  %s1079_s22 = smov 0  }
   0x8   :  { %s1081_s23 = smov 0   ;;  %s1083_s24 = smov 0  }
   0x9 LB: > { %s1098_s25 = sadd.s32 4294967295, %s1031_s24   ;;  %s707_s26 = sadd.s32 4294967294, %s1031_s24   ;;  %s1031_s24 = sphi %s1083_s24, %s1352_s24   ;;  %s1027_s23 = sphi %s1081_s23, %s1351_s23   ;;  %s1023_s22 = sphi %s1079_s22, %s1350_s22   ;;  %s1019_s21 = sphi %s1077_s21, %s1349_s21  }
   0xa   : > { %s1102_s27 = sadd.s32 1, %s1031_s24   ;;  %s140_s28 = sadd.s32 1, %s1027_s23 }
   0xb   : > { %s137_s29 = ssub.s32 %s1031_s24, %s1102_s27  ;;  %p150_p0 = scmp.ne.s32.totalorder %s1027_s23, %s1023_s22 }
   0xc   : > { %p138_p1 = scmp.eq.s32.totalorder %s137_s29, 0  ;;  %p151_p2 = scmp.eq.s32.totalorder %s1098_s25, 1 }
   0xd   : > { %p156_p3 = scmp.ne.s32.totalorder %s1023_s22, %s1019_s21  ;;  %p157_p4 = scmp.eq.s32.totalorder %s707_s26, 1 }
   0xe   : > { %s1113_s30 = scalar_select %p138_p1, %s1027_s23, %s140_s28  }
   0xf   : > { %p1115_p5 = por %p151_p2, %p150_p0  ;;  %p1119_p6 = por %p157_p4, %p156_p3 }
  0x10   : > { %p708_p7 = scmp.ge.s32.totalorder %s1031_s24, 1  ;;  %p190_p8 = scmp.lt.s32.totalorder %s1031_s24, 3 }
  0x11   : > { %s1333_s7 = scalar_select %p1115_p5, 1, 0 }
  0x12   : > { %s1334_s8 = scalar_select %p1119_p6, 1, 0 }
  0x13   : > { %p1328_p9 = scmp.eq.s32.totalorder %s1098_s25, 0  ;;  %p1126_p10 = pnand %p708_p7, %p190_p8 }
  0x14   : > { %s1033_s10 = smov [#allocation5]   ;;  %s1034_s12 = smov [#allocation2]  }
  0x15   : > { %s1335_s9 = scalar_select %p1126_p10, 1, 0 }
  0x16   : > { %s214_s11 = sshll.u32 %s1033_s10, 4  ;;  %p773_p11 = pneg %p1126_p10  ;;  %s215_s11 = int_to_ptr.vmem [resolvable:$true] %s214_s11 }
  0x17   : > { %s203_s13 = sshll.u32 %s1034_s12, 4  ;;  %s1035_s15 = smov [#allocation7]   ;;  %s1138_s13 = int_to_ptr.vmem [resolvable:$true] %s203_s13 }
  0x18   : > { %p1134_p12 = pnand %p1328_p9, %p773_p11  ;;  %s224_s16 = sshll.u32 %s1035_s15, 4  ;;  %s1140_s16 = int_to_ptr.vmem [resolvable:$true] %s224_s16 }
  0x19   : > { %s1337_s2 = sld [smem:[#allocation16_spill]] }
  0x1a   : > { %p1150_p0 = pneg %p1134_p12 }
  0x1f   : > { %s845_s19 = scalar_lea.hbm %s1337_s2, 16 }
  0x20   : > { %p846_p13 = scmp.ne.s32.totalorder %s1337_s2, %s845_s19  ;;  %p852_p3 = scmp.lt.u32.totalorder %s845_s19, %s1337_s2 }
  0x22   : > { %p848_p1 = pnand %p1150_p0, %p846_p13 }
  0x24   : > { %p849_p2 = pneg %p848_p1 }
  0x26   : > { %p854_p4 = pnand %p852_p3, %p849_p2 }
  0x28   : > { %857 = shalt.err (!%p854_p4)
}
  0x29   : > { %s858_s12 = scalar_lea.vmem %s215_s11, 16  ;;  %s865_s15 = scalar_lea.vmem %s215_s11, 32 }
  0x2a   : > { %p859_p7 = scmp.ne.s32.totalorder %s215_s11, %s858_s12  ;;  %p866_p9 = scmp.lt.s32.totalorder %s215_s11, %s215_s11 }
  0x2b   : > { %p867_p6 = scmp.lt.s32.totalorder %s865_s15, %s858_s12 }
  0x2c   : > { %p861_p8 = pnand %p859_p7, %p1150_p0 }
  0x2d   : > { %p868_p5 = por %p867_p6, %p866_p9 }
  0x2e   : > { %p862_p11 = pneg %p861_p8 }
  0x30   : > { %p869_p10 = pnand %p868_p5, %p862_p11 }
  0x32   : > { %872 = shalt.err (!%p869_p10)
}
  0x33   : > { %779 = dma.hbm_to_vmem [thread:$0]  (!%p1134_p12), %s1337_s2, 16, %s215_s11, [#allocation6]  }
  0x34   : > { %s1339_s1 = sld [smem:[#allocation15_spill]] }
  0x3a   : > { %s873_s26 = scalar_lea.hbm %s1339_s1, 16 }
  0x3b   : > { %p874_p13 = scmp.ne.s32.totalorder %s1339_s1, %s873_s26  ;;  %p880_p5 = scmp.lt.u32.totalorder %s873_s26, %s1339_s1 }
  0x3d   : > { %p876_p1 = pnand %p874_p13, %p1150_p0 }
  0x3f   : > { %p877_p6 = pneg %p876_p1 }
  0x41   : > { %p882_p9 = pnand %p880_p5, %p877_p6 }
  0x43   : > { %885 = shalt.err (!%p882_p9)
}
  0x44   : > { %s886_s11 = scalar_lea.vmem %s1138_s13, 16  ;;  %s893_s17 = scalar_lea.vmem %s1138_s13, 32 }
  0x45   : > { %p887_p10 = scmp.ne.s32.totalorder %s1138_s13, %s886_s11  ;;  %p894_p4 = scmp.lt.s32.totalorder %s1138_s13, %s1138_s13 }
  0x46   : > { %p895_p7 = scmp.lt.s32.totalorder %s893_s17, %s886_s11 }
  0x47   : > { %p889_p2 = pnand %p887_p10, %p1150_p0 }
  0x48   : > { %p896_p8 = por %p895_p7, %p894_p4 }
  0x49   : > { %p890_p3 = pneg %p889_p2 }
  0x4b   : > { %p897_p11 = pnand %p896_p8, %p890_p3 }
  0x4d   : > { %900 = shalt.err (!%p897_p11)
}
  0x4e   : > { %776 = dma.hbm_to_vmem [thread:$0]  (!%p1134_p12), %s1339_s1, 16, %s1138_s13, [#allocation3]  }
  0x4f   : > { %s901_s29 = scalar_lea.hbm %s1324_s3, 256 }
  0x50   : > { %p902_p13 = scmp.ne.s32.totalorder %s1324_s3, %s901_s29  ;;  %p908_p5 = scmp.lt.u32.totalorder %s901_s29, %s1324_s3 }
  0x52   : > { %p904_p1 = pnand %p902_p13, %p1150_p0 }
  0x54   : > { %p905_p6 = pneg %p904_p1 }
  0x56   : > { %p910_p9 = pnand %p908_p5, %p905_p6 }
  0x58   : > { %913 = shalt.err (!%p910_p9)
}
  0x59   : > { %s914_s13 = scalar_lea.vmem %s1140_s16, 256  ;;  %p922_p4 = scmp.lt.s32.totalorder %s1140_s16, %s1140_s16 }
  0x5a   : > { %p915_p10 = scmp.ne.s32.totalorder %s1140_s16, %s914_s13  ;;  %p923_p7 = scmp.lt.s32.totalorder %s914_s13, %s914_s13 }
  0x5c   : > { %p917_p2 = pnand %p915_p10, %p1150_p0  ;;  %p924_p8 = por %p923_p7, %p922_p4 }
  0x5e   : > { %p918_p3 = pneg %p917_p2 }
  0x60   : > { %p925_p11 = pnand %p924_p8, %p918_p3 }
  0x62   : > { %928 = shalt.err (!%p925_p11)
}
  0x63   : > { %s1036_s17 = smov 128   ;;  %s1037_s18 = smov 8  }
  0x64   : > { %782 = dma.hbm_to_vmem [thread:$0]  (!%p1134_p12), %s1324_s3, 256, %s1140_s16, [#allocation6], %s1036_s17, %s1036_s17, %s1037_s18  }
  0x65   : > { %s1038_s26 = smov [#allocation8]   ;;  %s929_s15 = scalar_lea.hbm %s1325_s4, 16 }
  0x66   : > { %s238_s29 = sshll.u32 %s1038_s26, 4  ;;  %p930_p13 = scmp.ne.s32.totalorder %s1325_s4, %s929_s15  ;;  %s239_s29 = int_to_ptr.vmem [resolvable:$true] %s238_s29 }
  0x67   : > { %p936_p5 = scmp.lt.u32.totalorder %s929_s15, %s1325_s4 }
  0x68   : > { %p932_p1 = pnand %p930_p13, %p1150_p0 }
  0x6a   : > { %p933_p6 = pneg %p932_p1 }
  0x6c   : > { %p938_p9 = pnand %p936_p5, %p933_p6 }
  0x6e   : > { %941 = shalt.err (!%p938_p9)
}
  0x6f   : > { %s942_s16 = scalar_lea.vmem %s239_s29, 16  ;;  %s949_s17 = scalar_lea.vmem %s239_s29, 32 }
  0x70   : > { %p943_p10 = scmp.ne.s32.totalorder %s239_s29, %s942_s16  ;;  %p950_p4 = scmp.lt.s32.totalorder %s239_s29, %s239_s29 }
  0x71   : > { %p951_p7 = scmp.lt.s32.totalorder %s949_s17, %s942_s16 }
  0x72   : > { %p945_p2 = pnand %p943_p10, %p1150_p0 }
  0x73   : > { %p952_p8 = por %p951_p7, %p950_p4 }
  0x74   : > { %p946_p3 = pneg %p945_p2 }
  0x76   : > { %p953_p11 = pnand %p952_p8, %p946_p3 }
  0x78   : > { %956 = shalt.err (!%p953_p11)
}
  0x79   : > { %785 = dma.hbm_to_vmem [thread:$0]  (!%p1134_p12), %s1325_s4, 16, %s239_s29, [#allocation9]  }
  0x7a   : > { %p1340_p13 = scmp.ne.s32.totalorder %s1335_s9, 0 }
  0x7b   : > { %p1341_p1 = scmp.eq.s32.totalorder (!%p1340_p13), %s1098_s25, 0 }
  0x7c   : > { %258 = sbr.rel (%p1340_p13) target bundleno = 1423 (0x58f), region = 40 }
  0x83   : > { %1002 = dma.done.wait (%p1341_p1), [#allocation3], 16   ;;  %p1342_p0 = pmov %p1341_p1 }
  0x85   : > { %1004 = vsyncadd (%p1342_p0), [#allocation3], 4294967280  ;;  %p1343_p6 = pmov %p1342_p0 }
  0x86   : > { %p1344_p5 = pmov %p1342_p0 }
  0x87   : > { %1006 = dma.done.wait (%p1343_p6), [#allocation6], 272  }
  0x88   : > { %1008 = vsyncadd (%p1344_p5), [#allocation6], 4294967024  ;;  %p1345_p9 = pmov %p1342_p0 }
  0x89   : > { %p1346_p12 = pmov %p1342_p0 }
  0x8a   : > { %1010 = dma.done.wait (%p1345_p9), [#allocation9], 16  }
  0x8b   : > { %1012 = vsyncadd (%p1346_p12), [#allocation9], 4294967280  ;;  %p303_p10 = scmp.lt.s32.totalorder %s1098_s25, 1  ;;  %v1039_v0 = vmov 0.0   ;;  %vm1040_vm0 = vmmov 0   ;;  %vm313_vm1 = vcmask 130048  }
  0x8c   : > { %739 = vmatprep.subr.mxu0 %v1039_v0  ;;  %741 = vmatprep.mubr.msk.f32.mxu0 %vm1040_vm0, %v1039_v0  ;;  %vm388_vm2 = vcmask 64512   ;;  %s294_s20 = sand.u32 1, %s1023_s22   ;;  %v505_v23 = vld [vmem:[#allocation7] sm:$0xff]  ;;  %v506_v24 = vld [vmem:[#allocation7 + $0x8] sm:$0xff]  ;;  %v725_v30 = vld [vmem:[#allocation2] ss:$0 sm:$0xff] }
  0x8d   : > { %s1247_s1 = scalar_select %p303_p10, %s1098_s25, 1  ;;  %749 = vmatprep.subr.bf16.mxu1 %v1039_v0  ;;  %751 = vmatprep.mubr.msk.bf16.mxu1 %vm1040_vm0, %v1039_v0  ;;  %v508_v25 = vpack.c.bf16 %v506_v24, %v505_v23  ;;  %v726_v32 = vld [vmem:[#allocation5] ss:$0 sm:$0xff] }
  0x8e   : > { %s1262_s26 = sshll.u32 %s294_s20, 3  ;;  %s730_s10 = sshll.u32 %s1098_s25, 7 }
  0x8f   : > { %s720_s2 = sshll.u32 %s1247_s1, 3  ;;  %s296_s29 = scalar_lea.vmem [#allocation10], %s1262_s26  ;;  %750 = vmatpush3.bf16.msra.mxu1 %v508_v25 }
  0x90   : > { %s306_s28 = scalar_lea.vmem %s1321_s0, %s720_s2  ;;  %s580_s12 = sshll.u32 %s296_s29, 4  ;;  %s581_s12 = int_to_ptr.vmem [resolvable:$true] %s580_s12 }
  0x91   : > { %v312_v1 = vld [vmem:[%s306_s28] sm:$0xff]  ;;  %s1278_s13 = scalar_lea.hbm %s1326_s5, %s730_s10  ;;  %s563_s16 = scalar_lea.sflag [#allocation4], %s294_s20 }
  0x92   : > { %740 = vmatpush3.xpose.msk.msra.mxu0 %vm313_vm1, %v312_v1  ;;  %s957_s17 = scalar_lea.vmem %s581_s12, 128  ;;  %p1347_p3 = scmp.ne.s32.totalorder %s1333_s7, 0 }
  0x93   : > { %744 = vmatprep.subr.mxu0 %v1039_v0  ;;  %p958_p2 = scmp.ne.s32.totalorder %s581_s12, %s957_s17  ;;  %s1041_s18 = smov [#allocation10]  }
  0x94   : > { %s961_s19 = sshll.u32 %s1041_s18, 4  ;;  %s962_s19 = int_to_ptr.vmem [resolvable:$false] %s961_s19 }
  0x95   : > { %742 = vmatmul.mubr.msk.f32.vlgmr.msra.gmra.mrb[0].mxu0 %vm313_vm1, %v312_v1  ;;  %p959_p4 = pnand %p958_p2, %p1347_p3  ;;  %s963_s9 = scalar_lea.vmem %s962_s19, 256 }
  0x96   : > { %745 = vmatpush3.msra.mxu0 %v312_v1  ;;  %746 = vmatprep.mubr.msk.f32.mxu0 %vm1040_vm0, %v1039_v0  ;;  %p964_p8 = scmp.lt.s32.totalorder %s581_s12, %s962_s19  ;;  %p965_p11 = scmp.lt.s32.totalorder %s963_s9, %s957_s17 }
  0x97   : > { %p960_p7 = pneg %p959_p4 }
  0x98   : > { %p966_p13 = por %p965_p11, %p964_p8 }
  0x9a   : > { %p967_p1 = pnand %p966_p13, %p960_p7 }
 0x168   : > { %v383_v2 = vpop.f32.mrb[0].mxu0 }
 0x169   : > { %v387_v3 = vmul.f32 0.25, %v383_v2  ;;  %v743_v4 = vpop.f32.mrb[1].mxu0 }
 0x16b   : > { %v389_v5 = vsel %vm388_vm2, %v387_v3, -inf }
 0x16c   : > { %390 = vmax.xlane.f32.xlu0 %v389_v5 }
 0x1f9   : > { %v391_v6 = vpop.xlane.xlu0 %390 }
 0x1fa   : > { %v392_v7 = vsub.f32 %v387_v3, %v391_v6 }
 0x1fc   : > { %v393_v8 = vmul.f32 1.442695, %v392_v7 }
 0x1fe   : > { %839 = vpow2.f32 %v393_v8 }
 0x208   : > { %v840_v9 = vpop.eup %839 }
 0x209   : > { %v395_v10 = vsel %vm388_vm2, %v840_v9, 0.0 }
 0x20a   : > { %396 = vadd.xlane.f32.xlu0 %v395_v10 }
 0x297   : > { %v397_v11 = vpop.xlane.xlu0 %396 }
 0x298   : > { %841 = vrcp.f32 %v397_v11 }
 0x2a2   : > { %v842_v12 = vpop.eup %841 }
 0x2a3   : > { %v399_v13 = vmul.f32 %v842_v12, %v840_v9 }
 0x2a5   : > { %747 = vmatmul.mubr.msk.f32.vlgmr.msra.gmra.mrb[2].mxu0 %vm388_vm2, %v399_v13  ;;  %400 = vst.msk [vmem:[%s296_s29] sm:$0xff] %vm388_vm2, %v399_v13 }
 0x378   : > { %v470_v14 = vpop.f32.mrb[2].mxu0 }
 0x379   : > { %v474_v15 = vadd.f32 %v470_v14, %v312_v1  ;;  %v748_v16 = vpop.f32.mrb[3].mxu0 }
 0x37b   : > { %v475_v17 = vsel %vm313_vm1, %v474_v15, 0.0 }
 0x37c   : > { %476 = vadd.xlane.f32.xlu1 %v475_v17 }
 0x409   : > { %v477_v18 = vpop.xlane.xlu1 %476 }
 0x40a   : > { %v479_v19 = vmul.f32 0.0625, %v477_v18 }
 0x40c   : > { %v480_v20 = vsub.f32 %v474_v15, %v479_v19 }
 0x40e   : > { %v481_v21 = vmul.f32 %v480_v20, %v480_v20 }
 0x410   : > { %v482_v22 = vsel %vm313_vm1, %v481_v21, 0.0 }
 0x411   : > { %483 = vadd.xlane.f32.xlu1 %v482_v22 }
 0x49e   : > { %v484_v26 = vpop.xlane.xlu1 %483 }
 0x49f   : > { %v485_v27 = vmul.f32 0.0625, %v484_v26 }
 0x4a1   : > { %v486_v28 = vadd.f32 1e-05, %v485_v27 }
 0x4a3   : > { %843 = vrsqrt.f32 %v486_v28 }
 0x4ad   : > { %v844_v29 = vpop.eup %843 }
 0x4ae   : > { %v488_v31 = vmul.f32 %v844_v29, %v480_v20 }
 0x4b0   : > { %v496_v33 = vmul.f32 %v725_v30, %v488_v31 }
 0x4b2   : > { %v504_v34 = vadd.f32 %v726_v32, %v496_v33 }
 0x4b4   : > { %v507_v35 = vpack.c.bf16 %v504_v34, %v504_v34 }
 0x4b6   : > { %752 = vmatmul.mubr.msk.bf16.vlgmr.msra.gmra.mrb[0].mxu1 %vm313_vm1, %v507_v35 }
 0x4b7   : > { %970 = shalt.err (!%p967_p1)
}
 0x4b8   : > { %s971_s25 = scalar_lea.hbm %s1278_s13, 128  ;;  %s975_s20 = scalar_lea.hbm %s1326_s5, 256 }
 0x4b9   : > { %p972_p0 = scmp.ne.s32.totalorder %s1278_s13, %s971_s25  ;;  %p976_p9 = scmp.lt.u32.totalorder %s1278_s13, %s1326_s5 }
 0x4ba   : > { %p977_p12 = scmp.lt.u32.totalorder %s975_s20, %s971_s25  ;;  %p979_p2 = scmp.lt.u32.totalorder %s971_s25, %s1278_s13 }
 0x4bb   : > { %p973_p6 = pnand %p972_p0, %p1347_p3 }
 0x4bc   : > { %p978_p10 = por %p977_p12, %p976_p9 }
 0x4bd   : > { %p974_p5 = pneg %p973_p6 }
 0x4be   : > { %p980_p4 = por %p979_p2, %p978_p10 }
 0x4c0   : > { %p981_p7 = pnand %p980_p4, %p974_p5 }
 0x4c2   : > { %984 = shalt.err (!%p981_p7)
}
 0x4c3   : > { %771 = dma.vmem_to_hbm [thread:$0]  (%p1347_p3), %s581_s12, 128, %s1278_s13, %s563_s16   ;;  %v727_v36 = vld [vmem:[#allocation8] ss:$0 sm:$0xff]  ;;  %vm560_vm3 = vcmask 261120  }
 0x4c4   : > { %s310_s11 = scalar_lea.vmem %s1327_s6, %s720_s2 }
 0x589   : > { %v553_v37 = vpop.f32.mrb[0].mxu1 }
 0x58a   : > { %v554_v38 = vadd.f32 %v727_v36, %v553_v37  ;;  %v753_v39 = vpop.f32.mrb[1].mxu1 }
 0x58b   : > { %v556_v40 = vpop.f32.mrb[2].mxu1 }
 0x58c   : > { %v559_v41 = vmax.f32 %v554_v38, 0.0  ;;  %v754_v42 = vpop.f32.mrb[3].mxu1 }
 0x58e   : > { %561 = vst.msk [vmem:[%s310_s11] sm:$0xff] %vm560_vm3, %v559_v41 }
 0x58f PF: > { %p798_p8 = scmp.ge.s32.totalorder %s1031_s24, 2  ;;  %s595_s7 = sand.u32 1, %s1019_s21  }
 0x590   : > { %p1348_p3 = scmp.ne.s32.totalorder %s1334_s8, 0  ;;  %s596_s12 = scalar_lea.sflag [#allocation4], %s595_s7 }
 0x592   : > { %p787_p11 = pnand %p798_p8, %p1348_p3 }
 0x594   : > { %1014 = dma.done.wait (!%p787_p11), %s596_s12, 128  }
 0x595   : > { %1016 = vsyncadd (!%p787_p11), %s596_s12, 4294967168  ;;  %p20_p13 = scmp.ge.s32.totalorder %s1102_s27, 4   ;;  %s1349_s21 = smov %s1023_s22 }
 0x596   : > { %s1350_s22 = smov %s1027_s23  ;;  %s1351_s23 = smov %s1113_s30 }
 0x597   : > { %s1352_s24 = smov %s1102_s27  ;;  %22 = sbr.rel (!%p20_p13) target bundleno = 9 (0x9), region = 104 }
 0x59e   :  { %608 = vsyncpa [#allocation3], 1 }
 0x59f   :  { %610 = vsyncpa [#allocation3 + $0x1], 1 }
 0x5a0   :  { %611 = vsyncpa [#allocation6], 1 }
 0x5a1   :  { %612 = vsyncpa [#allocation9], 1 }
 0x5a2   :  { %613 = vsyncpa [#allocation4], 1 }
 0x5a3   :  { %615 = vsyncpa [#allocation4 + $0x1], 1 }

// kernel: encoder_layer_forward.5
= control target key start
LH: loop header
LB: loop body
LE: loop exit
PB: predicated region body
PF: predicated region fallthrough
CT: control target
= control target key end

     0   :  { %s2033_s0 = inlined_call_operand.vmem [shape: f32[2,8,32], index: 0, kind: input, shape index: {}]   ;;  %s2034_s1 = inlined_call_operand.vmem [shape: f32[2,8,32], index: 1, kind: input, shape index: {}]   ;;  %s2035_s2 = inlined_call_operand.vmem [shape: f32[32,32], index: 2, kind: input, shape index: {}]   ;;  %s2036_s3 = inlined_call_operand.vmem [shape: f32[32,32], index: 3, kind: input, shape index: {}]   ;;  %s2037_s4 = inlined_call_operand.vmem [shape: f32[128,16], index: 4, kind: input, shape index: {}]   ;;  %s2038_s5 = inlined_call_operand.vmem [shape: f32[1,16], index: 5, kind: input, shape index: {}]   ;;  %s2039_s6 = inlined_call_operand.vmem [shape: f32[128,16], index: 6, kind: input, shape index: {}]   ;;  %s2040_s7 = inlined_call_operand.vmem [shape: f32[1,16], index: 7, kind: input, shape index: {}]   ;;  %s2041_s8 = inlined_call_operand.vmem [shape: f32[32,16], index: 8, kind: input, shape index: {}]   ;;  %s2042_s9 = inlined_call_operand.vmem [shape: f32[1,16], index: 9, kind: input, shape index: {}]   ;;  %s2043_s10 = inlined_call_operand.vmem [shape: f32[1,16], index: 10, kind: input, shape index: {}]   ;;  %s2044_s11 = inlined_call_operand.vmem [shape: f32[1,16], index: 11, kind: input, shape index: {}]   ;;  %s2045_s12 = inlined_call_operand.hbm [shape: f32[2,8,16], index: 12, kind: output, shape index: {}]  }
   0x1   :  { %2046 = sst [smem:[#allocation5_spill]] %s2033_s0 }
   0x2   :  { %2047 = sst [smem:[#allocation6_spill]] %s2034_s1 }
   0x3   :  { %2048 = sst [smem:[#allocation7_spill]] %s2035_s2 }
   0x4   :  { %17 = vsyncpa [#allocation3], 0 }
   0x5   :  { %19 = vsyncpa [#allocation3 + $0x1], 0  ;;  %s1674_s21 = smov 0   ;;  %s1676_s22 = smov 0  }
   0x6   :  { %s1678_s23 = smov 0   ;;  %s1680_s24 = smov 0  }
   0x7 LB: > { %s1695_s25 = sadd.s32 4294967295, %s1604_s24   ;;  %s1296_s26 = sadd.s32 4294967294, %s1604_s24   ;;  %s1604_s24 = sphi %s1680_s24, %s2057_s24   ;;  %s1600_s23 = sphi %s1678_s23, %s2056_s23   ;;  %s1596_s22 = sphi %s1676_s22, %s2055_s22   ;;  %s1592_s21 = sphi %s1674_s21, %s2054_s21  }
   0x8   : > { %s1699_s27 = sadd.s32 1, %s1604_s24   ;;  %s294_s28 = sadd.s32 1, %s1600_s23 }
   0x9   : > { %s291_s29 = ssub.s32 %s1604_s24, %s1699_s27  ;;  %p304_p0 = scmp.ne.s32.totalorder %s1600_s23, %s1596_s22 }
   0xa   : > { %p292_p1 = scmp.eq.s32.totalorder %s291_s29, 0  ;;  %p305_p2 = scmp.eq.s32.totalorder %s1695_s25, 1 }
   0xb   : > { %p310_p3 = scmp.ne.s32.totalorder %s1596_s22, %s1592_s21  ;;  %p311_p4 = scmp.eq.s32.totalorder %s1296_s26, 1 }
   0xc   : > { %s1710_s30 = scalar_select %p292_p1, %s1600_s23, %s294_s28  }
   0xd   : > { %p1712_p5 = por %p305_p2, %p304_p0  ;;  %p1716_p6 = por %p311_p4, %p310_p3 }
   0xe   : > { %p1299_p7 = scmp.ge.s32.totalorder %s1604_s24, 1  ;;  %p373_p8 = scmp.lt.s32.totalorder %s1604_s24, 3 }
  0x10   : > { %p374_p9 = pnand %p1299_p7, %p373_p8 }
  0x11   : > { %s2051_s2 = sld [smem:[#allocation7_spill]] (!%p374_p9)  ;;  %p418_p10 = scmp.lt.s32.totalorder (!%p374_p9), %s1695_s25, 1  ;;  %v1606_v3 = vmov (!%p374_p9), 0.0   ;;  %vm1607_vm0 = vmmov (!%p374_p9), 0   ;;  %v489_v6 = vld [vmem:[%s2037_s4 + $0x20] sm:$0xff] (!%p374_p9)  ;;  %v490_v7 = vld [vmem:[%s2037_s4 + $0x28] sm:$0xff] (!%p374_p9) }
  0x12   : > { %377 = sbr.rel (%p374_p9) target bundleno = 1480 (0x5c8), region = 68  ;;  %1373 = vmatprep.subr.bf16.mxu0 (!%p374_p9), %v1606_v3  ;;  %1377 = vmatprep.mubr.msk.bf16.mxu0 (!%p374_p9), %vm1607_vm0, %v1606_v3  ;;  %v494_v8 = vpack.c.bf16 (!%p374_p9), %v490_v7, %v489_v6  ;;  %s2052_s0 = sld [smem:[#allocation5_spill]] (!%p374_p9)  ;;  %vm443_vm1 = vcmask (!%p374_p9), 261120   ;;  %v433_v14 = vld [vmem:[%s2037_s4] sm:$0xff] (!%p374_p9)  ;;  %v434_v15 = vld [vmem:[%s2037_s4 + $0x8] sm:$0xff] (!%p374_p9)  ;;  %v491_v17 = vld [vmem:[%s2037_s4 + $0x30] sm:$0xff] (!%p374_p9) }
  0x13   : > { %1381 = vmatprep.subr.bf16.mxu1 (!%p374_p9), %v1606_v3  ;;  %1385 = vmatprep.mubr.msk.bf16.mxu1 (!%p374_p9), %vm1607_vm0, %v1606_v3  ;;  %s2053_s1 = sld [smem:[#allocation6_spill]] (!%p374_p9)  ;;  %v438_v16 = vpack.c.bf16 (!%p374_p9), %v434_v15, %v433_v14  ;;  %v492_v18 = vld [vmem:[%s2037_s4 + $0x38] sm:$0xff] (!%p374_p9)  ;;  %v435_v19 = vld [vmem:[%s2037_s4 + $0x10] sm:$0xff] (!%p374_p9)  ;;  %v621_v35 = vld [vmem:[%s2037_s4 + $0x40] sm:$0xff] (!%p374_p9)  ;;  %vm1178_vm2 = vcmask (!%p374_p9), 130048   ;;  %s1325_s15 = sshll.u32 (!%p374_p9), %s1695_s25, 7 }
  0x14   : > { %1382 = vmatpush3.bf16.msra.mxu1 (!%p374_p9), %v494_v8  ;;  %v495_v20 = vpack.c.bf16 (!%p374_p9), %v492_v18, %v491_v17  ;;  %v436_v21 = vld [vmem:[%s2037_s4 + $0x18] sm:$0xff] (!%p374_p9)  ;;  %v622_v36 = vld [vmem:[%s2037_s4 + $0x48] sm:$0xff] (!%p374_p9)  ;;  %v623_v38 = vld [vmem:[%s2037_s4 + $0x50] sm:$0xff] (!%p374_p9) }
  0x15   : > { %1383 = vmatprep.subr.bf16.mxu1 (!%p374_p9), %v1606_v3  ;;  %v439_v22 = vpack.c.bf16 (!%p374_p9), %v436_v21, %v435_v19  ;;  %v626_v37 = vpack.c.bf16 (!%p374_p9), %v622_v36, %v621_v35  ;;  %v624_v39 = vld [vmem:[%s2037_s4 + $0x58] sm:$0xff] (!%p374_p9)  ;;  %v773_v49 = vld [vmem:[%s2036_s3] sm:$0xff] (!%p374_p9)  ;;  %v774_v50 = vld [vmem:[%s2036_s3 + $0x8] sm:$0xff] (!%p374_p9) }
  0x16   : > { %v627_v40 = vpack.c.bf16 (!%p374_p9), %v624_v39, %v623_v38  ;;  %v714_v52 = vld [vmem:[%s2037_s4 + $0x60] sm:$0xff] (!%p374_p9)  ;;  %v715_v53 = vld [vmem:[%s2037_s4 + $0x68] sm:$0xff] (!%p374_p9)  ;;  %v1830_v56 = vpack.c.bf16 (!%p374_p9), %v774_v50, %v773_v49  ;;  %v775_v58 = vld [vmem:[%s2036_s3 + $0x10] sm:$0xff] (!%p374_p9) }
  0x17   : > { %v429_v0 = vld [vmem:[%s2051_s2] sm:$0xff] (!%p374_p9)  ;;  %v430_v1 = vld [vmem:[%s2051_s2 + $0x8] sm:$0xff] (!%p374_p9)  ;;  %v431_v2 = vld [vmem:[%s2051_s2 + $0x10] sm:$0xff] (!%p374_p9)  ;;  %v719_v60 = vpack.c.bf16 (!%p374_p9), %v715_v53, %v714_v52 }
  0x18   : > { %v441_v4 = vpack.c.bf16 (!%p374_p9), %v430_v1, %v429_v0  ;;  %v432_v5 = vld [vmem:[%s2051_s2 + $0x18] sm:$0xff] (!%p374_p9)  ;;  %1384 = vmatpush3.bf16.msra.mxu1 (!%p374_p9), %v495_v20  ;;  %v716_v62 = vld [vmem:[%s2037_s4 + $0x70] sm:$0xff] (!%p374_p9)  ;;  %v777_v1 = vld [vmem:[%s2039_s6] sm:$0xff] (!%p374_p9)  ;;  %s1990_s2 = scalar_lea.hbm (!%p374_p9), %s2045_s12, %s1325_s15 }
  0x19   : > { %s419_s18 = scalar_select %p418_p10, %s1695_s25, 1  ;;  %v442_v9 = vpack.c.bf16 %v432_v5, %v431_v2  ;;  %1397 = vmatprep.subr.bf16.mxu1 %v1606_v3  ;;  %v776_v59 = vld [vmem:[%s2036_s3 + $0x18] sm:$0xff]  ;;  %v778_v2 = vld [vmem:[%s2039_s6 + $0x8] sm:$0xff]  ;;  %v779_v5 = vld [vmem:[%s2039_s6 + $0x10] sm:$0xff] }
  0x1a   : > { %1374 = vmatpush3.bf16.msra.mxu0 %v441_v4  ;;  %v1841_v61 = vpack.c.bf16 %v776_v59, %v775_v58  ;;  %v717_v63 = vld [vmem:[%s2037_s4 + $0x78] sm:$0xff]  ;;  %v828_v17 = vld [vmem:[%s2039_s6 + $0x28] sm:$0xff]  ;;  %v959_v39 = vld [vmem:[%s2039_s6 + $0x40] sm:$0xff]  ;;  %s1608_s25 = smov [#allocation2]  }
  0x1b   : > { %1375 = vmatprep.subr.bf16.mxu0 %v1606_v3  ;;  %s1301_s19 = sshll.u32 %s419_s18, 3  ;;  %v720_v0 = vpack.c.bf16 %v717_v63, %v716_v62  ;;  %v780_v6 = vld [vmem:[%s2039_s6 + $0x18] sm:$0xff]  ;;  %v1122_v62 = vld [vmem:[%s2041_s8 + $0x8] sm:$0xff] }
  0x1c   : > { %s421_s28 = scalar_lea.vmem %s2052_s0, %s1301_s19  ;;  %s425_s16 = scalar_lea.vmem %s2053_s1, %s1301_s19  ;;  %v782_v7 = vpack.c.bf16 %v780_v6, %v779_v5  ;;  %v1123_v6 = vld [vmem:[%s2041_s8 + $0x10] sm:$0xff] }
  0x1d   : > { %v427_v10 = vld [vmem:[%s425_s16] sm:$0xff]  ;;  %s415_s0 = sand.u32 1, %s1596_s22  }
  0x1e   : > { %v428_v11 = vld [vmem:[%s421_s28] sm:$0xff]  ;;  %1376 = vmatpush3.bf16.msra.mxu0 %v442_v9  ;;  %v1756_v12 = vpack.c.bf16 %v427_v10, %v427_v10  ;;  %v1790_v23 = vmul.f32 0.3, %v427_v10  ;;  %s1300_s19 = sshll.u32 %s415_s0, 3  ;;  %s1212_s20 = scalar_lea.sflag [#allocation3], %s415_s0 }
  0x1f   : > { %v1758_v13 = vadd.f32 %v428_v11, %v427_v10  ;;  %1389 = vmatprep.subr.bf16.mxu0 %v1606_v3  ;;  %s417_s16 = scalar_lea.vmem [#allocation2], %s1300_s19  ;;  %s1546_s19 = sshll.u32 %s1608_s25, 4  ;;  %s1547_s19 = int_to_ptr.vmem [resolvable:$false] %s1546_s19 }
  0x20   : > { %s1225_s17 = sshll.u32 %s417_s16, 4  ;;  %s1548_s28 = scalar_lea.vmem %s1547_s19, 256  ;;  %s1992_s17 = int_to_ptr.vmem [resolvable:$true] %s1225_s17 }
  0x21   : > { %1378 = vmatmul.mubr.msk.bf16.vlgmr.msra.gmra.mrb[0].mxu0 %vm443_vm1, %v1756_v12  ;;  %s1542_s26 = scalar_lea.vmem %s1992_s17, 128  ;;  %p1549_p0 = scmp.lt.s32.totalorder %s1992_s17, %s1547_s19 }
  0x22   : > { %1393 = vmatprep.mubr.msk.bf16.mxu0 %vm1607_vm0, %v1606_v3  ;;  %1390 = vmatpush3.bf16.msra.mxu0 %v438_v16  ;;  %v827_v16 = vld [vmem:[%s2039_s6 + $0x20] sm:$0xff]  ;;  %p1543_p11 = scmp.ne.s32.totalorder %s1992_s17, %s1542_s26  ;;  %p1550_p1 = scmp.lt.s32.totalorder %s1548_s28, %s1542_s26 }
  0x23   : > { %1391 = vmatprep.subr.bf16.mxu0 %v1606_v3 }
  0x24   : > { %p1544_p12 = pnand %p1543_p11, %p1712_p5  ;;  %p1551_p2 = por %p1550_p1, %p1549_p0 }
  0x26   : > { %1392 = vmatpush3.bf16.msra.mxu0 %v439_v22  ;;  %v832_v22 = vpack.c.bf16 %v828_v17, %v827_v16  ;;  %v1054_v16 = vld [vmem:[%s2039_s6 + $0x70] sm:$0xff]  ;;  %v1055_v17 = vld [vmem:[%s2039_s6 + $0x78] sm:$0xff]  ;;  %p1545_p13 = pneg %p1544_p12 }
  0x27   : > { %1405 = vmatprep.subr.bf16.mxu0 %v1606_v3 }
  0x28   : > { %p1552_p3 = pnand %p1551_p2, %p1545_p13 }
  0x29   : > { %1394 = vmatmul.mubr.msk.bf16.vlgmr.msra.gmra.mrb[4].mxu0 %vm443_vm1, %v1756_v12 }
  0x2a   : > { %1409 = vmatprep.mubr.msk.bf16.mxu0 %vm1607_vm0, %v1606_v3  ;;  %1406 = vmatpush3.bf16.msra.mxu0 %v626_v37 }
  0x2b   : > { %1407 = vmatprep.subr.bf16.mxu0 %v1606_v3 }
  0x2e   : > { %1408 = vmatpush3.bf16.msra.mxu0 %v627_v40  ;;  %v960_v40 = vld [vmem:[%s2039_s6 + $0x48] sm:$0xff] }
  0x2f   : > { %1421 = vmatprep.subr.bf16.mxu0 %v1606_v3 }
  0xf4   : > { %v481_v24 = vpop.f32.mrb[0].mxu0 }
  0xf5   : > { %v487_v25 = vmul.f32 0.7, %v481_v24  ;;  %v1379_v26 = vpop.f32.mrb[1].mxu0 }
  0xf6   : > { %v484_v27 = vpop.f32.mrb[2].mxu0  ;;  %v830_v26 = vld [vmem:[%s2039_s6 + $0x38] sm:$0xff] }
  0xf7   : > { %v488_v28 = vadd.f32 %v487_v25, %v1790_v23  ;;  %v1380_v29 = vpop.f32.mrb[3].mxu0  ;;  %v829_v25 = vld [vmem:[%s2039_s6 + $0x30] sm:$0xff] }
  0xf9   : > { %v493_v30 = vpack.c.bf16 %v488_v28, %v488_v28  ;;  %v833_v28 = vpack.c.bf16 %v830_v26, %v829_v25 }
  0xfb   : > { %1386 = vmatmul.mubr.msk.bf16.vlgmr.msra.gmra.mrb[0].mxu1 %vm443_vm1, %v493_v30 }
  0xfc   : > { %1398 = vmatpush3.bf16.msra.mxu1 %v441_v4  ;;  %1401 = vmatprep.mubr.msk.bf16.mxu1 %vm1607_vm0, %v1606_v3  ;;  %v573_v31 = vpop.f32.mrb[4].mxu0 }
  0xfd   : > { %1399 = vmatprep.subr.bf16.mxu1 %v1606_v3  ;;  %v1395_v32 = vpop.f32.mrb[5].mxu0 }
  0xfe   : > { %v576_v33 = vpop.f32.mrb[6].mxu0 }
  0xff   : > { %v1396_v34 = vpop.f32.mrb[7].mxu0 }
 0x100   : > { %1400 = vmatpush3.bf16.msra.mxu1 %v442_v9 }
 0x101   : > { %1413 = vmatprep.subr.bf16.mxu1 %v1606_v3 }
 0x103   : > { %1402 = vmatmul.mubr.msk.bf16.vlgmr.msra.gmra.mrb[4].mxu1 %vm443_vm1, %v493_v30 }
 0x104   : > { %1414 = vmatpush3.bf16.msra.mxu1 %v441_v4  ;;  %1417 = vmatprep.mubr.msk.bf16.mxu1 %vm1607_vm0, %v1606_v3  ;;  %v781_v4 = vpack.c.bf16 %v778_v2, %v777_v1 }
 0x105   : > { %1415 = vmatprep.subr.bf16.mxu1 %v1606_v3 }
 0x108   : > { %1416 = vmatpush3.bf16.msra.mxu1 %v442_v9 }
 0x109   : > { %1429 = vmatprep.subr.bf16.mxu1 %v1606_v3 }
 0x1ce   : > { %v533_v41 = vpop.f32.mrb[0].mxu1 }
 0x1cf   : > { %v574_v42 = vadd.f32 %v573_v31, %v533_v41  ;;  %v1387_v43 = vpop.f32.mrb[1].mxu1  ;;  %v964_v41 = vpack.c.bf16 %v960_v40, %v959_v39 }
 0x1d0   : > { %v536_v44 = vpop.f32.mrb[2].mxu1  ;;  %v962_v43 = vld [vmem:[%s2039_s6 + $0x58] sm:$0xff] }
 0x1d1   : > { %v1388_v45 = vpop.f32.mrb[3].mxu1 }
 0x1d2   : > { %v1319_v45 = vmul.f32 -1.442695, %v1758_v13 }
 0x1d4   : > { %1534 = vpow2.f32 %v1319_v45 }
 0x1d5   : > { %1536 = vtanh.f32 %v1758_v13 }
 0x1d6   : > { %v613_v46 = vpop.f32.mrb[4].mxu1 }
 0x1d7   : > { %v619_v47 = vmul.f32 0.7, %v613_v46  ;;  %v1403_v48 = vpop.f32.mrb[5].mxu1 }
 0x1d8   : > { %v616_v51 = vpop.f32.mrb[6].mxu1 }
 0x1d9   : > { %v620_v54 = vadd.f32 %v619_v47, %v1790_v23  ;;  %v1404_v55 = vpop.f32.mrb[7].mxu1 }
 0x1db   : > { %v625_v57 = vpack.c.bf16 %v620_v54, %v620_v54 }
 0x1dd   : > { %1410 = vmatmul.mubr.msk.bf16.vlgmr.msra.gmra.mrb[8].mxu0 %vm443_vm1, %v625_v57  ;;  %1418 = vmatmul.mubr.msk.bf16.vlgmr.msra.gmra.mrb[8].mxu1 %vm443_vm1, %v625_v57 }
 0x1de   : > { %1430 = vmatpush3.bf16.msra.mxu1 %v1830_v56  ;;  %1433 = vmatprep.mubr.msk.bf16.mxu1 %vm1607_vm0, %v1606_v3  ;;  %v1535_v50 = vpop.eup %1534 }
 0x1df   : > { %1431 = vmatprep.subr.bf16.mxu1 %v1606_v3  ;;  %1422 = vmatpush3.bf16.msra.mxu0 %v719_v60  ;;  %v1117_v52 = vadd.f32 1.0, %v1535_v50 }
 0x1e0   : > { %1423 = vmatprep.subr.bf16.mxu0 %v1606_v3  ;;  %1425 = vmatprep.mubr.msk.bf16.mxu0 %vm1607_vm0, %v1606_v3 }
 0x1e1   : > { %1538 = vrcp.f32 %v1117_v52 }
 0x1e2   : > { %1432 = vmatpush3.bf16.msra.mxu1 %v1841_v61 }
 0x1e3   : > { %1445 = vmatprep.subr.bf16.mxu1 %v1606_v3  ;;  %1424 = vmatpush3.bf16.msra.mxu0 %v720_v0  ;;  %v1537_v0 = vpop.eup %1536 }
 0x1e4   : > { %1437 = vmatprep.subr.bf16.mxu0 %v1606_v3 }
 0x1e5   : > { %1434 = vmatmul.mubr.msk.bf16.vlgmr.msra.gmra.mrb[12].mxu1 %vm443_vm1, %v1756_v12 }
 0x1e6   : > { %1449 = vmatprep.mubr.msk.bf16.mxu1 %vm1607_vm0, %v1606_v3  ;;  %1446 = vmatpush3.bf16.msra.mxu1 %v781_v4 }
 0x1e7   : > { %1447 = vmatprep.subr.bf16.mxu1 %v1606_v3 }
 0x1ea   : > { %1448 = vmatpush3.bf16.msra.mxu1 %v782_v7  ;;  %v1124_v7 = vld [vmem:[%s2041_s8 + $0x18] sm:$0xff] }
 0x1eb   : > { %1461 = vmatprep.subr.bf16.mxu1 %v1606_v3  ;;  %v1539_v2 = vpop.eup %1538 }
 0x1ed   : > { %1450 = vmatmul.mubr.msk.bf16.vlgmr.msra.gmra.mrb[16].mxu1 %vm443_vm1, %v1756_v12 }
 0x1ee   : > { %1465 = vmatprep.mubr.msk.bf16.mxu1 %vm1607_vm0, %v1606_v3  ;;  %1462 = vmatpush3.bf16.msra.mxu1 %v964_v41  ;;  %v1310_v41 = vld [vmem:[%s2038_s5] ss:$0 sm:$0xff] }
 0x1ef   : > { %1463 = vmatprep.subr.bf16.mxu1 %v1606_v3 }
 0x2b0   : > { %v665_v8 = vpop.f32.mrb[8].mxu0  ;;  %v706_v9 = vpop.f32.mrb[8].mxu1 }
 0x2b1   : > { %v671_v10 = vadd.f32 %v665_v8, %v574_v42  ;;  %v712_v11 = vmul.f32 0.7, %v706_v9  ;;  %v1411_v14 = vpop.f32.mrb[9].mxu0  ;;  %v1419_v15 = vpop.f32.mrb[9].mxu1  ;;  %v961_v42 = vld [vmem:[%s2039_s6 + $0x50] sm:$0xff]  ;;  %v1120_v8 = vmul.f32 %v1539_v2, %v1537_v0  ;;  %v1127_v9 = vpack.c.bf16 %v1124_v7, %v1123_v6 }
 0x2b2   : > { %v668_v18 = vpop.f32.mrb[10].mxu0  ;;  %v709_v19 = vpop.f32.mrb[10].mxu1  ;;  %v965_v44 = vpack.c.bf16 %v962_v43, %v961_v42  ;;  %v1053_v14 = vld [vmem:[%s2039_s6 + $0x68] sm:$0xff]  ;;  %v1318_v43 = vld [vmem:[%s2040_s7] ss:$0 sm:$0xff] }
 0x2b3   : > { %v713_v12 = vadd.f32 %v712_v11, %v1790_v23  ;;  %v1412_v20 = vpop.f32.mrb[11].mxu0  ;;  %v1420_v21 = vpop.f32.mrb[11].mxu1  ;;  %v1052_v11 = vld [vmem:[%s2039_s6 + $0x60] sm:$0xff]  ;;  %v1058_v18 = vpack.c.bf16 %v1055_v17, %v1054_v16 }
 0x2b4   : > { %1464 = vmatpush3.bf16.msra.mxu1 %v965_v44  ;;  %v1057_v15 = vpack.c.bf16 %v1053_v14, %v1052_v11 }
 0x2b5   : > { %v718_v24 = vpack.c.bf16 %v713_v12, %v713_v12  ;;  %1477 = vmatprep.subr.bf16.mxu1 %v1606_v3 }
 0x2b7   : > { %1426 = vmatmul.mubr.msk.bf16.vlgmr.msra.gmra.mrb[12].mxu0 %vm443_vm1, %v718_v24 }
 0x2b8   : > { %1438 = vmatpush3.bf16.msra.mxu0 %v832_v22  ;;  %v819_v27 = vpop.f32.mrb[12].mxu1  ;;  %1441 = vmatprep.mubr.msk.bf16.mxu0 %vm1607_vm0, %v1606_v3 }
 0x2b9   : > { %v825_v29 = vmul.f32 0.7, %v819_v27  ;;  %v1435_v30 = vpop.f32.mrb[13].mxu1  ;;  %1439 = vmatprep.subr.bf16.mxu0 %v1606_v3 }
 0x2ba   : > { %v822_v31 = vpop.f32.mrb[14].mxu1  ;;  %v1320_v30 = vld [vmem:[%s2042_s9] ss:$0 sm:$0xff] }
 0x2bb   : > { %v826_v32 = vadd.f32 %v825_v29, %v1790_v23  ;;  %v1436_v33 = vpop.f32.mrb[15].mxu1 }
 0x2bc   : > { %1440 = vmatpush3.bf16.msra.mxu0 %v833_v28 }
 0x2bd   : > { %v831_v34 = vpack.c.bf16 %v826_v32, %v826_v32  ;;  %1453 = vmatprep.subr.bf16.mxu0 %v1606_v3 }
 0x2bf   : > { %1442 = vmatmul.mubr.msk.bf16.vlgmr.msra.gmra.mrb[16].mxu0 %vm443_vm1, %v831_v34 }
 0x2c0   : > { %1454 = vmatpush3.bf16.msra.mxu0 %v1830_v56  ;;  %1457 = vmatprep.mubr.msk.bf16.mxu0 %vm1607_vm0, %v1606_v3  ;;  %v911_v35 = vpop.f32.mrb[16].mxu1 }
 0x2c1   : > { %1455 = vmatprep.subr.bf16.mxu0 %v1606_v3  ;;  %v1451_v36 = vpop.f32.mrb[17].mxu1 }
 0x2c2   : > { %v914_v37 = vpop.f32.mrb[18].mxu1 }
 0x2c3   : > { %v1452_v38 = vpop.f32.mrb[19].mxu1 }
 0x2c4   : > { %1456 = vmatpush3.bf16.msra.mxu0 %v1841_v61 }
 0x2c5   : > { %1469 = vmatprep.subr.bf16.mxu0 %v1606_v3 }
 0x2c7   : > { %1458 = vmatmul.mubr.msk.bf16.vlgmr.msra.gmra.mrb[20].mxu0 %vm443_vm1, %v831_v34 }
 0x2c8   : > { %1470 = vmatpush3.bf16.msra.mxu0 %v1830_v56  ;;  %1473 = vmatprep.mubr.msk.bf16.mxu0 %vm1607_vm0, %v1606_v3 }
 0x2c9   : > { %1471 = vmatprep.subr.bf16.mxu0 %v1606_v3 }
 0x2cc   : > { %1472 = vmatpush3.bf16.msra.mxu0 %v1841_v61  ;;  %v1121_v61 = vld [vmem:[%s2041_s8] sm:$0xff] }
 0x2cd   : > { %1485 = vmatprep.subr.bf16.mxu0 %v1606_v3  ;;  %v1126_v4 = vpack.c.bf16 %v1122_v62, %v1121_v61 }
 0x38a   : > { %v758_v46 = vpop.f32.mrb[12].mxu0 }
 0x38b   : > { %v1928_v47 = vadd.f32 %v758_v46, %v671_v10  ;;  %v1427_v48 = vpop.f32.mrb[13].mxu0  ;;  %v1125_v10 = vpack.c.bf16 %v1120_v8, %v1120_v8 }
 0x38c   : > { %v761_v49 = vpop.f32.mrb[14].mxu0 }
 0x38d   : > { %v1428_v51 = vpop.f32.mrb[15].mxu0  ;;  %v772_v48 = vadd.f32 %v1310_v41, %v1928_v47  ;;  %v1323_v47 = vld [vmem:[%s2044_s11] ss:$0 sm:$0xff] }
 0x392   : > { %v871_v53 = vpop.f32.mrb[16].mxu0 }
 0x393   : > { %v912_v54 = vadd.f32 %v911_v35, %v871_v53  ;;  %v1443_v55 = vpop.f32.mrb[17].mxu0 }
 0x394   : > { %v874_v56 = vpop.f32.mrb[18].mxu0 }
 0x395   : > { %v1444_v57 = vpop.f32.mrb[19].mxu0  ;;  %v1322_v56 = vld [vmem:[%s2043_s10] ss:$0 sm:$0xff] }
 0x39a   : > { %v951_v58 = vpop.f32.mrb[20].mxu0 }
 0x39b   : > { %v957_v59 = vmul.f32 0.7, %v951_v58  ;;  %v1459_v60 = vpop.f32.mrb[21].mxu0 }
 0x39c   : > { %v954_v63 = vpop.f32.mrb[22].mxu0 }
 0x39d   : > { %v958_v13 = vadd.f32 %v957_v59, %v1790_v23  ;;  %v1460_v1 = vpop.f32.mrb[23].mxu0 }
 0x39f   : > { %v963_v5 = vpack.c.bf16 %v958_v13, %v958_v13 }
 0x3a1   : > { %1466 = vmatmul.mubr.msk.bf16.vlgmr.msra.gmra.mrb[20].mxu1 %vm443_vm1, %v963_v5  ;;  %1474 = vmatmul.mubr.msk.bf16.vlgmr.msra.gmra.mrb[24].mxu0 %vm443_vm1, %v963_v5 }
 0x3a2   : > { %1486 = vmatpush3.bf16.msra.mxu0 %v1126_v4  ;;  %1489 = vmatprep.mubr.msk.bf16.mxu0 %vm1607_vm0, %v1606_v3 }
 0x3a3   : > { %1487 = vmatprep.subr.bf16.mxu0 %v1606_v3  ;;  %1481 = vmatprep.mubr.msk.bf16.mxu1 %vm1607_vm0, %v1606_v3 }
 0x3a4   : > { %1478 = vmatpush3.bf16.msra.mxu1 %v1057_v15 }
 0x3a5   : > { %1479 = vmatprep.subr.bf16.mxu1 %v1606_v3 }
 0x3a6   : > { %1488 = vmatpush3.bf16.msra.mxu0 %v1127_v9 }
 0x3a8   : > { %1480 = vmatpush3.bf16.msra.mxu1 %v1058_v18 }
 0x3a9   : > { %1490 = vmatmul.mubr.msk.bf16.vlgmr.msra.gmra.mrb[28].mxu0 %vm443_vm1, %v1125_v10 }
 0x474   : > { %v1003_v19 = vpop.f32.mrb[20].mxu1  ;;  %v1044_v12 = vpop.f32.mrb[24].mxu0 }
 0x475   : > { %v1009_v20 = vadd.f32 %v1003_v19, %v912_v54  ;;  %v1050_v21 = vmul.f32 0.7, %v1044_v12  ;;  %v1467_v22 = vpop.f32.mrb[21].mxu1  ;;  %v1475_v24 = vpop.f32.mrb[25].mxu0 }
 0x476   : > { %v1006_v25 = vpop.f32.mrb[22].mxu1  ;;  %v1047_v26 = vpop.f32.mrb[26].mxu0 }
 0x477   : > { %v1051_v3 = vadd.f32 %v1050_v21, %v1790_v23  ;;  %v1468_v27 = vpop.f32.mrb[23].mxu1  ;;  %v1476_v28 = vpop.f32.mrb[27].mxu0 }
 0x479   : > { %v1056_v29 = vpack.c.bf16 %v1051_v3, %v1051_v3 }
 0x47b   : > { %1482 = vmatmul.mubr.msk.bf16.vlgmr.msra.gmra.mrb[24].mxu1 %vm443_vm1, %v1056_v29 }
 0x47c   : > { %v1172_v31 = vpop.f32.mrb[28].mxu0 }
 0x47d   : > { %v1173_v32 = vadd.f32 %v1320_v30, %v1172_v31  ;;  %v1491_v33 = vpop.f32.mrb[29].mxu0 }
 0x47e   : > { %v1175_v34 = vpop.f32.mrb[30].mxu0 }
 0x47f   : > { %v1492_v35 = vpop.f32.mrb[31].mxu0  ;;  %v1179_v36 = vsel %vm1178_vm2, %v1173_v32, 0.0 }
 0x480   : > { %1180 = vadd.xlane.f32.xlu0 %v1179_v36 }
 0x50d   : > { %v1181_v37 = vpop.xlane.xlu0 %1180 }
 0x50e   : > { %v1183_v23 = vmul.f32 0.0625, %v1181_v37 }
 0x510   : > { %v1184_v38 = vsub.f32 %v1173_v32, %v1183_v23 }
 0x512   : > { %v1185_v39 = vmul.f32 %v1184_v38, %v1184_v38 }
 0x514   : > { %v1186_v40 = vsel %vm1178_vm2, %v1185_v39, 0.0 }
 0x515   : > { %1187 = vadd.xlane.f32.xlu0 %v1186_v40 }
 0x54e   : > { %v1096_v42 = vpop.f32.mrb[24].mxu1 }
 0x54f   : > { %v1102_v44 = vadd.f32 %v1096_v42, %v1009_v20  ;;  %v1483_v45 = vpop.f32.mrb[25].mxu1 }
 0x550   : > { %v1099_v46 = vpop.f32.mrb[26].mxu1 }
 0x551   : > { %v1110_v49 = vadd.f32 %v1318_v43, %v1102_v44  ;;  %v1484_v50 = vpop.f32.mrb[27].mxu1 }
 0x553   : > { %v1111_v51 = vadd.f32 %v1110_v49, %v772_v48 }
 0x5a2   : > { %v1188_v52 = vpop.xlane.xlu0 %1187 }
 0x5a3   : > { %v1189_v53 = vmul.f32 0.0625, %v1188_v52 }
 0x5a5   : > { %v1190_v54 = vadd.f32 1e-05, %v1189_v53 }
 0x5a7   : > { %1540 = vrsqrt.f32 %v1190_v54 }
 0x5b1   : > { %v1541_v55 = vpop.eup %1540 }
 0x5b2   : > { %v1192_v57 = vmul.f32 %v1541_v55, %v1184_v38 }
 0x5b4   : > { %v1200_v58 = vmul.f32 %v1322_v56, %v1192_v57 }
 0x5b6   : > { %v1208_v59 = vadd.f32 %v1323_v47, %v1200_v58 }
 0x5b8   : > { %v1209_v60 = vadd.f32 %v1208_v59, %v1111_v51 }
 0x5ba   : > { %1210 = vst.msk [vmem:[%s417_s16] sm:$0xff] %vm1178_vm2, %v1209_v60 }
 0x5bb   : > { %1555 = shalt.err (!%p1552_p3)
}
 0x5bc   : > { %s1556_s1 = scalar_lea.hbm %s1990_s2, 128  ;;  %s1560_s15 = scalar_lea.hbm %s2045_s12, 256 }
 0x5bd   : > { %p1557_p4 = scmp.ne.s32.totalorder %s1990_s2, %s1556_s1  ;;  %p1561_p9 = scmp.lt.u32.totalorder %s1990_s2, %s2045_s12 }
 0x5be   : > { %p1562_p10 = scmp.lt.u32.totalorder %s1560_s15, %s1556_s1  ;;  %p1564_p12 = scmp.lt.u32.totalorder %s1556_s1, %s1990_s2 }
 0x5bf   : > { %p1558_p7 = pnand %p1557_p4, %p1712_p5 }
 0x5c0   : > { %p1563_p11 = por %p1562_p10, %p1561_p9 }
 0x5c1   : > { %p1559_p8 = pneg %p1558_p7 }
 0x5c2   : > { %p1565_p13 = por %p1564_p12, %p1563_p11 }
 0x5c4   : > { %p1566_p0 = pnand %p1565_p13, %p1559_p8 }
 0x5c6   : > { %1569 = shalt.err (!%p1566_p0)
}
 0x5c7   : > { %1493 = dma.vmem_to_hbm [thread:$0]  (%p1712_p5), %s1992_s17, 128, %s1990_s2, %s1212_s20  }
 0x5c8 PF: > { %p1499_p1 = scmp.ge.s32.totalorder %s1604_s24, 2  ;;  %s1237_s26 = sand.u32 1, %s1592_s21  }
 0x5c9   : > { %s1238_s25 = scalar_lea.sflag [#allocation3], %s1237_s26 }
 0x5ca   : > { %p1496_p2 = pnand %p1499_p1, %p1716_p6 }
 0x5cc   : > { %1587 = dma.done.wait (!%p1496_p2), %s1238_s25, 128  }
 0x5cd   : > { %1589 = vsyncadd (!%p1496_p2), %s1238_s25, 4294967168  ;;  %p22_p3 = scmp.ge.s32.totalorder %s1699_s27, 4   ;;  %s2054_s21 = smov %s1596_s22 }
 0x5ce   : > { %s2055_s22 = smov %s1600_s23  ;;  %s2056_s23 = smov %s1710_s30 }
 0x5cf   : > { %s2057_s24 = smov %s1699_s27  ;;  %24 = sbr.rel (!%p22_p3) target bundleno = 7 (0x7), region = 106 }
 0x5d6   :  { %1243 = vsyncpa [#allocation3], 1 }
 0x5d7   :  { %1245 = vsyncpa [#allocation3 + $0x1], 1 }

// kernel: encoder_layer_forward.4
= control target key start
LH: loop header
LB: loop body
LE: loop exit
PB: predicated region body
PF: predicated region fallthrough
CT: control target
= control target key end

     0   :  { %s7437_s6 = smov 1   ;;  %s7438_s10 = smov 2   ;;  %s8831_s0 = inlined_call_operand.smem [shape: u32[32], index: -1, kind: input, shape index: {}] }
   0x1   :  { %s7495_s5 = sld [smem:[%s8831_s0]]   ;;  %s7439_s14 = smov 3  }
   0x2   :  { %s7500_s9 = sld [smem:[%s8831_s0 + %s7437_s6]]   ;;  %s7440_s18 = smov 4  }
   0x3   :  { %s7505_s13 = sld [smem:[%s8831_s0 + %s7438_s10]]   ;;  %s7441_s22 = smov 5  }
   0x4   :  { %s7510_s17 = sld [smem:[%s8831_s0 + %s7439_s14]]   ;;  %s7442_s26 = smov 6  }
   0x5   :  { %s7515_s21 = sld [smem:[%s8831_s0 + %s7440_s18]]   ;;  %s7443_s30 = smov 7  }
   0x6   :  { %s7520_s25 = sld [smem:[%s8831_s0 + %s7441_s22]]   ;;  %s7444_s4 = smov 8  }
   0x7   :  { %s7525_s29 = sld [smem:[%s8831_s0 + %s7442_s26]]   ;;  %s7445_s10 = smov 9  }
   0x8   :  { %8843 = sst [smem:[#allocation20_spill]] %s7500_s9  ;;  %s7446_s15 = smov 10  }
   0x9   :  { %s7530_s3 = sld [smem:[%s8831_s0 + %s7443_s30]]   ;;  %s7447_s20 = smov 11  }
   0xa   :  { %s7535_s8 = sld [smem:[%s8831_s0 + %s7444_s4]]   ;;  %s7448_s26 = smov 12  }
   0xb   :  { %s7540_s14 = sld [smem:[%s8831_s0 + %s7445_s10]]   ;;  %s7449_s1 = smov 13  }
   0xc   :  { %s7545_s19 = sld [smem:[%s8831_s0 + %s7446_s15]]   ;;  %s7450_s7 = smov 14  }
   0xd   :  { %s7550_s24 = sld [smem:[%s8831_s0 + %s7447_s20]]   ;;  %s7451_s15 = smov 15  }
   0xe   :  { %s7555_s30 = sld [smem:[%s8831_s0 + %s7448_s26]]   ;;  %s7452_s22 = smov 16  }
   0xf   :  { %s7560_s6 = sld [smem:[%s8831_s0 + %s7449_s1]]   ;;  %s7453_s28 = smov 17  }
  0x10   :  { %s7565_s12 = sld [smem:[%s8831_s0 + %s7450_s7]]   ;;  %s7454_s7 = smov 18  }
  0x11   :  { %s7570_s20 = sld [smem:[%s8831_s0 + %s7451_s15]]   ;;  %s7455_s15 = smov 19  }
  0x12   :  { %s7575_s27 = sld [smem:[%s8831_s0 + %s7452_s22]]   ;;  %s7456_s22 = smov 20  }
  0x13   :  { %s7580_s4 = sld [smem:[%s8831_s0 + %s7453_s28]]   ;;  %s7457_s28 = smov 21  }
  0x14   :  { %s7585_s9 = sld [smem:[%s8831_s0 + %s7454_s7]]   ;;  %s7458_s7 = smov 22  }
  0x15   :  { %8844 = sst [smem:[#allocation21_spill]] %s7560_s6 }
  0x16   :  { %s7600_s6 = sld [smem:[%s8831_s0 + %s7457_s28]]   ;;  %s7461_s28 = smov 25  }
  0x17   :  { %8845 = sst [smem:[#allocation22_spill]] %s7570_s20 }
  0x18   :  { %8846 = sst [smem:[#allocation23_spill]] %s7575_s27 }
  0x19   :  { %s7590_s20 = sld [smem:[%s8831_s0 + %s7455_s15]]   ;;  %s7459_s15 = smov 23  }
  0x1a   :  { %8847 = sst [smem:[#allocation24_spill]] %s7585_s9 }
  0x1b   :  { %s7595_s27 = sld [smem:[%s8831_s0 + %s7456_s22]]   ;;  %s7460_s22 = smov 24  }
  0x1c   :  { %8850 = sst [smem:[#allocation27_spill]] %s7600_s6 }
  0x1d   :  { %s7605_s9 = sld [smem:[%s8831_s0 + %s7458_s7]]   ;;  %s7462_s7 = smov 26  }
  0x1e   :  { %s7620_s6 = sld [smem:[%s8831_s0 + %s7461_s28]]   ;;  %s7465_s28 = smov 29  }
  0x1f   :  { %8848 = sst [smem:[#allocation25_spill]] %s7590_s20 }
  0x20   :  { %s7610_s20 = sld [smem:[%s8831_s0 + %s7459_s15]]   ;;  %s7463_s15 = smov 27  }
  0x21   :  { %8849 = sst [smem:[#allocation26_spill]] %s7595_s27 }
  0x22   :  { %s7615_s27 = sld [smem:[%s8831_s0 + %s7460_s22]]   ;;  %s7464_s22 = smov 28  }
  0x23   :  { %8851 = sst [smem:[#allocation28_spill]] %s7605_s9 }
  0x24   :  { %8854 = sst [smem:[#allocation31_spill]] %s7620_s6 }
  0x25   :  { %s7625_s9 = sld [smem:[%s8831_s0 + %s7462_s7]]   ;;  %s7466_s7 = smov 30  }
  0x26   :  { %8852 = sst [smem:[#allocation29_spill]] %s7610_s20 }
  0x27   :  { %s7630_s20 = sld [smem:[%s8831_s0 + %s7463_s15]]   ;;  %s7467_s15 = smov 31  }
  0x28   :  { %8853 = sst [smem:[#allocation30_spill]] %s7615_s27 }
  0x29   :  { %s7635_s27 = sld [smem:[%s8831_s0 + %s7464_s22]]  }
  0x2a   :  { %s7640_s6 = sld [smem:[%s8831_s0 + %s7465_s28]]  }
  0x2b   :  { %8855 = sst [smem:[#allocation32_spill]] %s7625_s9 }
  0x2c   :  { %s7645_s9 = sld [smem:[%s8831_s0 + %s7466_s7]]  }
  0x2d   :  { %8856 = sst [smem:[#allocation33_spill]] %s7630_s20 }
  0x2e   :  { %s7650_s20 = sld [smem:[%s8831_s0 + %s7467_s15]]  }
  0x2f   :  { %69 = vsyncpa [#allocation4], 0 }
  0x30   :  { %70 = vsyncpa [#allocation7], 0 }
  0x31   :  { %71 = vsyncpa [#allocation10], 0 }
  0x32   :  { %72 = vsyncpa [#allocation5], 0 }
  0x33   :  { %73 = vsyncpa [#allocation14], 0  ;;  %s7468_s22 = smov [#allocation6]   ;;  %s7469_s26 = smov [#allocation9]  }
  0x34   :  { %s100_s23 = sshll.u32 %s7468_s22, 4  ;;  %s132_s28 = sshll.u32 %s7469_s26, 4  ;;  %s101_s23 = int_to_ptr.vmem [resolvable:$true] %s100_s23  ;;  %s133_s28 = int_to_ptr.vmem [resolvable:$true] %s132_s28 }
  0x35   :  { %s7273_s1 = scalar_lea.hbm %s7525_s29, 16 }
  0x36   :  { %p7274_p0 = scmp.ne.s32.totalorder %s7525_s29, %s7273_s1  ;;  %p7277_p1 = scmp.lt.u32.totalorder %s7273_s1, %s7525_s29 }
  0x38   :  { %p7279_p2 = pnand %p7277_p1, %p7274_p0 }
  0x3a   :  { %7282 = shalt.err (!%p7279_p2)
}
  0x3b   :  { %s7283_s0 = scalar_lea.vmem %s101_s23, 16  ;;  %s7287_s2 = scalar_lea.vmem %s101_s23, 32 }
  0x3c   :  { %p7284_p3 = scmp.ne.s32.totalorder %s101_s23, %s7283_s0  ;;  %p7288_p4 = scmp.lt.s32.totalorder %s101_s23, %s101_s23 }
  0x3d   :  { %p7289_p5 = scmp.lt.s32.totalorder %s7287_s2, %s7283_s0 }
  0x3f   :  { %p7290_p6 = por %p7289_p5, %p7288_p4 }
  0x41   :  { %p7291_p7 = pnand %p7290_p6, %p7284_p3 }
  0x43   :  { %7294 = shalt.err (!%p7291_p7)
}
  0x44   :  { %103 = dma.hbm_to_vmem [thread:$0]  %s7525_s29, 16, %s101_s23, [#allocation7]  }
  0x45   :  { %s7295_s7 = scalar_lea.hbm %s7565_s12, 16 }
  0x46   :  { %p7296_p8 = scmp.ne.s32.totalorder %s7565_s12, %s7295_s7  ;;  %p7299_p9 = scmp.lt.u32.totalorder %s7295_s7, %s7565_s12 }
  0x48   :  { %p7301_p10 = pnand %p7299_p9, %p7296_p8 }
  0x4a   :  { %7304 = shalt.err (!%p7301_p10)
}
  0x4b   :  { %s7305_s10 = scalar_lea.vmem %s133_s28, 16  ;;  %s7309_s11 = scalar_lea.vmem %s133_s28, 32 }
  0x4c   :  { %p7306_p11 = scmp.ne.s32.totalorder %s133_s28, %s7305_s10  ;;  %p7310_p12 = scmp.lt.s32.totalorder %s133_s28, %s133_s28 }
  0x4d   :  { %p7311_p13 = scmp.lt.s32.totalorder %s7309_s11, %s7305_s10 }
  0x4f   :  { %p7312_p0 = por %p7311_p13, %p7310_p12 }
  0x51   :  { %p7313_p1 = pnand %p7312_p0, %p7306_p11 }
  0x53   :  { %7316 = shalt.err (!%p7313_p1)
}
  0x54   :  { %135 = dma.hbm_to_vmem [thread:$0]  %s7565_s12, 16, %s133_s28, [#allocation10]  }
  0x55   :  { %s7470_s15 = smov [#allocation3]   ;;  %s7471_s16 = smov [#allocation8]  }
  0x56   :  { %s84_s29 = sshll.u32 %s7470_s15, 4  ;;  %s112_s18 = sshll.u32 %s7471_s16, 4  ;;  %s85_s29 = int_to_ptr.vmem [resolvable:$true] %s84_s29  ;;  %s113_s18 = int_to_ptr.vmem [resolvable:$true] %s112_s18 }
  0x57   :  { %s7317_s22 = scalar_lea.hbm %s7505_s13, 16 }
  0x58   :  { %p7318_p2 = scmp.ne.s32.totalorder %s7505_s13, %s7317_s22  ;;  %p7321_p3 = scmp.lt.u32.totalorder %s7317_s22, %s7505_s13 }
  0x5a   :  { %p7323_p4 = pnand %p7321_p3, %p7318_p2 }
  0x5c   :  { %7326 = shalt.err (!%p7323_p4)
}
  0x5d   :  { %s7327_s23 = scalar_lea.vmem %s85_s29, 16  ;;  %s7331_s26 = scalar_lea.vmem %s85_s29, 32 }
  0x5e   :  { %p7328_p5 = scmp.ne.s32.totalorder %s85_s29, %s7327_s23  ;;  %p7332_p6 = scmp.lt.s32.totalorder %s85_s29, %s85_s29 }
  0x5f   :  { %p7333_p7 = scmp.lt.s32.totalorder %s7331_s26, %s7327_s23 }
  0x61   :  { %p7334_p8 = por %p7333_p7, %p7332_p6 }
  0x63   :  { %p7335_p9 = pnand %p7334_p8, %p7328_p5 }
  0x65   :  { %7338 = shalt.err (!%p7335_p9)
}
  0x66   :  { %87 = dma.hbm_to_vmem [thread:$0]  %s7505_s13, 16, %s85_s29, [#allocation4]  }
  0x67   :  { %s7339_s12 = scalar_lea.hbm %s7535_s8, 16 }
  0x68   :  { %p7340_p10 = scmp.ne.s32.totalorder %s7535_s8, %s7339_s12  ;;  %p7343_p11 = scmp.lt.u32.totalorder %s7339_s12, %s7535_s8 }
  0x6a   :  { %p7345_p12 = pnand %p7343_p11, %p7340_p10 }
  0x6c   :  { %7348 = shalt.err (!%p7345_p12)
}
  0x6d   :  { %s7349_s28 = scalar_lea.vmem %s113_s18, 16  ;;  %s7353_s1 = scalar_lea.vmem %s113_s18, 32 }
  0x6e   :  { %p7350_p13 = scmp.ne.s32.totalorder %s113_s18, %s7349_s28  ;;  %p7354_p0 = scmp.lt.s32.totalorder %s113_s18, %s113_s18 }
  0x6f   :  { %p7355_p1 = scmp.lt.s32.totalorder %s7353_s1, %s7349_s28 }
  0x71   :  { %p7356_p2 = por %p7355_p1, %p7354_p0 }
  0x73   :  { %p7357_p3 = pnand %p7356_p2, %p7350_p13 }
  0x75   :  { %7360 = shalt.err (!%p7357_p3)
}
  0x76   :  { %115 = dma.hbm_to_vmem [thread:$0]  %s7535_s8, 16, %s113_s18, [#allocation7]  }
  0x77   :  { %s7472_s0 = smov [#allocation11]   ;;  %s7361_s2 = scalar_lea.hbm %s7580_s4, 16 }
  0x78   :  { %s146_s13 = sshll.u32 %s7472_s0, 4  ;;  %p7362_p4 = scmp.ne.s32.totalorder %s7580_s4, %s7361_s2  ;;  %s147_s13 = int_to_ptr.vmem [resolvable:$true] %s146_s13 }
  0x79   :  { %p7365_p5 = scmp.lt.u32.totalorder %s7361_s2, %s7580_s4 }
  0x7b   :  { %p7367_p6 = pnand %p7365_p5, %p7362_p4 }
  0x7d   :  { %7370 = shalt.err (!%p7367_p6)
}
  0x7e   :  { %s7371_s7 = scalar_lea.vmem %s147_s13, 16  ;;  %s7375_s10 = scalar_lea.vmem %s147_s13, 32 }
  0x7f   :  { %p7372_p7 = scmp.ne.s32.totalorder %s147_s13, %s7371_s7  ;;  %p7376_p8 = scmp.lt.s32.totalorder %s147_s13, %s147_s13 }
  0x80   :  { %p7377_p9 = scmp.lt.s32.totalorder %s7375_s10, %s7371_s7 }
  0x82   :  { %p7378_p10 = por %p7377_p9, %p7376_p8 }
  0x84   :  { %p7379_p11 = pnand %p7378_p10, %p7372_p7 }
  0x86   :  { %7382 = shalt.err (!%p7379_p11)
}
  0x87   :  { %149 = dma.hbm_to_vmem [thread:$0]  %s7580_s4, 16, %s147_s13, [#allocation10]  }
  0x88   :  { %7427 = dma.done.wait [#allocation4], 16  }
  0x89   :  { %7428 = vsyncadd [#allocation4], 4294967280 }
  0x8a   :  { %7429 = dma.done.wait [#allocation7], 32  }
  0x8b   :  { %7430 = vsyncadd [#allocation7], 4294967264 }
  0x8c   :  { %7431 = dma.done.wait [#allocation10], 32  }
  0x8d   :  { %7432 = vsyncadd [#allocation10], 4294967264  ;;  %v634_v0 = vlaneseq  ;;  %v7473_v1 = vmov 1966171168   ;;  %vm210_vm0 = vcmask 1041408   ;;  %vm197_vm1 = vcmask 80896  }
  0x8e   :  { %v784_v2 = vunpack.c.l.s4 %v7473_v1  ;;  %vm7474_vm2 = vmmov 1   ;;  %v311_v6 = vld [vmem:[%s7530_s3] sm:$0xff]  ;;  %v312_v7 = vld [vmem:[%s7530_s3 + $0x8] sm:$0x3]  ;;  %v309_v14 = vld [vmem:[%s7515_s21 + $0x10] sm:$0xff]  ;;  %v7475_v24 = vmov 0.0  }
  0x8f   :  { %v7673_v3 = vshrl.u32 %v634_v0, 7  ;;  %vm7675_vm3 = vmpackc.low %vm210_vm0, %vm7474_vm2  ;;  %v307_v8 = vld [vmem:[%s7515_s21] sm:$0xff]  ;;  %v6773_v9 = vpack.c.bf16 %v312_v7, %v311_v6  ;;  %v752_v11 = vld [vmem:[%s7540_s14 + $0x8] sm:$0xff]  ;;  %vm7476_vm4 = vmmov 0   ;;  %vm609_vm5 = vcmask 261120   ;;  %s8859_s3 = sld [smem:[#allocation21_spill]] }
  0x90   :  { %v785_v4 = vunpack.c.0.s8 %v784_v2  ;;  %6415 = vmatprep.mubr.msk.f32.mxu1 %vm197_vm1, %v307_v8  ;;  %v751_v10 = vld [vmem:[%s7540_s14] sm:$0xff]  ;;  %v308_v12 = vld [vmem:[%s7515_s21 + $0x8] sm:$0xff]  ;;  %v753_v15 = vld [vmem:[%s7540_s14 + $0x10] sm:$0xff]  ;;  %v7477_v45 = vmov 0   ;;  %v7478_v51 = vmov 1983009808  }
  0x91   :  { %6775 = vmatprep.subr.msk.bf16.mxu1 %vm7675_vm3, %v6773_v9  ;;  %v754_v16 = vld [vmem:[%s7540_s14 + $0x18] sm:$0xff]  ;;  %v743_v17 = vld [vmem:[%s7495_s5] sm:$0x3]  ;;  %v744_v18 = vld [vmem:[%s7495_s5 + $0x2] sm:$0x3]  ;;  %v763_v19 = vpack.c.bf16 %v752_v11, %v751_v10  ;;  %v830_v52 = vunpack.c.l.s4 %v7478_v51  ;;  %vm927_vm7 = vcmask 130048  }
  0x92   :  { %v7687_v13 = vsub.s32 %v785_v4, %v7673_v3  ;;  %6778 = vmatpush3.bf16.msk.msra.mxu1 %vm7675_vm3, %v6773_v9  ;;  %v745_v20 = vld [vmem:[%s7495_s5 + $0x4] sm:$0x3]  ;;  %v746_v21 = vld [vmem:[%s7495_s5 + $0x6] sm:$0x3]  ;;  %v747_v22 = vld [vmem:[%s7495_s5 + $0x8] sm:$0x3]  ;;  %v6139_v23 = vpack.c.bf16 %v744_v18, %v743_v17  ;;  %v764_v34 = vpack.c.bf16 %v754_v16, %v753_v15 }
  0x93   :  { %6435 = vmatprep.subr.bf16.mxu1 %v7475_v24  ;;  %v748_v25 = vld [vmem:[%s7495_s5 + $0xa] sm:$0x3]  ;;  %v749_v26 = vld [vmem:[%s7495_s5 + $0xc] sm:$0x3]  ;;  %v750_v27 = vld [vmem:[%s7495_s5 + $0xe] sm:$0x3]  ;;  %v6140_v28 = vpack.c.bf16 %v746_v21, %v745_v20  ;;  %v831_v53 = vunpack.c.0.s8 %v830_v52 }
  0x94   :  { %v6141_v29 = vpack.c.bf16 %v748_v25, %v747_v22  ;;  %v6142_v30 = vpack.c.bf16 %v750_v27, %v749_v26  ;;  %v789_v31 = vrot.slane %v6139_v23, %v7687_v13  ;;  %v310_v33 = vld [vmem:[%s7515_s21 + $0x18] sm:$0xff]  ;;  %v741_v39 = vld [vmem:[%s7545_s19] sm:$0xff]  ;;  %v742_v40 = vld [vmem:[%s7545_s19 + $0x8] sm:$0xff]  ;;  %s7479_s5 = smov 96   ;;  %s7480_s21 = smov 16   ;;  %vm1007_vm8 = vcmask 123904  }
  0x95   :  { %6416 = vmatmul.mubr.msk.f32.vlgmr.msra.gmra.mrb[0].mxu1 %vm197_vm1, %v308_v12  ;;  %v796_v32 = vrot.slane %v6140_v28, %v7687_v13  ;;  %v7721_v43 = vpack.c.bf16 %v742_v40, %v741_v39  ;;  %v188_v46 = vld [vmem:[%s7520_s25] sm:$0xff]  ;;  %v189_v47 = vld [vmem:[%s7520_s25 + $0x8] sm:$0x3]  ;;  %v6115_v55 = vld [vmem:[#allocation8] ss:$0 sm:$0xff]  ;;  %v7745_v56 = vsub.s32 %v831_v53, %v7673_v3  ;;  %s7482_s25 = smov 80  }
  0x96   :  { %6436 = vmatpush3.bf16.msra.mxu1 %v763_v19  ;;  %6418 = vmatprep.mubr.msk.f32.mxu1 %vm197_vm1, %v309_v14  ;;  %v803_v35 = vrot.slane %v6141_v29, %v7687_v13  ;;  %v810_v36 = vrot.slane %v6142_v30, %v7687_v13  ;;  %v6767_v48 = vpack.c.bf16 %v189_v47, %v188_v46  ;;  %v184_v49 = vld [vmem:[%s7510_s17] sm:$0xff]  ;;  %v185_v50 = vld [vmem:[%s7510_s17 + $0x8] sm:$0xff]  ;;  %vm6780_vm6 = vmpackc.low %vm197_vm1, %vm197_vm1  ;;  %s8860_s8 = sld [smem:[#allocation22_spill]]  ;;  %s8861_s14 = sld [smem:[#allocation23_spill]] }
  0x97   :  { %6437 = vmatprep.subr.bf16.mxu1 %v7475_v24  ;;  %v811_v37 = vcombine.low %v789_v31, %v796_v32  ;;  %6405 = vmatprep.mubr.msk.f32.mxu0 %vm197_vm1, %v184_v49  ;;  %v6138_v54 = vld [vmem:[%s7550_s24] ss:$0 sm:$0xff]  ;;  %s8862_s19 = sld [smem:[#allocation24_spill]]  ;;  %s8863_s24 = sld [smem:[#allocation25_spill]] }
  0x98   :  { %v812_v38 = vcombine.low %v803_v35, %v810_v36  ;;  %6769 = vmatprep.subr.msk.bf16.mxu0 %vm7675_vm3, %v6767_v48  ;;  %v828_v58 = vcombine.low %v6138_v54, %v6138_v54  ;;  %v187_v35 = vld [vmem:[%s7510_s17 + $0x18] sm:$0xff]  ;;  %s8865_s4 = sld [smem:[#allocation27_spill]]  ;;  %s8866_s11 = sld [smem:[#allocation28_spill]] }
  0x99   :  { %6419 = vmatmul.mubr.msk.f32.gmra.mrb[2].mxu1 %vm197_vm1, %v310_v33  ;;  %v819_v41 = vrot.slane %v811_v37, %v7687_v13  ;;  %6772 = vmatpush3.bf16.msk.msra.mxu0 %vm7675_vm3, %v6767_v48  ;;  %s8867_s15 = sld [smem:[#allocation29_spill]]  ;;  %s8868_s29 = sld [smem:[#allocation30_spill]] }
  0x9a   :  { %6438 = vmatpush3.bf16.msra.mxu1 %v764_v34  ;;  %6439 = vmatprep.mubr.msk.bf16.mxu1 %vm7476_vm4, %v7475_v24  ;;  %v826_v42 = vrot.slane %v812_v38, %v7687_v13  ;;  %v835_v2 = vrot.slane %v828_v58, %v7745_v56  ;;  %v186_v34 = vld [vmem:[%s7510_s17 + $0x10] sm:$0xff]  ;;  %s7481_s17 = smov 32   ;;  %s8869_s16 = sld [smem:[#allocation31_spill]] }
  0x9b   :  { %6443 = vmatprep.subr.bf16.mxu1 %v7475_v24  ;;  %s8870_s18 = sld [smem:[#allocation32_spill]]  ;;  %s8871_s22 = sld [smem:[#allocation20_spill]] }
  0x9c   :  { %v827_v44 = vcombine.low %v819_v41, %v826_v42  ;;  %6406 = vmatmul.mubr.msk.f32.vlgmr.msra.gmra.mrb[0].mxu0 %vm197_vm1, %v185_v50  ;;  %v836_v9 = vcombine.low %v835_v2, %v835_v2  ;;  %s7483_s23 = smov [#allocation12]  }
  0x9d   :  { %6408 = vmatprep.mubr.msk.f32.mxu0 %vm197_vm1, %v186_v34  ;;  %s6040_s26 = sshll.u32 %s7483_s23, 4  ;;  %s6041_s26 = int_to_ptr.vmem [resolvable:$true] %s6040_s26 }
  0x9e   :  { %6440 = vmatmul.mubr.msk.bf16.vlgmr.msra.gmra.mrb[4].mxu1 %vm609_vm5, %v827_v44  ;;  %v6109_v44 = vld [vmem:[#allocation6] ss:$0 sm:$0xff]  ;;  %s7383_s12 = scalar_lea.vmem %s6041_s26, 512  ;;  %p7388_p13 = scmp.lt.s32.totalorder %s6041_s26, %s6041_s26 }
  0x9f   :  { %6444 = vmatpush3.bf16.msra.mxu1 %v7721_v43  ;;  %6445 = vmatprep.mubr.msk.bf16.mxu1 %vm7476_vm4, %v7475_v24  ;;  %p7384_p12 = scmp.ne.s32.totalorder %s6041_s26, %s7383_s12  ;;  %p7389_p0 = scmp.lt.s32.totalorder %s7383_s12, %s7383_s12 }
  0xa0   :  { %6455 = vmatprep.subr.bf16.mxu1 %v7475_v24  ;;  %6409 = vmatmul.mubr.msk.f32.gmra.mrb[2].mxu0 %vm197_vm1, %v187_v35 }
  0xa1   :  { %p7390_p1 = por %p7389_p0, %p7388_p13 }
  0xa3   :  { %p7391_p2 = pnand %p7390_p1, %p7384_p12 }
  0xa6   :  { %6446 = vmatmul.mubr.bf16.vlgmr.msra.gmra.mrb[8].mxu1 %v7477_v45 }
  0xa7   :  { %6456 = vmatpush3.bf16.msra.mxu1 %v7721_v43  ;;  %6457 = vmatprep.mubr.msk.bf16.mxu1 %vm7476_vm4, %v7475_v24 }
  0xa8   :  { %6467 = vmatprep.subr.bf16.mxu1 %v7475_v24 }
 0x168   :  { %v6417_v57 = vpop.f32.mrb[0].mxu1 }
 0x169   :  { %v407_v59 = vadd.f32 %v6417_v57, %v6115_v55  ;;  %v401_v60 = vpop.f32.mrb[1].mxu1 }
 0x16a   :  { %v402_v61 = vadd.f32 %v6115_v55, %v401_v60 }
 0x16b   :  { %v421_v62 = vmul.f32 3.0, %v407_v59 }
 0x16c   :  { %v420_v63 = vmul.f32 3.0, %v402_v61  ;;  %v6420_v1 = vpop.f32.mrb[2].mxu1 }
 0x16d   :  { %6841 = vtanh.f32 %v421_v62  ;;  %v417_v4 = vadd.f32 %v6420_v1, %v6115_v55  ;;  %v411_v5 = vpop.f32.mrb[3].mxu1 }
 0x16e   :  { %6843 = vtanh.f32 %v420_v63  ;;  %v412_v6 = vadd.f32 %v6115_v55, %v411_v5 }
 0x16f   :  { %v423_v7 = vmul.f32 3.0, %v417_v4  ;;  %v6407_v42 = vpop.f32.mrb[0].mxu0 }
 0x170   :  { %v422_v8 = vmul.f32 3.0, %v412_v6  ;;  %v286_v46 = vadd.f32 %v6407_v42, %v6109_v44  ;;  %v280_v47 = vpop.f32.mrb[1].mxu0 }
 0x171   :  { %6845 = vtanh.f32 %v423_v7  ;;  %v875_v10 = vpop.f32.mrb[4].mxu1  ;;  %v281_v48 = vadd.f32 %v6109_v44, %v280_v47 }
 0x172   :  { %6847 = vtanh.f32 %v422_v8  ;;  %v6441_v11 = vpop.f32.mrb[5].mxu1  ;;  %v7748_v14 = vadd.f32 %v875_v10, %v836_v9  ;;  %v300_v49 = vmul.f32 3.0, %v286_v46 }
 0x173   :  { %v878_v12 = vpop.f32.mrb[6].mxu1  ;;  %v299_v50 = vmul.f32 3.0, %v281_v48  ;;  %v6410_v54 = vpop.f32.mrb[2].mxu0 }
 0x174   :  { %v7750_v15 = vadd.f32 %v878_v12, %v836_v9  ;;  %v6442_v16 = vpop.f32.mrb[7].mxu1  ;;  %v7754_v19 = vrot.slane %v7748_v14, %v7745_v56  ;;  %v296_v55 = vadd.f32 %v6410_v54, %v6109_v44  ;;  %v290_v57 = vpop.f32.mrb[3].mxu0  ;;  %v884_v34 = vcombine.high %v7748_v14, %v7748_v14 }
 0x175   :  { %v291_v58 = vadd.f32 %v6109_v44, %v290_v57 }
 0x176   :  { %v302_v59 = vmul.f32 3.0, %v296_v55  ;;  %v899_v9 = vcombine.high %v7754_v19, %v7754_v19  ;;  %v898_v35 = vrot.slane %v884_v34, %v7745_v56 }
 0x177   :  { %v6842_v17 = vpop.eup %6841  ;;  %v301_v60 = vmul.f32 3.0, %v291_v58 }
 0x178   :  { %v6844_v18 = vpop.eup %6843  ;;  %v900_v58 = vcombine.high %v898_v35, %v898_v35 }
 0x179   :  { %v965_v20 = vpop.f32.mrb[8].mxu1  ;;  %v6779_v21 = vpack.c.bf16 %v6842_v17, %v6844_v18 }
 0x17a   :  { %v971_v22 = vadd.f32 %v965_v20, %v7754_v19  ;;  %v6447_v23 = vpop.f32.mrb[9].mxu1 }
 0x17b   :  { %v6846_v25 = vpop.eup %6845  ;;  %v968_v26 = vpop.f32.mrb[10].mxu1  ;;  %6781 = vmatprep.subr.msk.bf16.mxu0 %vm6780_vm6, %v6779_v21 }
 0x17c   :  { %v6848_v27 = vpop.eup %6847  ;;  %6849 = vtanh.f32 %v971_v22  ;;  %v6448_v28 = vpop.f32.mrb[11].mxu1  ;;  %6784 = vmatpush3.bf16.xpose.msk.msra.mxu0 %vm6780_vm6, %v6779_v21  ;;  %v6144_v31 = vmul.f32 -1.442695, %v971_v22 }
 0x17d   :  { %v6785_v29 = vpack.c.bf16 %v6846_v25, %v6848_v27 }
 0x17e   :  { %6851 = vpow2.f32 %v6144_v31 }
 0x17f   :  { %6787 = vmatprep.subr.msk.bf16.mxu0 %vm6780_vm6, %v6785_v29 }
 0x184   :  { %6790 = vmatpush3.bf16.xpose.msk.msra.mxu0 %vm6780_vm6, %v6785_v29 }
 0x185   :  { %6449 = vmatprep.subr.bf16.mxu0 %v7475_v24 }
 0x186   :  { %v6850_v30 = vpop.eup %6849 }
 0x187   :  { %981 = vrot.lane.b32.xlu0 %v6850_v30, %s7479_s5 }
 0x188   :  { %v6852_v32 = vpop.eup %6851 }
 0x189   :  { %v975_v33 = vadd.f32 1.0, %v6852_v32 }
 0x18b   :  { %6853 = vrcp.f32 %v975_v33 }
 0x195   :  { %v6854_v36 = vpop.eup %6853 }
 0x196   :  { %v979_v39 = vmul.f32 0.0, %v6854_v36 }
 0x1f9   :  { %v982_v37 = vpop.permute.xlu0 %981 }
 0x1fa   :  { %v984_v38 = vmul.f32 %v6854_v36, %v982_v37 }
 0x1fc   :  { %986 = vrot.lane.b32.xlu0 %v984_v38, %s7480_s21 }
 0x26e   :  { %v987_v40 = vpop.permute.xlu0 %986 }
 0x26f   :  { %v7766_v41 = vadd.f32 %v987_v40, %v979_v39 }
 0x271   :  { %6855 = vtanh.f32 %v7766_v41 }
 0x272   :  { %6857 = vtanh.f32 %v300_v49 }
 0x273   :  { %6859 = vtanh.f32 %v299_v50 }
 0x274   :  { %6861 = vtanh.f32 %v302_v59 }
 0x275   :  { %6863 = vtanh.f32 %v301_v60 }
 0x27b   :  { %v6856_v51 = vpop.eup %6855 }
 0x27c   :  { %992 = vrot.lane.b32.xlu1 %v6856_v51, %s7481_s17  ;;  %v6858_v52 = vpop.eup %6857 }
 0x27d   :  { %v6860_v53 = vpop.eup %6859 }
 0x27e   :  { %6429 = vmatprep.mubr.msk.f32.mxu0 %vm197_vm1, %v6860_v53  ;;  %v6862_v61 = vpop.eup %6861 }
 0x27f   :  { %6430 = vmatmul.mubr.msk.f32.vlgmr.msra.gmra.mrb[4].mxu0 %vm197_vm1, %v6858_v52  ;;  %v6864_v62 = vpop.eup %6863 }
 0x280   :  { %6450 = vmatpush3.bf16.msra.mxu0 %v7721_v43  ;;  %6432 = vmatprep.mubr.msk.f32.mxu0 %vm197_vm1, %v6864_v62 }
 0x281   :  { %6461 = vmatprep.subr.bf16.mxu0 %v7475_v24 }
 0x283   :  { %6433 = vmatmul.mubr.msk.f32.gmra.mrb[6].mxu0 %vm197_vm1, %v6862_v61 }
 0x284   :  { %6451 = vmatprep.mubr.msk.bf16.mxu0 %vm7476_vm4, %v7475_v24 }
 0x2ee   :  { %v993_v63 = vpop.permute.xlu1 %992 }
 0x2ef   :  { %v7778_v1 = vmul.f32 %v6854_v36, %v993_v63 }
 0x2f1   :  { %v1009_v2 = vpack.c.bf16 %v7778_v1, %v7778_v1 }
 0x2f3   :  { %1011 = vrot.lane.b32.xlu1 %v1009_v2, %s7482_s25 }
 0x352   :  { %v7783_v4 = vpop.f32.mrb[4].mxu0 }
 0x353   :  { %v7785_v5 = vpop.f32.mrb[5].mxu0 }
 0x356   :  { %v7792_v7 = vpop.f32.mrb[6].mxu0 }
 0x357   :  { %v7794_v8 = vpop.f32.mrb[7].mxu0 }
 0x365   :  { %v1012_v6 = vpop.permute.xlu1 %1011 }
 0x366   :  { %6452 = vmatmul.mubr.msk.bf16.vlgmr.msra.gmra.mrb[8].mxu0 %vm927_vm7, %v1012_v6 }
 0x367   :  { %6462 = vmatpush3.bf16.msra.mxu0 %v7721_v43  ;;  %6463 = vmatprep.mubr.msk.bf16.mxu0 %vm7476_vm4, %v7475_v24 }
 0x368   :  { %6473 = vmatprep.subr.bf16.mxu0 %v7475_v24 }
 0x439   :  { %v1050_v10 = vpop.f32.mrb[8].mxu0 }
 0x43a   :  { %v1056_v11 = vadd.f32 %v1050_v10, %v899_v9  ;;  %v6453_v12 = vpop.f32.mrb[9].mxu0 }
 0x43b   :  { %v1053_v16 = vpop.f32.mrb[10].mxu0 }
 0x43c   :  { %6865 = vtanh.f32 %v1056_v11  ;;  %v6454_v17 = vpop.f32.mrb[11].mxu0  ;;  %v6146_v20 = vmul.f32 -1.442695, %v1056_v11 }
 0x43e   :  { %6867 = vpow2.f32 %v6146_v20 }
 0x446   :  { %v6866_v18 = vpop.eup %6865 }
 0x447   :  { %1066 = vrot.lane.b32.xlu0 %v6866_v18, %s7479_s5 }
 0x448   :  { %v6868_v21 = vpop.eup %6867 }
 0x449   :  { %v1060_v22 = vadd.f32 1.0, %v6868_v21 }
 0x44b   :  { %6869 = vrcp.f32 %v1060_v22 }
 0x455   :  { %v6870_v23 = vpop.eup %6869 }
 0x456   :  { %v1064_v19 = vmul.f32 %v6870_v23, %v7766_v41 }
 0x4b9   :  { %v1067_v25 = vpop.permute.xlu0 %1066 }
 0x4ba   :  { %v1069_v26 = vmul.f32 %v6870_v23, %v1067_v25 }
 0x4bc   :  { %1071 = vrot.lane.b32.xlu1 %v1069_v26, %s7480_s21 }
 0x52e   :  { %v1072_v27 = vpop.permute.xlu1 %1071 }
 0x52f   :  { %v1074_v28 = vadd.f32 %v1072_v27, %v1064_v19  ;;  %v908_v19 = vrot.slane %v7750_v15, %v7745_v56 }
 0x531   :  { %6871 = vtanh.f32 %v1074_v28 }
 0x53b   :  { %v6872_v29 = vpop.eup %6871 }
 0x53c   :  { %1077 = vrot.lane.b32.xlu0 %v6872_v29, %s7481_s17 }
 0x5ae   :  { %v1078_v30 = vpop.permute.xlu0 %1077 }
 0x5af   :  { %v7802_v31 = vmul.f32 %v6870_v23, %v1078_v30 }
 0x5b1   :  { %v1094_v32 = vpack.c.bf16 %v7802_v31, %v7802_v31 }
 0x5b3   :  { %1096 = vrot.lane.b32.xlu1 %v1094_v32, %s7482_s25 }
 0x625   :  { %v1097_v33 = vpop.permute.xlu1 %1096 }
 0x626   :  { %6458 = vmatmul.mubr.msk.bf16.vlgmr.msra.gmra.mrb[12].mxu1 %vm927_vm7, %v1097_v33 }
 0x627   :  { %6468 = vmatpush3.bf16.msra.mxu1 %v7721_v43  ;;  %6469 = vmatprep.mubr.msk.bf16.mxu1 %vm7476_vm4, %v7475_v24 }
 0x628   :  { %6479 = vmatprep.subr.bf16.mxu1 %v7475_v24 }
 0x6f9   :  { %v1135_v36 = vpop.f32.mrb[12].mxu1 }
 0x6fa   :  { %v1141_v37 = vadd.f32 %v1135_v36, %v898_v35  ;;  %v6459_v38 = vpop.f32.mrb[13].mxu1 }
 0x6fb   :  { %v1138_v39 = vpop.f32.mrb[14].mxu1 }
 0x6fc   :  { %6873 = vtanh.f32 %v1141_v37  ;;  %v6460_v40 = vpop.f32.mrb[15].mxu1  ;;  %v6148_v42 = vmul.f32 -1.442695, %v1141_v37 }
 0x6fe   :  { %6875 = vpow2.f32 %v6148_v42 }
 0x706   :  { %v6874_v41 = vpop.eup %6873 }
 0x707   :  { %1151 = vrot.lane.b32.xlu0 %v6874_v41, %s7479_s5 }
 0x708   :  { %v6876_v44 = vpop.eup %6875 }
 0x709   :  { %v1145_v46 = vadd.f32 1.0, %v6876_v44 }
 0x70b   :  { %6877 = vrcp.f32 %v1145_v46 }
 0x715   :  { %v6878_v47 = vpop.eup %6877 }
 0x716   :  { %v1149_v14 = vmul.f32 %v6878_v47, %v1074_v28 }
 0x779   :  { %v1152_v48 = vpop.permute.xlu0 %1151 }
 0x77a   :  { %v1154_v49 = vmul.f32 %v6878_v47, %v1152_v48 }
 0x77c   :  { %1156 = vrot.lane.b32.xlu1 %v1154_v49, %s7480_s21 }
 0x7ee   :  { %v1157_v50 = vpop.permute.xlu1 %1156 }
 0x7ef   :  { %v1159_v51 = vadd.f32 %v1157_v50, %v1149_v14  ;;  %v916_v14 = vcombine.high %v908_v19, %v908_v19 }
 0x7f1   :  { %6879 = vtanh.f32 %v1159_v51 }
 0x7fb   :  { %v6880_v52 = vpop.eup %6879 }
 0x7fc   :  { %1162 = vrot.lane.b32.xlu0 %v6880_v52, %s7481_s17 }
 0x86e   :  { %v1163_v53 = vpop.permute.xlu0 %1162 }
 0x86f   :  { %v7818_v54 = vmul.f32 %v6878_v47, %v1163_v53 }
 0x871   :  { %v1179_v55 = vpack.c.bf16 %v7818_v54, %v7818_v54 }
 0x873   :  { %1181 = vrot.lane.b32.xlu1 %v1179_v55, %s7482_s25 }
 0x8e5   :  { %v1182_v57 = vpop.permute.xlu1 %1181 }
 0x8e6   :  { %6464 = vmatmul.mubr.msk.bf16.vlgmr.msra.gmra.mrb[12].mxu0 %vm927_vm7, %v1182_v57 }
 0x8e7   :  { %6474 = vmatpush3.bf16.msra.mxu0 %v7721_v43  ;;  %6475 = vmatprep.mubr.msk.bf16.mxu0 %vm7476_vm4, %v7475_v24 }
 0x8e8   :  { %6485 = vmatprep.subr.bf16.mxu0 %v7475_v24 }
 0x9b9   :  { %v1220_v59 = vpop.f32.mrb[12].mxu0 }
 0x9ba   :  { %v1226_v60 = vadd.f32 %v1220_v59, %v900_v58  ;;  %v6465_v61 = vpop.f32.mrb[13].mxu0 }
 0x9bb   :  { %v1223_v62 = vpop.f32.mrb[14].mxu0 }
 0x9bc   :  { %6881 = vtanh.f32 %v1226_v60  ;;  %v6466_v63 = vpop.f32.mrb[15].mxu0  ;;  %v6150_v6 = vmul.f32 -1.442695, %v1226_v60 }
 0x9be   :  { %6883 = vpow2.f32 %v6150_v6 }
 0x9c6   :  { %v6882_v2 = vpop.eup %6881 }
 0x9c7   :  { %1236 = vrot.lane.b32.xlu0 %v6882_v2, %s7479_s5 }
 0x9c8   :  { %v6884_v9 = vpop.eup %6883 }
 0x9c9   :  { %v1230_v10 = vadd.f32 1.0, %v6884_v9 }
 0x9cb   :  { %6885 = vrcp.f32 %v1230_v10 }
 0x9d5   :  { %v6886_v11 = vpop.eup %6885 }
 0x9d6   :  { %v1234_v17 = vmul.f32 %v6886_v11, %v1159_v51 }
 0xa39   :  { %v1237_v12 = vpop.permute.xlu0 %1236 }
 0xa3a   :  { %v1239_v16 = vmul.f32 %v6886_v11, %v1237_v12 }
 0xa3c   :  { %1241 = vrot.lane.b32.xlu1 %v1239_v16, %s7480_s21 }
 0xaae   :  { %v1242_v18 = vpop.permute.xlu1 %1241 }
 0xaaf   :  { %v1244_v20 = vadd.f32 %v1242_v18, %v1234_v17  ;;  %v901_v17 = vcombine.high %v7750_v15, %v7750_v15 }
 0xab1   :  { %6887 = vtanh.f32 %v1244_v20  ;;  %v915_v18 = vrot.slane %v901_v17, %v7745_v56  ;;  %v1615_v17 = vld [vmem:[%s7555_s30 + $0x8] sm:$0xff] }
 0xabb   :  { %v6888_v21 = vpop.eup %6887 }
 0xabc   :  { %1247 = vrot.lane.b32.xlu0 %v6888_v21, %s7481_s17 }
 0xb2e   :  { %v1248_v22 = vpop.permute.xlu0 %1247 }
 0xb2f   :  { %v7831_v23 = vmul.f32 %v6886_v11, %v1248_v22 }
 0xb31   :  { %v1264_v25 = vpack.c.bf16 %v7831_v23, %v7831_v23 }
 0xb33   :  { %1266 = vrot.lane.b32.xlu1 %v1264_v25, %s7482_s25 }
 0xba5   :  { %v1267_v26 = vpop.permute.xlu1 %1266 }
 0xba6   :  { %6470 = vmatmul.mubr.msk.bf16.vlgmr.msra.gmra.mrb[16].mxu1 %vm927_vm7, %v1267_v26 }
 0xba7   :  { %6480 = vmatpush3.bf16.msra.mxu1 %v7721_v43  ;;  %6481 = vmatprep.mubr.msk.bf16.mxu1 %vm7476_vm4, %v7475_v24 }
 0xba8   :  { %6491 = vmatprep.subr.bf16.mxu1 %v7475_v24 }
 0xc79   :  { %v1305_v27 = vpop.f32.mrb[16].mxu1 }
 0xc7a   :  { %v1311_v28 = vadd.f32 %v1305_v27, %v908_v19  ;;  %v6471_v29 = vpop.f32.mrb[17].mxu1 }
 0xc7b   :  { %v1308_v30 = vpop.f32.mrb[18].mxu1 }
 0xc7c   :  { %6889 = vtanh.f32 %v1311_v28  ;;  %v6472_v32 = vpop.f32.mrb[19].mxu1  ;;  %v6152_v34 = vmul.f32 -1.442695, %v1311_v28 }
 0xc7e   :  { %6891 = vpow2.f32 %v6152_v34 }
 0xc86   :  { %v6890_v33 = vpop.eup %6889 }
 0xc87   :  { %1321 = vrot.lane.b32.xlu0 %v6890_v33, %s7479_s5 }
 0xc88   :  { %v6892_v35 = vpop.eup %6891 }
 0xc89   :  { %v1315_v36 = vadd.f32 1.0, %v6892_v35 }
 0xc8b   :  { %6893 = vrcp.f32 %v1315_v36 }
 0xc95   :  { %v6894_v37 = vpop.eup %6893 }
 0xc96   :  { %v1319_v40 = vmul.f32 %v6894_v37, %v1244_v20 }
 0xcf9   :  { %v1322_v38 = vpop.permute.xlu0 %1321 }
 0xcfa   :  { %v1324_v39 = vmul.f32 %v6894_v37, %v1322_v38 }
 0xcfc   :  { %1326 = vrot.lane.b32.xlu1 %v1324_v39, %s7480_s21 }
 0xd6e   :  { %v1327_v41 = vpop.permute.xlu1 %1326 }
 0xd6f   :  { %v1329_v42 = vadd.f32 %v1327_v41, %v1319_v40  ;;  %v917_v41 = vcombine.high %v915_v18, %v915_v18 }
 0xd71   :  { %6895 = vtanh.f32 %v1329_v42 }
 0xd7b   :  { %v6896_v44 = vpop.eup %6895 }
 0xd7c   :  { %1332 = vrot.lane.b32.xlu0 %v6896_v44, %s7481_s17 }
 0xdee   :  { %v1333_v46 = vpop.permute.xlu0 %1332 }
 0xdef   :  { %v7846_v47 = vmul.f32 %v6894_v37, %v1333_v46 }
 0xdf1   :  { %v1349_v48 = vpack.c.bf16 %v7846_v47, %v7846_v47 }
 0xdf3   :  { %1351 = vrot.lane.b32.xlu1 %v1349_v48, %s7482_s25 }
 0xe65   :  { %v1352_v49 = vpop.permute.xlu1 %1351 }
 0xe66   :  { %6476 = vmatmul.mubr.msk.bf16.vlgmr.msra.gmra.mrb[16].mxu0 %vm927_vm7, %v1352_v49 }
 0xe67   :  { %6486 = vmatpush3.bf16.msra.mxu0 %v7721_v43  ;;  %6487 = vmatprep.mubr.msk.bf16.mxu0 %vm7476_vm4, %v7475_v24 }
 0xe68   :  { %6497 = vmatprep.subr.bf16.mxu0 %v7475_v24 }
 0xf39   :  { %v1390_v50 = vpop.f32.mrb[16].mxu0 }
 0xf3a   :  { %v1396_v51 = vadd.f32 %v1390_v50, %v916_v14  ;;  %v6477_v52 = vpop.f32.mrb[17].mxu0 }
 0xf3b   :  { %v1393_v53 = vpop.f32.mrb[18].mxu0 }
 0xf3c   :  { %6897 = vtanh.f32 %v1396_v51  ;;  %v6478_v55 = vpop.f32.mrb[19].mxu0  ;;  %v6154_v58 = vmul.f32 -1.442695, %v1396_v51 }
 0xf3e   :  { %6899 = vpow2.f32 %v6154_v58  ;;  %v1003_v58 = vrot.slane %v7778_v1, %v7745_v56 }
 0xf46   :  { %v6898_v57 = vpop.eup %6897 }
 0xf47   :  { %1406 = vrot.lane.b32.xlu0 %v6898_v57, %s7479_s5 }
 0xf48   :  { %v6900_v59 = vpop.eup %6899 }
 0xf49   :  { %v1400_v60 = vadd.f32 1.0, %v6900_v59  ;;  %v1173_v59 = vrot.slane %v7818_v54, %v7745_v56 }
 0xf4b   :  { %6901 = vrcp.f32 %v1400_v60  ;;  %v1343_v60 = vrot.slane %v7846_v47, %v7745_v56 }
 0xf55   :  { %v6902_v43 = vpop.eup %6901 }
 0xf56   :  { %v1404_v63 = vmul.f32 %v6902_v43, %v1329_v42 }
 0xfb9   :  { %v1407_v61 = vpop.permute.xlu0 %1406 }
 0xfba   :  { %v1409_v62 = vmul.f32 %v6902_v43, %v1407_v61 }
 0xfbc   :  { %1411 = vrot.lane.b32.xlu1 %v1409_v62, %s7480_s21 }
0x102e   :  { %v1412_v2 = vpop.permute.xlu1 %1411 }
0x102f   :  { %v1414_v6 = vadd.f32 %v1412_v2, %v1404_v63 }
0x1031   :  { %6903 = vtanh.f32 %v1414_v6 }
0x103b   :  { %v6904_v9 = vpop.eup %6903 }
0x103c   :  { %1417 = vrot.lane.b32.xlu0 %v6904_v9, %s7481_s17 }
0x10ae   :  { %v1418_v10 = vpop.permute.xlu0 %1417 }
0x10af   :  { %v7859_v11 = vmul.f32 %v6902_v43, %v1418_v10  ;;  %v1258_v10 = vrot.slane %v7831_v23, %v7745_v56 }
0x10b1   :  { %v1434_v12 = vpack.c.bf16 %v7859_v11, %v7859_v11 }
0x10b3   :  { %1436 = vrot.lane.b32.xlu1 %v1434_v12, %s7482_s25  ;;  %v1428_v12 = vrot.slane %v7859_v11, %v7745_v56 }
0x1125   :  { %v1437_v16 = vpop.permute.xlu1 %1436 }
0x1126   :  { %6482 = vmatmul.mubr.msk.bf16.vlgmr.msra.gmra.mrb[20].mxu1 %vm927_vm7, %v1437_v16  ;;  %v1614_v16 = vld [vmem:[%s7555_s30] sm:$0xff]  ;;  %s8864_s30 = sld [smem:[#allocation26_spill]] }
0x1127   :  { %6493 = vmatprep.mubr.msk.bf16.mxu1 %vm7476_vm4, %v7475_v24 }
0x11f9   :  { %v1475_v20 = vpop.f32.mrb[20].mxu1 }
0x11fa   :  { %v1481_v21 = vadd.f32 %v1475_v20, %v915_v18  ;;  %v6483_v22 = vpop.f32.mrb[21].mxu1  ;;  %v1604_v18 = vld [vmem:[%s8859_s3] sm:$0xff]  ;;  %v1624_v20 = vpack.c.bf16 %v1615_v17, %v1614_v16 }
0x11fb   :  { %v1478_v25 = vpop.f32.mrb[22].mxu1 }
0x11fc   :  { %6905 = vtanh.f32 %v1481_v21  ;;  %v6484_v26 = vpop.f32.mrb[23].mxu1  ;;  %v6156_v27 = vmul.f32 -1.442695, %v1481_v21  ;;  %6492 = vmatpush3.bf16.msra.mxu1 %v1624_v20 }
0x11fd   :  { %6503 = vmatprep.subr.bf16.mxu1 %v7475_v24 }
0x11fe   :  { %6907 = vpow2.f32 %v6156_v27 }
0x1206   :  { %v6906_v19 = vpop.eup %6905 }
0x1207   :  { %1491 = vrot.lane.b32.xlu0 %v6906_v19, %s7479_s5 }
0x1208   :  { %v6908_v28 = vpop.eup %6907 }
0x1209   :  { %v1485_v29 = vadd.f32 1.0, %v6908_v28 }
0x120b   :  { %6909 = vrcp.f32 %v1485_v29 }
0x1215   :  { %v6910_v30 = vpop.eup %6909 }
0x1216   :  { %v1489_v15 = vmul.f32 %v6910_v30, %v1414_v6  ;;  %v1088_v6 = vrot.slane %v7802_v31, %v7745_v56  ;;  %v1605_v31 = vld [vmem:[%s8859_s3 + $0x8] sm:$0xff] }
0x1217   :  { %v7908_v21 = vpack.c.bf16 %v1605_v31, %v1604_v18 }
0x1279   :  { %v1492_v32 = vpop.permute.xlu0 %1491 }
0x127a   :  { %v1494_v33 = vmul.f32 %v6910_v30, %v1492_v32 }
0x127c   :  { %1496 = vrot.lane.b32.xlu1 %v1494_v33, %s7480_s21 }
0x12ee   :  { %v1497_v34 = vpop.permute.xlu1 %1496 }
0x12ef   :  { %v1499_v35 = vadd.f32 %v1497_v34, %v1489_v15 }
0x12f1   :  { %6911 = vtanh.f32 %v1499_v35 }
0x12fb   :  { %v6912_v36 = vpop.eup %6911 }
0x12fc   :  { %1502 = vrot.lane.b32.xlu0 %v6912_v36, %s7481_s17 }
0x136e   :  { %v1503_v37 = vpop.permute.xlu0 %1502 }
0x136f   :  { %v1505_v38 = vmul.f32 %v6910_v30, %v1503_v37 }
0x1371   :  { %v1519_v39 = vpack.c.bf16 %v1505_v38, %v1505_v38  ;;  %v1513_v43 = vrot.slane %v1505_v38, %v7745_v56 }
0x1373   :  { %1521 = vrot.lane.b32.xlu1 %v1519_v39, %s7482_s25 }
0x13e5   :  { %v1522_v40 = vpop.permute.xlu1 %1521 }
0x13e6   :  { %6488 = vmatmul.mubr.msk.bf16.vlgmr.msra.gmra.mrb[20].mxu0 %vm927_vm7, %v1522_v40 }
0x13e7   :  { %6499 = vmatprep.mubr.msk.bf16.mxu0 %vm7476_vm4, %v7475_v24  ;;  %6498 = vmatpush3.bf16.msra.mxu0 %v7908_v21 }
0x13e8   :  { %6509 = vmatprep.subr.bf16.mxu0 %v7475_v24 }
0x13ee   :  { %6500 = vmatmul.mubr.bf16.vlgmr.msra.gmra.mrb[24].mxu0 %v7477_v45 }
0x13ef   :  { %6510 = vmatpush3.bf16.msra.mxu0 %v7908_v21  ;;  %6511 = vmatprep.mubr.msk.bf16.mxu0 %vm7476_vm4, %v7475_v24 }
0x13f0   :  { %6521 = vmatprep.subr.bf16.mxu0 %v7475_v24 }
0x14b9   :  { %v1560_v42 = vpop.f32.mrb[20].mxu0 }
0x14ba   :  { %v1566_v44 = vadd.f32 %v1560_v42, %v917_v41  ;;  %v6489_v46 = vpop.f32.mrb[21].mxu0 }
0x14bb   :  { %v1563_v48 = vpop.f32.mrb[22].mxu0 }
0x14bc   :  { %6913 = vtanh.f32 %v1566_v44  ;;  %v6490_v49 = vpop.f32.mrb[23].mxu0  ;;  %v6158_v50 = vmul.f32 -1.442695, %v1566_v44 }
0x14be   :  { %6915 = vpow2.f32 %v6158_v50 }
0x14c6   :  { %v6914_v14 = vpop.eup %6913 }
0x14c7   :  { %1576 = vrot.lane.b32.xlu0 %v6914_v14, %s7479_s5 }
0x14c8   :  { %v6916_v51 = vpop.eup %6915 }
0x14c9   :  { %v1570_v52 = vadd.f32 1.0, %v6916_v51  ;;  %v1821_v51 = vpop.f32.mrb[24].mxu0 }
0x14cb   :  { %6917 = vrcp.f32 %v1570_v52  ;;  %v6501_v52 = vpop.f32.mrb[25].mxu0 }
0x14d5   :  { %v6918_v53 = vpop.eup %6917 }
0x14d6   :  { %v1574_v61 = vmul.f32 %v6918_v53, %v1499_v35 }
0x1539   :  { %v1577_v55 = vpop.permute.xlu0 %1576 }
0x153a   :  { %v1579_v57 = vmul.f32 %v6918_v53, %v1577_v55 }
0x153c   :  { %1581 = vrot.lane.b32.xlu1 %v1579_v57, %s7480_s21  ;;  %v6159_v57 = vld [vmem:[#allocation9] ss:$0 sm:$0xff] }
0x1540   :  { %1004 = vrot.lane.b32.xlu1 %v1003_v58, %s7482_s25  ;;  %v1688_v58 = vcombine.low %v6159_v57, %v6159_v57 }
0x1544   :  { %1174 = vrot.lane.b32.xlu1 %v1173_v59, %s7482_s25  ;;  %v1695_v59 = vrot.slane %v1688_v58, %v7745_v56 }
0x1548   :  { %1344 = vrot.lane.b32.xlu1 %v1343_v60, %s7482_s25  ;;  %v1696_v60 = vcombine.low %v1695_v59, %v1695_v59 }
0x154c   :  { %1514 = vrot.lane.b32.xlu1 %v1513_v43, %s7482_s25 }
0x15ae   :  { %v1582_v62 = vpop.permute.xlu1 %1581 }
0x15af   :  { %v1584_v63 = vadd.f32 %v1582_v62, %v1574_v61 }
0x15b1   :  { %6919 = vtanh.f32 %v1584_v63 }
0x15b2   :  { %v1005_v1 = vpop.permute.xlu1 %1004 }
0x15b3   :  { %1008 = vst.msk [vmem:[#allocation2] sm:$0x3] %vm1007_vm8, %v1005_v1 }
0x15b6   :  { %v1175_v54 = vpop.permute.xlu1 %1174 }
0x15b7   :  { %1178 = vst.msk [vmem:[#allocation2 + $0x4] sm:$0x3] %vm1007_vm8, %v1175_v54 }
0x15ba   :  { %v1345_v47 = vpop.permute.xlu1 %1344  ;;  %v1606_v33 = vld [vmem:[#allocation2] sm:$0x3] }
0x15bb   :  { %v6920_v2 = vpop.eup %6919  ;;  %1348 = vst.msk [vmem:[#allocation2 + $0x8] sm:$0x3] %vm1007_vm8, %v1345_v47 }
0x15bc   :  { %1587 = vrot.lane.b32.xlu0 %v6920_v2, %s7481_s17 }
0x15be   :  { %v1515_v9 = vpop.permute.xlu1 %1514  ;;  %v1608_v30 = vld [vmem:[#allocation2 + $0x4] sm:$0x3] }
0x15bf   :  { %1518 = vst.msk [vmem:[#allocation2 + $0xc] sm:$0x3] %vm1007_vm8, %v1515_v9 }
0x15c0   :  { %1089 = vrot.lane.b32.xlu0 %v1088_v6, %s7482_s25 }
0x15c2   :  { %v1610_v35 = vld [vmem:[#allocation2 + $0x8] sm:$0x3] }
0x15c4   :  { %1259 = vrot.lane.b32.xlu0 %v1258_v10, %s7482_s25 }
0x15c6   :  { %v1612_v38 = vld [vmem:[#allocation2 + $0xc] sm:$0x3] }
0x15c8   :  { %1429 = vrot.lane.b32.xlu0 %v1428_v12, %s7482_s25 }
0x162e   :  { %v1588_v23 = vpop.permute.xlu0 %1587 }
0x162f   :  { %v1590_v11 = vmul.f32 %v6918_v53, %v1588_v23  ;;  %v1824_v53 = vpop.f32.mrb[26].mxu0 }
0x1630   :  { %v6502_v55 = vpop.f32.mrb[27].mxu0 }
0x1631   :  { %v1598_v22 = vrot.slane %v1590_v11, %v7745_v56 }
0x1632   :  { %v1090_v25 = vpop.permute.xlu0 %1089 }
0x1633   :  { %1093 = vst.msk [vmem:[#allocation2 + $0x2] sm:$0x3] %vm1007_vm8, %v1090_v25  ;;  %1599 = vrot.lane.b32.xlu0 %v1598_v22, %s7482_s25 }
0x1636   :  { %v1260_v26 = vpop.permute.xlu0 %1259 }
0x1637   :  { %1263 = vst.msk [vmem:[#allocation2 + $0x6] sm:$0x3] %vm1007_vm8, %v1260_v26 }
0x163a   :  { %v1430_v19 = vpop.permute.xlu0 %1429  ;;  %v1607_v29 = vld [vmem:[#allocation2 + $0x2] sm:$0x3] }
0x163b   :  { %1433 = vst.msk [vmem:[#allocation2 + $0xa] sm:$0x3] %vm1007_vm8, %v1430_v19  ;;  %v6160_v34 = vpack.c.bf16 %v1607_v29, %v1606_v33 }
0x163d   :  { %v1649_v41 = vrot.slane %v6160_v34, %v7687_v13 }
0x163e   :  { %v1609_v28 = vld [vmem:[#allocation2 + $0x6] sm:$0x3] }
0x163f   :  { %v6161_v32 = vpack.c.bf16 %v1609_v28, %v1608_v30 }
0x1641   :  { %v1656_v37 = vrot.slane %v6161_v32, %v7687_v13 }
0x1642   :  { %v1611_v15 = vld [vmem:[#allocation2 + $0xa] sm:$0x3] }
0x1643   :  { %v6162_v36 = vpack.c.bf16 %v1611_v15, %v1610_v35  ;;  %v1671_v46 = vcombine.low %v1649_v41, %v1656_v37 }
0x1645   :  { %v1663_v42 = vrot.slane %v6162_v36, %v7687_v13  ;;  %v1679_v49 = vrot.slane %v1671_v46, %v7687_v13 }
0x16a5   :  { %v1600_v27 = vpop.permute.xlu0 %1599 }
0x16a6   :  { %1603 = vst.msk [vmem:[#allocation2 + $0xe] sm:$0x3] %vm1007_vm8, %v1600_v27 }
0x16ad   :  { %v1613_v39 = vld [vmem:[#allocation2 + $0xe] sm:$0x3] }
0x16ae   :  { %v6163_v40 = vpack.c.bf16 %v1613_v39, %v1612_v38 }
0x16b0   :  { %v1670_v44 = vrot.slane %v6163_v40, %v7687_v13 }
0x16b2   :  { %v1672_v48 = vcombine.low %v1663_v42, %v1670_v44 }
0x16b4   :  { %v1686_v14 = vrot.slane %v1672_v48, %v7687_v13 }
0x16b6   :  { %v1687_v50 = vcombine.low %v1679_v49, %v1686_v14 }
0x16b8   :  { %6494 = vmatmul.mubr.msk.bf16.vlgmr.msra.gmra.mrb[24].mxu1 %vm927_vm7, %v1687_v50 }
0x16b9   :  { %6504 = vmatpush3.bf16.msra.mxu1 %v7908_v21  ;;  %6505 = vmatprep.mubr.msk.bf16.mxu1 %vm7476_vm4, %v7475_v24 }
0x16ba   :  { %6515 = vmatprep.subr.bf16.mxu1 %v7475_v24 }
0x178b   :  { %v1735_v43 = vpop.f32.mrb[24].mxu1 }
0x178c   :  { %v7936_v61 = vadd.f32 %v1735_v43, %v1696_v60  ;;  %v6495_v62 = vpop.f32.mrb[25].mxu1 }
0x178d   :  { %v1738_v63 = vpop.f32.mrb[26].mxu1 }
0x178e   :  { %v7938_v1 = vadd.f32 %v1738_v63, %v1696_v60  ;;  %v1751_v54 = vrot.slane %v7936_v61, %v7745_v56  ;;  %v6496_v47 = vpop.f32.mrb[27].mxu1  ;;  %v1744_v50 = vcombine.high %v7936_v61, %v7936_v61 }
0x1790   :  { %v1827_v2 = vadd.f32 %v1821_v51, %v1751_v54  ;;  %v1759_v27 = vcombine.high %v1751_v54, %v1751_v54  ;;  %v1758_v51 = vrot.slane %v1744_v50, %v7745_v56 }
0x1792   :  { %6921 = vtanh.f32 %v1827_v2  ;;  %v6165_v9 = vmul.f32 -1.442695, %v1827_v2 }
0x1794   :  { %6923 = vpow2.f32 %v6165_v9 }
0x179c   :  { %v6922_v6 = vpop.eup %6921 }
0x179d   :  { %1837 = vrot.lane.b32.xlu1 %v6922_v6, %s7479_s5 }
0x179e   :  { %v6924_v10 = vpop.eup %6923 }
0x179f   :  { %v1831_v12 = vadd.f32 1.0, %v6924_v10 }
0x17a1   :  { %6925 = vrcp.f32 %v1831_v12 }
0x17ab   :  { %v6926_v16 = vpop.eup %6925 }
0x17ac   :  { %v1835_v20 = vmul.f32 0.0, %v6926_v16 }
0x180f   :  { %v1838_v17 = vpop.permute.xlu1 %1837 }
0x1810   :  { %v1840_v18 = vmul.f32 %v6926_v16, %v1838_v17 }
0x1812   :  { %1842 = vrot.lane.b32.xlu0 %v1840_v18, %s7480_s21  ;;  %v1760_v18 = vcombine.high %v1758_v51, %v1758_v51 }
0x1884   :  { %v1843_v31 = vpop.permute.xlu0 %1842 }
0x1885   :  { %v1845_v23 = vadd.f32 %v1843_v31, %v1835_v20 }
0x1887   :  { %6927 = vtanh.f32 %v1845_v23 }
0x1891   :  { %v6928_v11 = vpop.eup %6927 }
0x1892   :  { %1848 = vrot.lane.b32.xlu1 %v6928_v11, %s7481_s17 }
0x1904   :  { %v1849_v22 = vpop.permute.xlu1 %1848 }
0x1905   :  { %v7945_v25 = vmul.f32 %v6926_v16, %v1849_v22 }
0x1907   :  { %v1864_v26 = vpack.c.bf16 %v7945_v25, %v7945_v25 }
0x1909   :  { %1866 = vrot.lane.b32.xlu0 %v1864_v26, %s7482_s25 }
0x197b   :  { %v1867_v19 = vpop.permute.xlu0 %1866 }
0x197c   :  { %6506 = vmatmul.mubr.msk.bf16.vlgmr.msra.gmra.mrb[28].mxu1 %vm927_vm7, %v1867_v19 }
0x197d   :  { %6516 = vmatpush3.bf16.msra.mxu1 %v7908_v21  ;;  %6517 = vmatprep.mubr.msk.bf16.mxu1 %vm7476_vm4, %v7475_v24 }
0x197e   :  { %6527 = vmatprep.subr.bf16.mxu1 %v7475_v24 }
0x1a4f   :  { %v1905_v28 = vpop.f32.mrb[28].mxu1 }
0x1a50   :  { %v1911_v29 = vadd.f32 %v1905_v28, %v1759_v27  ;;  %v6507_v30 = vpop.f32.mrb[29].mxu1 }
0x1a51   :  { %v1908_v32 = vpop.f32.mrb[30].mxu1 }
0x1a52   :  { %6929 = vtanh.f32 %v1911_v29  ;;  %v6508_v33 = vpop.f32.mrb[31].mxu1  ;;  %v6167_v34 = vmul.f32 -1.442695, %v1911_v29 }
0x1a54   :  { %6931 = vpow2.f32 %v6167_v34 }
0x1a5c   :  { %v6930_v15 = vpop.eup %6929 }
0x1a5d   :  { %1921 = vrot.lane.b32.xlu1 %v6930_v15, %s7479_s5 }
0x1a5e   :  { %v6932_v35 = vpop.eup %6931 }
0x1a5f   :  { %v1915_v36 = vadd.f32 1.0, %v6932_v35 }
0x1a61   :  { %6933 = vrcp.f32 %v1915_v36 }
0x1a6b   :  { %v6934_v37 = vpop.eup %6933 }
0x1a6c   :  { %v1919_v40 = vmul.f32 %v6934_v37, %v1845_v23 }
0x1acf   :  { %v1922_v38 = vpop.permute.xlu1 %1921 }
0x1ad0   :  { %v1924_v39 = vmul.f32 %v6934_v37, %v1922_v38 }
0x1ad2   :  { %1926 = vrot.lane.b32.xlu0 %v1924_v39, %s7480_s21 }
0x1b44   :  { %v1927_v41 = vpop.permute.xlu0 %1926 }
0x1b45   :  { %v1929_v42 = vadd.f32 %v1927_v41, %v1919_v40  ;;  %v1768_v40 = vrot.slane %v7938_v1, %v7745_v56 }
0x1b47   :  { %6935 = vtanh.f32 %v1929_v42 }
0x1b51   :  { %v6936_v44 = vpop.eup %6935 }
0x1b52   :  { %1932 = vrot.lane.b32.xlu1 %v6936_v44, %s7481_s17 }
0x1bc4   :  { %v1933_v46 = vpop.permute.xlu1 %1932 }
0x1bc5   :  { %v7958_v48 = vmul.f32 %v6934_v37, %v1933_v46 }
0x1bc7   :  { %v1948_v49 = vpack.c.bf16 %v7958_v48, %v7958_v48 }
0x1bc9   :  { %1950 = vrot.lane.b32.xlu0 %v1948_v49, %s7482_s25 }
0x1c3b   :  { %v1951_v14 = vpop.permute.xlu0 %1950 }
0x1c3c   :  { %6512 = vmatmul.mubr.msk.bf16.vlgmr.msra.gmra.mrb[28].mxu0 %vm927_vm7, %v1951_v14 }
0x1c3d   :  { %6522 = vmatpush3.bf16.msra.mxu0 %v7908_v21  ;;  %6523 = vmatprep.mubr.msk.bf16.mxu0 %vm7476_vm4, %v7475_v24 }
0x1c3e   :  { %6533 = vmatprep.subr.bf16.mxu0 %v7475_v24 }
0x1d0f   :  { %v1989_v52 = vpop.f32.mrb[28].mxu0 }
0x1d10   :  { %v1995_v53 = vadd.f32 %v1989_v52, %v1758_v51  ;;  %v6513_v55 = vpop.f32.mrb[29].mxu0 }
0x1d11   :  { %v1992_v57 = vpop.f32.mrb[30].mxu0 }
0x1d12   :  { %6937 = vtanh.f32 %v1995_v53  ;;  %v6514_v58 = vpop.f32.mrb[31].mxu0  ;;  %v6169_v60 = vmul.f32 -1.442695, %v1995_v53 }
0x1d14   :  { %6939 = vpow2.f32 %v6169_v60 }
0x1d1c   :  { %v6938_v59 = vpop.eup %6937 }
0x1d1d   :  { %2005 = vrot.lane.b32.xlu1 %v6938_v59, %s7479_s5 }
0x1d1e   :  { %v6940_v43 = vpop.eup %6939 }
0x1d1f   :  { %v1999_v62 = vadd.f32 1.0, %v6940_v43 }
0x1d21   :  { %6941 = vrcp.f32 %v1999_v62 }
0x1d2b   :  { %v6942_v63 = vpop.eup %6941 }
0x1d2c   :  { %v2003_v61 = vmul.f32 %v6942_v63, %v1929_v42 }
0x1d8f   :  { %v2006_v54 = vpop.permute.xlu1 %2005 }
0x1d90   :  { %v2008_v47 = vmul.f32 %v6942_v63, %v2006_v54 }
0x1d92   :  { %2010 = vrot.lane.b32.xlu0 %v2008_v47, %s7480_s21 }
0x1e04   :  { %v2011_v2 = vpop.permute.xlu0 %2010 }
0x1e05   :  { %v2013_v6 = vadd.f32 %v2011_v2, %v2003_v61  ;;  %v1776_v61 = vcombine.high %v1768_v40, %v1768_v40 }
0x1e07   :  { %6943 = vtanh.f32 %v2013_v6 }
0x1e11   :  { %v6944_v9 = vpop.eup %6943 }
0x1e12   :  { %2016 = vrot.lane.b32.xlu1 %v6944_v9, %s7481_s17 }
0x1e84   :  { %v2017_v10 = vpop.permute.xlu1 %2016 }
0x1e85   :  { %v7974_v12 = vmul.f32 %v6942_v63, %v2017_v10 }
0x1e87   :  { %v2032_v16 = vpack.c.bf16 %v7974_v12, %v7974_v12 }
0x1e89   :  { %2034 = vrot.lane.b32.xlu0 %v2032_v16, %s7482_s25 }
0x1efb   :  { %v2035_v17 = vpop.permute.xlu0 %2034 }
0x1efc   :  { %6518 = vmatmul.mubr.msk.bf16.vlgmr.msra.gmra.mrb[32].mxu1 %vm927_vm7, %v2035_v17 }
0x1efd   :  { %6528 = vmatpush3.bf16.msra.mxu1 %v7908_v21  ;;  %6529 = vmatprep.mubr.msk.bf16.mxu1 %vm7476_vm4, %v7475_v24 }
0x1efe   :  { %6539 = vmatprep.subr.bf16.mxu1 %v7475_v24 }
0x1fcf   :  { %v2073_v20 = vpop.f32.mrb[32].mxu1 }
0x1fd0   :  { %v2079_v31 = vadd.f32 %v2073_v20, %v1760_v18  ;;  %v6519_v23 = vpop.f32.mrb[33].mxu1 }
0x1fd1   :  { %v2076_v11 = vpop.f32.mrb[34].mxu1 }
0x1fd2   :  { %6945 = vtanh.f32 %v2079_v31  ;;  %v6520_v22 = vpop.f32.mrb[35].mxu1  ;;  %v6171_v19 = vmul.f32 -1.442695, %v2079_v31 }
0x1fd4   :  { %6947 = vpow2.f32 %v6171_v19 }
0x1fdc   :  { %v6946_v26 = vpop.eup %6945 }
0x1fdd   :  { %2089 = vrot.lane.b32.xlu1 %v6946_v26, %s7479_s5 }
0x1fde   :  { %v6948_v27 = vpop.eup %6947 }
0x1fdf   :  { %v2083_v28 = vadd.f32 1.0, %v6948_v27 }
0x1fe1   :  { %6949 = vrcp.f32 %v2083_v28 }
0x1feb   :  { %v6950_v29 = vpop.eup %6949 }
0x1fec   :  { %v2087_v33 = vmul.f32 %v6950_v29, %v2013_v6 }
0x204f   :  { %v2090_v30 = vpop.permute.xlu1 %2089 }
0x2050   :  { %v2092_v32 = vmul.f32 %v6950_v29, %v2090_v30 }
0x2052   :  { %2094 = vrot.lane.b32.xlu0 %v2092_v32, %s7480_s21 }
0x20c4   :  { %v2095_v15 = vpop.permute.xlu0 %2094 }
0x20c5   :  { %v2097_v34 = vadd.f32 %v2095_v15, %v2087_v33  ;;  %v1761_v33 = vcombine.high %v7938_v1, %v7938_v1 }
0x20c7   :  { %6951 = vtanh.f32 %v2097_v34  ;;  %v1775_v15 = vrot.slane %v1761_v33, %v7745_v56  ;;  %v2463_v33 = vld [vmem:[%s8860_s8 + $0x8] sm:$0xff] }
0x20d1   :  { %v6952_v35 = vpop.eup %6951 }
0x20d2   :  { %2100 = vrot.lane.b32.xlu1 %v6952_v35, %s7481_s17 }
0x2144   :  { %v2101_v36 = vpop.permute.xlu1 %2100 }
0x2145   :  { %v7987_v37 = vmul.f32 %v6950_v29, %v2101_v36 }
0x2147   :  { %v2116_v38 = vpack.c.bf16 %v7987_v37, %v7987_v37 }
0x2149   :  { %2118 = vrot.lane.b32.xlu0 %v2116_v38, %s7482_s25 }
0x21bb   :  { %v2119_v39 = vpop.permute.xlu0 %2118 }
0x21bc   :  { %6524 = vmatmul.mubr.msk.bf16.vlgmr.msra.gmra.mrb[32].mxu0 %vm927_vm7, %v2119_v39 }
0x21bd   :  { %6534 = vmatpush3.bf16.msra.mxu0 %v7908_v21  ;;  %6535 = vmatprep.mubr.msk.bf16.mxu0 %vm7476_vm4, %v7475_v24 }
0x21be   :  { %6545 = vmatprep.subr.bf16.mxu0 %v7475_v24 }
0x228f   :  { %v2157_v41 = vpop.f32.mrb[32].mxu0 }
0x2290   :  { %v2163_v42 = vadd.f32 %v2157_v41, %v1768_v40  ;;  %v6525_v44 = vpop.f32.mrb[33].mxu0 }
0x2291   :  { %v2160_v46 = vpop.f32.mrb[34].mxu0 }
0x2292   :  { %6953 = vtanh.f32 %v2163_v42  ;;  %v6526_v49 = vpop.f32.mrb[35].mxu0  ;;  %v6173_v50 = vmul.f32 -1.442695, %v2163_v42 }
0x2294   :  { %6955 = vpow2.f32 %v6173_v50 }
0x229c   :  { %v6954_v14 = vpop.eup %6953 }
0x229d   :  { %2173 = vrot.lane.b32.xlu1 %v6954_v14, %s7479_s5 }
0x229e   :  { %v6956_v51 = vpop.eup %6955 }
0x229f   :  { %v2167_v52 = vadd.f32 1.0, %v6956_v51 }
0x22a1   :  { %6957 = vrcp.f32 %v2167_v52 }
0x22ab   :  { %v6958_v53 = vpop.eup %6957 }
0x22ac   :  { %v2171_v58 = vmul.f32 %v6958_v53, %v2097_v34 }
0x230f   :  { %v2174_v55 = vpop.permute.xlu1 %2173 }
0x2310   :  { %v2176_v57 = vmul.f32 %v6958_v53, %v2174_v55 }
0x2312   :  { %2178 = vrot.lane.b32.xlu0 %v2176_v57, %s7480_s21 }
0x2384   :  { %v2179_v59 = vpop.permute.xlu0 %2178 }
0x2385   :  { %v2181_v60 = vadd.f32 %v2179_v59, %v2171_v58  ;;  %v1777_v59 = vcombine.high %v1775_v15, %v1775_v15 }
0x2387   :  { %6959 = vtanh.f32 %v2181_v60 }
0x2391   :  { %v6960_v43 = vpop.eup %6959 }
0x2392   :  { %2184 = vrot.lane.b32.xlu1 %v6960_v43, %s7481_s17 }
0x2404   :  { %v2185_v62 = vpop.permute.xlu1 %2184 }
0x2405   :  { %v8002_v63 = vmul.f32 %v6958_v53, %v2185_v62 }
0x2407   :  { %v2200_v54 = vpack.c.bf16 %v8002_v63, %v8002_v63 }
0x2409   :  { %2202 = vrot.lane.b32.xlu0 %v2200_v54, %s7482_s25 }
0x247b   :  { %v2203_v47 = vpop.permute.xlu0 %2202 }
0x247c   :  { %6530 = vmatmul.mubr.msk.bf16.vlgmr.msra.gmra.mrb[36].mxu1 %vm927_vm7, %v2203_v47 }
0x247d   :  { %6540 = vmatpush3.bf16.msra.mxu1 %v7908_v21  ;;  %6541 = vmatprep.mubr.msk.bf16.mxu1 %vm7476_vm4, %v7475_v24 }
0x247e   :  { %6551 = vmatprep.subr.bf16.mxu1 %v7475_v24 }
0x254f   :  { %v2241_v2 = vpop.f32.mrb[36].mxu1 }
0x2550   :  { %v2247_v6 = vadd.f32 %v2241_v2, %v1776_v61  ;;  %v6531_v9 = vpop.f32.mrb[37].mxu1 }
0x2551   :  { %v2244_v10 = vpop.f32.mrb[38].mxu1 }
0x2552   :  { %6961 = vtanh.f32 %v2247_v6  ;;  %v6532_v16 = vpop.f32.mrb[39].mxu1  ;;  %v6175_v18 = vmul.f32 -1.442695, %v2247_v6 }
0x2554   :  { %6963 = vpow2.f32 %v6175_v18  ;;  %v1859_v18 = vrot.slane %v7945_v25, %v7745_v56 }
0x255c   :  { %v6962_v17 = vpop.eup %6961 }
0x255d   :  { %2257 = vrot.lane.b32.xlu1 %v6962_v17, %s7479_s5 }
0x255e   :  { %v6964_v20 = vpop.eup %6963 }
0x255f   :  { %v2251_v31 = vadd.f32 1.0, %v6964_v20  ;;  %v2027_v20 = vrot.slane %v7974_v12, %v7745_v56 }
0x2561   :  { %6965 = vrcp.f32 %v2251_v31  ;;  %v2195_v31 = vrot.slane %v8002_v63, %v7745_v56 }
0x256b   :  { %v6966_v21 = vpop.eup %6965 }
0x256c   :  { %v2255_v22 = vmul.f32 %v6966_v21, %v2181_v60 }
0x25cf   :  { %v2258_v23 = vpop.permute.xlu1 %2257 }
0x25d0   :  { %v2260_v11 = vmul.f32 %v6966_v21, %v2258_v23 }
0x25d2   :  { %2262 = vrot.lane.b32.xlu0 %v2260_v11, %s7480_s21 }
0x2644   :  { %v2263_v26 = vpop.permute.xlu0 %2262 }
0x2645   :  { %v2265_v19 = vadd.f32 %v2263_v26, %v2255_v22 }
0x2647   :  { %6967 = vtanh.f32 %v2265_v19 }
0x2651   :  { %v6968_v27 = vpop.eup %6967 }
0x2652   :  { %2268 = vrot.lane.b32.xlu1 %v6968_v27, %s7481_s17 }
0x26c4   :  { %v2269_v28 = vpop.permute.xlu1 %2268 }
0x26c5   :  { %v8015_v29 = vmul.f32 %v6966_v21, %v2269_v28  ;;  %v2111_v28 = vrot.slane %v7987_v37, %v7745_v56 }
0x26c7   :  { %v2284_v30 = vpack.c.bf16 %v8015_v29, %v8015_v29 }
0x26c9   :  { %2286 = vrot.lane.b32.xlu0 %v2284_v30, %s7482_s25  ;;  %v2279_v30 = vrot.slane %v8015_v29, %v7745_v56 }
0x273b   :  { %v2287_v32 = vpop.permute.xlu0 %2286 }
0x273c   :  { %6536 = vmatmul.mubr.msk.bf16.vlgmr.msra.gmra.mrb[36].mxu0 %vm927_vm7, %v2287_v32  ;;  %v2462_v32 = vld [vmem:[%s8860_s8] sm:$0xff] }
0x273d   :  { %6547 = vmatprep.mubr.msk.bf16.mxu0 %vm7476_vm4, %v7475_v24 }
0x280f   :  { %v2325_v34 = vpop.f32.mrb[36].mxu0 }
0x2810   :  { %v2331_v35 = vadd.f32 %v2325_v34, %v1775_v15  ;;  %v6537_v36 = vpop.f32.mrb[37].mxu0  ;;  %v2452_v15 = vld [vmem:[%s8861_s14] sm:$0xff]  ;;  %v2472_v34 = vpack.c.bf16 %v2463_v33, %v2462_v32 }
0x2811   :  { %v2328_v38 = vpop.f32.mrb[38].mxu0 }
0x2812   :  { %6969 = vtanh.f32 %v2331_v35  ;;  %v6538_v39 = vpop.f32.mrb[39].mxu0  ;;  %v6177_v41 = vmul.f32 -1.442695, %v2331_v35  ;;  %6546 = vmatpush3.bf16.msra.mxu0 %v2472_v34 }
0x2813   :  { %6557 = vmatprep.subr.bf16.mxu0 %v7475_v24 }
0x2814   :  { %6971 = vpow2.f32 %v6177_v41 }
0x281c   :  { %v6970_v40 = vpop.eup %6969 }
0x281d   :  { %2341 = vrot.lane.b32.xlu1 %v6970_v40, %s7479_s5 }
0x281e   :  { %v6972_v42 = vpop.eup %6971 }
0x281f   :  { %v2335_v44 = vadd.f32 1.0, %v6972_v42 }
0x2821   :  { %6973 = vrcp.f32 %v2335_v44 }
0x282b   :  { %v6974_v46 = vpop.eup %6973 }
0x282c   :  { %v2339_v1 = vmul.f32 %v6974_v46, %v2265_v19  ;;  %v1943_v19 = vrot.slane %v7958_v48, %v7745_v56  ;;  %v2453_v48 = vld [vmem:[%s8861_s14 + $0x8] sm:$0xff] }
0x282d   :  { %v8064_v35 = vpack.c.bf16 %v2453_v48, %v2452_v15 }
0x288f   :  { %v2342_v49 = vpop.permute.xlu1 %2341 }
0x2890   :  { %v2344_v14 = vmul.f32 %v6974_v46, %v2342_v49 }
0x2892   :  { %2346 = vrot.lane.b32.xlu0 %v2344_v14, %s7480_s21 }
0x2904   :  { %v2347_v50 = vpop.permute.xlu0 %2346 }
0x2905   :  { %v2349_v51 = vadd.f32 %v2347_v50, %v2339_v1 }
0x2907   :  { %6975 = vtanh.f32 %v2349_v51 }
0x2911   :  { %v6976_v52 = vpop.eup %6975 }
0x2912   :  { %2352 = vrot.lane.b32.xlu1 %v6976_v52, %s7481_s17 }
0x2984   :  { %v2353_v53 = vpop.permute.xlu1 %2352 }
0x2985   :  { %v2355_v55 = vmul.f32 %v6974_v46, %v2353_v53 }
0x2987   :  { %v2368_v57 = vpack.c.bf16 %v2355_v55, %v2355_v55  ;;  %v2363_v21 = vrot.slane %v2355_v55, %v7745_v56 }
0x2989   :  { %2370 = vrot.lane.b32.xlu0 %v2368_v57, %s7482_s25 }
0x29fb   :  { %v2371_v58 = vpop.permute.xlu0 %2370 }
0x29fc   :  { %6542 = vmatmul.mubr.msk.bf16.vlgmr.msra.gmra.mrb[40].mxu1 %vm927_vm7, %v2371_v58 }
0x29fd   :  { %6553 = vmatprep.mubr.msk.bf16.mxu1 %vm7476_vm4, %v7475_v24  ;;  %6552 = vmatpush3.bf16.msra.mxu1 %v8064_v35 }
0x29fe   :  { %6563 = vmatprep.subr.bf16.mxu1 %v7475_v24 }
0x2a04   :  { %6554 = vmatmul.mubr.bf16.vlgmr.msra.gmra.mrb[44].mxu1 %v7477_v45 }
0x2a05   :  { %6564 = vmatpush3.bf16.msra.mxu1 %v8064_v35  ;;  %6565 = vmatprep.mubr.msk.bf16.mxu1 %vm7476_vm4, %v7475_v24 }
0x2a06   :  { %6575 = vmatprep.subr.bf16.mxu1 %v7475_v24 }
0x2acf   :  { %v2409_v60 = vpop.f32.mrb[40].mxu1 }
0x2ad0   :  { %v2415_v43 = vadd.f32 %v2409_v60, %v1777_v59  ;;  %v6543_v62 = vpop.f32.mrb[41].mxu1 }
0x2ad1   :  { %v2412_v54 = vpop.f32.mrb[42].mxu1 }
0x2ad2   :  { %6977 = vtanh.f32 %v2415_v43  ;;  %v6544_v47 = vpop.f32.mrb[43].mxu1  ;;  %v6179_v2 = vmul.f32 -1.442695, %v2415_v43 }
0x2ad4   :  { %6979 = vpow2.f32 %v6179_v2 }
0x2adc   :  { %v6978_v61 = vpop.eup %6977 }
0x2add   :  { %2425 = vrot.lane.b32.xlu1 %v6978_v61, %s7479_s5 }
0x2ade   :  { %v6980_v6 = vpop.eup %6979 }
0x2adf   :  { %v2419_v9 = vadd.f32 1.0, %v6980_v6  ;;  %v2669_v6 = vpop.f32.mrb[44].mxu1 }
0x2ae1   :  { %6981 = vrcp.f32 %v2419_v9  ;;  %v6555_v9 = vpop.f32.mrb[45].mxu1 }
0x2aeb   :  { %v6982_v10 = vpop.eup %6981 }
0x2aec   :  { %v2423_v23 = vmul.f32 %v6982_v10, %v2349_v51 }
0x2b4f   :  { %v2426_v16 = vpop.permute.xlu1 %2425 }
0x2b50   :  { %v2428_v17 = vmul.f32 %v6982_v10, %v2426_v16 }
0x2b52   :  { %2430 = vrot.lane.b32.xlu0 %v2428_v17, %s7480_s21  ;;  %v6180_v17 = vld [vmem:[#allocation11] ss:$0 sm:$0xff] }
0x2b56   :  { %1860 = vrot.lane.b32.xlu0 %v1859_v18, %s7482_s25  ;;  %v2536_v18 = vcombine.low %v6180_v17, %v6180_v17 }
0x2b5a   :  { %2028 = vrot.lane.b32.xlu0 %v2027_v20, %s7482_s25  ;;  %v2543_v20 = vrot.slane %v2536_v18, %v7745_v56 }
0x2b5e   :  { %2196 = vrot.lane.b32.xlu0 %v2195_v31, %s7482_s25  ;;  %v2544_v31 = vcombine.low %v2543_v20, %v2543_v20 }
0x2b62   :  { %2364 = vrot.lane.b32.xlu0 %v2363_v21, %s7482_s25 }
0x2bc4   :  { %v2431_v11 = vpop.permute.xlu0 %2430 }
0x2bc5   :  { %v2433_v22 = vadd.f32 %v2431_v11, %v2423_v23 }
0x2bc7   :  { %6983 = vtanh.f32 %v2433_v22 }
0x2bc8   :  { %v1861_v25 = vpop.permute.xlu0 %1860 }
0x2bc9   :  { %1863 = vst.msk [vmem:[#allocation2] sm:$0x3] %vm1007_vm8, %v1861_v25 }
0x2bcc   :  { %v2029_v12 = vpop.permute.xlu0 %2028 }
0x2bcd   :  { %2031 = vst.msk [vmem:[#allocation2 + $0x4] sm:$0x3] %vm1007_vm8, %v2029_v12 }
0x2bd0   :  { %v2197_v63 = vpop.permute.xlu0 %2196  ;;  %v2454_v14 = vld [vmem:[#allocation2] sm:$0x3] }
0x2bd1   :  { %v6984_v26 = vpop.eup %6983  ;;  %2199 = vst.msk [vmem:[#allocation2 + $0x8] sm:$0x3] %vm1007_vm8, %v2197_v63 }
0x2bd2   :  { %2436 = vrot.lane.b32.xlu1 %v6984_v26, %s7481_s17 }
0x2bd4   :  { %v2365_v27 = vpop.permute.xlu0 %2364  ;;  %v2456_v46 = vld [vmem:[#allocation2 + $0x4] sm:$0x3] }
0x2bd5   :  { %2367 = vst.msk [vmem:[#allocation2 + $0xc] sm:$0x3] %vm1007_vm8, %v2365_v27 }
0x2bd6   :  { %1944 = vrot.lane.b32.xlu1 %v1943_v19, %s7482_s25 }
0x2bd8   :  { %v2458_v51 = vld [vmem:[#allocation2 + $0x8] sm:$0x3] }
0x2bda   :  { %2112 = vrot.lane.b32.xlu1 %v2111_v28, %s7482_s25 }
0x2bdc   :  { %v2460_v55 = vld [vmem:[#allocation2 + $0xc] sm:$0x3] }
0x2bde   :  { %2280 = vrot.lane.b32.xlu1 %v2279_v30, %s7482_s25 }
0x2c44   :  { %v2437_v37 = vpop.permute.xlu1 %2436 }
0x2c45   :  { %v2439_v29 = vmul.f32 %v6982_v10, %v2437_v37  ;;  %v2672_v10 = vpop.f32.mrb[46].mxu1 }
0x2c46   :  { %v6556_v16 = vpop.f32.mrb[47].mxu1 }
0x2c47   :  { %v2447_v36 = vrot.slane %v2439_v29, %v7745_v56 }
0x2c48   :  { %v1945_v38 = vpop.permute.xlu1 %1944 }
0x2c49   :  { %1947 = vst.msk [vmem:[#allocation2 + $0x2] sm:$0x3] %vm1007_vm8, %v1945_v38  ;;  %2448 = vrot.lane.b32.xlu1 %v2447_v36, %s7482_s25 }
0x2c4c   :  { %v2113_v39 = vpop.permute.xlu1 %2112 }
0x2c4d   :  { %2115 = vst.msk [vmem:[#allocation2 + $0x6] sm:$0x3] %vm1007_vm8, %v2113_v39 }
0x2c50   :  { %v2281_v40 = vpop.permute.xlu1 %2280  ;;  %v2455_v44 = vld [vmem:[#allocation2 + $0x2] sm:$0x3] }
0x2c51   :  { %2283 = vst.msk [vmem:[#allocation2 + $0xa] sm:$0x3] %vm1007_vm8, %v2281_v40  ;;  %v6181_v50 = vpack.c.bf16 %v2455_v44, %v2454_v14 }
0x2c53   :  { %v2497_v59 = vrot.slane %v6181_v50, %v7687_v13 }
0x2c54   :  { %v2457_v42 = vld [vmem:[#allocation2 + $0x6] sm:$0x3] }
0x2c55   :  { %v6182_v49 = vpack.c.bf16 %v2457_v42, %v2456_v46 }
0x2c57   :  { %v2504_v53 = vrot.slane %v6182_v49, %v7687_v13 }
0x2c58   :  { %v2459_v1 = vld [vmem:[#allocation2 + $0xa] sm:$0x3] }
0x2c59   :  { %v6183_v52 = vpack.c.bf16 %v2459_v1, %v2458_v51  ;;  %v2519_v62 = vcombine.low %v2497_v59, %v2504_v53 }
0x2c5b   :  { %v2511_v60 = vrot.slane %v6183_v52, %v7687_v13  ;;  %v2527_v47 = vrot.slane %v2519_v62, %v7687_v13 }
0x2cbb   :  { %v2449_v41 = vpop.permute.xlu1 %2448 }
0x2cbc   :  { %2451 = vst.msk [vmem:[#allocation2 + $0xe] sm:$0x3] %vm1007_vm8, %v2449_v41 }
0x2cc3   :  { %v2461_v57 = vld [vmem:[#allocation2 + $0xe] sm:$0x3] }
0x2cc4   :  { %v6184_v58 = vpack.c.bf16 %v2461_v57, %v2460_v55 }
0x2cc6   :  { %v2518_v43 = vrot.slane %v6184_v58, %v7687_v13 }
0x2cc8   :  { %v2520_v54 = vcombine.low %v2511_v60, %v2518_v43 }
0x2cca   :  { %v2534_v61 = vrot.slane %v2520_v54, %v7687_v13 }
0x2ccc   :  { %v2535_v2 = vcombine.low %v2527_v47, %v2534_v61 }
0x2cce   :  { %6548 = vmatmul.mubr.msk.bf16.vlgmr.msra.gmra.mrb[40].mxu0 %vm927_vm7, %v2535_v2 }
0x2ccf   :  { %6558 = vmatpush3.bf16.msra.mxu0 %v8064_v35  ;;  %6559 = vmatprep.mubr.msk.bf16.mxu0 %vm7476_vm4, %v7475_v24 }
0x2cd0   :  { %6569 = vmatprep.subr.bf16.mxu0 %v7475_v24 }
0x2da1   :  { %v2583_v21 = vpop.f32.mrb[40].mxu0 }
0x2da2   :  { %v8092_v23 = vadd.f32 %v2583_v21, %v2544_v31  ;;  %v6549_v11 = vpop.f32.mrb[41].mxu0 }
0x2da3   :  { %v2586_v22 = vpop.f32.mrb[42].mxu0 }
0x2da4   :  { %v8094_v25 = vadd.f32 %v2586_v22, %v2544_v31  ;;  %v2599_v12 = vrot.slane %v8092_v23, %v7745_v56  ;;  %v6550_v63 = vpop.f32.mrb[43].mxu0  ;;  %v2592_v2 = vcombine.high %v8092_v23, %v8092_v23 }
0x2da6   :  { %v2675_v26 = vadd.f32 %v2669_v6, %v2599_v12  ;;  %v2607_v41 = vcombine.high %v2599_v12, %v2599_v12  ;;  %v2606_v6 = vrot.slane %v2592_v2, %v7745_v56 }
0x2da8   :  { %6985 = vtanh.f32 %v2675_v26  ;;  %v6186_v27 = vmul.f32 -1.442695, %v2675_v26 }
0x2daa   :  { %6987 = vpow2.f32 %v6186_v27 }
0x2db2   :  { %v6986_v19 = vpop.eup %6985 }
0x2db3   :  { %2685 = vrot.lane.b32.xlu0 %v6986_v19, %s7479_s5 }
0x2db4   :  { %v6988_v28 = vpop.eup %6987 }
0x2db5   :  { %v2679_v30 = vadd.f32 1.0, %v6988_v28 }
0x2db7   :  { %6989 = vrcp.f32 %v2679_v30 }
0x2dc1   :  { %v6990_v32 = vpop.eup %6989 }
0x2dc2   :  { %v2683_v34 = vmul.f32 0.0, %v6990_v32 }
0x2e25   :  { %v2686_v33 = vpop.permute.xlu0 %2685 }
0x2e26   :  { %v2688_v15 = vmul.f32 %v6990_v32, %v2686_v33 }
0x2e28   :  { %2690 = vrot.lane.b32.xlu1 %v2688_v15, %s7480_s21  ;;  %v2608_v15 = vcombine.high %v2606_v6, %v2606_v6 }
0x2e9a   :  { %v2691_v48 = vpop.permute.xlu1 %2690 }
0x2e9b   :  { %v2693_v37 = vadd.f32 %v2691_v48, %v2683_v34 }
0x2e9d   :  { %6991 = vtanh.f32 %v2693_v37 }
0x2ea7   :  { %v6992_v29 = vpop.eup %6991 }
0x2ea8   :  { %2696 = vrot.lane.b32.xlu0 %v6992_v29, %s7481_s17 }
0x2f1a   :  { %v2697_v36 = vpop.permute.xlu0 %2696 }
0x2f1b   :  { %v8101_v38 = vmul.f32 %v6990_v32, %v2697_v36 }
0x2f1d   :  { %v2712_v39 = vpack.c.bf16 %v8101_v38, %v8101_v38 }
0x2f1f   :  { %2714 = vrot.lane.b32.xlu1 %v2712_v39, %s7482_s25 }
0x2f91   :  { %v2715_v40 = vpop.permute.xlu1 %2714 }
0x2f92   :  { %6560 = vmatmul.mubr.msk.bf16.vlgmr.msra.gmra.mrb[44].mxu0 %vm927_vm7, %v2715_v40 }
0x2f93   :  { %6570 = vmatpush3.bf16.msra.mxu0 %v8064_v35  ;;  %6571 = vmatprep.mubr.msk.bf16.mxu0 %vm7476_vm4, %v7475_v24 }
0x2f94   :  { %6581 = vmatprep.subr.bf16.mxu0 %v7475_v24 }
0x3065   :  { %v2753_v42 = vpop.f32.mrb[44].mxu0 }
0x3066   :  { %v2759_v44 = vadd.f32 %v2753_v42, %v2607_v41  ;;  %v6561_v46 = vpop.f32.mrb[45].mxu0 }
0x3067   :  { %v2756_v49 = vpop.f32.mrb[46].mxu0 }
0x3068   :  { %6993 = vtanh.f32 %v2759_v44  ;;  %v6562_v14 = vpop.f32.mrb[47].mxu0  ;;  %v6188_v50 = vmul.f32 -1.442695, %v2759_v44 }
0x306a   :  { %6995 = vpow2.f32 %v6188_v50 }
0x3072   :  { %v6994_v1 = vpop.eup %6993 }
0x3073   :  { %2769 = vrot.lane.b32.xlu0 %v6994_v1, %s7479_s5 }
0x3074   :  { %v6996_v51 = vpop.eup %6995 }
0x3075   :  { %v2763_v52 = vadd.f32 1.0, %v6996_v51 }
0x3077   :  { %6997 = vrcp.f32 %v2763_v52 }
0x3081   :  { %v6998_v53 = vpop.eup %6997 }
0x3082   :  { %v2767_v58 = vmul.f32 %v6998_v53, %v2693_v37 }
0x30e5   :  { %v2770_v55 = vpop.permute.xlu0 %2769 }
0x30e6   :  { %v2772_v57 = vmul.f32 %v6998_v53, %v2770_v55 }
0x30e8   :  { %2774 = vrot.lane.b32.xlu1 %v2772_v57, %s7480_s21 }
0x315a   :  { %v2775_v59 = vpop.permute.xlu1 %2774 }
0x315b   :  { %v2777_v60 = vadd.f32 %v2775_v59, %v2767_v58  ;;  %v2616_v58 = vrot.slane %v8094_v25, %v7745_v56 }
0x315d   :  { %6999 = vtanh.f32 %v2777_v60 }
0x3167   :  { %v7000_v43 = vpop.eup %6999 }
0x3168   :  { %2780 = vrot.lane.b32.xlu0 %v7000_v43, %s7481_s17 }
0x31da   :  { %v2781_v62 = vpop.permute.xlu0 %2780 }
0x31db   :  { %v8114_v54 = vmul.f32 %v6998_v53, %v2781_v62 }
0x31dd   :  { %v2796_v47 = vpack.c.bf16 %v8114_v54, %v8114_v54 }
0x31df   :  { %2798 = vrot.lane.b32.xlu1 %v2796_v47, %s7482_s25 }
0x3251   :  { %v2799_v61 = vpop.permute.xlu1 %2798 }
0x3252   :  { %6566 = vmatmul.mubr.msk.bf16.vlgmr.msra.gmra.mrb[48].mxu1 %vm927_vm7, %v2799_v61 }
0x3253   :  { %6576 = vmatpush3.bf16.msra.mxu1 %v8064_v35  ;;  %6577 = vmatprep.mubr.msk.bf16.mxu1 %vm7476_vm4, %v7475_v24 }
0x3254   :  { %6587 = vmatprep.subr.bf16.mxu1 %v7475_v24 }
0x3325   :  { %v2837_v9 = vpop.f32.mrb[48].mxu1 }
0x3326   :  { %v2843_v10 = vadd.f32 %v2837_v9, %v2606_v6  ;;  %v6567_v16 = vpop.f32.mrb[49].mxu1 }
0x3327   :  { %v2840_v17 = vpop.f32.mrb[50].mxu1 }
0x3328   :  { %7001 = vtanh.f32 %v2843_v10  ;;  %v6568_v18 = vpop.f32.mrb[51].mxu1  ;;  %v6190_v31 = vmul.f32 -1.442695, %v2843_v10 }
0x332a   :  { %7003 = vpow2.f32 %v6190_v31 }
0x3332   :  { %v7002_v20 = vpop.eup %7001 }
0x3333   :  { %2853 = vrot.lane.b32.xlu0 %v7002_v20, %s7479_s5 }
0x3334   :  { %v7004_v21 = vpop.eup %7003 }
0x3335   :  { %v2847_v11 = vadd.f32 1.0, %v7004_v21 }
0x3337   :  { %7005 = vrcp.f32 %v2847_v11 }
0x3341   :  { %v7006_v22 = vpop.eup %7005 }
0x3342   :  { %v2851_v23 = vmul.f32 %v7006_v22, %v2777_v60 }
0x33a5   :  { %v2854_v12 = vpop.permute.xlu0 %2853 }
0x33a6   :  { %v2856_v63 = vmul.f32 %v7006_v22, %v2854_v12 }
0x33a8   :  { %2858 = vrot.lane.b32.xlu1 %v2856_v63, %s7480_s21 }
0x341a   :  { %v2859_v26 = vpop.permute.xlu1 %2858 }
0x341b   :  { %v2861_v19 = vadd.f32 %v2859_v26, %v2851_v23  ;;  %v2624_v23 = vcombine.high %v2616_v58, %v2616_v58 }
0x341d   :  { %7007 = vtanh.f32 %v2861_v19 }
0x3427   :  { %v7008_v27 = vpop.eup %7007 }
0x3428   :  { %2864 = vrot.lane.b32.xlu0 %v7008_v27, %s7481_s17 }
0x349a   :  { %v2865_v28 = vpop.permute.xlu0 %2864 }
0x349b   :  { %v8130_v30 = vmul.f32 %v7006_v22, %v2865_v28 }
0x349d   :  { %v2880_v32 = vpack.c.bf16 %v8130_v30, %v8130_v30 }
0x349f   :  { %2882 = vrot.lane.b32.xlu1 %v2880_v32, %s7482_s25 }
0x3511   :  { %v2883_v33 = vpop.permute.xlu1 %2882 }
0x3512   :  { %6572 = vmatmul.mubr.msk.bf16.vlgmr.msra.gmra.mrb[48].mxu0 %vm927_vm7, %v2883_v33 }
0x3513   :  { %6582 = vmatpush3.bf16.msra.mxu0 %v8064_v35  ;;  %6583 = vmatprep.mubr.msk.bf16.mxu0 %vm7476_vm4, %v7475_v24 }
0x3514   :  { %6593 = vmatprep.subr.bf16.mxu0 %v7475_v24 }
0x35e5   :  { %v2921_v34 = vpop.f32.mrb[48].mxu0 }
0x35e6   :  { %v2927_v48 = vadd.f32 %v2921_v34, %v2608_v15  ;;  %v6573_v37 = vpop.f32.mrb[49].mxu0 }
0x35e7   :  { %v2924_v29 = vpop.f32.mrb[50].mxu0 }
0x35e8   :  { %7009 = vtanh.f32 %v2927_v48  ;;  %v6574_v36 = vpop.f32.mrb[51].mxu0  ;;  %v6192_v40 = vmul.f32 -1.442695, %v2927_v48 }
0x35ea   :  { %7011 = vpow2.f32 %v6192_v40 }
0x35f2   :  { %v7010_v39 = vpop.eup %7009 }
0x35f3   :  { %2937 = vrot.lane.b32.xlu0 %v7010_v39, %s7479_s5 }
0x35f4   :  { %v7012_v41 = vpop.eup %7011 }
0x35f5   :  { %v2931_v42 = vadd.f32 1.0, %v7012_v41 }
0x35f7   :  { %7013 = vrcp.f32 %v2931_v42 }
0x3601   :  { %v7014_v44 = vpop.eup %7013 }
0x3602   :  { %v2935_v14 = vmul.f32 %v7014_v44, %v2861_v19 }
0x3665   :  { %v2938_v46 = vpop.permute.xlu0 %2937 }
0x3666   :  { %v2940_v49 = vmul.f32 %v7014_v44, %v2938_v46 }
0x3668   :  { %2942 = vrot.lane.b32.xlu1 %v2940_v49, %s7480_s21 }
0x36da   :  { %v2943_v1 = vpop.permute.xlu1 %2942 }
0x36db   :  { %v2945_v50 = vadd.f32 %v2943_v1, %v2935_v14  ;;  %v2609_v14 = vcombine.high %v8094_v25, %v8094_v25 }
0x36dd   :  { %7015 = vtanh.f32 %v2945_v50  ;;  %v2623_v1 = vrot.slane %v2609_v14, %v7745_v56  ;;  %v3311_v14 = vld [vmem:[%s8862_s19 + $0x8] sm:$0xff] }
0x36e7   :  { %v7016_v51 = vpop.eup %7015 }
0x36e8   :  { %2948 = vrot.lane.b32.xlu0 %v7016_v51, %s7481_s17 }
0x375a   :  { %v2949_v52 = vpop.permute.xlu0 %2948 }
0x375b   :  { %v8143_v53 = vmul.f32 %v7014_v44, %v2949_v52 }
0x375d   :  { %v2964_v55 = vpack.c.bf16 %v8143_v53, %v8143_v53 }
0x375f   :  { %2966 = vrot.lane.b32.xlu1 %v2964_v55, %s7482_s25 }
0x37d1   :  { %v2967_v57 = vpop.permute.xlu1 %2966 }
0x37d2   :  { %6578 = vmatmul.mubr.msk.bf16.vlgmr.msra.gmra.mrb[52].mxu1 %vm927_vm7, %v2967_v57 }
0x37d3   :  { %6588 = vmatpush3.bf16.msra.mxu1 %v8064_v35  ;;  %6589 = vmatprep.mubr.msk.bf16.mxu1 %vm7476_vm4, %v7475_v24 }
0x37d4   :  { %6599 = vmatprep.subr.bf16.mxu1 %v7475_v24 }
0x38a5   :  { %v3005_v59 = vpop.f32.mrb[52].mxu1 }
0x38a6   :  { %v3011_v60 = vadd.f32 %v3005_v59, %v2616_v58  ;;  %v6579_v43 = vpop.f32.mrb[53].mxu1 }
0x38a7   :  { %v3008_v62 = vpop.f32.mrb[54].mxu1 }
0x38a8   :  { %7017 = vtanh.f32 %v3011_v60  ;;  %v6580_v47 = vpop.f32.mrb[55].mxu1  ;;  %v6194_v2 = vmul.f32 -1.442695, %v3011_v60 }
0x38aa   :  { %7019 = vpow2.f32 %v6194_v2 }
0x38b2   :  { %v7018_v61 = vpop.eup %7017 }
0x38b3   :  { %3021 = vrot.lane.b32.xlu0 %v7018_v61, %s7479_s5 }
0x38b4   :  { %v7020_v6 = vpop.eup %7019 }
0x38b5   :  { %v3015_v9 = vadd.f32 1.0, %v7020_v6 }
0x38b7   :  { %7021 = vrcp.f32 %v3015_v9 }
0x38c1   :  { %v7022_v10 = vpop.eup %7021 }
0x38c2   :  { %v3019_v18 = vmul.f32 %v7022_v10, %v2945_v50 }
0x3925   :  { %v3022_v16 = vpop.permute.xlu0 %3021 }
0x3926   :  { %v3024_v17 = vmul.f32 %v7022_v10, %v3022_v16 }
0x3928   :  { %3026 = vrot.lane.b32.xlu1 %v3024_v17, %s7480_s21 }
0x399a   :  { %v3027_v20 = vpop.permute.xlu1 %3026 }
0x399b   :  { %v3029_v31 = vadd.f32 %v3027_v20, %v3019_v18  ;;  %v2625_v20 = vcombine.high %v2623_v1, %v2623_v1 }
0x399d   :  { %7023 = vtanh.f32 %v3029_v31 }
0x39a7   :  { %v7024_v21 = vpop.eup %7023 }
0x39a8   :  { %3032 = vrot.lane.b32.xlu0 %v7024_v21, %s7481_s17 }
0x3a1a   :  { %v3033_v11 = vpop.permute.xlu0 %3032 }
0x3a1b   :  { %v8158_v22 = vmul.f32 %v7022_v10, %v3033_v11 }
0x3a1d   :  { %v3048_v12 = vpack.c.bf16 %v8158_v22, %v8158_v22 }
0x3a1f   :  { %3050 = vrot.lane.b32.xlu1 %v3048_v12, %s7482_s25 }
0x3a91   :  { %v3051_v63 = vpop.permute.xlu1 %3050 }
0x3a92   :  { %6584 = vmatmul.mubr.msk.bf16.vlgmr.msra.gmra.mrb[52].mxu0 %vm927_vm7, %v3051_v63 }
0x3a93   :  { %6594 = vmatpush3.bf16.msra.mxu0 %v8064_v35  ;;  %6595 = vmatprep.mubr.msk.bf16.mxu0 %vm7476_vm4, %v7475_v24 }
0x3a94   :  { %6605 = vmatprep.subr.bf16.mxu0 %v7475_v24 }
0x3b65   :  { %v3089_v26 = vpop.f32.mrb[52].mxu0 }
0x3b66   :  { %v3095_v19 = vadd.f32 %v3089_v26, %v2624_v23  ;;  %v6585_v27 = vpop.f32.mrb[53].mxu0 }
0x3b67   :  { %v3092_v28 = vpop.f32.mrb[54].mxu0 }
0x3b68   :  { %7025 = vtanh.f32 %v3095_v19  ;;  %v6586_v32 = vpop.f32.mrb[55].mxu0  ;;  %v6196_v15 = vmul.f32 -1.442695, %v3095_v19 }
0x3b6a   :  { %7027 = vpow2.f32 %v6196_v15  ;;  %v2707_v15 = vrot.slane %v8101_v38, %v7745_v56 }
0x3b72   :  { %v7026_v33 = vpop.eup %7025 }
0x3b73   :  { %3105 = vrot.lane.b32.xlu0 %v7026_v33, %s7479_s5 }
0x3b74   :  { %v7028_v34 = vpop.eup %7027 }
0x3b75   :  { %v3099_v48 = vadd.f32 1.0, %v7028_v34  ;;  %v2875_v34 = vrot.slane %v8130_v30, %v7745_v56 }
0x3b77   :  { %7029 = vrcp.f32 %v3099_v48  ;;  %v3043_v48 = vrot.slane %v8158_v22, %v7745_v56 }
0x3b81   :  { %v7030_v35 = vpop.eup %7029 }
0x3b82   :  { %v3103_v36 = vmul.f32 %v7030_v35, %v3029_v31 }
0x3be5   :  { %v3106_v37 = vpop.permute.xlu0 %3105 }
0x3be6   :  { %v3108_v29 = vmul.f32 %v7030_v35, %v3106_v37 }
0x3be8   :  { %3110 = vrot.lane.b32.xlu1 %v3108_v29, %s7480_s21 }
0x3c5a   :  { %v3111_v39 = vpop.permute.xlu1 %3110 }
0x3c5b   :  { %v3113_v40 = vadd.f32 %v3111_v39, %v3103_v36 }
0x3c5d   :  { %7031 = vtanh.f32 %v3113_v40 }
0x3c67   :  { %v7032_v41 = vpop.eup %7031 }
0x3c68   :  { %3116 = vrot.lane.b32.xlu0 %v7032_v41, %s7481_s17 }
0x3cda   :  { %v3117_v42 = vpop.permute.xlu0 %3116 }
0x3cdb   :  { %v8171_v44 = vmul.f32 %v7030_v35, %v3117_v42  ;;  %v2959_v42 = vrot.slane %v8143_v53, %v7745_v56 }
0x3cdd   :  { %v3132_v46 = vpack.c.bf16 %v8171_v44, %v8171_v44 }
0x3cdf   :  { %3134 = vrot.lane.b32.xlu1 %v3132_v46, %s7482_s25  ;;  %v3127_v46 = vrot.slane %v8171_v44, %v7745_v56 }
0x3d51   :  { %v3135_v49 = vpop.permute.xlu1 %3134 }
0x3d52   :  { %6590 = vmatmul.mubr.msk.bf16.vlgmr.msra.gmra.mrb[56].mxu1 %vm927_vm7, %v3135_v49  ;;  %v3310_v49 = vld [vmem:[%s8862_s19] sm:$0xff] }
0x3d53   :  { %6601 = vmatprep.mubr.msk.bf16.mxu1 %vm7476_vm4, %v7475_v24 }
0x3e25   :  { %v3173_v50 = vpop.f32.mrb[56].mxu1 }
0x3e26   :  { %v3179_v51 = vadd.f32 %v3173_v50, %v2623_v1  ;;  %v6591_v52 = vpop.f32.mrb[57].mxu1  ;;  %v3300_v1 = vld [vmem:[%s8863_s24] sm:$0xff]  ;;  %v3320_v50 = vpack.c.bf16 %v3311_v14, %v3310_v49 }
0x3e27   :  { %v3176_v55 = vpop.f32.mrb[58].mxu1 }
0x3e28   :  { %7033 = vtanh.f32 %v3179_v51  ;;  %v6592_v57 = vpop.f32.mrb[59].mxu1  ;;  %v6198_v59 = vmul.f32 -1.442695, %v3179_v51  ;;  %6600 = vmatpush3.bf16.msra.mxu1 %v3320_v50 }
0x3e29   :  { %6611 = vmatprep.subr.bf16.mxu1 %v7475_v24 }
0x3e2a   :  { %7035 = vpow2.f32 %v6198_v59 }
0x3e32   :  { %v7034_v58 = vpop.eup %7033 }
0x3e33   :  { %3189 = vrot.lane.b32.xlu0 %v7034_v58, %s7479_s5 }
0x3e34   :  { %v7036_v60 = vpop.eup %7035 }
0x3e35   :  { %v3183_v43 = vadd.f32 1.0, %v7036_v60 }
0x3e37   :  { %7037 = vrcp.f32 %v3183_v43 }
0x3e41   :  { %v7038_v62 = vpop.eup %7037 }
0x3e42   :  { %v3187_v25 = vmul.f32 %v7038_v62, %v3113_v40  ;;  %v2791_v40 = vrot.slane %v8114_v54, %v7745_v56  ;;  %v3301_v54 = vld [vmem:[%s8863_s24 + $0x8] sm:$0xff] }
0x3e43   :  { %v8220_v51 = vpack.c.bf16 %v3301_v54, %v3300_v1 }
0x3ea5   :  { %v3190_v47 = vpop.permute.xlu0 %3189 }
0x3ea6   :  { %v3192_v61 = vmul.f32 %v7038_v62, %v3190_v47 }
0x3ea8   :  { %3194 = vrot.lane.b32.xlu1 %v3192_v61, %s7480_s21 }
0x3f1a   :  { %v3195_v2 = vpop.permute.xlu1 %3194 }
0x3f1b   :  { %v3197_v6 = vadd.f32 %v3195_v2, %v3187_v25 }
0x3f1d   :  { %7039 = vtanh.f32 %v3197_v6 }
0x3f27   :  { %v7040_v9 = vpop.eup %7039 }
0x3f28   :  { %3200 = vrot.lane.b32.xlu0 %v7040_v9, %s7481_s17 }
0x3f9a   :  { %v3201_v10 = vpop.permute.xlu0 %3200 }
0x3f9b   :  { %v3203_v16 = vmul.f32 %v7038_v62, %v3201_v10 }
0x3f9d   :  { %v3216_v17 = vpack.c.bf16 %v3203_v16, %v3203_v16  ;;  %v3211_v35 = vrot.slane %v3203_v16, %v7745_v56 }
0x3f9f   :  { %3218 = vrot.lane.b32.xlu1 %v3216_v17, %s7482_s25 }
0x4011   :  { %v3219_v18 = vpop.permute.xlu1 %3218 }
0x4012   :  { %6596 = vmatmul.mubr.msk.bf16.vlgmr.msra.gmra.mrb[56].mxu0 %vm927_vm7, %v3219_v18 }
0x4013   :  { %6607 = vmatprep.mubr.msk.bf16.mxu0 %vm7476_vm4, %v7475_v24  ;;  %6606 = vmatpush3.bf16.msra.mxu0 %v8220_v51 }
0x4014   :  { %6617 = vmatprep.subr.bf16.mxu0 %v7475_v24 }
0x401a   :  { %6608 = vmatmul.mubr.bf16.vlgmr.msra.gmra.mrb[60].mxu0 %v7477_v45 }
0x401b   :  { %6618 = vmatpush3.bf16.msra.mxu0 %v8220_v51  ;;  %6619 = vmatprep.mubr.msk.bf16.mxu0 %vm7476_vm4, %v7475_v24 }
0x401c   :  { %6629 = vmatprep.subr.bf16.mxu0 %v7475_v24 }
0x40e5   :  { %v3257_v31 = vpop.f32.mrb[56].mxu0 }
0x40e6   :  { %v3263_v21 = vadd.f32 %v3257_v31, %v2625_v20  ;;  %v6597_v11 = vpop.f32.mrb[57].mxu0 }
0x40e7   :  { %v3260_v12 = vpop.f32.mrb[58].mxu0 }
0x40e8   :  { %7041 = vtanh.f32 %v3263_v21  ;;  %v6598_v63 = vpop.f32.mrb[59].mxu0  ;;  %v6200_v26 = vmul.f32 -1.442695, %v3263_v21 }
0x40ea   :  { %7043 = vpow2.f32 %v6200_v26 }
0x40f2   :  { %v7042_v23 = vpop.eup %7041 }
0x40f3   :  { %3273 = vrot.lane.b32.xlu0 %v7042_v23, %s7479_s5 }
0x40f4   :  { %v7044_v19 = vpop.eup %7043 }
0x40f5   :  { %v3267_v27 = vadd.f32 1.0, %v7044_v19  ;;  %v3517_v19 = vpop.f32.mrb[60].mxu0 }
0x40f7   :  { %7045 = vrcp.f32 %v3267_v27  ;;  %v6609_v27 = vpop.f32.mrb[61].mxu0 }
0x4101   :  { %v7046_v28 = vpop.eup %7045 }
0x4102   :  { %v3271_v37 = vmul.f32 %v7046_v28, %v3197_v6 }
0x4165   :  { %v3274_v32 = vpop.permute.xlu0 %3273 }
0x4166   :  { %v3276_v33 = vmul.f32 %v7046_v28, %v3274_v32 }
0x4168   :  { %3278 = vrot.lane.b32.xlu1 %v3276_v33, %s7480_s21  ;;  %v6201_v33 = vld [vmem:[%s8864_s30] ss:$0 sm:$0xff] }
0x416c   :  { %2708 = vrot.lane.b32.xlu1 %v2707_v15, %s7482_s25  ;;  %v3384_v15 = vcombine.low %v6201_v33, %v6201_v33 }
0x4170   :  { %2876 = vrot.lane.b32.xlu1 %v2875_v34, %s7482_s25  ;;  %v3391_v34 = vrot.slane %v3384_v15, %v7745_v56 }
0x4174   :  { %3044 = vrot.lane.b32.xlu1 %v3043_v48, %s7482_s25  ;;  %v3392_v48 = vcombine.low %v3391_v34, %v3391_v34 }
0x4178   :  { %3212 = vrot.lane.b32.xlu1 %v3211_v35, %s7482_s25 }
0x41da   :  { %v3279_v29 = vpop.permute.xlu1 %3278 }
0x41db   :  { %v3281_v36 = vadd.f32 %v3279_v29, %v3271_v37 }
0x41dd   :  { %7047 = vtanh.f32 %v3281_v36 }
0x41de   :  { %v2709_v38 = vpop.permute.xlu1 %2708 }
0x41df   :  { %2711 = vst.msk [vmem:[#allocation2] sm:$0x3] %vm1007_vm8, %v2709_v38 }
0x41e2   :  { %v2877_v30 = vpop.permute.xlu1 %2876 }
0x41e3   :  { %2879 = vst.msk [vmem:[#allocation2 + $0x4] sm:$0x3] %vm1007_vm8, %v2877_v30 }
0x41e6   :  { %v3045_v22 = vpop.permute.xlu1 %3044  ;;  %v3302_v61 = vld [vmem:[#allocation2] sm:$0x3] }
0x41e7   :  { %v7048_v39 = vpop.eup %7047  ;;  %3047 = vst.msk [vmem:[#allocation2 + $0x8] sm:$0x3] %vm1007_vm8, %v3045_v22 }
0x41e8   :  { %3284 = vrot.lane.b32.xlu0 %v7048_v39, %s7481_s17 }
0x41ea   :  { %v3213_v41 = vpop.permute.xlu1 %3212  ;;  %v3304_v62 = vld [vmem:[#allocation2 + $0x4] sm:$0x3] }
0x41eb   :  { %3215 = vst.msk [vmem:[#allocation2 + $0xc] sm:$0x3] %vm1007_vm8, %v3213_v41 }
0x41ec   :  { %2792 = vrot.lane.b32.xlu0 %v2791_v40, %s7482_s25 }
0x41ee   :  { %v3306_v6 = vld [vmem:[#allocation2 + $0x8] sm:$0x3] }
0x41f0   :  { %2960 = vrot.lane.b32.xlu0 %v2959_v42, %s7482_s25 }
0x41f2   :  { %v3308_v16 = vld [vmem:[#allocation2 + $0xc] sm:$0x3] }
0x41f4   :  { %3128 = vrot.lane.b32.xlu0 %v3127_v46, %s7482_s25 }
0x425a   :  { %v3285_v53 = vpop.permute.xlu0 %3284 }
0x425b   :  { %v3287_v44 = vmul.f32 %v7046_v28, %v3285_v53  ;;  %v3520_v28 = vpop.f32.mrb[62].mxu0 }
0x425c   :  { %v6610_v32 = vpop.f32.mrb[63].mxu0 }
0x425d   :  { %v3295_v52 = vrot.slane %v3287_v44, %v7745_v56 }
0x425e   :  { %v2793_v55 = vpop.permute.xlu0 %2792 }
0x425f   :  { %2795 = vst.msk [vmem:[#allocation2 + $0x2] sm:$0x3] %vm1007_vm8, %v2793_v55  ;;  %3296 = vrot.lane.b32.xlu0 %v3295_v52, %s7482_s25 }
0x4262   :  { %v2961_v57 = vpop.permute.xlu0 %2960 }
0x4263   :  { %2963 = vst.msk [vmem:[#allocation2 + $0x6] sm:$0x3] %vm1007_vm8, %v2961_v57 }
0x4266   :  { %v3129_v58 = vpop.permute.xlu0 %3128  ;;  %v3303_v43 = vld [vmem:[#allocation2 + $0x2] sm:$0x3] }
0x4267   :  { %3131 = vst.msk [vmem:[#allocation2 + $0xa] sm:$0x3] %vm1007_vm8, %v3129_v58  ;;  %v6202_v2 = vpack.c.bf16 %v3303_v43, %v3302_v61 }
0x4269   :  { %v3345_v20 = vrot.slane %v6202_v2, %v7687_v13 }
0x426a   :  { %v3305_v60 = vld [vmem:[#allocation2 + $0x6] sm:$0x3] }
0x426b   :  { %v6203_v47 = vpack.c.bf16 %v3305_v60, %v3304_v62 }
0x426d   :  { %v3352_v10 = vrot.slane %v6203_v47, %v7687_v13 }
0x426e   :  { %v3307_v25 = vld [vmem:[#allocation2 + $0xa] sm:$0x3] }
0x426f   :  { %v6204_v9 = vpack.c.bf16 %v3307_v25, %v3306_v6  ;;  %v3367_v11 = vcombine.low %v3345_v20, %v3352_v10 }
0x4271   :  { %v3359_v31 = vrot.slane %v6204_v9, %v7687_v13  ;;  %v3375_v63 = vrot.slane %v3367_v11, %v7687_v13 }
0x42d1   :  { %v3297_v59 = vpop.permute.xlu0 %3296 }
0x42d2   :  { %3299 = vst.msk [vmem:[#allocation2 + $0xe] sm:$0x3] %vm1007_vm8, %v3297_v59 }
0x42d9   :  { %v3309_v17 = vld [vmem:[#allocation2 + $0xe] sm:$0x3] }
0x42da   :  { %v6205_v18 = vpack.c.bf16 %v3309_v17, %v3308_v16 }
0x42dc   :  { %v3366_v21 = vrot.slane %v6205_v18, %v7687_v13 }
0x42de   :  { %v3368_v12 = vcombine.low %v3359_v31, %v3366_v21 }
0x42e0   :  { %v3382_v23 = vrot.slane %v3368_v12, %v7687_v13 }
0x42e2   :  { %v3383_v26 = vcombine.low %v3375_v63, %v3382_v23 }
0x42e4   :  { %6602 = vmatmul.mubr.msk.bf16.vlgmr.msra.gmra.mrb[60].mxu1 %vm927_vm7, %v3383_v26 }
0x42e5   :  { %6612 = vmatpush3.bf16.msra.mxu1 %v8220_v51  ;;  %6613 = vmatprep.mubr.msk.bf16.mxu1 %vm7476_vm4, %v7475_v24 }
0x42e6   :  { %6623 = vmatprep.subr.bf16.mxu1 %v7475_v24 }
0x43b7   :  { %v3431_v35 = vpop.f32.mrb[60].mxu1 }
0x43b8   :  { %v8249_v37 = vadd.f32 %v3431_v35, %v3392_v48  ;;  %v6603_v29 = vpop.f32.mrb[61].mxu1 }
0x43b9   :  { %v3434_v36 = vpop.f32.mrb[62].mxu1 }
0x43ba   :  { %v8251_v38 = vadd.f32 %v3434_v36, %v3392_v48  ;;  %v3447_v30 = vrot.slane %v8249_v37, %v7745_v56  ;;  %v6604_v22 = vpop.f32.mrb[63].mxu1  ;;  %v3440_v26 = vcombine.high %v8249_v37, %v8249_v37 }
0x43bc   :  { %v3523_v39 = vadd.f32 %v3517_v19, %v3447_v30  ;;  %v3455_v59 = vcombine.high %v3447_v30, %v3447_v30  ;;  %v3454_v19 = vrot.slane %v3440_v26, %v7745_v56 }
0x43be   :  { %7049 = vtanh.f32 %v3523_v39  ;;  %v6207_v41 = vmul.f32 -1.442695, %v3523_v39 }
0x43c0   :  { %7051 = vpow2.f32 %v6207_v41 }
0x43c8   :  { %v7050_v40 = vpop.eup %7049 }
0x43c9   :  { %3533 = vrot.lane.b32.xlu1 %v7050_v40, %s7479_s5 }
0x43ca   :  { %v7052_v42 = vpop.eup %7051 }
0x43cb   :  { %v3527_v46 = vadd.f32 1.0, %v7052_v42 }
0x43cd   :  { %7053 = vrcp.f32 %v3527_v46 }
0x43d7   :  { %v7054_v49 = vpop.eup %7053 }
0x43d8   :  { %v3531_v50 = vmul.f32 0.0, %v7054_v49 }
0x443b   :  { %v3534_v14 = vpop.permute.xlu1 %3533 }
0x443c   :  { %v3536_v1 = vmul.f32 %v7054_v49, %v3534_v14 }
0x443e   :  { %3538 = vrot.lane.b32.xlu0 %v3536_v1, %s7480_s21  ;;  %v3456_v1 = vcombine.high %v3454_v19, %v3454_v19 }
0x44b0   :  { %v3539_v54 = vpop.permute.xlu0 %3538 }
0x44b1   :  { %v3541_v53 = vadd.f32 %v3539_v54, %v3531_v50 }
0x44b3   :  { %7055 = vtanh.f32 %v3541_v53 }
0x44bd   :  { %v7056_v44 = vpop.eup %7055 }
0x44be   :  { %3544 = vrot.lane.b32.xlu1 %v7056_v44, %s7481_s17 }
0x4530   :  { %v3545_v52 = vpop.permute.xlu1 %3544 }
0x4531   :  { %v8258_v55 = vmul.f32 %v7054_v49, %v3545_v52 }
0x4533   :  { %v3560_v57 = vpack.c.bf16 %v8258_v55, %v8258_v55 }
0x4535   :  { %3562 = vrot.lane.b32.xlu0 %v3560_v57, %s7482_s25 }
0x45a7   :  { %v3563_v58 = vpop.permute.xlu0 %3562 }
0x45a8   :  { %6614 = vmatmul.mubr.msk.bf16.vlgmr.msra.gmra.mrb[64].mxu1 %vm927_vm7, %v3563_v58 }
0x45a9   :  { %6624 = vmatpush3.bf16.msra.mxu1 %v8220_v51  ;;  %6625 = vmatprep.mubr.msk.bf16.mxu1 %vm7476_vm4, %v7475_v24 }
0x45aa   :  { %6635 = vmatprep.subr.bf16.mxu1 %v7475_v24 }
0x467b   :  { %v3601_v60 = vpop.f32.mrb[64].mxu1 }
0x467c   :  { %v3607_v43 = vadd.f32 %v3601_v60, %v3455_v59  ;;  %v6615_v62 = vpop.f32.mrb[65].mxu1 }
0x467d   :  { %v3604_v47 = vpop.f32.mrb[66].mxu1 }
0x467e   :  { %7057 = vtanh.f32 %v3607_v43  ;;  %v6616_v61 = vpop.f32.mrb[67].mxu1  ;;  %v6209_v2 = vmul.f32 -1.442695, %v3607_v43 }
0x4680   :  { %7059 = vpow2.f32 %v6209_v2 }
0x4688   :  { %v7058_v25 = vpop.eup %7057 }
0x4689   :  { %3617 = vrot.lane.b32.xlu1 %v7058_v25, %s7479_s5 }
0x468a   :  { %v7060_v6 = vpop.eup %7059 }
0x468b   :  { %v3611_v9 = vadd.f32 1.0, %v7060_v6 }
0x468d   :  { %7061 = vrcp.f32 %v3611_v9 }
0x4697   :  { %v7062_v10 = vpop.eup %7061 }
0x4698   :  { %v3615_v18 = vmul.f32 %v7062_v10, %v3541_v53 }
0x46fb   :  { %v3618_v16 = vpop.permute.xlu1 %3617 }
0x46fc   :  { %v3620_v17 = vmul.f32 %v7062_v10, %v3618_v16 }
0x46fe   :  { %3622 = vrot.lane.b32.xlu0 %v3620_v17, %s7480_s21 }
0x4770   :  { %v3623_v20 = vpop.permute.xlu0 %3622 }
0x4771   :  { %v3625_v31 = vadd.f32 %v3623_v20, %v3615_v18  ;;  %v3464_v18 = vrot.slane %v8251_v38, %v7745_v56 }
0x4773   :  { %7063 = vtanh.f32 %v3625_v31 }
0x477d   :  { %v7064_v21 = vpop.eup %7063 }
0x477e   :  { %3628 = vrot.lane.b32.xlu1 %v7064_v21, %s7481_s17 }
0x47f0   :  { %v3629_v11 = vpop.permute.xlu1 %3628 }
0x47f1   :  { %v8271_v12 = vmul.f32 %v7062_v10, %v3629_v11 }
0x47f3   :  { %v3644_v63 = vpack.c.bf16 %v8271_v12, %v8271_v12 }
0x47f5   :  { %3646 = vrot.lane.b32.xlu0 %v3644_v63, %s7482_s25 }
0x4867   :  { %v3647_v23 = vpop.permute.xlu0 %3646 }
0x4868   :  { %6620 = vmatmul.mubr.msk.bf16.vlgmr.msra.gmra.mrb[64].mxu0 %vm927_vm7, %v3647_v23 }
0x4869   :  { %6630 = vmatpush3.bf16.msra.mxu0 %v8220_v51  ;;  %6631 = vmatprep.mubr.msk.bf16.mxu0 %vm7476_vm4, %v7475_v24 }
0x486a   :  { %6641 = vmatprep.subr.bf16.mxu0 %v7475_v24 }
0x493b   :  { %v3685_v27 = vpop.f32.mrb[64].mxu0 }
0x493c   :  { %v3691_v28 = vadd.f32 %v3685_v27, %v3454_v19  ;;  %v6621_v32 = vpop.f32.mrb[65].mxu0 }
0x493d   :  { %v3688_v33 = vpop.f32.mrb[66].mxu0 }
0x493e   :  { %7065 = vtanh.f32 %v3691_v28  ;;  %v6622_v15 = vpop.f32.mrb[67].mxu0  ;;  %v6211_v48 = vmul.f32 -1.442695, %v3691_v28 }
0x4940   :  { %7067 = vpow2.f32 %v6211_v48 }
0x4948   :  { %v7066_v34 = vpop.eup %7065 }
0x4949   :  { %3701 = vrot.lane.b32.xlu1 %v7066_v34, %s7479_s5 }
0x494a   :  { %v7068_v35 = vpop.eup %7067 }
0x494b   :  { %v3695_v29 = vadd.f32 1.0, %v7068_v35 }
0x494d   :  { %7069 = vrcp.f32 %v3695_v29 }
0x4957   :  { %v7070_v36 = vpop.eup %7069 }
0x4958   :  { %v3699_v37 = vmul.f32 %v7070_v36, %v3625_v31 }
0x49bb   :  { %v3702_v30 = vpop.permute.xlu1 %3701 }
0x49bc   :  { %v3704_v22 = vmul.f32 %v7070_v36, %v3702_v30 }
0x49be   :  { %3706 = vrot.lane.b32.xlu0 %v3704_v22, %s7480_s21 }
0x4a30   :  { %v3707_v39 = vpop.permute.xlu0 %3706 }
0x4a31   :  { %v3709_v40 = vadd.f32 %v3707_v39, %v3699_v37  ;;  %v3472_v37 = vcombine.high %v3464_v18, %v3464_v18 }
0x4a33   :  { %7071 = vtanh.f32 %v3709_v40 }
0x4a3d   :  { %v7072_v41 = vpop.eup %7071 }
0x4a3e   :  { %3712 = vrot.lane.b32.xlu1 %v7072_v41, %s7481_s17 }
0x4ab0   :  { %v3713_v42 = vpop.permute.xlu1 %3712 }
0x4ab1   :  { %v8287_v46 = vmul.f32 %v7070_v36, %v3713_v42 }
0x4ab3   :  { %v3728_v49 = vpack.c.bf16 %v8287_v46, %v8287_v46 }
0x4ab5   :  { %3730 = vrot.lane.b32.xlu0 %v3728_v49, %s7482_s25 }
0x4b27   :  { %v3731_v14 = vpop.permute.xlu0 %3730 }
0x4b28   :  { %6626 = vmatmul.mubr.msk.bf16.vlgmr.msra.gmra.mrb[68].mxu1 %vm927_vm7, %v3731_v14 }
0x4b29   :  { %6636 = vmatpush3.bf16.msra.mxu1 %v8220_v51  ;;  %6637 = vmatprep.mubr.msk.bf16.mxu1 %vm7476_vm4, %v7475_v24 }
0x4b2a   :  { %6647 = vmatprep.subr.bf16.mxu1 %v7475_v24 }
0x4bfb   :  { %v3769_v50 = vpop.f32.mrb[68].mxu1 }
0x4bfc   :  { %v3775_v54 = vadd.f32 %v3769_v50, %v3456_v1  ;;  %v6627_v53 = vpop.f32.mrb[69].mxu1 }
0x4bfd   :  { %v3772_v44 = vpop.f32.mrb[70].mxu1 }
0x4bfe   :  { %7073 = vtanh.f32 %v3775_v54  ;;  %v6628_v52 = vpop.f32.mrb[71].mxu1  ;;  %v6213_v58 = vmul.f32 -1.442695, %v3775_v54 }
0x4c00   :  { %7075 = vpow2.f32 %v6213_v58 }
0x4c08   :  { %v7074_v57 = vpop.eup %7073 }
0x4c09   :  { %3785 = vrot.lane.b32.xlu1 %v7074_v57, %s7479_s5 }
0x4c0a   :  { %v7076_v59 = vpop.eup %7075 }
0x4c0b   :  { %v3779_v60 = vadd.f32 1.0, %v7076_v59 }
0x4c0d   :  { %7077 = vrcp.f32 %v3779_v60 }
0x4c17   :  { %v7078_v43 = vpop.eup %7077 }
0x4c18   :  { %v3783_v61 = vmul.f32 %v7078_v43, %v3709_v40 }
0x4c7b   :  { %v3786_v62 = vpop.permute.xlu1 %3785 }
0x4c7c   :  { %v3788_v47 = vmul.f32 %v7078_v43, %v3786_v62 }
0x4c7e   :  { %3790 = vrot.lane.b32.xlu0 %v3788_v47, %s7480_s21 }
0x4cf0   :  { %v3791_v25 = vpop.permute.xlu0 %3790 }
0x4cf1   :  { %v3793_v2 = vadd.f32 %v3791_v25, %v3783_v61  ;;  %v3457_v61 = vcombine.high %v8251_v38, %v8251_v38 }
0x4cf3   :  { %7079 = vtanh.f32 %v3793_v2  ;;  %v3471_v25 = vrot.slane %v3457_v61, %v7745_v56  ;;  %v4159_v61 = vld [vmem:[%s8865_s4 + $0x8] sm:$0xff] }
0x4cfd   :  { %v7080_v6 = vpop.eup %7079 }
0x4cfe   :  { %3796 = vrot.lane.b32.xlu1 %v7080_v6, %s7481_s17 }
0x4d70   :  { %v3797_v9 = vpop.permute.xlu1 %3796 }
0x4d71   :  { %v8300_v10 = vmul.f32 %v7078_v43, %v3797_v9 }
0x4d73   :  { %v3812_v16 = vpack.c.bf16 %v8300_v10, %v8300_v10 }
0x4d75   :  { %3814 = vrot.lane.b32.xlu0 %v3812_v16, %s7482_s25 }
0x4de7   :  { %v3815_v17 = vpop.permute.xlu0 %3814 }
0x4de8   :  { %6632 = vmatmul.mubr.msk.bf16.vlgmr.msra.gmra.mrb[68].mxu0 %vm927_vm7, %v3815_v17 }
0x4de9   :  { %6642 = vmatpush3.bf16.msra.mxu0 %v8220_v51  ;;  %6643 = vmatprep.mubr.msk.bf16.mxu0 %vm7476_vm4, %v7475_v24 }
0x4dea   :  { %6653 = vmatprep.subr.bf16.mxu0 %v7475_v24 }
0x4ebb   :  { %v3853_v20 = vpop.f32.mrb[68].mxu0 }
0x4ebc   :  { %v3859_v31 = vadd.f32 %v3853_v20, %v3464_v18  ;;  %v6633_v21 = vpop.f32.mrb[69].mxu0 }
0x4ebd   :  { %v3856_v11 = vpop.f32.mrb[70].mxu0 }
0x4ebe   :  { %7081 = vtanh.f32 %v3859_v31  ;;  %v6634_v63 = vpop.f32.mrb[71].mxu0  ;;  %v6215_v26 = vmul.f32 -1.442695, %v3859_v31 }
0x4ec0   :  { %7083 = vpow2.f32 %v6215_v26 }
0x4ec8   :  { %v7082_v23 = vpop.eup %7081 }
0x4ec9   :  { %3869 = vrot.lane.b32.xlu1 %v7082_v23, %s7479_s5 }
0x4eca   :  { %v7084_v19 = vpop.eup %7083 }
0x4ecb   :  { %v3863_v27 = vadd.f32 1.0, %v7084_v19 }
0x4ecd   :  { %7085 = vrcp.f32 %v3863_v27 }
0x4ed7   :  { %v7086_v28 = vpop.eup %7085 }
0x4ed8   :  { %v3867_v15 = vmul.f32 %v7086_v28, %v3793_v2 }
0x4f3b   :  { %v3870_v32 = vpop.permute.xlu1 %3869 }
0x4f3c   :  { %v3872_v33 = vmul.f32 %v7086_v28, %v3870_v32 }
0x4f3e   :  { %3874 = vrot.lane.b32.xlu0 %v3872_v33, %s7480_s21 }
0x4fb0   :  { %v3875_v34 = vpop.permute.xlu0 %3874 }
0x4fb1   :  { %v3877_v48 = vadd.f32 %v3875_v34, %v3867_v15  ;;  %v3473_v34 = vcombine.high %v3471_v25, %v3471_v25 }
0x4fb3   :  { %7087 = vtanh.f32 %v3877_v48 }
0x4fbd   :  { %v7088_v35 = vpop.eup %7087 }
0x4fbe   :  { %3880 = vrot.lane.b32.xlu1 %v7088_v35, %s7481_s17 }
0x5030   :  { %v3881_v29 = vpop.permute.xlu1 %3880 }
0x5031   :  { %v8315_v36 = vmul.f32 %v7086_v28, %v3881_v29 }
0x5033   :  { %v3896_v30 = vpack.c.bf16 %v8315_v36, %v8315_v36 }
0x5035   :  { %3898 = vrot.lane.b32.xlu0 %v3896_v30, %s7482_s25 }
0x50a7   :  { %v3899_v22 = vpop.permute.xlu0 %3898 }
0x50a8   :  { %6638 = vmatmul.mubr.msk.bf16.vlgmr.msra.gmra.mrb[72].mxu1 %vm927_vm7, %v3899_v22 }
0x50a9   :  { %6648 = vmatpush3.bf16.msra.mxu1 %v8220_v51  ;;  %6649 = vmatprep.mubr.msk.bf16.mxu1 %vm7476_vm4, %v7475_v24 }
0x50aa   :  { %6659 = vmatprep.subr.bf16.mxu1 %v7475_v24 }
0x517b   :  { %v3937_v39 = vpop.f32.mrb[72].mxu1 }
0x517c   :  { %v3943_v40 = vadd.f32 %v3937_v39, %v3472_v37  ;;  %v6639_v41 = vpop.f32.mrb[73].mxu1 }
0x517d   :  { %v3940_v42 = vpop.f32.mrb[74].mxu1 }
0x517e   :  { %7089 = vtanh.f32 %v3943_v40  ;;  %v6640_v49 = vpop.f32.mrb[75].mxu1  ;;  %v6217_v1 = vmul.f32 -1.442695, %v3943_v40 }
0x5180   :  { %7091 = vpow2.f32 %v6217_v1  ;;  %v3555_v1 = vrot.slane %v8258_v55, %v7745_v56 }
0x5188   :  { %v7090_v14 = vpop.eup %7089 }
0x5189   :  { %3953 = vrot.lane.b32.xlu1 %v7090_v14, %s7479_s5 }
0x518a   :  { %v7092_v50 = vpop.eup %7091 }
0x518b   :  { %v3947_v54 = vadd.f32 1.0, %v7092_v50  ;;  %v3723_v50 = vrot.slane %v8287_v46, %v7745_v56 }
0x518d   :  { %7093 = vrcp.f32 %v3947_v54  ;;  %v3891_v54 = vrot.slane %v8315_v36, %v7745_v56 }
0x5197   :  { %v7094_v51 = vpop.eup %7093 }
0x5198   :  { %v3951_v52 = vmul.f32 %v7094_v51, %v3877_v48 }
0x51fb   :  { %v3954_v53 = vpop.permute.xlu1 %3953 }
0x51fc   :  { %v3956_v44 = vmul.f32 %v7094_v51, %v3954_v53 }
0x51fe   :  { %3958 = vrot.lane.b32.xlu0 %v3956_v44, %s7480_s21 }
0x5270   :  { %v3959_v57 = vpop.permute.xlu0 %3958 }
0x5271   :  { %v3961_v58 = vadd.f32 %v3959_v57, %v3951_v52 }
0x5273   :  { %7095 = vtanh.f32 %v3961_v58 }
0x527d   :  { %v7096_v59 = vpop.eup %7095 }
0x527e   :  { %3964 = vrot.lane.b32.xlu1 %v7096_v59, %s7481_s17 }
0x52f0   :  { %v3965_v60 = vpop.permute.xlu1 %3964 }
0x52f1   :  { %v8328_v43 = vmul.f32 %v7094_v51, %v3965_v60  ;;  %v3807_v60 = vrot.slane %v8300_v10, %v7745_v56 }
0x52f3   :  { %v3980_v62 = vpack.c.bf16 %v8328_v43, %v8328_v43 }
0x52f5   :  { %3982 = vrot.lane.b32.xlu0 %v3980_v62, %s7482_s25  ;;  %v3975_v62 = vrot.slane %v8328_v43, %v7745_v56 }
0x5367   :  { %v3983_v47 = vpop.permute.xlu0 %3982 }
0x5368   :  { %6644 = vmatmul.mubr.msk.bf16.vlgmr.msra.gmra.mrb[72].mxu0 %vm927_vm7, %v3983_v47  ;;  %v4158_v47 = vld [vmem:[%s8865_s4] sm:$0xff] }
0x5369   :  { %6655 = vmatprep.mubr.msk.bf16.mxu0 %vm7476_vm4, %v7475_v24 }
0x543b   :  { %v4021_v2 = vpop.f32.mrb[72].mxu0 }
0x543c   :  { %v4027_v6 = vadd.f32 %v4021_v2, %v3471_v25  ;;  %v6645_v9 = vpop.f32.mrb[73].mxu0  ;;  %v4148_v25 = vld [vmem:[%s8866_s11] sm:$0xff]  ;;  %v4168_v2 = vpack.c.bf16 %v4159_v61, %v4158_v47 }
0x543d   :  { %v4024_v16 = vpop.f32.mrb[74].mxu0 }
0x543e   :  { %7097 = vtanh.f32 %v4027_v6  ;;  %v6646_v17 = vpop.f32.mrb[75].mxu0  ;;  %v6219_v20 = vmul.f32 -1.442695, %v4027_v6  ;;  %6654 = vmatpush3.bf16.msra.mxu0 %v4168_v2 }
0x543f   :  { %6665 = vmatprep.subr.bf16.mxu0 %v7475_v24 }
0x5440   :  { %7099 = vpow2.f32 %v6219_v20 }
0x5448   :  { %v7098_v18 = vpop.eup %7097 }
0x5449   :  { %4037 = vrot.lane.b32.xlu1 %v7098_v18, %s7479_s5 }
0x544a   :  { %v7100_v31 = vpop.eup %7099 }
0x544b   :  { %v4031_v21 = vadd.f32 1.0, %v7100_v31 }
0x544d   :  { %7101 = vrcp.f32 %v4031_v21 }
0x5457   :  { %v7102_v11 = vpop.eup %7101 }
0x5458   :  { %v4035_v38 = vmul.f32 %v7102_v11, %v3961_v58  ;;  %v3639_v58 = vrot.slane %v8271_v12, %v7745_v56  ;;  %v4149_v12 = vld [vmem:[%s8866_s11 + $0x8] sm:$0xff] }
0x5459   :  { %v8377_v6 = vpack.c.bf16 %v4149_v12, %v4148_v25 }
0x54bb   :  { %v4038_v63 = vpop.permute.xlu1 %4037 }
0x54bc   :  { %v4040_v23 = vmul.f32 %v7102_v11, %v4038_v63 }
0x54be   :  { %4042 = vrot.lane.b32.xlu0 %v4040_v23, %s7480_s21 }
0x5530   :  { %v4043_v26 = vpop.permute.xlu0 %4042 }
0x5531   :  { %v4045_v19 = vadd.f32 %v4043_v26, %v4035_v38 }
0x5533   :  { %7103 = vtanh.f32 %v4045_v19 }
0x553d   :  { %v7104_v27 = vpop.eup %7103 }
0x553e   :  { %4048 = vrot.lane.b32.xlu1 %v7104_v27, %s7481_s17 }
0x55b0   :  { %v4049_v28 = vpop.permute.xlu1 %4048 }
0x55b1   :  { %v4051_v32 = vmul.f32 %v7102_v11, %v4049_v28 }
0x55b3   :  { %v4064_v33 = vpack.c.bf16 %v4051_v32, %v4051_v32  ;;  %v4059_v51 = vrot.slane %v4051_v32, %v7745_v56 }
0x55b5   :  { %4066 = vrot.lane.b32.xlu0 %v4064_v33, %s7482_s25 }
0x5627   :  { %v4067_v15 = vpop.permute.xlu0 %4066 }
0x5628   :  { %6650 = vmatmul.mubr.msk.bf16.vlgmr.msra.gmra.mrb[76].mxu1 %vm927_vm7, %v4067_v15 }
0x5629   :  { %6661 = vmatprep.mubr.msk.bf16.mxu1 %vm7476_vm4, %v7475_v24  ;;  %6660 = vmatpush3.bf16.msra.mxu1 %v8377_v6 }
0x562a   :  { %6671 = vmatprep.subr.bf16.mxu1 %v7475_v24 }
0x5630   :  { %6662 = vmatmul.mubr.bf16.vlgmr.msra.gmra.mrb[80].mxu1 %v7477_v45 }
0x5631   :  { %6672 = vmatpush3.bf16.msra.mxu1 %v8377_v6  ;;  %6673 = vmatprep.mubr.msk.bf16.mxu1 %vm7476_vm4, %v7475_v24 }
0x5632   :  { %6683 = vmatprep.subr.bf16.mxu1 %v7475_v24 }
0x56fb   :  { %v4105_v48 = vpop.f32.mrb[76].mxu1 }
0x56fc   :  { %v4111_v35 = vadd.f32 %v4105_v48, %v3473_v34  ;;  %v6651_v29 = vpop.f32.mrb[77].mxu1 }
0x56fd   :  { %v4108_v30 = vpop.f32.mrb[78].mxu1 }
0x56fe   :  { %7105 = vtanh.f32 %v4111_v35  ;;  %v6652_v22 = vpop.f32.mrb[79].mxu1  ;;  %v6221_v39 = vmul.f32 -1.442695, %v4111_v35 }
0x5700   :  { %7107 = vpow2.f32 %v6221_v39 }
0x5708   :  { %v7106_v37 = vpop.eup %7105 }
0x5709   :  { %4121 = vrot.lane.b32.xlu1 %v7106_v37, %s7479_s5 }
0x570a   :  { %v7108_v40 = vpop.eup %7107 }
0x570b   :  { %v4115_v41 = vadd.f32 1.0, %v7108_v40  ;;  %v4365_v40 = vpop.f32.mrb[80].mxu1 }
0x570d   :  { %7109 = vrcp.f32 %v4115_v41  ;;  %v6663_v41 = vpop.f32.mrb[81].mxu1 }
0x5717   :  { %v7110_v42 = vpop.eup %7109 }
0x5718   :  { %v4119_v53 = vmul.f32 %v7110_v42, %v4045_v19 }
0x577b   :  { %v4122_v49 = vpop.permute.xlu1 %4121 }
0x577c   :  { %v4124_v14 = vmul.f32 %v7110_v42, %v4122_v49 }
0x577e   :  { %4126 = vrot.lane.b32.xlu0 %v4124_v14, %s7480_s21  ;;  %v6222_v14 = vld [vmem:[%s8867_s15] ss:$0 sm:$0xff] }
0x5782   :  { %3556 = vrot.lane.b32.xlu0 %v3555_v1, %s7482_s25  ;;  %v4232_v1 = vcombine.low %v6222_v14, %v6222_v14 }
0x5786   :  { %3724 = vrot.lane.b32.xlu0 %v3723_v50, %s7482_s25  ;;  %v4239_v50 = vrot.slane %v4232_v1, %v7745_v56 }
0x578a   :  { %3892 = vrot.lane.b32.xlu0 %v3891_v54, %s7482_s25  ;;  %v4240_v54 = vcombine.low %v4239_v50, %v4239_v50 }
0x578e   :  { %4060 = vrot.lane.b32.xlu0 %v4059_v51, %s7482_s25 }
0x57f0   :  { %v4127_v44 = vpop.permute.xlu0 %4126 }
0x57f1   :  { %v4129_v52 = vadd.f32 %v4127_v44, %v4119_v53 }
0x57f3   :  { %7111 = vtanh.f32 %v4129_v52 }
0x57f4   :  { %v3557_v55 = vpop.permute.xlu0 %3556 }
0x57f5   :  { %3559 = vst.msk [vmem:[#allocation2] sm:$0x3] %vm1007_vm8, %v3557_v55 }
0x57f8   :  { %v3725_v46 = vpop.permute.xlu0 %3724 }
0x57f9   :  { %3727 = vst.msk [vmem:[#allocation2 + $0x4] sm:$0x3] %vm1007_vm8, %v3725_v46 }
0x57fc   :  { %v3893_v36 = vpop.permute.xlu0 %3892  ;;  %v4150_v23 = vld [vmem:[#allocation2] sm:$0x3] }
0x57fd   :  { %v7112_v57 = vpop.eup %7111  ;;  %3895 = vst.msk [vmem:[#allocation2 + $0x8] sm:$0x3] %vm1007_vm8, %v3893_v36 }
0x57fe   :  { %4132 = vrot.lane.b32.xlu1 %v7112_v57, %s7481_s17 }
0x5800   :  { %v4061_v59 = vpop.permute.xlu0 %4060  ;;  %v4152_v11 = vld [vmem:[#allocation2 + $0x4] sm:$0x3] }
0x5801   :  { %4063 = vst.msk [vmem:[#allocation2 + $0xc] sm:$0x3] %vm1007_vm8, %v4061_v59 }
0x5802   :  { %3640 = vrot.lane.b32.xlu1 %v3639_v58, %s7482_s25 }
0x5804   :  { %v4154_v19 = vld [vmem:[#allocation2 + $0x8] sm:$0x3] }
0x5806   :  { %3808 = vrot.lane.b32.xlu1 %v3807_v60, %s7482_s25 }
0x5808   :  { %v4156_v32 = vld [vmem:[#allocation2 + $0xc] sm:$0x3] }
0x580a   :  { %3976 = vrot.lane.b32.xlu1 %v3975_v62, %s7482_s25 }
0x5870   :  { %v4133_v10 = vpop.permute.xlu1 %4132 }
0x5871   :  { %v4135_v43 = vmul.f32 %v7110_v42, %v4133_v10  ;;  %v4368_v42 = vpop.f32.mrb[82].mxu1 }
0x5872   :  { %v6664_v49 = vpop.f32.mrb[83].mxu1 }
0x5873   :  { %v4143_v9 = vrot.slane %v4135_v43, %v7745_v56 }
0x5874   :  { %v3641_v16 = vpop.permute.xlu1 %3640 }
0x5875   :  { %3643 = vst.msk [vmem:[#allocation2 + $0x2] sm:$0x3] %vm1007_vm8, %v3641_v16  ;;  %4144 = vrot.lane.b32.xlu1 %v4143_v9, %s7482_s25 }
0x5878   :  { %v3809_v17 = vpop.permute.xlu1 %3808 }
0x5879   :  { %3811 = vst.msk [vmem:[#allocation2 + $0x6] sm:$0x3] %vm1007_vm8, %v3809_v17 }
0x587c   :  { %v3977_v18 = vpop.permute.xlu1 %3976  ;;  %v4151_v21 = vld [vmem:[#allocation2 + $0x2] sm:$0x3] }
0x587d   :  { %3979 = vst.msk [vmem:[#allocation2 + $0xa] sm:$0x3] %vm1007_vm8, %v3977_v18  ;;  %v6223_v26 = vpack.c.bf16 %v4151_v21, %v4150_v23 }
0x587f   :  { %v4193_v34 = vrot.slane %v6223_v26, %v7687_v13 }
0x5880   :  { %v4153_v31 = vld [vmem:[#allocation2 + $0x6] sm:$0x3] }
0x5881   :  { %v6224_v63 = vpack.c.bf16 %v4153_v31, %v4152_v11 }
0x5883   :  { %v4200_v28 = vrot.slane %v6224_v63, %v7687_v13 }
0x5884   :  { %v4155_v38 = vld [vmem:[#allocation2 + $0xa] sm:$0x3] }
0x5885   :  { %v6225_v27 = vpack.c.bf16 %v4155_v38, %v4154_v19  ;;  %v4215_v29 = vcombine.low %v4193_v34, %v4200_v28 }
0x5887   :  { %v4207_v48 = vrot.slane %v6225_v27, %v7687_v13  ;;  %v4223_v22 = vrot.slane %v4215_v29, %v7687_v13 }
0x58e7   :  { %v4145_v20 = vpop.permute.xlu1 %4144 }
0x58e8   :  { %4147 = vst.msk [vmem:[#allocation2 + $0xe] sm:$0x3] %vm1007_vm8, %v4145_v20 }
0x58ef   :  { %v4157_v33 = vld [vmem:[#allocation2 + $0xe] sm:$0x3] }
0x58f0   :  { %v6226_v15 = vpack.c.bf16 %v4157_v33, %v4156_v32 }
0x58f2   :  { %v4214_v35 = vrot.slane %v6226_v15, %v7687_v13 }
0x58f4   :  { %v4216_v30 = vcombine.low %v4207_v48, %v4214_v35 }
0x58f6   :  { %v4230_v37 = vrot.slane %v4216_v30, %v7687_v13 }
0x58f8   :  { %v4231_v39 = vcombine.low %v4223_v22, %v4230_v37 }
0x58fa   :  { %6656 = vmatmul.mubr.msk.bf16.vlgmr.msra.gmra.mrb[76].mxu0 %vm927_vm7, %v4231_v39 }
0x58fb   :  { %6666 = vmatpush3.bf16.msra.mxu0 %v8377_v6  ;;  %6667 = vmatprep.mubr.msk.bf16.mxu0 %vm7476_vm4, %v7475_v24 }
0x58fc   :  { %6677 = vmatprep.subr.bf16.mxu0 %v7475_v24 }
0x59cd   :  { %v4279_v51 = vpop.f32.mrb[76].mxu0 }
0x59ce   :  { %v8406_v53 = vadd.f32 %v4279_v51, %v4240_v54  ;;  %v6657_v44 = vpop.f32.mrb[77].mxu0 }
0x59cf   :  { %v4282_v52 = vpop.f32.mrb[78].mxu0 }
0x59d0   :  { %v8408_v55 = vadd.f32 %v4282_v52, %v4240_v54  ;;  %v4295_v46 = vrot.slane %v8406_v53, %v7745_v56  ;;  %v6658_v36 = vpop.f32.mrb[79].mxu0  ;;  %v4288_v39 = vcombine.high %v8406_v53, %v8406_v53 }
0x59d2   :  { %v4371_v57 = vadd.f32 %v4365_v40, %v4295_v46  ;;  %v4303_v20 = vcombine.high %v4295_v46, %v4295_v46  ;;  %v4302_v40 = vrot.slane %v4288_v39, %v7745_v56 }
0x59d4   :  { %7113 = vtanh.f32 %v4371_v57  ;;  %v6228_v59 = vmul.f32 -1.442695, %v4371_v57 }
0x59d6   :  { %7115 = vpow2.f32 %v6228_v59 }
0x59de   :  { %v7114_v58 = vpop.eup %7113 }
0x59df   :  { %4381 = vrot.lane.b32.xlu0 %v7114_v58, %s7479_s5 }
0x59e0   :  { %v7116_v60 = vpop.eup %7115 }
0x59e1   :  { %v4375_v62 = vadd.f32 1.0, %v7116_v60 }
0x59e3   :  { %7117 = vrcp.f32 %v4375_v62 }
0x59ed   :  { %v7118_v47 = vpop.eup %7117 }
0x59ee   :  { %v4379_v2 = vmul.f32 0.0, %v7118_v47 }
0x5a51   :  { %v4382_v61 = vpop.permute.xlu0 %4381 }
0x5a52   :  { %v4384_v25 = vmul.f32 %v7118_v47, %v4382_v61 }
0x5a54   :  { %4386 = vrot.lane.b32.xlu1 %v4384_v25, %s7480_s21  ;;  %v4304_v25 = vcombine.high %v4302_v40, %v4302_v40 }
0x5ac6   :  { %v4387_v12 = vpop.permute.xlu1 %4386 }
0x5ac7   :  { %v4389_v10 = vadd.f32 %v4387_v12, %v4379_v2 }
0x5ac9   :  { %7119 = vtanh.f32 %v4389_v10 }
0x5ad3   :  { %v7120_v43 = vpop.eup %7119 }
0x5ad4   :  { %4392 = vrot.lane.b32.xlu0 %v7120_v43, %s7481_s17 }
0x5b46   :  { %v4393_v9 = vpop.permute.xlu0 %4392 }
0x5b47   :  { %v8415_v16 = vmul.f32 %v7118_v47, %v4393_v9 }
0x5b49   :  { %v4408_v17 = vpack.c.bf16 %v8415_v16, %v8415_v16 }
0x5b4b   :  { %4410 = vrot.lane.b32.xlu1 %v4408_v17, %s7482_s25 }
0x5bbd   :  { %v4411_v18 = vpop.permute.xlu1 %4410 }
0x5bbe   :  { %6668 = vmatmul.mubr.msk.bf16.vlgmr.msra.gmra.mrb[80].mxu0 %vm927_vm7, %v4411_v18 }
0x5bbf   :  { %6678 = vmatpush3.bf16.msra.mxu0 %v8377_v6  ;;  %6679 = vmatprep.mubr.msk.bf16.mxu0 %vm7476_vm4, %v7475_v24 }
0x5bc0   :  { %6689 = vmatprep.subr.bf16.mxu0 %v7475_v24 }
0x5c91   :  { %v4449_v31 = vpop.f32.mrb[80].mxu0 }
0x5c92   :  { %v4455_v21 = vadd.f32 %v4449_v31, %v4303_v20  ;;  %v6669_v11 = vpop.f32.mrb[81].mxu0 }
0x5c93   :  { %v4452_v63 = vpop.f32.mrb[82].mxu0 }
0x5c94   :  { %7121 = vtanh.f32 %v4455_v21  ;;  %v6670_v23 = vpop.f32.mrb[83].mxu0  ;;  %v6230_v26 = vmul.f32 -1.442695, %v4455_v21 }
0x5c96   :  { %7123 = vpow2.f32 %v6230_v26 }
0x5c9e   :  { %v7122_v38 = vpop.eup %7121 }
0x5c9f   :  { %4465 = vrot.lane.b32.xlu0 %v7122_v38, %s7479_s5 }
0x5ca0   :  { %v7124_v19 = vpop.eup %7123 }
0x5ca1   :  { %v4459_v27 = vadd.f32 1.0, %v7124_v19 }
0x5ca3   :  { %7125 = vrcp.f32 %v4459_v27 }
0x5cad   :  { %v7126_v28 = vpop.eup %7125 }
0x5cae   :  { %v4463_v15 = vmul.f32 %v7126_v28, %v4389_v10 }
0x5d11   :  { %v4466_v32 = vpop.permute.xlu0 %4465 }
0x5d12   :  { %v4468_v33 = vmul.f32 %v7126_v28, %v4466_v32 }
0x5d14   :  { %4470 = vrot.lane.b32.xlu1 %v4468_v33, %s7480_s21 }
0x5d86   :  { %v4471_v34 = vpop.permute.xlu1 %4470 }
0x5d87   :  { %v4473_v48 = vadd.f32 %v4471_v34, %v4463_v15  ;;  %v4312_v15 = vrot.slane %v8408_v55, %v7745_v56 }
0x5d89   :  { %7127 = vtanh.f32 %v4473_v48 }
0x5d93   :  { %v7128_v35 = vpop.eup %7127 }
0x5d94   :  { %4476 = vrot.lane.b32.xlu0 %v7128_v35, %s7481_s17 }
0x5e06   :  { %v4477_v29 = vpop.permute.xlu0 %4476 }
0x5e07   :  { %v8428_v30 = vmul.f32 %v7126_v28, %v4477_v29 }
0x5e09   :  { %v4492_v22 = vpack.c.bf16 %v8428_v30, %v8428_v30 }
0x5e0b   :  { %4494 = vrot.lane.b32.xlu1 %v4492_v22, %s7482_s25 }
0x5e7d   :  { %v4495_v37 = vpop.permute.xlu1 %4494 }
0x5e7e   :  { %6674 = vmatmul.mubr.msk.bf16.vlgmr.msra.gmra.mrb[84].mxu1 %vm927_vm7, %v4495_v37 }
0x5e7f   :  { %6684 = vmatpush3.bf16.msra.mxu1 %v8377_v6  ;;  %6685 = vmatprep.mubr.msk.bf16.mxu1 %vm7476_vm4, %v7475_v24 }
0x5e80   :  { %6695 = vmatprep.subr.bf16.mxu1 %v7475_v24 }
0x5f51   :  { %v4533_v41 = vpop.f32.mrb[84].mxu1 }
0x5f52   :  { %v4539_v42 = vadd.f32 %v4533_v41, %v4302_v40  ;;  %v6675_v49 = vpop.f32.mrb[85].mxu1 }
0x5f53   :  { %v4536_v14 = vpop.f32.mrb[86].mxu1 }
0x5f54   :  { %7129 = vtanh.f32 %v4539_v42  ;;  %v6676_v1 = vpop.f32.mrb[87].mxu1  ;;  %v6232_v54 = vmul.f32 -1.442695, %v4539_v42 }
0x5f56   :  { %7131 = vpow2.f32 %v6232_v54 }
0x5f5e   :  { %v7130_v50 = vpop.eup %7129 }
0x5f5f   :  { %4549 = vrot.lane.b32.xlu0 %v7130_v50, %s7479_s5 }
0x5f60   :  { %v7132_v51 = vpop.eup %7131 }
0x5f61   :  { %v4543_v44 = vadd.f32 1.0, %v7132_v51 }
0x5f63   :  { %7133 = vrcp.f32 %v4543_v44 }
0x5f6d   :  { %v7134_v52 = vpop.eup %7133 }
0x5f6e   :  { %v4547_v53 = vmul.f32 %v7134_v52, %v4473_v48 }
0x5fd1   :  { %v4550_v46 = vpop.permute.xlu0 %4549 }
0x5fd2   :  { %v4552_v36 = vmul.f32 %v7134_v52, %v4550_v46 }
0x5fd4   :  { %4554 = vrot.lane.b32.xlu1 %v4552_v36, %s7480_s21 }
0x6046   :  { %v4555_v57 = vpop.permute.xlu1 %4554 }
0x6047   :  { %v4557_v58 = vadd.f32 %v4555_v57, %v4547_v53  ;;  %v4320_v53 = vcombine.high %v4312_v15, %v4312_v15 }
0x6049   :  { %7135 = vtanh.f32 %v4557_v58 }
0x6053   :  { %v7136_v59 = vpop.eup %7135 }
0x6054   :  { %4560 = vrot.lane.b32.xlu0 %v7136_v59, %s7481_s17 }
0x60c6   :  { %v4561_v60 = vpop.permute.xlu0 %4560 }
0x60c7   :  { %v8444_v62 = vmul.f32 %v7134_v52, %v4561_v60 }
0x60c9   :  { %v4576_v47 = vpack.c.bf16 %v8444_v62, %v8444_v62 }
0x60cb   :  { %4578 = vrot.lane.b32.xlu1 %v4576_v47, %s7482_s25 }
0x613d   :  { %v4579_v61 = vpop.permute.xlu1 %4578 }
0x613e   :  { %6680 = vmatmul.mubr.msk.bf16.vlgmr.msra.gmra.mrb[84].mxu0 %vm927_vm7, %v4579_v61 }
0x613f   :  { %6690 = vmatpush3.bf16.msra.mxu0 %v8377_v6  ;;  %6691 = vmatprep.mubr.msk.bf16.mxu0 %vm7476_vm4, %v7475_v24 }
0x6140   :  { %6701 = vmatprep.subr.bf16.mxu0 %v7475_v24 }
0x6211   :  { %v4617_v2 = vpop.f32.mrb[84].mxu0 }
0x6212   :  { %v4623_v12 = vadd.f32 %v4617_v2, %v4304_v25  ;;  %v6681_v10 = vpop.f32.mrb[85].mxu0 }
0x6213   :  { %v4620_v43 = vpop.f32.mrb[86].mxu0 }
0x6214   :  { %7137 = vtanh.f32 %v4623_v12  ;;  %v6682_v9 = vpop.f32.mrb[87].mxu0  ;;  %v6234_v18 = vmul.f32 -1.442695, %v4623_v12 }
0x6216   :  { %7139 = vpow2.f32 %v6234_v18 }
0x621e   :  { %v7138_v17 = vpop.eup %7137 }
0x621f   :  { %4633 = vrot.lane.b32.xlu0 %v7138_v17, %s7479_s5 }
0x6220   :  { %v7140_v20 = vpop.eup %7139 }
0x6221   :  { %v4627_v31 = vadd.f32 1.0, %v7140_v20 }
0x6223   :  { %7141 = vrcp.f32 %v4627_v31 }
0x622d   :  { %v7142_v21 = vpop.eup %7141 }
0x622e   :  { %v4631_v23 = vmul.f32 %v7142_v21, %v4557_v58 }
0x6291   :  { %v4634_v11 = vpop.permute.xlu0 %4633 }
0x6292   :  { %v4636_v63 = vmul.f32 %v7142_v21, %v4634_v11 }
0x6294   :  { %4638 = vrot.lane.b32.xlu1 %v4636_v63, %s7480_s21 }
0x6306   :  { %v4639_v38 = vpop.permute.xlu1 %4638 }
0x6307   :  { %v4641_v26 = vadd.f32 %v4639_v38, %v4631_v23  ;;  %v4305_v23 = vcombine.high %v8408_v55, %v8408_v55 }
0x6309   :  { %7143 = vtanh.f32 %v4641_v26  ;;  %v4319_v38 = vrot.slane %v4305_v23, %v7745_v56  ;;  %v5007_v23 = vld [vmem:[%s8868_s29 + $0x8] sm:$0xff] }
0x6313   :  { %v7144_v19 = vpop.eup %7143 }
0x6314   :  { %4644 = vrot.lane.b32.xlu0 %v7144_v19, %s7481_s17 }
0x6386   :  { %v4645_v27 = vpop.permute.xlu0 %4644 }
0x6387   :  { %v8457_v28 = vmul.f32 %v7142_v21, %v4645_v27 }
0x6389   :  { %v4660_v32 = vpack.c.bf16 %v8457_v28, %v8457_v28 }
0x638b   :  { %4662 = vrot.lane.b32.xlu1 %v4660_v32, %s7482_s25 }
0x63fd   :  { %v4663_v33 = vpop.permute.xlu1 %4662 }
0x63fe   :  { %6686 = vmatmul.mubr.msk.bf16.vlgmr.msra.gmra.mrb[88].mxu1 %vm927_vm7, %v4663_v33 }
0x63ff   :  { %6696 = vmatpush3.bf16.msra.mxu1 %v8377_v6  ;;  %6697 = vmatprep.mubr.msk.bf16.mxu1 %vm7476_vm4, %v7475_v24 }
0x6400   :  { %6707 = vmatprep.subr.bf16.mxu1 %v7475_v24 }
0x64d1   :  { %v4701_v34 = vpop.f32.mrb[88].mxu1 }
0x64d2   :  { %v4707_v48 = vadd.f32 %v4701_v34, %v4312_v15  ;;  %v6687_v35 = vpop.f32.mrb[89].mxu1 }
0x64d3   :  { %v4704_v29 = vpop.f32.mrb[90].mxu1 }
0x64d4   :  { %7145 = vtanh.f32 %v4707_v48  ;;  %v6688_v22 = vpop.f32.mrb[91].mxu1  ;;  %v6236_v39 = vmul.f32 -1.442695, %v4707_v48 }
0x64d6   :  { %7147 = vpow2.f32 %v6236_v39 }
0x64de   :  { %v7146_v37 = vpop.eup %7145 }
0x64df   :  { %4717 = vrot.lane.b32.xlu0 %v7146_v37, %s7479_s5 }
0x64e0   :  { %v7148_v40 = vpop.eup %7147 }
0x64e1   :  { %v4711_v41 = vadd.f32 1.0, %v7148_v40 }
0x64e3   :  { %7149 = vrcp.f32 %v4711_v41 }
0x64ed   :  { %v7150_v42 = vpop.eup %7149 }
0x64ee   :  { %v4715_v1 = vmul.f32 %v7150_v42, %v4641_v26 }
0x6551   :  { %v4718_v49 = vpop.permute.xlu0 %4717 }
0x6552   :  { %v4720_v14 = vmul.f32 %v7150_v42, %v4718_v49 }
0x6554   :  { %4722 = vrot.lane.b32.xlu1 %v4720_v14, %s7480_s21 }
0x65c6   :  { %v4723_v50 = vpop.permute.xlu1 %4722 }
0x65c7   :  { %v4725_v54 = vadd.f32 %v4723_v50, %v4715_v1  ;;  %v4321_v50 = vcombine.high %v4319_v38, %v4319_v38 }
0x65c9   :  { %7151 = vtanh.f32 %v4725_v54 }
0x65d3   :  { %v7152_v51 = vpop.eup %7151 }
0x65d4   :  { %4728 = vrot.lane.b32.xlu0 %v7152_v51, %s7481_s17 }
0x6646   :  { %v4729_v44 = vpop.permute.xlu0 %4728 }
0x6647   :  { %v8472_v52 = vmul.f32 %v7150_v42, %v4729_v44 }
0x6649   :  { %v4744_v46 = vpack.c.bf16 %v8472_v52, %v8472_v52 }
0x664b   :  { %4746 = vrot.lane.b32.xlu1 %v4744_v46, %s7482_s25 }
0x66bd   :  { %v4747_v36 = vpop.permute.xlu1 %4746 }
0x66be   :  { %6692 = vmatmul.mubr.msk.bf16.vlgmr.msra.gmra.mrb[88].mxu0 %vm927_vm7, %v4747_v36 }
0x66bf   :  { %6702 = vmatpush3.bf16.msra.mxu0 %v8377_v6  ;;  %6703 = vmatprep.mubr.msk.bf16.mxu0 %vm7476_vm4, %v7475_v24 }
0x66c0   :  { %6713 = vmatprep.subr.bf16.mxu0 %v7475_v24 }
0x6791   :  { %v4785_v57 = vpop.f32.mrb[88].mxu0 }
0x6792   :  { %v4791_v58 = vadd.f32 %v4785_v57, %v4320_v53  ;;  %v6693_v59 = vpop.f32.mrb[89].mxu0 }
0x6793   :  { %v4788_v60 = vpop.f32.mrb[90].mxu0 }
0x6794   :  { %7153 = vtanh.f32 %v4791_v58  ;;  %v6694_v47 = vpop.f32.mrb[91].mxu0  ;;  %v6238_v25 = vmul.f32 -1.442695, %v4791_v58 }
0x6796   :  { %7155 = vpow2.f32 %v6238_v25  ;;  %v4403_v25 = vrot.slane %v8415_v16, %v7745_v56 }
0x679e   :  { %v7154_v61 = vpop.eup %7153 }
0x679f   :  { %4801 = vrot.lane.b32.xlu0 %v7154_v61, %s7479_s5 }
0x67a0   :  { %v7156_v2 = vpop.eup %7155 }
0x67a1   :  { %v4795_v12 = vadd.f32 1.0, %v7156_v2  ;;  %v4571_v2 = vrot.slane %v8444_v62, %v7745_v56 }
0x67a3   :  { %7157 = vrcp.f32 %v4795_v12  ;;  %v4739_v12 = vrot.slane %v8472_v52, %v7745_v56 }
0x67ad   :  { %v7158_v6 = vpop.eup %7157 }
0x67ae   :  { %v4799_v9 = vmul.f32 %v7158_v6, %v4725_v54 }
0x6811   :  { %v4802_v10 = vpop.permute.xlu0 %4801 }
0x6812   :  { %v4804_v43 = vmul.f32 %v7158_v6, %v4802_v10 }
0x6814   :  { %4806 = vrot.lane.b32.xlu1 %v4804_v43, %s7480_s21 }
0x6886   :  { %v4807_v17 = vpop.permute.xlu1 %4806 }
0x6887   :  { %v4809_v18 = vadd.f32 %v4807_v17, %v4799_v9 }
0x6889   :  { %7159 = vtanh.f32 %v4809_v18 }
0x6893   :  { %v7160_v20 = vpop.eup %7159 }
0x6894   :  { %4812 = vrot.lane.b32.xlu0 %v7160_v20, %s7481_s17 }
0x6906   :  { %v4813_v31 = vpop.permute.xlu0 %4812 }
0x6907   :  { %v8485_v21 = vmul.f32 %v7158_v6, %v4813_v31  ;;  %v4655_v31 = vrot.slane %v8457_v28, %v7745_v56 }
0x6909   :  { %v4828_v11 = vpack.c.bf16 %v8485_v21, %v8485_v21 }
0x690b   :  { %4830 = vrot.lane.b32.xlu1 %v4828_v11, %s7482_s25  ;;  %v4823_v11 = vrot.slane %v8485_v21, %v7745_v56 }
0x697d   :  { %v4831_v63 = vpop.permute.xlu1 %4830 }
0x697e   :  { %6698 = vmatmul.mubr.msk.bf16.vlgmr.msra.gmra.mrb[92].mxu1 %vm927_vm7, %v4831_v63  ;;  %v5006_v63 = vld [vmem:[%s8868_s29] sm:$0xff] }
0x697f   :  { %6709 = vmatprep.mubr.msk.bf16.mxu1 %vm7476_vm4, %v7475_v24 }
0x6a51   :  { %v4869_v26 = vpop.f32.mrb[92].mxu1 }
0x6a52   :  { %v4875_v19 = vadd.f32 %v4869_v26, %v4319_v38  ;;  %v6699_v27 = vpop.f32.mrb[93].mxu1  ;;  %v4996_v38 = vld [vmem:[%s8869_s16] sm:$0xff]  ;;  %v5016_v26 = vpack.c.bf16 %v5007_v23, %v5006_v63 }
0x6a53   :  { %v4872_v32 = vpop.f32.mrb[94].mxu1 }
0x6a54   :  { %7161 = vtanh.f32 %v4875_v19  ;;  %v6700_v33 = vpop.f32.mrb[95].mxu1  ;;  %v6240_v34 = vmul.f32 -1.442695, %v4875_v19  ;;  %6708 = vmatpush3.bf16.msra.mxu1 %v5016_v26 }
0x6a55   :  { %6719 = vmatprep.subr.bf16.mxu1 %v7475_v24 }
0x6a56   :  { %7163 = vpow2.f32 %v6240_v34 }
0x6a5e   :  { %v7162_v15 = vpop.eup %7161 }
0x6a5f   :  { %4885 = vrot.lane.b32.xlu0 %v7162_v15, %s7479_s5 }
0x6a60   :  { %v7164_v48 = vpop.eup %7163 }
0x6a61   :  { %v4879_v35 = vadd.f32 1.0, %v7164_v48 }
0x6a63   :  { %7165 = vrcp.f32 %v4879_v35 }
0x6a6d   :  { %v7166_v29 = vpop.eup %7165 }
0x6a6e   :  { %v4883_v55 = vmul.f32 %v7166_v29, %v4809_v18  ;;  %v4487_v18 = vrot.slane %v8428_v30, %v7745_v56  ;;  %v4997_v30 = vld [vmem:[%s8869_s16 + $0x8] sm:$0xff] }
0x6a6f   :  { %v8534_v19 = vpack.c.bf16 %v4997_v30, %v4996_v38 }
0x6ad1   :  { %v4886_v22 = vpop.permute.xlu0 %4885 }
0x6ad2   :  { %v4888_v37 = vmul.f32 %v7166_v29, %v4886_v22 }
0x6ad4   :  { %4890 = vrot.lane.b32.xlu1 %v4888_v37, %s7480_s21 }
0x6b46   :  { %v4891_v39 = vpop.permute.xlu1 %4890 }
0x6b47   :  { %v4893_v40 = vadd.f32 %v4891_v39, %v4883_v55 }
0x6b49   :  { %7167 = vtanh.f32 %v4893_v40 }
0x6b53   :  { %v7168_v41 = vpop.eup %7167 }
0x6b54   :  { %4896 = vrot.lane.b32.xlu0 %v7168_v41, %s7481_s17 }
0x6bc6   :  { %v4897_v42 = vpop.permute.xlu0 %4896 }
0x6bc7   :  { %v4899_v49 = vmul.f32 %v7166_v29, %v4897_v42 }
0x6bc9   :  { %v4912_v14 = vpack.c.bf16 %v4899_v49, %v4899_v49  ;;  %v4907_v6 = vrot.slane %v4899_v49, %v7745_v56 }
0x6bcb   :  { %4914 = vrot.lane.b32.xlu1 %v4912_v14, %s7482_s25 }
0x6c3d   :  { %v4915_v1 = vpop.permute.xlu1 %4914 }
0x6c3e   :  { %6704 = vmatmul.mubr.msk.bf16.vlgmr.msra.gmra.mrb[92].mxu0 %vm927_vm7, %v4915_v1 }
0x6c3f   :  { %6715 = vmatprep.mubr.msk.bf16.mxu0 %vm7476_vm4, %v7475_v24  ;;  %6714 = vmatpush3.bf16.msra.mxu0 %v8534_v19 }
0x6c40   :  { %6725 = vmatprep.subr.bf16.mxu0 %v7475_v24 }
0x6c46   :  { %6716 = vmatmul.mubr.bf16.vlgmr.msra.gmra.mrb[96].mxu0 %v7477_v45 }
0x6c47   :  { %6726 = vmatpush3.bf16.msra.mxu0 %v8534_v19  ;;  %6727 = vmatprep.mubr.msk.bf16.mxu0 %vm7476_vm4, %v7475_v24 }
0x6c48   :  { %6737 = vmatprep.subr.bf16.mxu0 %v7475_v24 }
0x6d11   :  { %v4953_v54 = vpop.f32.mrb[92].mxu0 }
0x6d12   :  { %v4959_v51 = vadd.f32 %v4953_v54, %v4321_v50  ;;  %v6705_v44 = vpop.f32.mrb[93].mxu0 }
0x6d13   :  { %v4956_v46 = vpop.f32.mrb[94].mxu0 }
0x6d14   :  { %7169 = vtanh.f32 %v4959_v51  ;;  %v6706_v36 = vpop.f32.mrb[95].mxu0  ;;  %v6242_v57 = vmul.f32 -1.442695, %v4959_v51 }
0x6d16   :  { %7171 = vpow2.f32 %v6242_v57 }
0x6d19   :  { %v5213_v57 = vpop.f32.mrb[96].mxu0 }
0x6d1e   :  { %v7170_v53 = vpop.eup %7169 }
0x6d1f   :  { %4969 = vrot.lane.b32.xlu0 %v7170_v53, %s7479_s5 }
0x6d20   :  { %v7172_v58 = vpop.eup %7171 }
0x6d21   :  { %v4963_v59 = vadd.f32 1.0, %v7172_v58  ;;  %v6717_v58 = vpop.f32.mrb[97].mxu0 }
0x6d23   :  { %7173 = vrcp.f32 %v4963_v59  ;;  %v5216_v59 = vpop.f32.mrb[98].mxu0 }
0x6d2d   :  { %v7174_v60 = vpop.eup %7173 }
0x6d2e   :  { %v4967_v10 = vmul.f32 %v7174_v60, %v4893_v40 }
0x6d91   :  { %v4970_v47 = vpop.permute.xlu0 %4969 }
0x6d92   :  { %v4972_v61 = vmul.f32 %v7174_v60, %v4970_v47  ;;  %v6243_v47 = vld [vmem:[%s8870_s18] ss:$0 sm:$0xff] }
0x6d94   :  { %4974 = vrot.lane.b32.xlu1 %v4972_v61, %s7480_s21  ;;  %v5080_v61 = vcombine.low %v6243_v47, %v6243_v47 }
0x6d98   :  { %4404 = vrot.lane.b32.xlu1 %v4403_v25, %s7482_s25  ;;  %v5087_v25 = vrot.slane %v5080_v61, %v7745_v56 }
0x6d9c   :  { %4572 = vrot.lane.b32.xlu1 %v4571_v2, %s7482_s25  ;;  %v5088_v2 = vcombine.low %v5087_v25, %v5087_v25 }
0x6da0   :  { %4740 = vrot.lane.b32.xlu1 %v4739_v12, %s7482_s25 }
0x6da4   :  { %4908 = vrot.lane.b32.xlu1 %v4907_v6, %s7482_s25 }
0x6e06   :  { %v4975_v43 = vpop.permute.xlu1 %4974 }
0x6e07   :  { %v4977_v9 = vadd.f32 %v4975_v43, %v4967_v10 }
0x6e09   :  { %7175 = vtanh.f32 %v4977_v9 }
0x6e0a   :  { %v4405_v16 = vpop.permute.xlu1 %4404 }
0x6e0b   :  { %4407 = vst.msk [vmem:[#allocation2] sm:$0x3] %vm1007_vm8, %v4405_v16 }
0x6e0e   :  { %v4573_v62 = vpop.permute.xlu1 %4572 }
0x6e0f   :  { %4575 = vst.msk [vmem:[#allocation2 + $0x4] sm:$0x3] %vm1007_vm8, %v4573_v62 }
0x6e12   :  { %v4741_v52 = vpop.permute.xlu1 %4740  ;;  %v4998_v22 = vld [vmem:[#allocation2] sm:$0x3] }
0x6e13   :  { %v7176_v17 = vpop.eup %7175  ;;  %4743 = vst.msk [vmem:[#allocation2 + $0x8] sm:$0x3] %vm1007_vm8, %v4741_v52 }
0x6e14   :  { %4980 = vrot.lane.b32.xlu0 %v7176_v17, %s7481_s17 }
0x6e16   :  { %v4909_v20 = vpop.permute.xlu1 %4908  ;;  %v5000_v35 = vld [vmem:[#allocation2 + $0x4] sm:$0x3] }
0x6e17   :  { %4911 = vst.msk [vmem:[#allocation2 + $0xc] sm:$0x3] %vm1007_vm8, %v4909_v20 }
0x6e18   :  { %4488 = vrot.lane.b32.xlu0 %v4487_v18, %s7482_s25 }
0x6e1a   :  { %v5002_v39 = vld [vmem:[#allocation2 + $0x8] sm:$0x3] }
0x6e1c   :  { %4656 = vrot.lane.b32.xlu0 %v4655_v31, %s7482_s25 }
0x6e1e   :  { %v5004_v42 = vld [vmem:[#allocation2 + $0xc] sm:$0x3] }
0x6e20   :  { %4824 = vrot.lane.b32.xlu0 %v4823_v11, %s7482_s25 }
0x6e86   :  { %v4981_v28 = vpop.permute.xlu0 %4980 }
0x6e87   :  { %v4983_v21 = vmul.f32 %v7174_v60, %v4981_v28  ;;  %v6718_v60 = vpop.f32.mrb[99].mxu0 }
0x6e89   :  { %v4991_v27 = vrot.slane %v4983_v21, %v7745_v56 }
0x6e8a   :  { %v4489_v32 = vpop.permute.xlu0 %4488 }
0x6e8b   :  { %4491 = vst.msk [vmem:[#allocation2 + $0x2] sm:$0x3] %vm1007_vm8, %v4489_v32  ;;  %4992 = vrot.lane.b32.xlu0 %v4991_v27, %s7482_s25 }
0x6e8e   :  { %v4657_v33 = vpop.permute.xlu0 %4656 }
0x6e8f   :  { %4659 = vst.msk [vmem:[#allocation2 + $0x6] sm:$0x3] %vm1007_vm8, %v4657_v33 }
0x6e92   :  { %v4825_v45 = vpop.permute.xlu0 %4824  ;;  %v4999_v48 = vld [vmem:[#allocation2 + $0x2] sm:$0x3] }
0x6e93   :  { %4827 = vst.msk [vmem:[#allocation2 + $0xa] sm:$0x3] %vm1007_vm8, %v4825_v45  ;;  %v6244_v55 = vpack.c.bf16 %v4999_v48, %v4998_v22 }
0x6e95   :  { %v5041_v1 = vrot.slane %v6244_v55, %v7687_v13 }
0x6e96   :  { %v5001_v34 = vld [vmem:[#allocation2 + $0x6] sm:$0x3] }
0x6e97   :  { %v6245_v29 = vpack.c.bf16 %v5001_v34, %v5000_v35 }
0x6e99   :  { %v5048_v41 = vrot.slane %v6245_v29, %v7687_v13 }
0x6e9a   :  { %v5003_v37 = vld [vmem:[#allocation2 + $0xa] sm:$0x3] }
0x6e9b   :  { %v6246_v40 = vpack.c.bf16 %v5003_v37, %v5002_v39  ;;  %v5063_v51 = vcombine.low %v5041_v1, %v5048_v41 }
0x6e9d   :  { %v5055_v50 = vrot.slane %v6246_v40, %v7687_v13  ;;  %v5071_v46 = vrot.slane %v5063_v51, %v7687_v13 }
0x6efd   :  { %v4993_v15 = vpop.permute.xlu0 %4992 }
0x6efe   :  { %4995 = vst.msk [vmem:[#allocation2 + $0xe] sm:$0x3] %vm1007_vm8, %v4993_v15 }
0x6f05   :  { %v5005_v49 = vld [vmem:[#allocation2 + $0xe] sm:$0x3] }
0x6f06   :  { %v6247_v14 = vpack.c.bf16 %v5005_v49, %v5004_v42 }
0x6f08   :  { %v5062_v54 = vrot.slane %v6247_v14, %v7687_v13 }
0x6f0a   :  { %v5064_v44 = vcombine.low %v5055_v50, %v5062_v54 }
0x6f0c   :  { %v5078_v36 = vrot.slane %v5064_v44, %v7687_v13 }
0x6f0e   :  { %v5079_v53 = vcombine.low %v5071_v46, %v5078_v36 }
0x6f10   :  { %6710 = vmatmul.mubr.msk.bf16.vlgmr.msra.gmra.mrb[96].mxu1 %vm927_vm7, %v5079_v53 }
0x6f11   :  { %6720 = vmatpush3.bf16.msra.mxu1 %v8534_v19  ;;  %6721 = vmatprep.mubr.msk.bf16.mxu1 %vm7476_vm4, %v7475_v24 }
0x6f12   :  { %6731 = vmatprep.subr.bf16.mxu1 %v7475_v24 }
0x6fe3   :  { %v5127_v12 = vpop.f32.mrb[96].mxu1 }
0x6fe4   :  { %v8563_v6 = vadd.f32 %v5127_v12, %v5088_v2  ;;  %v6711_v10 = vpop.f32.mrb[97].mxu1 }
0x6fe5   :  { %v5130_v43 = vpop.f32.mrb[98].mxu1 }
0x6fe6   :  { %v8565_v9 = vadd.f32 %v5130_v43, %v5088_v2  ;;  %v5143_v16 = vrot.slane %v8563_v6, %v7745_v56  ;;  %v6712_v62 = vpop.f32.mrb[99].mxu1  ;;  %v5136_v36 = vcombine.high %v8563_v6, %v8563_v6 }
0x6fe8   :  { %v5219_v52 = vadd.f32 %v5213_v57, %v5143_v16  ;;  %v5151_v45 = vcombine.high %v5143_v16, %v5143_v16  ;;  %v5150_v53 = vrot.slane %v5136_v36, %v7745_v56 }
0x6fea   :  { %7177 = vtanh.f32 %v5219_v52  ;;  %v6249_v18 = vmul.f32 -1.442695, %v5219_v52 }
0x6fec   :  { %7179 = vpow2.f32 %v6249_v18 }
0x6ff4   :  { %v7178_v17 = vpop.eup %7177 }
0x6ff5   :  { %5229 = vrot.lane.b32.xlu1 %v7178_v17, %s7479_s5 }
0x6ff6   :  { %v7180_v20 = vpop.eup %7179 }
0x6ff7   :  { %v5223_v31 = vadd.f32 1.0, %v7180_v20 }
0x6ff9   :  { %7181 = vrcp.f32 %v5223_v31 }
0x7003   :  { %v7182_v11 = vpop.eup %7181 }
0x7004   :  { %v5227_v38 = vmul.f32 0.0, %v7182_v11 }
0x7067   :  { %v5230_v63 = vpop.permute.xlu1 %5229 }
0x7068   :  { %v5232_v23 = vmul.f32 %v7182_v11, %v5230_v63  ;;  %v5152_v63 = vcombine.high %v5150_v53, %v5150_v53 }
0x706a   :  { %5234 = vrot.lane.b32.xlu0 %v5232_v23, %s7480_s21 }
0x70dc   :  { %v5235_v26 = vpop.permute.xlu0 %5234 }
0x70dd   :  { %v5237_v30 = vadd.f32 %v5235_v26, %v5227_v38 }
0x70df   :  { %7183 = vtanh.f32 %v5237_v30 }
0x70e9   :  { %v7184_v28 = vpop.eup %7183 }
0x70ea   :  { %5240 = vrot.lane.b32.xlu1 %v7184_v28, %s7481_s17 }
0x715c   :  { %v5241_v21 = vpop.permute.xlu1 %5240 }
0x715d   :  { %v8572_v27 = vmul.f32 %v7182_v11, %v5241_v21 }
0x715f   :  { %v5256_v32 = vpack.c.bf16 %v8572_v27, %v8572_v27 }
0x7161   :  { %5258 = vrot.lane.b32.xlu0 %v5256_v32, %s7482_s25 }
0x71d3   :  { %v5259_v33 = vpop.permute.xlu0 %5258 }
0x71d4   :  { %6722 = vmatmul.mubr.msk.bf16.vlgmr.msra.gmra.mrb[100].mxu1 %vm927_vm7, %v5259_v33 }
0x71d5   :  { %6732 = vmatpush3.bf16.msra.mxu1 %v8534_v19  ;;  %6733 = vmatprep.mubr.msk.bf16.mxu1 %vm7476_vm4, %v7475_v24 }
0x71d6   :  { %6743 = vmatprep.subr.bf16.mxu1 %v7475_v24 }
0x72a7   :  { %v5297_v15 = vpop.f32.mrb[100].mxu1 }
0x72a8   :  { %v5303_v34 = vadd.f32 %v5297_v15, %v5151_v45  ;;  %v6723_v48 = vpop.f32.mrb[101].mxu1 }
0x72a9   :  { %v5300_v35 = vpop.f32.mrb[102].mxu1 }
0x72aa   :  { %7185 = vtanh.f32 %v5303_v34  ;;  %v6724_v29 = vpop.f32.mrb[103].mxu1  ;;  %v6251_v37 = vmul.f32 -1.442695, %v5303_v34 }
0x72ac   :  { %7187 = vpow2.f32 %v6251_v37 }
0x72b4   :  { %v7186_v22 = vpop.eup %7185 }
0x72b5   :  { %5313 = vrot.lane.b32.xlu1 %v7186_v22, %s7479_s5 }
0x72b6   :  { %v7188_v55 = vpop.eup %7187 }
0x72b7   :  { %v5307_v39 = vadd.f32 1.0, %v7188_v55 }
0x72b9   :  { %7189 = vrcp.f32 %v5307_v39 }
0x72c3   :  { %v7190_v40 = vpop.eup %7189 }
0x72c4   :  { %v5311_v49 = vmul.f32 %v7190_v40, %v5237_v30 }
0x7327   :  { %v5314_v41 = vpop.permute.xlu1 %5313 }
0x7328   :  { %v5316_v42 = vmul.f32 %v7190_v40, %v5314_v41 }
0x732a   :  { %5318 = vrot.lane.b32.xlu0 %v5316_v42, %s7480_s21  ;;  %v5160_v42 = vrot.slane %v8565_v9, %v7745_v56 }
0x739c   :  { %v5319_v14 = vpop.permute.xlu0 %5318 }
0x739d   :  { %v5321_v1 = vadd.f32 %v5319_v14, %v5311_v49 }
0x739f   :  { %7191 = vtanh.f32 %v5321_v1 }
0x73a9   :  { %v7192_v50 = vpop.eup %7191 }
0x73aa   :  { %5324 = vrot.lane.b32.xlu1 %v7192_v50, %s7481_s17 }
0x741c   :  { %v5325_v54 = vpop.permute.xlu1 %5324 }
0x741d   :  { %v8585_v51 = vmul.f32 %v7190_v40, %v5325_v54 }
0x741f   :  { %v5340_v44 = vpack.c.bf16 %v8585_v51, %v8585_v51 }
0x7421   :  { %5342 = vrot.lane.b32.xlu0 %v5340_v44, %s7482_s25 }
0x7493   :  { %v5343_v46 = vpop.permute.xlu0 %5342 }
0x7494   :  { %6728 = vmatmul.mubr.msk.bf16.vlgmr.msra.gmra.mrb[100].mxu0 %vm927_vm7, %v5343_v46 }
0x7495   :  { %6738 = vmatpush3.bf16.msra.mxu0 %v8534_v19  ;;  %6739 = vmatprep.mubr.msk.bf16.mxu0 %vm7476_vm4, %v7475_v24 }
0x7496   :  { %6749 = vmatprep.subr.bf16.mxu0 %v7475_v24 }
0x7567   :  { %v5381_v57 = vpop.f32.mrb[100].mxu0 }
0x7568   :  { %v5387_v58 = vadd.f32 %v5381_v57, %v5150_v53  ;;  %v6729_v59 = vpop.f32.mrb[101].mxu0 }
0x7569   :  { %v5384_v60 = vpop.f32.mrb[102].mxu0 }
0x756a   :  { %7193 = vtanh.f32 %v5387_v58  ;;  %v6730_v47 = vpop.f32.mrb[103].mxu0  ;;  %v6253_v25 = vmul.f32 -1.442695, %v5387_v58 }
0x756c   :  { %7195 = vpow2.f32 %v6253_v25 }
0x7574   :  { %v7194_v61 = vpop.eup %7193 }
0x7575   :  { %5397 = vrot.lane.b32.xlu1 %v7194_v61, %s7479_s5 }
0x7576   :  { %v7196_v2 = vpop.eup %7195 }
0x7577   :  { %v5391_v12 = vadd.f32 1.0, %v7196_v2 }
0x7579   :  { %7197 = vrcp.f32 %v5391_v12 }
0x7583   :  { %v7198_v10 = vpop.eup %7197 }
0x7584   :  { %v5395_v6 = vmul.f32 %v7198_v10, %v5321_v1 }
0x75e7   :  { %v5398_v43 = vpop.permute.xlu1 %5397 }
0x75e8   :  { %v5400_v16 = vmul.f32 %v7198_v10, %v5398_v43 }
0x75ea   :  { %5402 = vrot.lane.b32.xlu0 %v5400_v16, %s7480_s21  ;;  %v5168_v16 = vcombine.high %v5160_v42, %v5160_v42 }
0x765c   :  { %v5403_v62 = vpop.permute.xlu0 %5402 }
0x765d   :  { %v5405_v52 = vadd.f32 %v5403_v62, %v5395_v6 }
0x765f   :  { %7199 = vtanh.f32 %v5405_v52 }
0x7669   :  { %v7200_v17 = vpop.eup %7199 }
0x766a   :  { %5408 = vrot.lane.b32.xlu1 %v7200_v17, %s7481_s17 }
0x76dc   :  { %v5409_v18 = vpop.permute.xlu1 %5408 }
0x76dd   :  { %v8601_v20 = vmul.f32 %v7198_v10, %v5409_v18 }
0x76df   :  { %v5424_v31 = vpack.c.bf16 %v8601_v20, %v8601_v20 }
0x76e1   :  { %5426 = vrot.lane.b32.xlu0 %v5424_v31, %s7482_s25 }
0x7753   :  { %v5427_v11 = vpop.permute.xlu0 %5426 }
0x7754   :  { %6734 = vmatmul.mubr.msk.bf16.vlgmr.msra.gmra.mrb[104].mxu1 %vm927_vm7, %v5427_v11 }
0x7755   :  { %6744 = vmatpush3.bf16.msra.mxu1 %v8534_v19  ;;  %6745 = vmatprep.mubr.msk.bf16.mxu1 %vm7476_vm4, %v7475_v24 }
0x7756   :  { %6755 = vmatprep.subr.bf16.mxu1 %v7475_v24 }
0x7827   :  { %v5465_v23 = vpop.f32.mrb[104].mxu1 }
0x7828   :  { %v5471_v38 = vadd.f32 %v5465_v23, %v5152_v63  ;;  %v6735_v26 = vpop.f32.mrb[105].mxu1 }
0x7829   :  { %v5468_v30 = vpop.f32.mrb[106].mxu1 }
0x782a   :  { %7201 = vtanh.f32 %v5471_v38  ;;  %v6736_v28 = vpop.f32.mrb[107].mxu1  ;;  %v6255_v32 = vmul.f32 -1.442695, %v5471_v38 }
0x782c   :  { %7203 = vpow2.f32 %v6255_v32 }
0x7834   :  { %v7202_v21 = vpop.eup %7201 }
0x7835   :  { %5481 = vrot.lane.b32.xlu1 %v7202_v21, %s7479_s5 }
0x7836   :  { %v7204_v33 = vpop.eup %7203 }
0x7837   :  { %v5475_v45 = vadd.f32 1.0, %v7204_v33 }
0x7839   :  { %7205 = vrcp.f32 %v5475_v45 }
0x7843   :  { %v7206_v15 = vpop.eup %7205 }
0x7844   :  { %v5479_v35 = vmul.f32 %v7206_v15, %v5405_v52 }
0x78a7   :  { %v5482_v34 = vpop.permute.xlu1 %5481 }
0x78a8   :  { %v5484_v48 = vmul.f32 %v7206_v15, %v5482_v34 }
0x78aa   :  { %5486 = vrot.lane.b32.xlu0 %v5484_v48, %s7480_s21  ;;  %v5153_v48 = vcombine.high %v8565_v9, %v8565_v9 }
0x791c   :  { %v5487_v29 = vpop.permute.xlu0 %5486 }
0x791d   :  { %v5489_v22 = vadd.f32 %v5487_v29, %v5479_v35  ;;  %v5167_v35 = vrot.slane %v5153_v48, %v7745_v56 }
0x791f   :  { %7207 = vtanh.f32 %v5489_v22 }
0x7929   :  { %v7208_v37 = vpop.eup %7207 }
0x792a   :  { %5492 = vrot.lane.b32.xlu1 %v7208_v37, %s7481_s17 }
0x799c   :  { %v5493_v55 = vpop.permute.xlu1 %5492 }
0x799d   :  { %v8614_v39 = vmul.f32 %v7206_v15, %v5493_v55 }
0x799f   :  { %v5508_v40 = vpack.c.bf16 %v8614_v39, %v8614_v39 }
0x79a1   :  { %5510 = vrot.lane.b32.xlu0 %v5508_v40, %s7482_s25 }
0x7a13   :  { %v5511_v41 = vpop.permute.xlu0 %5510 }
0x7a14   :  { %6740 = vmatmul.mubr.msk.bf16.vlgmr.msra.gmra.mrb[104].mxu0 %vm927_vm7, %v5511_v41 }
0x7a15   :  { %6750 = vmatpush3.bf16.msra.mxu0 %v8534_v19  ;;  %6751 = vmatprep.mubr.msk.bf16.mxu0 %vm7476_vm4, %v7475_v24 }
0x7a16   :  { %6761 = vmatprep.subr.bf16.mxu0 %v7475_v24 }
0x7ae7   :  { %v5549_v49 = vpop.f32.mrb[104].mxu0 }
0x7ae8   :  { %v5555_v14 = vadd.f32 %v5549_v49, %v5160_v42  ;;  %v6741_v1 = vpop.f32.mrb[105].mxu0 }
0x7ae9   :  { %v5552_v50 = vpop.f32.mrb[106].mxu0 }
0x7aea   :  { %7209 = vtanh.f32 %v5555_v14  ;;  %v6742_v54 = vpop.f32.mrb[107].mxu0  ;;  %v6257_v46 = vmul.f32 -1.442695, %v5555_v14 }
0x7aec   :  { %7211 = vpow2.f32 %v6257_v46 }
0x7af4   :  { %v7210_v44 = vpop.eup %7209 }
0x7af5   :  { %5565 = vrot.lane.b32.xlu1 %v7210_v44, %s7479_s5 }
0x7af6   :  { %v7212_v36 = vpop.eup %7211 }
0x7af7   :  { %v5559_v53 = vadd.f32 1.0, %v7212_v36 }
0x7af9   :  { %7213 = vrcp.f32 %v5559_v53 }
0x7b03   :  { %v7214_v57 = vpop.eup %7213 }
0x7b04   :  { %v5563_v60 = vmul.f32 %v7214_v57, %v5489_v22 }
0x7b67   :  { %v5566_v58 = vpop.permute.xlu1 %5565 }
0x7b68   :  { %v5568_v59 = vmul.f32 %v7214_v57, %v5566_v58 }
0x7b6a   :  { %5570 = vrot.lane.b32.xlu0 %v5568_v59, %s7480_s21 }
0x7bdc   :  { %v5571_v47 = vpop.permute.xlu0 %5570 }
0x7bdd   :  { %v5573_v61 = vadd.f32 %v5571_v47, %v5563_v60  ;;  %v5169_v60 = vcombine.high %v5167_v35, %v5167_v35 }
0x7bdf   :  { %7215 = vtanh.f32 %v5573_v61 }
0x7be9   :  { %v7216_v25 = vpop.eup %7215 }
0x7bea   :  { %5576 = vrot.lane.b32.xlu1 %v7216_v25, %s7481_s17 }
0x7c5c   :  { %v5577_v2 = vpop.permute.xlu1 %5576 }
0x7c5d   :  { %v8629_v12 = vmul.f32 %v7214_v57, %v5577_v2 }
0x7c5f   :  { %v5592_v10 = vpack.c.bf16 %v8629_v12, %v8629_v12 }
0x7c61   :  { %5594 = vrot.lane.b32.xlu0 %v5592_v10, %s7482_s25 }
0x7cd3   :  { %v5595_v43 = vpop.permute.xlu0 %5594 }
0x7cd4   :  { %6746 = vmatmul.mubr.msk.bf16.vlgmr.msra.gmra.mrb[108].mxu1 %vm927_vm7, %v5595_v43 }
0x7cd5   :  { %6756 = vmatpush3.bf16.msra.mxu1 %v8534_v19  ;;  %6757 = vmatprep.mubr.msk.bf16.mxu1 %vm7476_vm4, %v7475_v24 }
0x7da7   :  { %v5633_v6 = vpop.f32.mrb[108].mxu1 }
0x7da8   :  { %v5639_v62 = vadd.f32 %v5633_v6, %v5168_v16  ;;  %v6747_v52 = vpop.f32.mrb[109].mxu1 }
0x7da9   :  { %v5636_v17 = vpop.f32.mrb[110].mxu1 }
0x7daa   :  { %7217 = vtanh.f32 %v5639_v62  ;;  %v6748_v18 = vpop.f32.mrb[111].mxu1  ;;  %v6259_v11 = vmul.f32 -1.442695, %v5639_v62 }
0x7dac   :  { %7219 = vpow2.f32 %v6259_v11  ;;  %v5419_v11 = vrot.slane %v8601_v20, %v7745_v56 }
0x7db4   :  { %v7218_v31 = vpop.eup %7217 }
0x7db5   :  { %5649 = vrot.lane.b32.xlu1 %v7218_v31, %s7479_s5  ;;  %v5251_v31 = vrot.slane %v8572_v27, %v7745_v56 }
0x7db6   :  { %v7220_v63 = vpop.eup %7219 }
0x7db7   :  { %v5643_v23 = vadd.f32 1.0, %v7220_v63  ;;  %v5587_v63 = vrot.slane %v8629_v12, %v7745_v56 }
0x7db9   :  { %7221 = vrcp.f32 %v5643_v23 }
0x7dc3   :  { %v7222_v38 = vpop.eup %7221 }
0x7dc4   :  { %v5647_v30 = vmul.f32 %v7222_v38, %v5573_v61 }
0x7e27   :  { %v5650_v19 = vpop.permute.xlu1 %5649 }
0x7e28   :  { %v5652_v26 = vmul.f32 %v7222_v38, %v5650_v19 }
0x7e2a   :  { %5654 = vrot.lane.b32.xlu0 %v5652_v26, %s7480_s21 }
0x7e9c   :  { %v5655_v28 = vpop.permute.xlu0 %5654 }
0x7e9d   :  { %v5657_v21 = vadd.f32 %v5655_v28, %v5647_v30  ;;  %v5335_v28 = vrot.slane %v8585_v51, %v7745_v56 }
0x7e9f   :  { %7223 = vtanh.f32 %v5657_v21 }
0x7ea9   :  { %v7224_v32 = vpop.eup %7223 }
0x7eaa   :  { %5660 = vrot.lane.b32.xlu1 %v7224_v32, %s7481_s17  ;;  %v5503_v32 = vrot.slane %v8614_v39, %v7745_v56 }
0x7f1c   :  { %v5661_v33 = vpop.permute.xlu1 %5660 }
0x7f1d   :  { %v8641_v45 = vmul.f32 %v7222_v38, %v5661_v33 }
0x7f1f   :  { %v5676_v15 = vpack.c.bf16 %v8641_v45, %v8641_v45  ;;  %v5671_v33 = vrot.slane %v8641_v45, %v7745_v56 }
0x7f21   :  { %5678 = vrot.lane.b32.xlu0 %v5676_v15, %s7482_s25 }
0x7f93   :  { %v5679_v34 = vpop.permute.xlu0 %5678 }
0x7f94   :  { %6752 = vmatmul.mubr.msk.bf16.vlgmr.msra.gmra.mrb[108].mxu0 %vm927_vm7, %v5679_v34 }
0x7f95   :  { %6763 = vmatprep.mubr.msk.bf16.mxu0 %vm7476_vm4, %v7475_v24 }
0x8067   :  { %v5717_v29 = vpop.f32.mrb[108].mxu0 }
0x8068   :  { %v5723_v22 = vadd.f32 %v5717_v29, %v5167_v35  ;;  %v6753_v37 = vpop.f32.mrb[109].mxu0 }
0x8069   :  { %v5720_v55 = vpop.f32.mrb[110].mxu0 }
0x806a   :  { %7225 = vtanh.f32 %v5723_v22  ;;  %v6754_v40 = vpop.f32.mrb[111].mxu0  ;;  %v6261_v42 = vmul.f32 -1.442695, %v5723_v22 }
0x806c   :  { %7227 = vpow2.f32 %v6261_v42 }
0x8074   :  { %v7226_v41 = vpop.eup %7225 }
0x8075   :  { %5733 = vrot.lane.b32.xlu1 %v7226_v41, %s7479_s5 }
0x8076   :  { %v7228_v49 = vpop.eup %7227 }
0x8077   :  { %v5727_v14 = vadd.f32 1.0, %v7228_v49 }
0x8079   :  { %7229 = vrcp.f32 %v5727_v14 }
0x8083   :  { %v7230_v1 = vpop.eup %7229 }
0x8084   :  { %v5731_v9 = vmul.f32 %v7230_v1, %v5657_v21 }
0x80e7   :  { %v5734_v50 = vpop.permute.xlu1 %5733 }
0x80e8   :  { %v5736_v54 = vmul.f32 %v7230_v1, %v5734_v50 }
0x80ea   :  { %5738 = vrot.lane.b32.xlu0 %v5736_v54, %s7480_s21  ;;  %v640_v54 = vand.u32 127, %v634_v0 }
0x80ec   :  { %vm641_vm9 = vcmp.eq.s32.totalorder %v7673_v3, %v640_v54 }
0x815c   :  { %v5739_v44 = vpop.permute.xlu0 %5738 }
0x815d   :  { %v5741_v46 = vadd.f32 %v5739_v44, %v5731_v9 }
0x815f   :  { %7231 = vtanh.f32 %v5741_v46 }
0x8169   :  { %v7232_v36 = vpop.eup %7231 }
0x816a   :  { %5744 = vrot.lane.b32.xlu1 %v7232_v36, %s7481_s17  ;;  %v8699_v36 = vsel %vm641_vm9, 1.0, %v7475_v24 }
0x81dc   :  { %v5745_v53 = vpop.permute.xlu1 %5744 }
0x81dd   :  { %v5747_v57 = vmul.f32 %v7230_v1, %v5745_v53  ;;  %v637_v53 = vadd.s32 16, %v7673_v3 }
0x81df   :  { %v5760_v58 = vpack.c.bf16 %v5747_v57, %v5747_v57  ;;  %v5755_v23 = vrot.slane %v5747_v57, %v7745_v56  ;;  %vm643_vm11 = vcmp.eq.s32.totalorder %v637_v53, %v640_v54 }
0x81e1   :  { %5762 = vrot.lane.b32.xlu0 %v5760_v58, %s7482_s25 }
0x8253   :  { %v5763_v59 = vpop.permute.xlu0 %5762 }
0x8254   :  { %6758 = vmatmul.mubr.msk.bf16.vlgmr.msra.gmra.mrb[112].mxu1 %vm927_vm7, %v5763_v59 }
0x8327   :  { %v5801_v47 = vpop.f32.mrb[112].mxu1 }
0x8328   :  { %v5807_v61 = vadd.f32 %v5801_v47, %v5169_v60  ;;  %v6759_v25 = vpop.f32.mrb[113].mxu1  ;;  %v638_v60 = vadd.s32 24, %v7673_v3 }
0x8329   :  { %v5804_v2 = vpop.f32.mrb[114].mxu1  ;;  %v8715_v25 = vsel %vm643_vm11, 1.0, %v7475_v24 }
0x832a   :  { %7233 = vtanh.f32 %v5807_v61  ;;  %v6760_v10 = vpop.f32.mrb[115].mxu1  ;;  %v6263_v16 = vmul.f32 -1.442695, %v5807_v61  ;;  %vm644_vm14 = vcmp.eq.s32.totalorder %v638_v60, %v640_v54 }
0x832c   :  { %7235 = vpow2.f32 %v6263_v16  ;;  %v8724_v16 = vsel %vm644_vm14, 1.0, %v7475_v24 }
0x8334   :  { %v7234_v43 = vpop.eup %7233 }
0x8335   :  { %5817 = vrot.lane.b32.xlu1 %v7234_v43, %s7479_s5 }
0x8336   :  { %v7236_v6 = vpop.eup %7235 }
0x8337   :  { %v5811_v62 = vadd.f32 1.0, %v7236_v6 }
0x8339   :  { %7237 = vrcp.f32 %v5811_v62 }
0x8343   :  { %v8658_v52 = vpop.eup %7237 }
0x8344   :  { %v5815_v27 = vmul.f32 %v8658_v52, %v5741_v46 }
0x83a7   :  { %v5818_v17 = vpop.permute.xlu1 %5817 }
0x83a8   :  { %v5820_v18 = vmul.f32 %v8658_v52, %v5818_v17 }
0x83aa   :  { %5822 = vrot.lane.b32.xlu0 %v5820_v18, %s7480_s21 }
0x83ae   :  { %5252 = vrot.lane.b32.xlu0 %v5251_v31, %s7482_s25 }
0x83b2   :  { %5420 = vrot.lane.b32.xlu0 %v5419_v11, %s7482_s25 }
0x83b6   :  { %5588 = vrot.lane.b32.xlu0 %v5587_v63, %s7482_s25 }
0x83ba   :  { %5756 = vrot.lane.b32.xlu0 %v5755_v23, %s7482_s25 }
0x83d8   :  { %537 = vxpose.xlu0.b32.start [1/4] (short) (narrow) %v7785_v5, 32 }
0x83dc   :  { %538 = vxpose.xlu0.b32.cont [2/4] (short) (narrow) %v7783_v4, 32 }
0x83e0   :  { %539 = vxpose.xlu0.b32.cont [3/4] (short) (narrow) %v7794_v8, 32 }
0x83e4   :  { %540 = vxpose.xlu0.b32.end [4/4] (short) (narrow) %v7792_v7, 32 }
0x841c   :  { %v5823_v20 = vpop.permute.xlu0 %5822 }
0x841d   :  { %v5825_v38 = vadd.f32 %v5823_v20, %v5815_v27  ;;  %v5852_v27 = vld [vmem:[%s8871_s22] sm:$0xff]  ;;  %v5853_v20 = vld [vmem:[%s8871_s22 + $0x8] sm:$0xff] }
0x841f   :  { %7239 = vtanh.f32 %v5825_v38  ;;  %v5862_v38 = vpack.c.bf16 %v5853_v20, %v5852_v27 }
0x8420   :  { %v5253_v12 = vpop.permute.xlu0 %5252 }
0x8421   :  { %5255 = vst.msk [vmem:[#allocation2] sm:$0x3] %vm1007_vm8, %v5253_v12  ;;  %6762 = vmatpush3.bf16.msra.mxu0 %v5862_v38 }
0x8424   :  { %v5421_v19 = vpop.permute.xlu0 %5420 }
0x8425   :  { %5423 = vst.msk [vmem:[#allocation2 + $0x4] sm:$0x3] %vm1007_vm8, %v5421_v19 }
0x8428   :  { %v5589_v26 = vpop.permute.xlu0 %5588 }
0x8429   :  { %v7240_v30 = vpop.eup %7239  ;;  %5591 = vst.msk [vmem:[#allocation2 + $0x8] sm:$0x3] %vm1007_vm8, %v5589_v26 }
0x842a   :  { %5828 = vrot.lane.b32.xlu1 %v7240_v30, %s7481_s17 }
0x842c   :  { %v5757_v21 = vpop.permute.xlu0 %5756 }
0x842d   :  { %5759 = vst.msk [vmem:[#allocation2 + $0xc] sm:$0x3] %vm1007_vm8, %v5757_v21 }
0x842e   :  { %5336 = vrot.lane.b32.xlu1 %v5335_v28, %s7482_s25 }
0x8432   :  { %5504 = vrot.lane.b32.xlu1 %v5503_v32, %s7482_s25 }
0x8436   :  { %5672 = vrot.lane.b32.xlu1 %v5671_v33, %s7482_s25 }
0x8458   :  { %v553_v15 = vpop.trf.xlu0 }
0x8459   :  { %v569_v34 = vsub.f32 %v7785_v5, %v553_v15 }
0x845b   :  { %v6129_v48 = vmul.f32 -3.0, %v569_v34 }
0x845c   :  { %v554_v51 = vpop.trf.xlu0 }
0x845d   :  { %v581_v35 = vmul.f32 1.442695, %v6129_v48  ;;  %v570_v29 = vsub.f32 %v7783_v4, %v554_v51  ;;  %v5846_v51 = vld [vmem:[#allocation2 + $0x4] sm:$0x3] }
0x845f   :  { %7241 = vpow2.f32 %v581_v35  ;;  %v6130_v22 = vmul.f32 -3.0, %v570_v29  ;;  %v5844_v29 = vld [vmem:[#allocation2] sm:$0x3] }
0x8460   :  { %v555_v37 = vpop.trf.xlu0 }
0x8461   :  { %v583_v55 = vmul.f32 1.442695, %v6130_v22  ;;  %v571_v39 = vsub.f32 %v7794_v8, %v555_v37 }
0x8463   :  { %7243 = vpow2.f32 %v583_v55  ;;  %v6131_v40 = vmul.f32 -3.0, %v571_v39  ;;  %v5848_v55 = vld [vmem:[#allocation2 + $0x8] sm:$0x3] }
0x8464   :  { %v556_v41 = vpop.trf.xlu0 }
0x8465   :  { %v585_v45 = vmul.f32 1.442695, %v6131_v40  ;;  %v572_v42 = vsub.f32 %v7792_v7, %v556_v41  ;;  %v5850_v41 = vld [vmem:[#allocation2 + $0xc] sm:$0x3] }
0x8467   :  { %7245 = vpow2.f32 %v585_v45  ;;  %v6132_v49 = vmul.f32 -3.0, %v572_v42 }
0x8469   :  { %v7242_v5 = vpop.eup %7241  ;;  %v587_v14 = vmul.f32 1.442695, %v6132_v49 }
0x846a   :  { %v589_v1 = vadd.f32 1.0, %v7242_v5 }
0x846b   :  { %7247 = vpow2.f32 %v587_v14 }
0x846c   :  { %7249 = vrcp.f32 %v589_v1 }
0x846d   :  { %v7244_v4 = vpop.eup %7243 }
0x846e   :  { %v590_v50 = vadd.f32 1.0, %v7244_v4 }
0x8470   :  { %7251 = vrcp.f32 %v590_v50 }
0x8471   :  { %v7246_v9 = vpop.eup %7245 }
0x8472   :  { %v591_v8 = vadd.f32 1.0, %v7246_v9 }
0x8474   :  { %7253 = vrcp.f32 %v591_v8 }
0x8475   :  { %v7248_v44 = vpop.eup %7247 }
0x8476   :  { %v7250_v46 = vpop.eup %7249  ;;  %v592_v7 = vadd.f32 1.0, %v7248_v44 }
0x8477   :  { %vm601_vm10 = vcmp.lt.f32.partialorder %v7250_v46, 0.79 }
0x8478   :  { %7255 = vrcp.f32 %v592_v7  ;;  %v8702_v57 = vsel %vm601_vm10, 0.0, %v7250_v46 }
0x8479   :  { %v653_v0 = vadd.f32 %v8699_v36, %v8702_v57  ;;  %610 = vst.msk [vmem:[#allocation12] sm:$0xff] %vm609_vm5, %v8702_v57 }
0x847a   :  { %v7252_v58 = vpop.eup %7251 }
0x847b   :  { %v657_v59 = vsel %vm609_vm5, %v653_v0, 0.0  ;;  %vm602_vm12 = vcmp.lt.f32.partialorder %v7252_v58, 0.79 }
0x847c   :  { %658 = vadd.xlane.f32.xlu0 %v657_v59  ;;  %v8710_v47 = vsel %vm602_vm12, 0.0, %v7252_v58 }
0x847d   :  { %611 = vst.msk [vmem:[#allocation12 + $0x8] sm:$0xff] %vm609_vm5, %v8710_v47  ;;  %v615_v53 = vsel %vm609_vm5, %v8710_v47, 0.0 }
0x847e   :  { %v7254_v61 = vpop.eup %7253 }
0x847f   :  { %vm603_vm13 = vcmp.lt.f32.partialorder %v7254_v61, 0.79 }
0x8480   :  { %v8717_v2 = vsel %vm603_vm13, 0.0, %v7254_v61 }
0x8481   :  { %v655_v10 = vadd.f32 %v8715_v25, %v8717_v2  ;;  %612 = vst.msk [vmem:[#allocation12 + $0x10] sm:$0xff] %vm609_vm5, %v8717_v2  ;;  %v617_v58 = vsel %vm609_vm5, %v8717_v2, 0.0 }
0x8482   :  { %v7256_v43 = vpop.eup %7255 }
0x8483   :  { %v663_v6 = vsel %vm609_vm5, %v655_v10, 0.0  ;;  %vm604_vm15 = vcmp.lt.f32.partialorder %v7256_v43, 0.79 }
0x8484   :  { %664 = vadd.xlane.f32.xlu0 %v663_v6  ;;  %v8727_v62 = vsel %vm604_vm15, 0.0, %v7256_v43 }
0x8485   :  { %v656_v17 = vadd.f32 %v8724_v16, %v8727_v62  ;;  %613 = vst.msk [vmem:[#allocation12 + $0x18] sm:$0xff] %vm609_vm5, %v8727_v62  ;;  %v619_v60 = vsel %vm609_vm5, %v8727_v62, 0.0 }
0x8487   :  { %v666_v18 = vsel %vm609_vm5, %v656_v17, 0.0 }
0x8488   :  { %667 = vadd.xlane.f32.xlu0 %v666_v18 }
0x849c   :  { %v5829_v31 = vpop.permute.xlu1 %5828 }
0x849d   :  { %v5831_v11 = vmul.f32 %v8658_v52, %v5829_v31  ;;  %v636_v52 = vadd.s32 8, %v7673_v3 }
0x849f   :  { %v5839_v63 = vrot.slane %v5831_v11, %v7745_v56  ;;  %vm642_vm0 = vcmp.eq.s32.totalorder %v636_v52, %v640_v54 }
0x84a0   :  { %v5337_v23 = vpop.permute.xlu1 %5336  ;;  %v6135_v26 = vsel %vm642_vm0, 1.0, %v7475_v24 }
0x84a1   :  { %5339 = vst.msk [vmem:[#allocation2 + $0x2] sm:$0x3] %vm1007_vm8, %v5337_v23  ;;  %5840 = vrot.lane.b32.xlu1 %v5839_v63, %s7482_s25  ;;  %v8749_v30 = vadd.f32 %v6135_v26, %v8710_v47 }
0x84a3   :  { %v660_v28 = vsel %vm609_vm5, %v8749_v30, 0.0 }
0x84a4   :  { %v5505_v12 = vpop.permute.xlu1 %5504 }
0x84a5   :  { %5507 = vst.msk [vmem:[#allocation2 + $0x6] sm:$0x3] %vm1007_vm8, %v5505_v12 }
0x84a8   :  { %v5673_v19 = vpop.permute.xlu1 %5672  ;;  %v5845_v24 = vld [vmem:[#allocation2 + $0x2] sm:$0x3] }
0x84a9   :  { %5675 = vst.msk [vmem:[#allocation2 + $0xa] sm:$0x3] %vm1007_vm8, %v5673_v19  ;;  %v6265_v37 = vpack.c.bf16 %v5845_v24, %v5844_v29 }
0x84ab   :  { %v5887_v5 = vrot.slane %v6265_v37, %v7687_v13 }
0x84ac   :  { %v5847_v15 = vld [vmem:[#allocation2 + $0x6] sm:$0x3] }
0x84ad   :  { %v6266_v35 = vpack.c.bf16 %v5847_v15, %v5846_v51 }
0x84af   :  { %v5894_v40 = vrot.slane %v6266_v35, %v7687_v13 }
0x84b0   :  { %v5849_v22 = vld [vmem:[#allocation2 + $0xa] sm:$0x3] }
0x84b1   :  { %v6267_v39 = vpack.c.bf16 %v5849_v22, %v5848_v55  ;;  %v5909_v50 = vcombine.low %v5887_v5, %v5894_v40 }
0x84b3   :  { %v5901_v1 = vrot.slane %v6267_v39, %v7687_v13  ;;  %v5917_v44 = vrot.slane %v5909_v50, %v7687_v13 }
0x84ca   :  { %681 = vxpose.xlu1.b32.start [1/4] (short) (narrow) %v8702_v57, 32 }
0x84ce   :  { %682 = vxpose.xlu1.b32.cont [2/4] (short) (narrow) %v8710_v47, 32 }
0x84d2   :  { %683 = vxpose.xlu1.b32.cont [3/4] (short) (narrow) %v8717_v2, 32 }
0x84d6   :  { %684 = vxpose.xlu1.b32.end [4/4] (short) (narrow) %v8727_v62, 32 }
0x84fd   :  { %661 = vadd.xlane.f32.xlu1 %v660_v28 }
0x8509   :  { %v659_v21 = vpop.xlane.xlu0 %658 }
0x850a   :  { %7257 = vrcp.f32 %v659_v21 }
0x8511   :  { %v665_v32 = vpop.xlane.xlu0 %664 }
0x8512   :  { %7259 = vrcp.f32 %v665_v32 }
0x8513   :  { %v5841_v33 = vpop.permute.xlu1 %5840 }
0x8514   :  { %v7258_v34 = vpop.eup %7257  ;;  %5843 = vst.msk [vmem:[#allocation2 + $0xe] sm:$0x3] %vm1007_vm8, %v5841_v33 }
0x8515   :  { %v670_v3 = vmul.f32 %v7258_v34, %v653_v0  ;;  %v668_v48 = vpop.xlane.xlu0 %667  ;;  %v614_v0 = vsel %vm609_vm5, %v8702_v57, 0.0 }
0x8516   :  { %7261 = vrcp.f32 %v668_v48  ;;  %v616_v59 = vadd.f32 %v615_v53, %v614_v0 }
0x8517   :  { %677 = vst.msk [vmem:[%s7645_s9] sm:$0xff] %vm609_vm5, %v670_v3 }
0x8518   :  { %v618_v61 = vadd.f32 %v617_v58, %v616_v59 }
0x851b   :  { %v5851_v45 = vld [vmem:[#allocation2 + $0xe] sm:$0x3] }
0x851c   :  { %v7260_v42 = vpop.eup %7259  ;;  %v6268_v49 = vpack.c.bf16 %v5851_v45, %v5850_v41 }
0x851d   :  { %v674_v14 = vmul.f32 %v7260_v42, %v655_v10 }
0x851e   :  { %v5908_v4 = vrot.slane %v6268_v49, %v7687_v13 }
0x851f   :  { %679 = vst.msk [vmem:[%s7645_s9 + $0x10] sm:$0xff] %vm609_vm5, %v674_v14 }
0x8520   :  { %v7262_v54 = vpop.eup %7261  ;;  %v5910_v9 = vcombine.low %v5901_v1, %v5908_v4 }
0x8521   :  { %v676_v8 = vmul.f32 %v7262_v54, %v656_v17 }
0x8522   :  { %v5924_v46 = vrot.slane %v5910_v9, %v7687_v13  ;;  %v620_v13 = vadd.f32 %v619_v60, %v618_v61 }
0x8523   :  { %680 = vst.msk [vmem:[%s7645_s9 + $0x18] sm:$0xff] %vm609_vm5, %v676_v8 }
0x8524   :  { %v5925_v7 = vcombine.low %v5917_v44, %v5924_v46  ;;  %v621_v10 = vrot.slane %v620_v13, 4 }
0x8526   :  { %6764 = vmatmul.mubr.msk.bf16.vlgmr.msra.gmra.mrb[112].mxu0 %vm927_vm7, %v5925_v7  ;;  %v622_v43 = vadd.f32 %v621_v10, %v620_v13 }
0x8528   :  { %v623_v6 = vrot.slane %v622_v43, 2 }
0x852a   :  { %v624_v31 = vadd.f32 %v623_v6, %v622_v43 }
0x852c   :  { %v625_v63 = vrot.slane %v624_v31, 1 }
0x852e   :  { %v626_v20 = vadd.f32 %v625_v63, %v624_v31 }
0x8530   :  { %v627_v19 = vsel %vm609_vm5, %v626_v20, 0.0 }
0x854a   :  { %v697_v17 = vpop.trf.xlu1 }
0x854b   :  { %v713_v18 = vadd.f32 %v8699_v36, %v697_v17 }
0x854d   :  { %v717_v47 = vsel %vm609_vm5, %v713_v18, 0.0 }
0x854e   :  { %718 = vadd.xlane.f32.xlu1 %v717_v47  ;;  %v698_v57 = vpop.trf.xlu1 }
0x854f   :  { %v714_v11 = vadd.f32 %v6135_v26, %v698_v57 }
0x8551   :  { %v720_v2 = vsel %vm609_vm5, %v714_v11, 0.0 }
0x8552   :  { %v699_v23 = vpop.trf.xlu1  ;;  %721 = vadd.xlane.f32.xlu0 %v720_v2 }
0x8553   :  { %v8779_v62 = vadd.f32 %v8715_v25, %v699_v23 }
0x8555   :  { %v723_v27 = vsel %vm609_vm5, %v8779_v62, 0.0 }
0x8556   :  { %724 = vadd.xlane.f32.xlu1 %v723_v27  ;;  %v700_v36 = vpop.trf.xlu1 }
0x8557   :  { %v8784_v38 = vadd.f32 %v8724_v16, %v700_v36 }
0x8559   :  { %v726_v12 = vsel %vm609_vm5, %v8784_v38, 0.0 }
0x855a   :  { %727 = vadd.xlane.f32.xlu0 %v726_v12  ;;  %628 = vadd.xlane.f32.xlu1 %v627_v19 }
0x855b   :  { %7394 = shalt.err (!%p7391_p2)
}
0x855c   :  { %s7395_s28 = scalar_lea.hbm %s7635_s27, 512 }
0x855d   :  { %p7396_p3 = scmp.ne.s32.totalorder %s7635_s27, %s7395_s28  ;;  %p7399_p4 = scmp.lt.u32.totalorder %s7395_s28, %s7635_s27 }
0x855f   :  { %p7401_p5 = pnand %p7399_p4, %p7396_p3 }
0x8561   :  { %7404 = shalt.err (!%p7401_p5)
}
0x8562   :  { %s7484_s1 = smov 128   ;;  %s7485_s0 = smov 8   ;;  %vm632_vm1 = vcmask 0   ;;  %v6264_v51 = vld [vmem:[#allocation3] ss:$0 sm:$0xff] }
0x8563   :  { %6046 = dma.vmem_to_hbm [thread:$0]  %s6041_s26, 512, %s7635_s27, [#allocation5], %s7484_s1, %s7484_s1, %s7485_s0  }
0x8564   :  { %s7486_s27 = smov [#allocation13]  }
0x8565   :  { %s6053_s13 = sshll.u32 %s7486_s27, 4  ;;  %s6054_s13 = int_to_ptr.vmem [resolvable:$true] %s6053_s13 }
0x8566   :  { %s7409_s2 = scalar_lea.vmem %s6054_s13, 32  ;;  %p7410_p7 = scmp.lt.s32.totalorder %s6054_s13, %s6054_s13 }
0x858a   :  { %v662_v25 = vpop.xlane.xlu1 %661 }
0x858b   :  { %7263 = vrcp.f32 %v662_v25 }
0x8595   :  { %v7264_v16 = vpop.eup %7263 }
0x8596   :  { %v672_v52 = vmul.f32 %v7264_v16, %v8749_v30 }
0x8598   :  { %678 = vst.msk [vmem:[%s7645_s9 + $0x8] sm:$0xff] %vm609_vm5, %v672_v52  ;;  %s7405_s9 = scalar_lea.vmem %s6054_s13, 16 }
0x8599   :  { %p7406_p6 = scmp.ne.s32.totalorder %s6054_s13, %s7405_s9  ;;  %p7411_p8 = scmp.lt.s32.totalorder %s7409_s2, %s7405_s9 }
0x859b   :  { %p7412_p9 = por %p7411_p8, %p7410_p7 }
0x859d   :  { %p7413_p10 = pnand %p7412_p9, %p7406_p6 }
0x85db   :  { %v719_v26 = vpop.xlane.xlu1 %718 }
0x85dc   :  { %7265 = vrcp.f32 %v719_v26 }
0x85df   :  { %v722_v28 = vpop.xlane.xlu0 %721 }
0x85e0   :  { %7267 = vrcp.f32 %v722_v28 }
0x85e3   :  { %v725_v21 = vpop.xlane.xlu1 %724 }
0x85e4   :  { %7269 = vrcp.f32 %v725_v21 }
0x85e6   :  { %v7266_v32 = vpop.eup %7265 }
0x85e7   :  { %v730_v33 = vmul.f32 %v7266_v32, %v713_v18  ;;  %v629_v15 = vpop.xlane.xlu1 %628  ;;  %v728_v34 = vpop.xlane.xlu0 %727 }
0x85e8   :  { %v6133_v3 = vadd.f32 -32.0, %v629_v15  ;;  %7271 = vrcp.f32 %v728_v34 }
0x85e9   :  { %737 = vst.msk [vmem:[%s7650_s20] sm:$0xff] %vm609_vm5, %v730_v33 }
0x85ea   :  { %v7268_v30 = vpop.eup %7267  ;;  %v631_v48 = vand.u32 2147483647, %v6133_v3 }
0x85eb   :  { %v732_v24 = vmul.f32 %v7268_v30, %v714_v11 }
0x85ec   :  { %633 = vst.msk [vmem:[#allocation13] sm:$0x1] %vm632_vm1, %v631_v48 }
0x85ed   :  { %738 = vst.msk [vmem:[%s7650_s20 + $0x8] sm:$0xff] %vm609_vm5, %v732_v24 }
0x85ee   :  { %7416 = shalt.err (!%p7413_p10)
}
0x85ef   :  { %s7417_s7 = scalar_lea.hbm %s7640_s6, 16 }
0x85f0   :  { %p7418_p11 = scmp.ne.s32.totalorder %s7640_s6, %s7417_s7  ;;  %p7421_p12 = scmp.lt.u32.totalorder %s7417_s7, %s7640_s6 }
0x85f2   :  { %p7423_p13 = pnand %p7421_p12, %p7418_p11 }
0x85f4   :  { %7426 = shalt.err (!%p7423_p13)
}
0x85f5   :  { %6056 = dma.vmem_to_hbm [thread:$0]  %s6054_s13, 16, %s7640_s6, [#allocation14]   ;;  %v7270_v35 = vpop.eup %7269  ;;  %v5926_v29 = vcombine.low %v6264_v51, %v6264_v51  ;;  %vm6024_vm2 = vcmask 254976  }
0x85f6   :  { %v734_v22 = vmul.f32 %v7270_v35, %v8779_v62  ;;  %v7272_v37 = vpop.eup %7271  ;;  %s8872_s10 = sld [smem:[#allocation33_spill]] }
0x85f7   :  { %v5933_v55 = vrot.slane %v5926_v29, %v7745_v56  ;;  %v736_v39 = vmul.f32 %v7272_v37, %v8784_v38 }
0x85f8   :  { %739 = vst.msk [vmem:[%s7650_s20 + $0x10] sm:$0xff] %vm609_vm5, %v734_v22 }
0x85f9   :  { %740 = vst.msk [vmem:[%s7650_s20 + $0x18] sm:$0xff] %vm609_vm5, %v736_v39  ;;  %v5934_v40 = vcombine.low %v5933_v55, %v5933_v55  ;;  %v5973_v41 = vpop.f32.mrb[112].mxu0 }
0x85fa   :  { %v6765_v42 = vpop.f32.mrb[113].mxu0 }
0x85fb   :  { %v5974_v45 = vadd.f32 %v5973_v41, %v5934_v40  ;;  %v5976_v49 = vpop.f32.mrb[114].mxu0 }
0x85fc   :  { %v5977_v1 = vadd.f32 %v5976_v49, %v5934_v40  ;;  %v6766_v4 = vpop.f32.mrb[115].mxu0 }
0x85fd   :  { %v5982_v5 = vcombine.high %v5974_v45, %v5974_v45  ;;  %v5989_v14 = vrot.slane %v5974_v45, %v7745_v56 }
0x85fe   :  { %v5999_v9 = vcombine.high %v5977_v1, %v5977_v1  ;;  %v6006_v8 = vrot.slane %v5977_v1, %v7745_v56 }
0x85ff   :  { %v5996_v50 = vrot.slane %v5982_v5, %v7745_v56  ;;  %v5997_v54 = vcombine.high %v5989_v14, %v5989_v14  ;;  %6025 = vst.msk [vmem:[%s8872_s10] sm:$0x3] %vm6024_vm2, %v5989_v14 }
0x8600   :  { %v6013_v46 = vrot.slane %v5999_v9, %v7745_v56  ;;  %v6014_v7 = vcombine.high %v6006_v8, %v6006_v8  ;;  %6029 = vst.msk [vmem:[%s8872_s10 + $0x8] sm:$0x3] %vm6024_vm2, %v6006_v8 }
0x8601   :  { %v5998_v44 = vcombine.high %v5996_v50, %v5996_v50  ;;  %6026 = vst.msk [vmem:[%s8872_s10 + $0x2] sm:$0x3] %vm6024_vm2, %v5997_v54  ;;  %6027 = vst.msk [vmem:[%s8872_s10 + $0x4] sm:$0x3] %vm6024_vm2, %v5996_v50 }
0x8602   :  { %v6015_v53 = vcombine.high %v6013_v46, %v6013_v46  ;;  %6030 = vst.msk [vmem:[%s8872_s10 + $0xa] sm:$0x3] %vm6024_vm2, %v6014_v7  ;;  %6031 = vst.msk [vmem:[%s8872_s10 + $0xc] sm:$0x3] %vm6024_vm2, %v6013_v46 }
0x8603   :  { %6028 = vst.msk [vmem:[%s8872_s10 + $0x6] sm:$0x3] %vm6024_vm2, %v5998_v44 }
0x8604   :  { %6032 = vst.msk [vmem:[%s8872_s10 + $0xe] sm:$0x3] %vm6024_vm2, %v6015_v53 }
0x8605   :  { %7433 = dma.done.wait [#allocation5], 512  }
0x8606   :  { %7434 = vsyncadd [#allocation5], 4294966784 }
0x8607   :  { %7435 = dma.done.wait [#allocation14], 16  }
0x8608   :  { %7436 = vsyncadd [#allocation14], 4294967280 }
0x8609   :  { %6073 = vsyncpa [#allocation4], 1 }
0x860a   :  { %6074 = vsyncpa [#allocation7], 1 }
0x860b   :  { %6075 = vsyncpa [#allocation10], 1 }
0x860c   :  { %6076 = vsyncpa [#allocation5], 1 }
0x860d   :  { %6077 = vsyncpa [#allocation14], 1 }

</bundles_post_ra>
